<compile_context>
chip_gen: v6e
topology: v6e:2x2x1
jax: 0.10.0
libtpu: 0.0.40
codegen_flags: <defaults>
</compile_context>

<pallas_src>
import math

import jax
import jax.numpy as jnp
from jax.experimental import pallas as pl
from jax.experimental.pallas import tpu as pltpu

# ---- module hyperparameters (small, VITS-flow-like: kernel_size=5, dilation_rate=1) ----
CHANNELS = 8          # coupling channels (must be even)
HIDDEN = 16           # hidden_channels of WN
KERNEL_SIZE = 5
DILATION_RATE = 1
N_WN_LAYERS = 4
N_FLOWS = 4
GIN_CHANNELS = 0      # g=None path

B = 2
T = 16

HALF = CHANNELS // 2
BT = B * T
KH = KERNEL_SIZE * HIDDEN

# Per-WN-layer tap offsets: dilation = dilation_rate**i, "same" padding = (K*d - d)//2
OFFSETS = []
for _i in range(N_WN_LAYERS):
    _d = DILATION_RATE ** _i
    _pad = (KERNEL_SIZE * _d - _d) // 2
    OFFSETS.append([_k * _d - _pad for _k in range(KERNEL_SIZE)])


def coupling_block_kernel(x0_ref, x1_ref, mask_ref,
                          pre_w_ref, pre_b_ref,
                          gate_w_ref, gate_b_ref,
                          rs_w_ref, rs_b_ref,
                          post_w_ref, post_b_ref,
                          o_ref):
    # x0/x1: [BT, HALF] f32   mask: [BT, 1] f32
    # pre_w:  [F, HALF, H]     bf16 (Flip folded in)     pre_b:  [F, 1, H]    f32
    # gate_w: [F, L, K*H, 2H]  bf16 (taps+gates fused)   gate_b: [F, L, 1, 2H] f32
    # rs_w:   [F, L, H, 2H]    bf16 (res|skip fused)     rs_b:   [F, L, 1, 2H] f32
    # post_w: [F, H, HALF]     bf16 (Flip folded in)     post_b: [F, 1, HALF]  f32
    u = x0_ref[...]
    v = x1_ref[...]
    mask = mask_ref[...]

    # hoisted lane-broadcasts of the [BT, 1] mask (JAX does not CSE broadcast_in_dim)
    mask_h = jnp.broadcast_to(mask, (BT, HIDDEN))
    mask_half = jnp.broadcast_to(mask, (BT, HALF))

    # "same"-padding conv edge masks, computed in-kernel from an iota over the row index.
    # They zero both the conv padding taps and any cross-batch bleed introduced by roll.
    row = jax.lax.broadcasted_iota(jnp.int32, (BT, HIDDEN), 0)
    edge_cache = {}

    def edge_mask(off):
        if off not in edge_cache:
            lo, hi = max(0, -off), T - max(0, off)
            valid = None
            for b in range(B):
                w = (row >= b * T + lo) & (row < b * T + hi)
                valid = w if valid is None else (valid | w)
            edge_cache[off] = valid.astype(jnp.float32)
        return edge_cache[off]

    tapmask = {}
    for i in range(N_WN_LAYERS):
        key = tuple(OFFSETS[i])
        if key not in tapmask:
            tapmask[key] = jnp.concatenate([edge_mask(o) for o in key], axis=-1)  # [BT, K*H]

    for f in range(N_FLOWS):
        # ---------------- ResidualCouplingLayer (mean_only=True, g=None) ----------------
        # pre: 1x1 conv half -> hidden, masked (Flip of the previous flow folded into rows)
        h = (jnp.dot(u.astype(jnp.bfloat16), pre_w_ref[f],
                     preferred_element_type=jnp.float32) + pre_b_ref[f]) * mask_h

        # WN (WaveNet) core
        skip = jnp.zeros((BT, HIDDEN), jnp.float32)
        for i in range(N_WN_LAYERS):
            offs = OFFSETS[i]
            # dilated conv over time: gather the K shifted copies (XLU roll), mask edges,
            # then ONE fused [BT, K*H] @ [K*H, 2H] matmul covering both gate halves.
            taps = [h if off == 0 else pltpu.roll(h, shift=(-off) % BT, axis=0)
                    for off in offs]
            hs_cat = jnp.concatenate(taps, axis=-1) * tapmask[tuple(offs)]
            gate = (jnp.dot(hs_cat.astype(jnp.bfloat16), gate_w_ref[f, i],
                            preferred_element_type=jnp.float32) + gate_b_ref[f, i])
            # fused_add_tanh_sigmoid_multiply with g = 0
            acts = jnp.tanh(gate[:, :HIDDEN]) * jax.nn.sigmoid(gate[:, HIDDEN:])

            # fused res/skip 1x1 conv: [BT, H] @ [H, 2H] -> (res | skip)
            rs = (jnp.dot(acts.astype(jnp.bfloat16), rs_w_ref[f, i],
                          preferred_element_type=jnp.float32) + rs_b_ref[f, i])
            if i < N_WN_LAYERS - 1:            # last layer has no residual branch
                h = (h + rs[:, :HIDDEN]) * mask_h
            skip = skip + rs[:, HIDDEN:]
        wn_out = skip * mask_h

        # post: 1x1 conv hidden -> half, masked; mean_only => logs = 0
        # (the Flip following this flow is folded into the post columns)
        m = (jnp.dot(wn_out.astype(jnp.bfloat16), post_w_ref[f],
                     preferred_element_type=jnp.float32) + post_b_ref[f]) * mask_half

        # coupling update + Flip.  The channel reversal lives in the weights, so the
        # flip reduces to swapping the carried halves — no matmul.
        u, v = m + v * mask_half, u

    # single full-block store ([BT, C]; at real VITS sizes C >= 128 so this is lane-dense)
    o_ref[...] = jnp.concatenate([u, v], axis=-1)


def init_params(key):
    """Deterministic synthetic effective weights (weight_norm folded), natural layout."""
    F, L, K, H, half = N_FLOWS, N_WN_LAYERS, KERNEL_SIZE, HIDDEN, HALF
    ks = jax.random.split(key, 12)

    def w(k, shape, fan_in, scale=1.0):
        return jax.random.normal(k, shape, jnp.float32) * (scale / math.sqrt(fan_in))

    pre_w = w(ks[0], (F, half, H), half)            # pre 1x1: half -> hidden
    pre_b = w(ks[1], (F, 1, H), half)
    in_wt = w(ks[2], (F, L, K, H, H), H * K)        # in_layers, tanh half (per tap)
    in_ws = w(ks[3], (F, L, K, H, H), H * K)        # in_layers, sigmoid half (per tap)
    in_bt = w(ks[4], (F, L, 1, H), H * K)
    in_bs = w(ks[5], (F, L, 1, H), H * K)
    rsr_w = w(ks[6], (F, L - 1, H, H), H)           # res branch (absent in last layer)
    rsr_b = w(ks[7], (F, L - 1, 1, H), H)
    rss_w = w(ks[8], (F, L, H, H), H)               # skip branch
    rss_b = w(ks[9], (F, L, 1, H), H)
    # NOTE: real VITS zero-inits `post`; small random weights here exercise the full path.
    post_w = w(ks[10], (F, H, half), H, scale=0.1)  # post 1x1: hidden -> half
    post_b = w(ks[11], (F, 1, half), H, scale=0.1)
    return (pre_w, pre_b, in_wt, in_ws, in_bt, in_bs,
            rsr_w, rsr_b, rss_w, rss_b, post_w, post_b)


def pack_params(params):
    """Host-side repack: fuse taps/gates and res/skip, fold the Flips, cast to bf16."""
    (pre_w, pre_b, in_wt, in_ws, in_bt, in_bs,
     rsr_w, rsr_b, rss_w, rss_b, post_w, post_b) = params
    F, L, K, H = N_FLOWS, N_WN_LAYERS, KERNEL_SIZE, HIDDEN

    # (1) fuse the K per-tap weights and the tanh/sigmoid halves into one [K*H, 2H]
    #     matmul operand per (flow, layer); rows are tap-major (matching hs_cat).
    gate_w = jnp.concatenate([in_wt, in_ws], axis=-1).reshape(F, L, K * H, 2 * H)
    gate_b = jnp.concatenate([in_bt, in_bs], axis=-1)                 # [F, L, 1, 2H]

    # (2) fuse res & skip branches into one [H, 2H] matmul (last layer: res half = 0).
    rsr_w_full = jnp.concatenate([rsr_w, jnp.zeros((F, 1, H, H), jnp.float32)], axis=1)
    rsr_b_full = jnp.concatenate([rsr_b, jnp.zeros((F, 1, 1, H), jnp.float32)], axis=1)
    rs_w = jnp.concatenate([rsr_w_full, rss_w], axis=-1)              # [F, L, H, 2H]
    rs_b = jnp.concatenate([rsr_b_full, rss_b], axis=-1)              # [F, L, 1, 2H]

    # (3) fold the Flip layers into the adjacent 1x1 convs.  After flow f the carried
    #     halves equal the true (x0, x1) with channels reversed iff f is odd, so:
    #     reverse the input rows of pre_w and the output columns of post_w/post_b for
    #     odd f; the in-kernel flow update is then just (u, v) <- (m + v*mask, u).
    pre_wf = jnp.stack([jnp.flip(pre_w[f], axis=0) if f % 2 else pre_w[f]
                        for f in range(F)])
    post_wf = jnp.stack([jnp.flip(post_w[f], axis=1) if f % 2 else post_w[f]
                         for f in range(F)])
    post_bf = jnp.stack([jnp.flip(post_b[f], axis=1) if f % 2 else post_b[f]
                         for f in range(F)])

    # (4) bf16 matmul operands (f32 accumulation happens in-kernel); biases stay f32.
    bf16 = lambda a: a.astype(jnp.bfloat16)
    return (bf16(pre_wf), pre_b, bf16(gate_w), gate_b,
            bf16(rs_w), rs_b, bf16(post_wf), post_bf)


def residual_coupling_block(packed_params, x, x_mask):
    """x: [B, channels, T] (NCT), x_mask: [B, 1, T]. Returns [B, channels, T]."""
    Bn, Cn, Tn = x.shape
    half = Cn // 2
    bt = Bn * Tn

    # layout plumbing in the wrapper (XLA): NCT -> [B*T, C], split halves, flatten mask
    x_tc = jnp.transpose(x, (0, 2, 1)).astype(jnp.float32).reshape(bt, Cn)
    x0 = x_tc[:, :half]
    x1 = x_tc[:, half:]
    mask = jnp.transpose(x_mask, (0, 2, 1)).astype(jnp.float32).reshape(bt, 1)

    inputs = (x0, x1, mask) + tuple(packed_params)

    def _full_spec(a):
        n = a.ndim
        return pl.BlockSpec(a.shape, lambda i, n=n: (0,) * n)

    out2 = pl.pallas_call(
        coupling_block_kernel,
        out_shape=jax.ShapeDtypeStruct((bt, Cn), jnp.float32),
        grid=(1,),
        in_specs=[_full_spec(a) for a in inputs],
        out_specs=pl.BlockSpec((bt, Cn), lambda i: (0, 0)),
        compiler_params=pltpu.CompilerParams(dimension_semantics=("arbitrary",)),
    )(*inputs)

    if N_FLOWS % 2:
        # odd number of flows: the carried halves are still channel-reversed; undo here
        out2 = jnp.concatenate([jnp.flip(out2[:, :half], axis=1),
                                jnp.flip(out2[:, half:], axis=1)], axis=-1)

    return jnp.transpose(out2.reshape(Bn, Tn, Cn), (0, 2, 1))   # back to [B, C, T]


if __name__ == "__main__":
    key = jax.random.PRNGKey(0)
    k_param, k_x = jax.random.split(key)

    params = init_params(k_param)
    packed = pack_params(params)

    x = jax.random.normal(k_x, (B, CHANNELS, T), jnp.float32)             # [B, C, T]
    lengths = jnp.array([T, T - 5], jnp.int32)
    x_mask = (jnp.arange(T)[None, :] < lengths[:, None]).astype(jnp.float32)[:, None, :]

    out = residual_coupling_block(packed, x, x_mask)
    out = jax.block_until_ready(out)
    assert out.shape == (B, CHANNELS, T)
    assert bool(jnp.all(jnp.isfinite(out)))
    print("KERNEL_OK")
</pallas_src>

<mosaic_0001>
module attributes {stable_mosaic.version = 11 : i64} {
  func.func @coupling_block_kernel(%arg0: i32, %arg1: memref<32x4xf32, #tpu.memory_space<vmem>>, %arg2: memref<32x4xf32, #tpu.memory_space<vmem>>, %arg3: memref<32x1xf32, #tpu.memory_space<vmem>>, %arg4: memref<4x4x16xbf16, #tpu.memory_space<vmem>>, %arg5: memref<4x1x16xf32, #tpu.memory_space<vmem>>, %arg6: memref<4x4x80x32xbf16, #tpu.memory_space<vmem>>, %arg7: memref<4x4x1x32xf32, #tpu.memory_space<vmem>>, %arg8: memref<4x4x16x32xbf16, #tpu.memory_space<vmem>>, %arg9: memref<4x4x1x32xf32, #tpu.memory_space<vmem>>, %arg10: memref<4x16x4xbf16, #tpu.memory_space<vmem>>, %arg11: memref<4x1x4xf32, #tpu.memory_space<vmem>>, %arg12: memref<32x8xf32, #tpu.memory_space<vmem>>) attributes {dimension_semantics = [#tpu.dimension_semantics<arbitrary>], iteration_bounds = array<i64: 1>, scalar_prefetch = 0 : i64, scratch_operands = 0 : i64, tpu.core_type = #tpu.core_type<tc>, window_params = [{pipeline_mode = #tpu.pipeline_mode<synchronous>, transform_indices = @transform_0, window_bounds = array<i64: 32, 4>}, {pipeline_mode = #tpu.pipeline_mode<synchronous>, transform_indices = @transform_1, window_bounds = array<i64: 32, 4>}, {pipeline_mode = #tpu.pipeline_mode<synchronous>, transform_indices = @transform_2, window_bounds = array<i64: 32, 1>}, {pipeline_mode = #tpu.pipeline_mode<synchronous>, transform_indices = @transform_3, window_bounds = array<i64: 4, 4, 16>}, {pipeline_mode = #tpu.pipeline_mode<synchronous>, transform_indices = @transform_4, window_bounds = array<i64: 4, 1, 16>}, {pipeline_mode = #tpu.pipeline_mode<synchronous>, transform_indices = @transform_5, window_bounds = array<i64: 4, 4, 80, 32>}, {pipeline_mode = #tpu.pipeline_mode<synchronous>, transform_indices = @transform_6, window_bounds = array<i64: 4, 4, 1, 32>}, {pipeline_mode = #tpu.pipeline_mode<synchronous>, transform_indices = @transform_7, window_bounds = array<i64: 4, 4, 16, 32>}, {pipeline_mode = #tpu.pipeline_mode<synchronous>, transform_indices = @transform_8, window_bounds = array<i64: 4, 4, 1, 32>}, {pipeline_mode = #tpu.pipeline_mode<synchronous>, transform_indices = @transform_9, window_bounds = array<i64: 4, 16, 4>}, {pipeline_mode = #tpu.pipeline_mode<synchronous>, transform_indices = @transform_10, window_bounds = array<i64: 4, 1, 4>}, {pipeline_mode = #tpu.pipeline_mode<synchronous>, transform_indices = @transform_11, window_bounds = array<i64: 32, 8>}]} {
    %c0 = arith.constant 0 : index
    %c0_0 = arith.constant 0 : index
    %0 = vector.load %arg1[%c0, %c0_0] : memref<32x4xf32, #tpu.memory_space<vmem>>, vector<32x4xf32>
    %c0_1 = arith.constant 0 : index
    %c0_2 = arith.constant 0 : index
    %1 = vector.load %arg2[%c0_1, %c0_2] : memref<32x4xf32, #tpu.memory_space<vmem>>, vector<32x4xf32>
    %c0_3 = arith.constant 0 : index
    %c0_4 = arith.constant 0 : index
    %2 = vector.load %arg3[%c0_3, %c0_4] : memref<32x1xf32, #tpu.memory_space<vmem>>, vector<32x1xf32>
    %3 = vector.shape_cast %2 : vector<32x1xf32> to vector<32x1xf32>
    %4 = vector.broadcast %3 : vector<32x1xf32> to vector<32x16xf32>
    %5 = vector.shape_cast %2 : vector<32x1xf32> to vector<32x1xf32>
    %6 = vector.broadcast %5 : vector<32x1xf32> to vector<32x4xf32>
    %7 = tpu.iota {dimensions = array<i32: 0>} : vector<32x16xi32>
    %c2_i32 = arith.constant 2 : i32
    %8 = vector.broadcast %c2_i32 : i32 to vector<32x16xi32>
    %9 = arith.cmpi sge, %7, %8 : vector<32x16xi32>
    %c16_i32 = arith.constant 16 : i32
    %10 = vector.broadcast %c16_i32 : i32 to vector<32x16xi32>
    %11 = arith.cmpi slt, %7, %10 : vector<32x16xi32>
    %12 = arith.andi %9, %11 : vector<32x16xi1>
    %c18_i32 = arith.constant 18 : i32
    %13 = vector.broadcast %c18_i32 : i32 to vector<32x16xi32>
    %14 = arith.cmpi sge, %7, %13 : vector<32x16xi32>
    %c32_i32 = arith.constant 32 : i32
    %15 = vector.broadcast %c32_i32 : i32 to vector<32x16xi32>
    %16 = arith.cmpi slt, %7, %15 : vector<32x16xi32>
    %17 = arith.andi %14, %16 : vector<32x16xi1>
    %18 = arith.ori %12, %17 : vector<32x16xi1>
    %19 = arith.extui %18 : vector<32x16xi1> to vector<32x16xi32>
    %20 = arith.sitofp %19 : vector<32x16xi32> to vector<32x16xf32>
    %c1_i32 = arith.constant 1 : i32
    %21 = vector.broadcast %c1_i32 : i32 to vector<32x16xi32>
    %22 = arith.cmpi sge, %7, %21 : vector<32x16xi32>
    %c16_i32_5 = arith.constant 16 : i32
    %23 = vector.broadcast %c16_i32_5 : i32 to vector<32x16xi32>
    %24 = arith.cmpi slt, %7, %23 : vector<32x16xi32>
    %25 = arith.andi %22, %24 : vector<32x16xi1>
    %c17_i32 = arith.constant 17 : i32
    %26 = vector.broadcast %c17_i32 : i32 to vector<32x16xi32>
    %27 = arith.cmpi sge, %7, %26 : vector<32x16xi32>
    %c32_i32_6 = arith.constant 32 : i32
    %28 = vector.broadcast %c32_i32_6 : i32 to vector<32x16xi32>
    %29 = arith.cmpi slt, %7, %28 : vector<32x16xi32>
    %30 = arith.andi %27, %29 : vector<32x16xi1>
    %31 = arith.ori %25, %30 : vector<32x16xi1>
    %32 = arith.extui %31 : vector<32x16xi1> to vector<32x16xi32>
    %33 = arith.sitofp %32 : vector<32x16xi32> to vector<32x16xf32>
    %c0_i32 = arith.constant 0 : i32
    %34 = vector.broadcast %c0_i32 : i32 to vector<32x16xi32>
    %35 = arith.cmpi sge, %7, %34 : vector<32x16xi32>
    %c16_i32_7 = arith.constant 16 : i32
    %36 = vector.broadcast %c16_i32_7 : i32 to vector<32x16xi32>
    %37 = arith.cmpi slt, %7, %36 : vector<32x16xi32>
    %38 = arith.andi %35, %37 : vector<32x16xi1>
    %c16_i32_8 = arith.constant 16 : i32
    %39 = vector.broadcast %c16_i32_8 : i32 to vector<32x16xi32>
    %40 = arith.cmpi sge, %7, %39 : vector<32x16xi32>
    %c32_i32_9 = arith.constant 32 : i32
    %41 = vector.broadcast %c32_i32_9 : i32 to vector<32x16xi32>
    %42 = arith.cmpi slt, %7, %41 : vector<32x16xi32>
    %43 = arith.andi %40, %42 : vector<32x16xi1>
    %44 = arith.ori %38, %43 : vector<32x16xi1>
    %45 = arith.extui %44 : vector<32x16xi1> to vector<32x16xi32>
    %46 = arith.sitofp %45 : vector<32x16xi32> to vector<32x16xf32>
    %c0_i32_10 = arith.constant 0 : i32
    %47 = vector.broadcast %c0_i32_10 : i32 to vector<32x16xi32>
    %48 = arith.cmpi sge, %7, %47 : vector<32x16xi32>
    %c15_i32 = arith.constant 15 : i32
    %49 = vector.broadcast %c15_i32 : i32 to vector<32x16xi32>
    %50 = arith.cmpi slt, %7, %49 : vector<32x16xi32>
    %51 = arith.andi %48, %50 : vector<32x16xi1>
    %c16_i32_11 = arith.constant 16 : i32
    %52 = vector.broadcast %c16_i32_11 : i32 to vector<32x16xi32>
    %53 = arith.cmpi sge, %7, %52 : vector<32x16xi32>
    %c31_i32 = arith.constant 31 : i32
    %54 = vector.broadcast %c31_i32 : i32 to vector<32x16xi32>
    %55 = arith.cmpi slt, %7, %54 : vector<32x16xi32>
    %56 = arith.andi %53, %55 : vector<32x16xi1>
    %57 = arith.ori %51, %56 : vector<32x16xi1>
    %58 = arith.extui %57 : vector<32x16xi1> to vector<32x16xi32>
    %59 = arith.sitofp %58 : vector<32x16xi32> to vector<32x16xf32>
    %c0_i32_12 = arith.constant 0 : i32
    %60 = vector.broadcast %c0_i32_12 : i32 to vector<32x16xi32>
    %61 = arith.cmpi sge, %7, %60 : vector<32x16xi32>
    %c14_i32 = arith.constant 14 : i32
    %62 = vector.broadcast %c14_i32 : i32 to vector<32x16xi32>
    %63 = arith.cmpi slt, %7, %62 : vector<32x16xi32>
    %64 = arith.andi %61, %63 : vector<32x16xi1>
    %c16_i32_13 = arith.constant 16 : i32
    %65 = vector.broadcast %c16_i32_13 : i32 to vector<32x16xi32>
    %66 = arith.cmpi sge, %7, %65 : vector<32x16xi32>
    %c30_i32 = arith.constant 30 : i32
    %67 = vector.broadcast %c30_i32 : i32 to vector<32x16xi32>
    %68 = arith.cmpi slt, %7, %67 : vector<32x16xi32>
    %69 = arith.andi %66, %68 : vector<32x16xi1>
    %70 = arith.ori %64, %69 : vector<32x16xi1>
    %71 = arith.extui %70 : vector<32x16xi1> to vector<32x16xi32>
    %72 = arith.sitofp %71 : vector<32x16xi32> to vector<32x16xf32>
    %73 = tpu.concatenate %20, %33, %46, %59, %72 in 1 : vector<32x16xf32>, vector<32x16xf32>, vector<32x16xf32>, vector<32x16xf32>, vector<32x16xf32> -> vector<32x80xf32>
    %74 = arith.truncf %0 : vector<32x4xf32> to vector<32x4xbf16>
    %c0_14 = arith.constant 0 : index
    %c0_15 = arith.constant 0 : index
    %c0_16 = arith.constant 0 : index
    %75 = vector.load %arg4[%c0_14, %c0_15, %c0_16] : memref<4x4x16xbf16, #tpu.memory_space<vmem>>, vector<1x4x16xbf16>
    %76 = vector.shape_cast %75 : vector<1x4x16xbf16> to vector<4x16xbf16>
    %cst = arith.constant dense<0.000000e+00> : vector<32x16xf32>
    %77 = tpu.matmul %74, %76, %cst {dimension_numbers = #tpu.dot_dimension_numbers<[1], [0], [0], [1], [0, 0, 1, 1], [], []>} : vector<32x4xbf16>, vector<4x16xbf16>, vector<32x16xf32> -> vector<32x16xf32>
    %c0_17 = arith.constant 0 : index
    %c0_18 = arith.constant 0 : index
    %c0_19 = arith.constant 0 : index
    %78 = vector.load %arg5[%c0_17, %c0_18, %c0_19] : memref<4x1x16xf32, #tpu.memory_space<vmem>>, vector<1x1x16xf32>
    %79 = vector.shape_cast %78 : vector<1x1x16xf32> to vector<1x16xf32>
    %80 = vector.broadcast %79 : vector<1x16xf32> to vector<32x16xf32>
    %81 = arith.addf %77, %80 : vector<32x16xf32>
    %82 = arith.mulf %81, %4 : vector<32x16xf32>
    %cst_20 = arith.constant 0.000000e+00 : f32
    %83 = vector.broadcast %cst_20 : f32 to vector<32x16xf32>
    %c2_i32_21 = arith.constant 2 : i32
    %84 = tpu.dynamic_rotate %82 by %c2_i32_21 dim 0 : vector<32x16xf32>, i32 -> vector<32x16xf32>
    %c1_i32_22 = arith.constant 1 : i32
    %85 = tpu.dynamic_rotate %82 by %c1_i32_22 dim 0 : vector<32x16xf32>, i32 -> vector<32x16xf32>
    %c31_i32_23 = arith.constant 31 : i32
    %86 = tpu.dynamic_rotate %82 by %c31_i32_23 dim 0 : vector<32x16xf32>, i32 -> vector<32x16xf32>
    %c30_i32_24 = arith.constant 30 : i32
    %87 = tpu.dynamic_rotate %82 by %c30_i32_24 dim 0 : vector<32x16xf32>, i32 -> vector<32x16xf32>
    %88 = tpu.concatenate %84, %85, %82, %86, %87 in 1 : vector<32x16xf32>, vector<32x16xf32>, vector<32x16xf32>, vector<32x16xf32>, vector<32x16xf32> -> vector<32x80xf32>
    %89 = arith.mulf %88, %73 : vector<32x80xf32>
    %90 = arith.truncf %89 : vector<32x80xf32> to vector<32x80xbf16>
    %c0_25 = arith.constant 0 : index
    %c0_26 = arith.constant 0 : index
    %c0_27 = arith.constant 0 : index
    %c0_28 = arith.constant 0 : index
    %91 = vector.load %arg6[%c0_25, %c0_26, %c0_27, %c0_28] : memref<4x4x80x32xbf16, #tpu.memory_space<vmem>>, vector<1x1x80x32xbf16>
    %92 = vector.shape_cast %91 : vector<1x1x80x32xbf16> to vector<80x32xbf16>
    %cst_29 = arith.constant dense<0.000000e+00> : vector<32x32xf32>
    %93 = tpu.matmul %90, %92, %cst_29 {dimension_numbers = #tpu.dot_dimension_numbers<[1], [0], [0], [1], [0, 0, 1, 1], [], []>} : vector<32x80xbf16>, vector<80x32xbf16>, vector<32x32xf32> -> vector<32x32xf32>
    %c0_30 = arith.constant 0 : index
    %c0_31 = arith.constant 0 : index
    %c0_32 = arith.constant 0 : index
    %c0_33 = arith.constant 0 : index
    %94 = vector.load %arg7[%c0_30, %c0_31, %c0_32, %c0_33] : memref<4x4x1x32xf32, #tpu.memory_space<vmem>>, vector<1x1x1x32xf32>
    %95 = vector.shape_cast %94 : vector<1x1x1x32xf32> to vector<1x32xf32>
    %96 = vector.broadcast %95 : vector<1x32xf32> to vector<32x32xf32>
    %97 = arith.addf %93, %96 : vector<32x32xf32>
    %98 = vector.extract_strided_slice %97 {offsets = [0, 0], sizes = [32, 16], strides = [1, 1]} : vector<32x32xf32> to vector<32x16xf32>
    %99 = math.tanh %98 : vector<32x16xf32>
    %100 = vector.extract_strided_slice %97 {offsets = [0, 16], sizes = [32, 16], strides = [1, 1]} : vector<32x32xf32> to vector<32x16xf32>
    %101 = arith.negf %100 : vector<32x16xf32>
    %102 = math.exp %101 : vector<32x16xf32>
    %cst_34 = arith.constant 1.000000e+00 : f32
    %103 = vector.broadcast %cst_34 : f32 to vector<32x16xf32>
    %104 = arith.addf %103, %102 : vector<32x16xf32>
    %105 = arith.divf %103, %104 : vector<32x16xf32>
    %106 = arith.mulf %99, %105 : vector<32x16xf32>
    %107 = arith.truncf %106 : vector<32x16xf32> to vector<32x16xbf16>
    %c0_35 = arith.constant 0 : index
    %c0_36 = arith.constant 0 : index
    %c0_37 = arith.constant 0 : index
    %c0_38 = arith.constant 0 : index
    %108 = vector.load %arg8[%c0_35, %c0_36, %c0_37, %c0_38] : memref<4x4x16x32xbf16, #tpu.memory_space<vmem>>, vector<1x1x16x32xbf16>
    %109 = vector.shape_cast %108 : vector<1x1x16x32xbf16> to vector<16x32xbf16>
    %cst_39 = arith.constant dense<0.000000e+00> : vector<32x32xf32>
    %110 = tpu.matmul %107, %109, %cst_39 {dimension_numbers = #tpu.dot_dimension_numbers<[1], [0], [0], [1], [0, 0, 1, 1], [], []>} : vector<32x16xbf16>, vector<16x32xbf16>, vector<32x32xf32> -> vector<32x32xf32>
    %c0_40 = arith.constant 0 : index
    %c0_41 = arith.constant 0 : index
    %c0_42 = arith.constant 0 : index
    %c0_43 = arith.constant 0 : index
    %111 = vector.load %arg9[%c0_40, %c0_41, %c0_42, %c0_43] : memref<4x4x1x32xf32, #tpu.memory_space<vmem>>, vector<1x1x1x32xf32>
    %112 = vector.shape_cast %111 : vector<1x1x1x32xf32> to vector<1x32xf32>
    %113 = vector.broadcast %112 : vector<1x32xf32> to vector<32x32xf32>
    %114 = arith.addf %110, %113 : vector<32x32xf32>
    %115 = vector.extract_strided_slice %114 {offsets = [0, 0], sizes = [32, 16], strides = [1, 1]} : vector<32x32xf32> to vector<32x16xf32>
    %116 = arith.addf %82, %115 : vector<32x16xf32>
    %117 = arith.mulf %116, %4 : vector<32x16xf32>
    %118 = vector.extract_strided_slice %114 {offsets = [0, 16], sizes = [32, 16], strides = [1, 1]} : vector<32x32xf32> to vector<32x16xf32>
    %119 = arith.addf %83, %118 : vector<32x16xf32>
    %c2_i32_44 = arith.constant 2 : i32
    %120 = tpu.dynamic_rotate %117 by %c2_i32_44 dim 0 : vector<32x16xf32>, i32 -> vector<32x16xf32>
    %c1_i32_45 = arith.constant 1 : i32
    %121 = tpu.dynamic_rotate %117 by %c1_i32_45 dim 0 : vector<32x16xf32>, i32 -> vector<32x16xf32>
    %c31_i32_46 = arith.constant 31 : i32
    %122 = tpu.dynamic_rotate %117 by %c31_i32_46 dim 0 : vector<32x16xf32>, i32 -> vector<32x16xf32>
    %c30_i32_47 = arith.constant 30 : i32
    %123 = tpu.dynamic_rotate %117 by %c30_i32_47 dim 0 : vector<32x16xf32>, i32 -> vector<32x16xf32>
    %124 = tpu.concatenate %120, %121, %117, %122, %123 in 1 : vector<32x16xf32>, vector<32x16xf32>, vector<32x16xf32>, vector<32x16xf32>, vector<32x16xf32> -> vector<32x80xf32>
    %125 = arith.mulf %124, %73 : vector<32x80xf32>
    %126 = arith.truncf %125 : vector<32x80xf32> to vector<32x80xbf16>
    %c0_48 = arith.constant 0 : index
    %c1 = arith.constant 1 : index
    %c0_49 = arith.constant 0 : index
    %c0_50 = arith.constant 0 : index
    %127 = vector.load %arg6[%c0_48, %c1, %c0_49, %c0_50] : memref<4x4x80x32xbf16, #tpu.memory_space<vmem>>, vector<1x1x80x32xbf16>
    %128 = vector.shape_cast %127 : vector<1x1x80x32xbf16> to vector<80x32xbf16>
    %cst_51 = arith.constant dense<0.000000e+00> : vector<32x32xf32>
    %129 = tpu.matmul %126, %128, %cst_51 {dimension_numbers = #tpu.dot_dimension_numbers<[1], [0], [0], [1], [0, 0, 1, 1], [], []>} : vector<32x80xbf16>, vector<80x32xbf16>, vector<32x32xf32> -> vector<32x32xf32>
    %c0_52 = arith.constant 0 : index
    %c1_53 = arith.constant 1 : index
    %c0_54 = arith.constant 0 : index
    %c0_55 = arith.constant 0 : index
    %130 = vector.load %arg7[%c0_52, %c1_53, %c0_54, %c0_55] : memref<4x4x1x32xf32, #tpu.memory_space<vmem>>, vector<1x1x1x32xf32>
    %131 = vector.shape_cast %130 : vector<1x1x1x32xf32> to vector<1x32xf32>
    %132 = vector.broadcast %131 : vector<1x32xf32> to vector<32x32xf32>
    %133 = arith.addf %129, %132 : vector<32x32xf32>
    %134 = vector.extract_strided_slice %133 {offsets = [0, 0], sizes = [32, 16], strides = [1, 1]} : vector<32x32xf32> to vector<32x16xf32>
    %135 = math.tanh %134 : vector<32x16xf32>
    %136 = vector.extract_strided_slice %133 {offsets = [0, 16], sizes = [32, 16], strides = [1, 1]} : vector<32x32xf32> to vector<32x16xf32>
    %137 = arith.negf %136 : vector<32x16xf32>
    %138 = math.exp %137 : vector<32x16xf32>
    %cst_56 = arith.constant 1.000000e+00 : f32
    %139 = vector.broadcast %cst_56 : f32 to vector<32x16xf32>
    %140 = arith.addf %139, %138 : vector<32x16xf32>
    %141 = arith.divf %139, %140 : vector<32x16xf32>
    %142 = arith.mulf %135, %141 : vector<32x16xf32>
    %143 = arith.truncf %142 : vector<32x16xf32> to vector<32x16xbf16>
    %c0_57 = arith.constant 0 : index
    %c1_58 = arith.constant 1 : index
    %c0_59 = arith.constant 0 : index
    %c0_60 = arith.constant 0 : index
    %144 = vector.load %arg8[%c0_57, %c1_58, %c0_59, %c0_60] : memref<4x4x16x32xbf16, #tpu.memory_space<vmem>>, vector<1x1x16x32xbf16>
    %145 = vector.shape_cast %144 : vector<1x1x16x32xbf16> to vector<16x32xbf16>
    %cst_61 = arith.constant dense<0.000000e+00> : vector<32x32xf32>
    %146 = tpu.matmul %143, %145, %cst_61 {dimension_numbers = #tpu.dot_dimension_numbers<[1], [0], [0], [1], [0, 0, 1, 1], [], []>} : vector<32x16xbf16>, vector<16x32xbf16>, vector<32x32xf32> -> vector<32x32xf32>
    %c0_62 = arith.constant 0 : index
    %c1_63 = arith.constant 1 : index
    %c0_64 = arith.constant 0 : index
    %c0_65 = arith.constant 0 : index
    %147 = vector.load %arg9[%c0_62, %c1_63, %c0_64, %c0_65] : memref<4x4x1x32xf32, #tpu.memory_space<vmem>>, vector<1x1x1x32xf32>
    %148 = vector.shape_cast %147 : vector<1x1x1x32xf32> to vector<1x32xf32>
    %149 = vector.broadcast %148 : vector<1x32xf32> to vector<32x32xf32>
    %150 = arith.addf %146, %149 : vector<32x32xf32>
    %151 = vector.extract_strided_slice %150 {offsets = [0, 0], sizes = [32, 16], strides = [1, 1]} : vector<32x32xf32> to vector<32x16xf32>
    %152 = arith.addf %117, %151 : vector<32x16xf32>
    %153 = arith.mulf %152, %4 : vector<32x16xf32>
    %154 = vector.extract_strided_slice %150 {offsets = [0, 16], sizes = [32, 16], strides = [1, 1]} : vector<32x32xf32> to vector<32x16xf32>
    %155 = arith.addf %119, %154 : vector<32x16xf32>
    %c2_i32_66 = arith.constant 2 : i32
    %156 = tpu.dynamic_rotate %153 by %c2_i32_66 dim 0 : vector<32x16xf32>, i32 -> vector<32x16xf32>
    %c1_i32_67 = arith.constant 1 : i32
    %157 = tpu.dynamic_rotate %153 by %c1_i32_67 dim 0 : vector<32x16xf32>, i32 -> vector<32x16xf32>
    %c31_i32_68 = arith.constant 31 : i32
    %158 = tpu.dynamic_rotate %153 by %c31_i32_68 dim 0 : vector<32x16xf32>, i32 -> vector<32x16xf32>
    %c30_i32_69 = arith.constant 30 : i32
    %159 = tpu.dynamic_rotate %153 by %c30_i32_69 dim 0 : vector<32x16xf32>, i32 -> vector<32x16xf32>
    %160 = tpu.concatenate %156, %157, %153, %158, %159 in 1 : vector<32x16xf32>, vector<32x16xf32>, vector<32x16xf32>, vector<32x16xf32>, vector<32x16xf32> -> vector<32x80xf32>
    %161 = arith.mulf %160, %73 : vector<32x80xf32>
    %162 = arith.truncf %161 : vector<32x80xf32> to vector<32x80xbf16>
    %c0_70 = arith.constant 0 : index
    %c2 = arith.constant 2 : index
    %c0_71 = arith.constant 0 : index
    %c0_72 = arith.constant 0 : index
    %163 = vector.load %arg6[%c0_70, %c2, %c0_71, %c0_72] : memref<4x4x80x32xbf16, #tpu.memory_space<vmem>>, vector<1x1x80x32xbf16>
    %164 = vector.shape_cast %163 : vector<1x1x80x32xbf16> to vector<80x32xbf16>
    %cst_73 = arith.constant dense<0.000000e+00> : vector<32x32xf32>
    %165 = tpu.matmul %162, %164, %cst_73 {dimension_numbers = #tpu.dot_dimension_numbers<[1], [0], [0], [1], [0, 0, 1, 1], [], []>} : vector<32x80xbf16>, vector<80x32xbf16>, vector<32x32xf32> -> vector<32x32xf32>
    %c0_74 = arith.constant 0 : index
    %c2_75 = arith.constant 2 : index
    %c0_76 = arith.constant 0 : index
    %c0_77 = arith.constant 0 : index
    %166 = vector.load %arg7[%c0_74, %c2_75, %c0_76, %c0_77] : memref<4x4x1x32xf32, #tpu.memory_space<vmem>>, vector<1x1x1x32xf32>
    %167 = vector.shape_cast %166 : vector<1x1x1x32xf32> to vector<1x32xf32>
    %168 = vector.broadcast %167 : vector<1x32xf32> to vector<32x32xf32>
    %169 = arith.addf %165, %168 : vector<32x32xf32>
    %170 = vector.extract_strided_slice %169 {offsets = [0, 0], sizes = [32, 16], strides = [1, 1]} : vector<32x32xf32> to vector<32x16xf32>
    %171 = math.tanh %170 : vector<32x16xf32>
    %172 = vector.extract_strided_slice %169 {offsets = [0, 16], sizes = [32, 16], strides = [1, 1]} : vector<32x32xf32> to vector<32x16xf32>
    %173 = arith.negf %172 : vector<32x16xf32>
    %174 = math.exp %173 : vector<32x16xf32>
    %cst_78 = arith.constant 1.000000e+00 : f32
    %175 = vector.broadcast %cst_78 : f32 to vector<32x16xf32>
    %176 = arith.addf %175, %174 : vector<32x16xf32>
    %177 = arith.divf %175, %176 : vector<32x16xf32>
    %178 = arith.mulf %171, %177 : vector<32x16xf32>
    %179 = arith.truncf %178 : vector<32x16xf32> to vector<32x16xbf16>
    %c0_79 = arith.constant 0 : index
    %c2_80 = arith.constant 2 : index
    %c0_81 = arith.constant 0 : index
    %c0_82 = arith.constant 0 : index
    %180 = vector.load %arg8[%c0_79, %c2_80, %c0_81, %c0_82] : memref<4x4x16x32xbf16, #tpu.memory_space<vmem>>, vector<1x1x16x32xbf16>
    %181 = vector.shape_cast %180 : vector<1x1x16x32xbf16> to vector<16x32xbf16>
    %cst_83 = arith.constant dense<0.000000e+00> : vector<32x32xf32>
    %182 = tpu.matmul %179, %181, %cst_83 {dimension_numbers = #tpu.dot_dimension_numbers<[1], [0], [0], [1], [0, 0, 1, 1], [], []>} : vector<32x16xbf16>, vector<16x32xbf16>, vector<32x32xf32> -> vector<32x32xf32>
    %c0_84 = arith.constant 0 : index
    %c2_85 = arith.constant 2 : index
    %c0_86 = arith.constant 0 : index
    %c0_87 = arith.constant 0 : index
    %183 = vector.load %arg9[%c0_84, %c2_85, %c0_86, %c0_87] : memref<4x4x1x32xf32, #tpu.memory_space<vmem>>, vector<1x1x1x32xf32>
    %184 = vector.shape_cast %183 : vector<1x1x1x32xf32> to vector<1x32xf32>
    %185 = vector.broadcast %184 : vector<1x32xf32> to vector<32x32xf32>
    %186 = arith.addf %182, %185 : vector<32x32xf32>
    %187 = vector.extract_strided_slice %186 {offsets = [0, 0], sizes = [32, 16], strides = [1, 1]} : vector<32x32xf32> to vector<32x16xf32>
    %188 = arith.addf %153, %187 : vector<32x16xf32>
    %189 = arith.mulf %188, %4 : vector<32x16xf32>
    %190 = vector.extract_strided_slice %186 {offsets = [0, 16], sizes = [32, 16], strides = [1, 1]} : vector<32x32xf32> to vector<32x16xf32>
    %191 = arith.addf %155, %190 : vector<32x16xf32>
    %c2_i32_88 = arith.constant 2 : i32
    %192 = tpu.dynamic_rotate %189 by %c2_i32_88 dim 0 : vector<32x16xf32>, i32 -> vector<32x16xf32>
    %c1_i32_89 = arith.constant 1 : i32
    %193 = tpu.dynamic_rotate %189 by %c1_i32_89 dim 0 : vector<32x16xf32>, i32 -> vector<32x16xf32>
    %c31_i32_90 = arith.constant 31 : i32
    %194 = tpu.dynamic_rotate %189 by %c31_i32_90 dim 0 : vector<32x16xf32>, i32 -> vector<32x16xf32>
    %c30_i32_91 = arith.constant 30 : i32
    %195 = tpu.dynamic_rotate %189 by %c30_i32_91 dim 0 : vector<32x16xf32>, i32 -> vector<32x16xf32>
    %196 = tpu.concatenate %192, %193, %189, %194, %195 in 1 : vector<32x16xf32>, vector<32x16xf32>, vector<32x16xf32>, vector<32x16xf32>, vector<32x16xf32> -> vector<32x80xf32>
    %197 = arith.mulf %196, %73 : vector<32x80xf32>
    %198 = arith.truncf %197 : vector<32x80xf32> to vector<32x80xbf16>
    %c0_92 = arith.constant 0 : index
    %c3 = arith.constant 3 : index
    %c0_93 = arith.constant 0 : index
    %c0_94 = arith.constant 0 : index
    %199 = vector.load %arg6[%c0_92, %c3, %c0_93, %c0_94] : memref<4x4x80x32xbf16, #tpu.memory_space<vmem>>, vector<1x1x80x32xbf16>
    %200 = vector.shape_cast %199 : vector<1x1x80x32xbf16> to vector<80x32xbf16>
    %cst_95 = arith.constant dense<0.000000e+00> : vector<32x32xf32>
    %201 = tpu.matmul %198, %200, %cst_95 {dimension_numbers = #tpu.dot_dimension_numbers<[1], [0], [0], [1], [0, 0, 1, 1], [], []>} : vector<32x80xbf16>, vector<80x32xbf16>, vector<32x32xf32> -> vector<32x32xf32>
    %c0_96 = arith.constant 0 : index
    %c3_97 = arith.constant 3 : index
    %c0_98 = arith.constant 0 : index
    %c0_99 = arith.constant 0 : index
    %202 = vector.load %arg7[%c0_96, %c3_97, %c0_98, %c0_99] : memref<4x4x1x32xf32, #tpu.memory_space<vmem>>, vector<1x1x1x32xf32>
    %203 = vector.shape_cast %202 : vector<1x1x1x32xf32> to vector<1x32xf32>
    %204 = vector.broadcast %203 : vector<1x32xf32> to vector<32x32xf32>
    %205 = arith.addf %201, %204 : vector<32x32xf32>
    %206 = vector.extract_strided_slice %205 {offsets = [0, 0], sizes = [32, 16], strides = [1, 1]} : vector<32x32xf32> to vector<32x16xf32>
    %207 = math.tanh %206 : vector<32x16xf32>
    %208 = vector.extract_strided_slice %205 {offsets = [0, 16], sizes = [32, 16], strides = [1, 1]} : vector<32x32xf32> to vector<32x16xf32>
    %209 = arith.negf %208 : vector<32x16xf32>
    %210 = math.exp %209 : vector<32x16xf32>
    %cst_100 = arith.constant 1.000000e+00 : f32
    %211 = vector.broadcast %cst_100 : f32 to vector<32x16xf32>
    %212 = arith.addf %211, %210 : vector<32x16xf32>
    %213 = arith.divf %211, %212 : vector<32x16xf32>
    %214 = arith.mulf %207, %213 : vector<32x16xf32>
    %215 = arith.truncf %214 : vector<32x16xf32> to vector<32x16xbf16>
    %c0_101 = arith.constant 0 : index
    %c3_102 = arith.constant 3 : index
    %c0_103 = arith.constant 0 : index
    %c0_104 = arith.constant 0 : index
    %216 = vector.load %arg8[%c0_101, %c3_102, %c0_103, %c0_104] : memref<4x4x16x32xbf16, #tpu.memory_space<vmem>>, vector<1x1x16x32xbf16>
    %217 = vector.shape_cast %216 : vector<1x1x16x32xbf16> to vector<16x32xbf16>
    %cst_105 = arith.constant dense<0.000000e+00> : vector<32x32xf32>
    %218 = tpu.matmul %215, %217, %cst_105 {dimension_numbers = #tpu.dot_dimension_numbers<[1], [0], [0], [1], [0, 0, 1, 1], [], []>} : vector<32x16xbf16>, vector<16x32xbf16>, vector<32x32xf32> -> vector<32x32xf32>
    %c0_106 = arith.constant 0 : index
    %c3_107 = arith.constant 3 : index
    %c0_108 = arith.constant 0 : index
    %c0_109 = arith.constant 0 : index
    %219 = vector.load %arg9[%c0_106, %c3_107, %c0_108, %c0_109] : memref<4x4x1x32xf32, #tpu.memory_space<vmem>>, vector<1x1x1x32xf32>
    %220 = vector.shape_cast %219 : vector<1x1x1x32xf32> to vector<1x32xf32>
    %221 = vector.broadcast %220 : vector<1x32xf32> to vector<32x32xf32>
    %222 = arith.addf %218, %221 : vector<32x32xf32>
    %223 = vector.extract_strided_slice %222 {offsets = [0, 16], sizes = [32, 16], strides = [1, 1]} : vector<32x32xf32> to vector<32x16xf32>
    %224 = arith.addf %191, %223 : vector<32x16xf32>
    %225 = arith.mulf %224, %4 : vector<32x16xf32>
    %226 = arith.truncf %225 : vector<32x16xf32> to vector<32x16xbf16>
    %c0_110 = arith.constant 0 : index
    %c0_111 = arith.constant 0 : index
    %c0_112 = arith.constant 0 : index
    %227 = vector.load %arg10[%c0_110, %c0_111, %c0_112] : memref<4x16x4xbf16, #tpu.memory_space<vmem>>, vector<1x16x4xbf16>
    %228 = vector.shape_cast %227 : vector<1x16x4xbf16> to vector<16x4xbf16>
    %cst_113 = arith.constant dense<0.000000e+00> : vector<32x4xf32>
    %229 = tpu.matmul %226, %228, %cst_113 {dimension_numbers = #tpu.dot_dimension_numbers<[1], [0], [0], [1], [0, 0, 1, 1], [], []>} : vector<32x16xbf16>, vector<16x4xbf16>, vector<32x4xf32> -> vector<32x4xf32>
    %c0_114 = arith.constant 0 : index
    %c0_115 = arith.constant 0 : index
    %c0_116 = arith.constant 0 : index
    %230 = vector.load %arg11[%c0_114, %c0_115, %c0_116] : memref<4x1x4xf32, #tpu.memory_space<vmem>>, vector<1x1x4xf32>
    %231 = vector.shape_cast %230 : vector<1x1x4xf32> to vector<1x4xf32>
    %232 = vector.broadcast %231 : vector<1x4xf32> to vector<32x4xf32>
    %233 = arith.addf %229, %232 : vector<32x4xf32>
    %234 = arith.mulf %233, %6 : vector<32x4xf32>
    %235 = arith.mulf %1, %6 : vector<32x4xf32>
    %236 = arith.addf %234, %235 : vector<32x4xf32>
    %237 = arith.truncf %236 : vector<32x4xf32> to vector<32x4xbf16>
    %c1_117 = arith.constant 1 : index
    %c0_118 = arith.constant 0 : index
    %c0_119 = arith.constant 0 : index
    %238 = vector.load %arg4[%c1_117, %c0_118, %c0_119] : memref<4x4x16xbf16, #tpu.memory_space<vmem>>, vector<1x4x16xbf16>
    %239 = vector.shape_cast %238 : vector<1x4x16xbf16> to vector<4x16xbf16>
    %cst_120 = arith.constant dense<0.000000e+00> : vector<32x16xf32>
    %240 = tpu.matmul %237, %239, %cst_120 {dimension_numbers = #tpu.dot_dimension_numbers<[1], [0], [0], [1], [0, 0, 1, 1], [], []>} : vector<32x4xbf16>, vector<4x16xbf16>, vector<32x16xf32> -> vector<32x16xf32>
    %c1_121 = arith.constant 1 : index
    %c0_122 = arith.constant 0 : index
    %c0_123 = arith.constant 0 : index
    %241 = vector.load %arg5[%c1_121, %c0_122, %c0_123] : memref<4x1x16xf32, #tpu.memory_space<vmem>>, vector<1x1x16xf32>
    %242 = vector.shape_cast %241 : vector<1x1x16xf32> to vector<1x16xf32>
    %243 = vector.broadcast %242 : vector<1x16xf32> to vector<32x16xf32>
    %244 = arith.addf %240, %243 : vector<32x16xf32>
    %245 = arith.mulf %244, %4 : vector<32x16xf32>
    %cst_124 = arith.constant 0.000000e+00 : f32
    %246 = vector.broadcast %cst_124 : f32 to vector<32x16xf32>
    %c2_i32_125 = arith.constant 2 : i32
    %247 = tpu.dynamic_rotate %245 by %c2_i32_125 dim 0 : vector<32x16xf32>, i32 -> vector<32x16xf32>
    %c1_i32_126 = arith.constant 1 : i32
    %248 = tpu.dynamic_rotate %245 by %c1_i32_126 dim 0 : vector<32x16xf32>, i32 -> vector<32x16xf32>
    %c31_i32_127 = arith.constant 31 : i32
    %249 = tpu.dynamic_rotate %245 by %c31_i32_127 dim 0 : vector<32x16xf32>, i32 -> vector<32x16xf32>
    %c30_i32_128 = arith.constant 30 : i32
    %250 = tpu.dynamic_rotate %245 by %c30_i32_128 dim 0 : vector<32x16xf32>, i32 -> vector<32x16xf32>
    %251 = tpu.concatenate %247, %248, %245, %249, %250 in 1 : vector<32x16xf32>, vector<32x16xf32>, vector<32x16xf32>, vector<32x16xf32>, vector<32x16xf32> -> vector<32x80xf32>
    %252 = arith.mulf %251, %73 : vector<32x80xf32>
    %253 = arith.truncf %252 : vector<32x80xf32> to vector<32x80xbf16>
    %c1_129 = arith.constant 1 : index
    %c0_130 = arith.constant 0 : index
    %c0_131 = arith.constant 0 : index
    %c0_132 = arith.constant 0 : index
    %254 = vector.load %arg6[%c1_129, %c0_130, %c0_131, %c0_132] : memref<4x4x80x32xbf16, #tpu.memory_space<vmem>>, vector<1x1x80x32xbf16>
    %255 = vector.shape_cast %254 : vector<1x1x80x32xbf16> to vector<80x32xbf16>
    %cst_133 = arith.constant dense<0.000000e+00> : vector<32x32xf32>
    %256 = tpu.matmul %253, %255, %cst_133 {dimension_numbers = #tpu.dot_dimension_numbers<[1], [0], [0], [1], [0, 0, 1, 1], [], []>} : vector<32x80xbf16>, vector<80x32xbf16>, vector<32x32xf32> -> vector<32x32xf32>
    %c1_134 = arith.constant 1 : index
    %c0_135 = arith.constant 0 : index
    %c0_136 = arith.constant 0 : index
    %c0_137 = arith.constant 0 : index
    %257 = vector.load %arg7[%c1_134, %c0_135, %c0_136, %c0_137] : memref<4x4x1x32xf32, #tpu.memory_space<vmem>>, vector<1x1x1x32xf32>
    %258 = vector.shape_cast %257 : vector<1x1x1x32xf32> to vector<1x32xf32>
    %259 = vector.broadcast %258 : vector<1x32xf32> to vector<32x32xf32>
    %260 = arith.addf %256, %259 : vector<32x32xf32>
    %261 = vector.extract_strided_slice %260 {offsets = [0, 0], sizes = [32, 16], strides = [1, 1]} : vector<32x32xf32> to vector<32x16xf32>
    %262 = math.tanh %261 : vector<32x16xf32>
    %263 = vector.extract_strided_slice %260 {offsets = [0, 16], sizes = [32, 16], strides = [1, 1]} : vector<32x32xf32> to vector<32x16xf32>
    %264 = arith.negf %263 : vector<32x16xf32>
    %265 = math.exp %264 : vector<32x16xf32>
    %cst_138 = arith.constant 1.000000e+00 : f32
    %266 = vector.broadcast %cst_138 : f32 to vector<32x16xf32>
    %267 = arith.addf %266, %265 : vector<32x16xf32>
    %268 = arith.divf %266, %267 : vector<32x16xf32>
    %269 = arith.mulf %262, %268 : vector<32x16xf32>
    %270 = arith.truncf %269 : vector<32x16xf32> to vector<32x16xbf16>
    %c1_139 = arith.constant 1 : index
    %c0_140 = arith.constant 0 : index
    %c0_141 = arith.constant 0 : index
    %c0_142 = arith.constant 0 : index
    %271 = vector.load %arg8[%c1_139, %c0_140, %c0_141, %c0_142] : memref<4x4x16x32xbf16, #tpu.memory_space<vmem>>, vector<1x1x16x32xbf16>
    %272 = vector.shape_cast %271 : vector<1x1x16x32xbf16> to vector<16x32xbf16>
    %cst_143 = arith.constant dense<0.000000e+00> : vector<32x32xf32>
    %273 = tpu.matmul %270, %272, %cst_143 {dimension_numbers = #tpu.dot_dimension_numbers<[1], [0], [0], [1], [0, 0, 1, 1], [], []>} : vector<32x16xbf16>, vector<16x32xbf16>, vector<32x32xf32> -> vector<32x32xf32>
    %c1_144 = arith.constant 1 : index
    %c0_145 = arith.constant 0 : index
    %c0_146 = arith.constant 0 : index
    %c0_147 = arith.constant 0 : index
    %274 = vector.load %arg9[%c1_144, %c0_145, %c0_146, %c0_147] : memref<4x4x1x32xf32, #tpu.memory_space<vmem>>, vector<1x1x1x32xf32>
    %275 = vector.shape_cast %274 : vector<1x1x1x32xf32> to vector<1x32xf32>
    %276 = vector.broadcast %275 : vector<1x32xf32> to vector<32x32xf32>
    %277 = arith.addf %273, %276 : vector<32x32xf32>
    %278 = vector.extract_strided_slice %277 {offsets = [0, 0], sizes = [32, 16], strides = [1, 1]} : vector<32x32xf32> to vector<32x16xf32>
    %279 = arith.addf %245, %278 : vector<32x16xf32>
    %280 = arith.mulf %279, %4 : vector<32x16xf32>
    %281 = vector.extract_strided_slice %277 {offsets = [0, 16], sizes = [32, 16], strides = [1, 1]} : vector<32x32xf32> to vector<32x16xf32>
    %282 = arith.addf %246, %281 : vector<32x16xf32>
    %c2_i32_148 = arith.constant 2 : i32
    %283 = tpu.dynamic_rotate %280 by %c2_i32_148 dim 0 : vector<32x16xf32>, i32 -> vector<32x16xf32>
    %c1_i32_149 = arith.constant 1 : i32
    %284 = tpu.dynamic_rotate %280 by %c1_i32_149 dim 0 : vector<32x16xf32>, i32 -> vector<32x16xf32>
    %c31_i32_150 = arith.constant 31 : i32
    %285 = tpu.dynamic_rotate %280 by %c31_i32_150 dim 0 : vector<32x16xf32>, i32 -> vector<32x16xf32>
    %c30_i32_151 = arith.constant 30 : i32
    %286 = tpu.dynamic_rotate %280 by %c30_i32_151 dim 0 : vector<32x16xf32>, i32 -> vector<32x16xf32>
    %287 = tpu.concatenate %283, %284, %280, %285, %286 in 1 : vector<32x16xf32>, vector<32x16xf32>, vector<32x16xf32>, vector<32x16xf32>, vector<32x16xf32> -> vector<32x80xf32>
    %288 = arith.mulf %287, %73 : vector<32x80xf32>
    %289 = arith.truncf %288 : vector<32x80xf32> to vector<32x80xbf16>
    %c1_152 = arith.constant 1 : index
    %c1_153 = arith.constant 1 : index
    %c0_154 = arith.constant 0 : index
    %c0_155 = arith.constant 0 : index
    %290 = vector.load %arg6[%c1_152, %c1_153, %c0_154, %c0_155] : memref<4x4x80x32xbf16, #tpu.memory_space<vmem>>, vector<1x1x80x32xbf16>
    %291 = vector.shape_cast %290 : vector<1x1x80x32xbf16> to vector<80x32xbf16>
    %cst_156 = arith.constant dense<0.000000e+00> : vector<32x32xf32>
    %292 = tpu.matmul %289, %291, %cst_156 {dimension_numbers = #tpu.dot_dimension_numbers<[1], [0], [0], [1], [0, 0, 1, 1], [], []>} : vector<32x80xbf16>, vector<80x32xbf16>, vector<32x32xf32> -> vector<32x32xf32>
    %c1_157 = arith.constant 1 : index
    %c1_158 = arith.constant 1 : index
    %c0_159 = arith.constant 0 : index
    %c0_160 = arith.constant 0 : index
    %293 = vector.load %arg7[%c1_157, %c1_158, %c0_159, %c0_160] : memref<4x4x1x32xf32, #tpu.memory_space<vmem>>, vector<1x1x1x32xf32>
    %294 = vector.shape_cast %293 : vector<1x1x1x32xf32> to vector<1x32xf32>
    %295 = vector.broadcast %294 : vector<1x32xf32> to vector<32x32xf32>
    %296 = arith.addf %292, %295 : vector<32x32xf32>
    %297 = vector.extract_strided_slice %296 {offsets = [0, 0], sizes = [32, 16], strides = [1, 1]} : vector<32x32xf32> to vector<32x16xf32>
    %298 = math.tanh %297 : vector<32x16xf32>
    %299 = vector.extract_strided_slice %296 {offsets = [0, 16], sizes = [32, 16], strides = [1, 1]} : vector<32x32xf32> to vector<32x16xf32>
    %300 = arith.negf %299 : vector<32x16xf32>
    %301 = math.exp %300 : vector<32x16xf32>
    %cst_161 = arith.constant 1.000000e+00 : f32
    %302 = vector.broadcast %cst_161 : f32 to vector<32x16xf32>
    %303 = arith.addf %302, %301 : vector<32x16xf32>
    %304 = arith.divf %302, %303 : vector<32x16xf32>
    %305 = arith.mulf %298, %304 : vector<32x16xf32>
    %306 = arith.truncf %305 : vector<32x16xf32> to vector<32x16xbf16>
    %c1_162 = arith.constant 1 : index
    %c1_163 = arith.constant 1 : index
    %c0_164 = arith.constant 0 : index
    %c0_165 = arith.constant 0 : index
    %307 = vector.load %arg8[%c1_162, %c1_163, %c0_164, %c0_165] : memref<4x4x16x32xbf16, #tpu.memory_space<vmem>>, vector<1x1x16x32xbf16>
    %308 = vector.shape_cast %307 : vector<1x1x16x32xbf16> to vector<16x32xbf16>
    %cst_166 = arith.constant dense<0.000000e+00> : vector<32x32xf32>
    %309 = tpu.matmul %306, %308, %cst_166 {dimension_numbers = #tpu.dot_dimension_numbers<[1], [0], [0], [1], [0, 0, 1, 1], [], []>} : vector<32x16xbf16>, vector<16x32xbf16>, vector<32x32xf32> -> vector<32x32xf32>
    %c1_167 = arith.constant 1 : index
    %c1_168 = arith.constant 1 : index
    %c0_169 = arith.constant 0 : index
    %c0_170 = arith.constant 0 : index
    %310 = vector.load %arg9[%c1_167, %c1_168, %c0_169, %c0_170] : memref<4x4x1x32xf32, #tpu.memory_space<vmem>>, vector<1x1x1x32xf32>
    %311 = vector.shape_cast %310 : vector<1x1x1x32xf32> to vector<1x32xf32>
    %312 = vector.broadcast %311 : vector<1x32xf32> to vector<32x32xf32>
    %313 = arith.addf %309, %312 : vector<32x32xf32>
    %314 = vector.extract_strided_slice %313 {offsets = [0, 0], sizes = [32, 16], strides = [1, 1]} : vector<32x32xf32> to vector<32x16xf32>
    %315 = arith.addf %280, %314 : vector<32x16xf32>
    %316 = arith.mulf %315, %4 : vector<32x16xf32>
    %317 = vector.extract_strided_slice %313 {offsets = [0, 16], sizes = [32, 16], strides = [1, 1]} : vector<32x32xf32> to vector<32x16xf32>
    %318 = arith.addf %282, %317 : vector<32x16xf32>
    %c2_i32_171 = arith.constant 2 : i32
    %319 = tpu.dynamic_rotate %316 by %c2_i32_171 dim 0 : vector<32x16xf32>, i32 -> vector<32x16xf32>
    %c1_i32_172 = arith.constant 1 : i32
    %320 = tpu.dynamic_rotate %316 by %c1_i32_172 dim 0 : vector<32x16xf32>, i32 -> vector<32x16xf32>
    %c31_i32_173 = arith.constant 31 : i32
    %321 = tpu.dynamic_rotate %316 by %c31_i32_173 dim 0 : vector<32x16xf32>, i32 -> vector<32x16xf32>
    %c30_i32_174 = arith.constant 30 : i32
    %322 = tpu.dynamic_rotate %316 by %c30_i32_174 dim 0 : vector<32x16xf32>, i32 -> vector<32x16xf32>
    %323 = tpu.concatenate %319, %320, %316, %321, %322 in 1 : vector<32x16xf32>, vector<32x16xf32>, vector<32x16xf32>, vector<32x16xf32>, vector<32x16xf32> -> vector<32x80xf32>
    %324 = arith.mulf %323, %73 : vector<32x80xf32>
    %325 = arith.truncf %324 : vector<32x80xf32> to vector<32x80xbf16>
    %c1_175 = arith.constant 1 : index
    %c2_176 = arith.constant 2 : index
    %c0_177 = arith.constant 0 : index
    %c0_178 = arith.constant 0 : index
    %326 = vector.load %arg6[%c1_175, %c2_176, %c0_177, %c0_178] : memref<4x4x80x32xbf16, #tpu.memory_space<vmem>>, vector<1x1x80x32xbf16>
    %327 = vector.shape_cast %326 : vector<1x1x80x32xbf16> to vector<80x32xbf16>
    %cst_179 = arith.constant dense<0.000000e+00> : vector<32x32xf32>
    %328 = tpu.matmul %325, %327, %cst_179 {dimension_numbers = #tpu.dot_dimension_numbers<[1], [0], [0], [1], [0, 0, 1, 1], [], []>} : vector<32x80xbf16>, vector<80x32xbf16>, vector<32x32xf32> -> vector<32x32xf32>
    %c1_180 = arith.constant 1 : index
    %c2_181 = arith.constant 2 : index
    %c0_182 = arith.constant 0 : index
    %c0_183 = arith.constant 0 : index
    %329 = vector.load %arg7[%c1_180, %c2_181, %c0_182, %c0_183] : memref<4x4x1x32xf32, #tpu.memory_space<vmem>>, vector<1x1x1x32xf32>
    %330 = vector.shape_cast %329 : vector<1x1x1x32xf32> to vector<1x32xf32>
    %331 = vector.broadcast %330 : vector<1x32xf32> to vector<32x32xf32>
    %332 = arith.addf %328, %331 : vector<32x32xf32>
    %333 = vector.extract_strided_slice %332 {offsets = [0, 0], sizes = [32, 16], strides = [1, 1]} : vector<32x32xf32> to vector<32x16xf32>
    %334 = math.tanh %333 : vector<32x16xf32>
    %335 = vector.extract_strided_slice %332 {offsets = [0, 16], sizes = [32, 16], strides = [1, 1]} : vector<32x32xf32> to vector<32x16xf32>
    %336 = arith.negf %335 : vector<32x16xf32>
    %337 = math.exp %336 : vector<32x16xf32>
    %cst_184 = arith.constant 1.000000e+00 : f32
    %338 = vector.broadcast %cst_184 : f32 to vector<32x16xf32>
    %339 = arith.addf %338, %337 : vector<32x16xf32>
    %340 = arith.divf %338, %339 : vector<32x16xf32>
    %341 = arith.mulf %334, %340 : vector<32x16xf32>
    %342 = arith.truncf %341 : vector<32x16xf32> to vector<32x16xbf16>
    %c1_185 = arith.constant 1 : index
    %c2_186 = arith.constant 2 : index
    %c0_187 = arith.constant 0 : index
    %c0_188 = arith.constant 0 : index
    %343 = vector.load %arg8[%c1_185, %c2_186, %c0_187, %c0_188] : memref<4x4x16x32xbf16, #tpu.memory_space<vmem>>, vector<1x1x16x32xbf16>
    %344 = vector.shape_cast %343 : vector<1x1x16x32xbf16> to vector<16x32xbf16>
    %cst_189 = arith.constant dense<0.000000e+00> : vector<32x32xf32>
    %345 = tpu.matmul %342, %344, %cst_189 {dimension_numbers = #tpu.dot_dimension_numbers<[1], [0], [0], [1], [0, 0, 1, 1], [], []>} : vector<32x16xbf16>, vector<16x32xbf16>, vector<32x32xf32> -> vector<32x32xf32>
    %c1_190 = arith.constant 1 : index
    %c2_191 = arith.constant 2 : index
    %c0_192 = arith.constant 0 : index
    %c0_193 = arith.constant 0 : index
    %346 = vector.load %arg9[%c1_190, %c2_191, %c0_192, %c0_193] : memref<4x4x1x32xf32, #tpu.memory_space<vmem>>, vector<1x1x1x32xf32>
    %347 = vector.shape_cast %346 : vector<1x1x1x32xf32> to vector<1x32xf32>
    %348 = vector.broadcast %347 : vector<1x32xf32> to vector<32x32xf32>
    %349 = arith.addf %345, %348 : vector<32x32xf32>
    %350 = vector.extract_strided_slice %349 {offsets = [0, 0], sizes = [32, 16], strides = [1, 1]} : vector<32x32xf32> to vector<32x16xf32>
    %351 = arith.addf %316, %350 : vector<32x16xf32>
    %352 = arith.mulf %351, %4 : vector<32x16xf32>
    %353 = vector.extract_strided_slice %349 {offsets = [0, 16], sizes = [32, 16], strides = [1, 1]} : vector<32x32xf32> to vector<32x16xf32>
    %354 = arith.addf %318, %353 : vector<32x16xf32>
    %c2_i32_194 = arith.constant 2 : i32
    %355 = tpu.dynamic_rotate %352 by %c2_i32_194 dim 0 : vector<32x16xf32>, i32 -> vector<32x16xf32>
    %c1_i32_195 = arith.constant 1 : i32
    %356 = tpu.dynamic_rotate %352 by %c1_i32_195 dim 0 : vector<32x16xf32>, i32 -> vector<32x16xf32>
    %c31_i32_196 = arith.constant 31 : i32
    %357 = tpu.dynamic_rotate %352 by %c31_i32_196 dim 0 : vector<32x16xf32>, i32 -> vector<32x16xf32>
    %c30_i32_197 = arith.constant 30 : i32
    %358 = tpu.dynamic_rotate %352 by %c30_i32_197 dim 0 : vector<32x16xf32>, i32 -> vector<32x16xf32>
    %359 = tpu.concatenate %355, %356, %352, %357, %358 in 1 : vector<32x16xf32>, vector<32x16xf32>, vector<32x16xf32>, vector<32x16xf32>, vector<32x16xf32> -> vector<32x80xf32>
    %360 = arith.mulf %359, %73 : vector<32x80xf32>
    %361 = arith.truncf %360 : vector<32x80xf32> to vector<32x80xbf16>
    %c1_198 = arith.constant 1 : index
    %c3_199 = arith.constant 3 : index
    %c0_200 = arith.constant 0 : index
    %c0_201 = arith.constant 0 : index
    %362 = vector.load %arg6[%c1_198, %c3_199, %c0_200, %c0_201] : memref<4x4x80x32xbf16, #tpu.memory_space<vmem>>, vector<1x1x80x32xbf16>
    %363 = vector.shape_cast %362 : vector<1x1x80x32xbf16> to vector<80x32xbf16>
    %cst_202 = arith.constant dense<0.000000e+00> : vector<32x32xf32>
    %364 = tpu.matmul %361, %363, %cst_202 {dimension_numbers = #tpu.dot_dimension_numbers<[1], [0], [0], [1], [0, 0, 1, 1], [], []>} : vector<32x80xbf16>, vector<80x32xbf16>, vector<32x32xf32> -> vector<32x32xf32>
    %c1_203 = arith.constant 1 : index
    %c3_204 = arith.constant 3 : index
    %c0_205 = arith.constant 0 : index
    %c0_206 = arith.constant 0 : index
    %365 = vector.load %arg7[%c1_203, %c3_204, %c0_205, %c0_206] : memref<4x4x1x32xf32, #tpu.memory_space<vmem>>, vector<1x1x1x32xf32>
    %366 = vector.shape_cast %365 : vector<1x1x1x32xf32> to vector<1x32xf32>
    %367 = vector.broadcast %366 : vector<1x32xf32> to vector<32x32xf32>
    %368 = arith.addf %364, %367 : vector<32x32xf32>
    %369 = vector.extract_strided_slice %368 {offsets = [0, 0], sizes = [32, 16], strides = [1, 1]} : vector<32x32xf32> to vector<32x16xf32>
    %370 = math.tanh %369 : vector<32x16xf32>
    %371 = vector.extract_strided_slice %368 {offsets = [0, 16], sizes = [32, 16], strides = [1, 1]} : vector<32x32xf32> to vector<32x16xf32>
    %372 = arith.negf %371 : vector<32x16xf32>
    %373 = math.exp %372 : vector<32x16xf32>
    %cst_207 = arith.constant 1.000000e+00 : f32
    %374 = vector.broadcast %cst_207 : f32 to vector<32x16xf32>
    %375 = arith.addf %374, %373 : vector<32x16xf32>
    %376 = arith.divf %374, %375 : vector<32x16xf32>
    %377 = arith.mulf %370, %376 : vector<32x16xf32>
    %378 = arith.truncf %377 : vector<32x16xf32> to vector<32x16xbf16>
    %c1_208 = arith.constant 1 : index
    %c3_209 = arith.constant 3 : index
    %c0_210 = arith.constant 0 : index
    %c0_211 = arith.constant 0 : index
    %379 = vector.load %arg8[%c1_208, %c3_209, %c0_210, %c0_211] : memref<4x4x16x32xbf16, #tpu.memory_space<vmem>>, vector<1x1x16x32xbf16>
    %380 = vector.shape_cast %379 : vector<1x1x16x32xbf16> to vector<16x32xbf16>
    %cst_212 = arith.constant dense<0.000000e+00> : vector<32x32xf32>
    %381 = tpu.matmul %378, %380, %cst_212 {dimension_numbers = #tpu.dot_dimension_numbers<[1], [0], [0], [1], [0, 0, 1, 1], [], []>} : vector<32x16xbf16>, vector<16x32xbf16>, vector<32x32xf32> -> vector<32x32xf32>
    %c1_213 = arith.constant 1 : index
    %c3_214 = arith.constant 3 : index
    %c0_215 = arith.constant 0 : index
    %c0_216 = arith.constant 0 : index
    %382 = vector.load %arg9[%c1_213, %c3_214, %c0_215, %c0_216] : memref<4x4x1x32xf32, #tpu.memory_space<vmem>>, vector<1x1x1x32xf32>
    %383 = vector.shape_cast %382 : vector<1x1x1x32xf32> to vector<1x32xf32>
    %384 = vector.broadcast %383 : vector<1x32xf32> to vector<32x32xf32>
    %385 = arith.addf %381, %384 : vector<32x32xf32>
    %386 = vector.extract_strided_slice %385 {offsets = [0, 16], sizes = [32, 16], strides = [1, 1]} : vector<32x32xf32> to vector<32x16xf32>
    %387 = arith.addf %354, %386 : vector<32x16xf32>
    %388 = arith.mulf %387, %4 : vector<32x16xf32>
    %389 = arith.truncf %388 : vector<32x16xf32> to vector<32x16xbf16>
    %c1_217 = arith.constant 1 : index
    %c0_218 = arith.constant 0 : index
    %c0_219 = arith.constant 0 : index
    %390 = vector.load %arg10[%c1_217, %c0_218, %c0_219] : memref<4x16x4xbf16, #tpu.memory_space<vmem>>, vector<1x16x4xbf16>
    %391 = vector.shape_cast %390 : vector<1x16x4xbf16> to vector<16x4xbf16>
    %cst_220 = arith.constant dense<0.000000e+00> : vector<32x4xf32>
    %392 = tpu.matmul %389, %391, %cst_220 {dimension_numbers = #tpu.dot_dimension_numbers<[1], [0], [0], [1], [0, 0, 1, 1], [], []>} : vector<32x16xbf16>, vector<16x4xbf16>, vector<32x4xf32> -> vector<32x4xf32>
    %c1_221 = arith.constant 1 : index
    %c0_222 = arith.constant 0 : index
    %c0_223 = arith.constant 0 : index
    %393 = vector.load %arg11[%c1_221, %c0_222, %c0_223] : memref<4x1x4xf32, #tpu.memory_space<vmem>>, vector<1x1x4xf32>
    %394 = vector.shape_cast %393 : vector<1x1x4xf32> to vector<1x4xf32>
    %395 = vector.broadcast %394 : vector<1x4xf32> to vector<32x4xf32>
    %396 = arith.addf %392, %395 : vector<32x4xf32>
    %397 = arith.mulf %396, %6 : vector<32x4xf32>
    %398 = arith.mulf %0, %6 : vector<32x4xf32>
    %399 = arith.addf %397, %398 : vector<32x4xf32>
    %400 = arith.truncf %399 : vector<32x4xf32> to vector<32x4xbf16>
    %c2_224 = arith.constant 2 : index
    %c0_225 = arith.constant 0 : index
    %c0_226 = arith.constant 0 : index
    %401 = vector.load %arg4[%c2_224, %c0_225, %c0_226] : memref<4x4x16xbf16, #tpu.memory_space<vmem>>, vector<1x4x16xbf16>
    %402 = vector.shape_cast %401 : vector<1x4x16xbf16> to vector<4x16xbf16>
    %cst_227 = arith.constant dense<0.000000e+00> : vector<32x16xf32>
    %403 = tpu.matmul %400, %402, %cst_227 {dimension_numbers = #tpu.dot_dimension_numbers<[1], [0], [0], [1], [0, 0, 1, 1], [], []>} : vector<32x4xbf16>, vector<4x16xbf16>, vector<32x16xf32> -> vector<32x16xf32>
    %c2_228 = arith.constant 2 : index
    %c0_229 = arith.constant 0 : index
    %c0_230 = arith.constant 0 : index
    %404 = vector.load %arg5[%c2_228, %c0_229, %c0_230] : memref<4x1x16xf32, #tpu.memory_space<vmem>>, vector<1x1x16xf32>
    %405 = vector.shape_cast %404 : vector<1x1x16xf32> to vector<1x16xf32>
    %406 = vector.broadcast %405 : vector<1x16xf32> to vector<32x16xf32>
    %407 = arith.addf %403, %406 : vector<32x16xf32>
    %408 = arith.mulf %407, %4 : vector<32x16xf32>
    %cst_231 = arith.constant 0.000000e+00 : f32
    %409 = vector.broadcast %cst_231 : f32 to vector<32x16xf32>
    %c2_i32_232 = arith.constant 2 : i32
    %410 = tpu.dynamic_rotate %408 by %c2_i32_232 dim 0 : vector<32x16xf32>, i32 -> vector<32x16xf32>
    %c1_i32_233 = arith.constant 1 : i32
    %411 = tpu.dynamic_rotate %408 by %c1_i32_233 dim 0 : vector<32x16xf32>, i32 -> vector<32x16xf32>
    %c31_i32_234 = arith.constant 31 : i32
    %412 = tpu.dynamic_rotate %408 by %c31_i32_234 dim 0 : vector<32x16xf32>, i32 -> vector<32x16xf32>
    %c30_i32_235 = arith.constant 30 : i32
    %413 = tpu.dynamic_rotate %408 by %c30_i32_235 dim 0 : vector<32x16xf32>, i32 -> vector<32x16xf32>
    %414 = tpu.concatenate %410, %411, %408, %412, %413 in 1 : vector<32x16xf32>, vector<32x16xf32>, vector<32x16xf32>, vector<32x16xf32>, vector<32x16xf32> -> vector<32x80xf32>
    %415 = arith.mulf %414, %73 : vector<32x80xf32>
    %416 = arith.truncf %415 : vector<32x80xf32> to vector<32x80xbf16>
    %c2_236 = arith.constant 2 : index
    %c0_237 = arith.constant 0 : index
    %c0_238 = arith.constant 0 : index
    %c0_239 = arith.constant 0 : index
    %417 = vector.load %arg6[%c2_236, %c0_237, %c0_238, %c0_239] : memref<4x4x80x32xbf16, #tpu.memory_space<vmem>>, vector<1x1x80x32xbf16>
    %418 = vector.shape_cast %417 : vector<1x1x80x32xbf16> to vector<80x32xbf16>
    %cst_240 = arith.constant dense<0.000000e+00> : vector<32x32xf32>
    %419 = tpu.matmul %416, %418, %cst_240 {dimension_numbers = #tpu.dot_dimension_numbers<[1], [0], [0], [1], [0, 0, 1, 1], [], []>} : vector<32x80xbf16>, vector<80x32xbf16>, vector<32x32xf32> -> vector<32x32xf32>
    %c2_241 = arith.constant 2 : index
    %c0_242 = arith.constant 0 : index
    %c0_243 = arith.constant 0 : index
    %c0_244 = arith.constant 0 : index
    %420 = vector.load %arg7[%c2_241, %c0_242, %c0_243, %c0_244] : memref<4x4x1x32xf32, #tpu.memory_space<vmem>>, vector<1x1x1x32xf32>
    %421 = vector.shape_cast %420 : vector<1x1x1x32xf32> to vector<1x32xf32>
    %422 = vector.broadcast %421 : vector<1x32xf32> to vector<32x32xf32>
    %423 = arith.addf %419, %422 : vector<32x32xf32>
    %424 = vector.extract_strided_slice %423 {offsets = [0, 0], sizes = [32, 16], strides = [1, 1]} : vector<32x32xf32> to vector<32x16xf32>
    %425 = math.tanh %424 : vector<32x16xf32>
    %426 = vector.extract_strided_slice %423 {offsets = [0, 16], sizes = [32, 16], strides = [1, 1]} : vector<32x32xf32> to vector<32x16xf32>
    %427 = arith.negf %426 : vector<32x16xf32>
    %428 = math.exp %427 : vector<32x16xf32>
    %cst_245 = arith.constant 1.000000e+00 : f32
    %429 = vector.broadcast %cst_245 : f32 to vector<32x16xf32>
    %430 = arith.addf %429, %428 : vector<32x16xf32>
    %431 = arith.divf %429, %430 : vector<32x16xf32>
    %432 = arith.mulf %425, %431 : vector<32x16xf32>
    %433 = arith.truncf %432 : vector<32x16xf32> to vector<32x16xbf16>
    %c2_246 = arith.constant 2 : index
    %c0_247 = arith.constant 0 : index
    %c0_248 = arith.constant 0 : index
    %c0_249 = arith.constant 0 : index
    %434 = vector.load %arg8[%c2_246, %c0_247, %c0_248, %c0_249] : memref<4x4x16x32xbf16, #tpu.memory_space<vmem>>, vector<1x1x16x32xbf16>
    %435 = vector.shape_cast %434 : vector<1x1x16x32xbf16> to vector<16x32xbf16>
    %cst_250 = arith.constant dense<0.000000e+00> : vector<32x32xf32>
    %436 = tpu.matmul %433, %435, %cst_250 {dimension_numbers = #tpu.dot_dimension_numbers<[1], [0], [0], [1], [0, 0, 1, 1], [], []>} : vector<32x16xbf16>, vector<16x32xbf16>, vector<32x32xf32> -> vector<32x32xf32>
    %c2_251 = arith.constant 2 : index
    %c0_252 = arith.constant 0 : index
    %c0_253 = arith.constant 0 : index
    %c0_254 = arith.constant 0 : index
    %437 = vector.load %arg9[%c2_251, %c0_252, %c0_253, %c0_254] : memref<4x4x1x32xf32, #tpu.memory_space<vmem>>, vector<1x1x1x32xf32>
    %438 = vector.shape_cast %437 : vector<1x1x1x32xf32> to vector<1x32xf32>
    %439 = vector.broadcast %438 : vector<1x32xf32> to vector<32x32xf32>
    %440 = arith.addf %436, %439 : vector<32x32xf32>
    %441 = vector.extract_strided_slice %440 {offsets = [0, 0], sizes = [32, 16], strides = [1, 1]} : vector<32x32xf32> to vector<32x16xf32>
    %442 = arith.addf %408, %441 : vector<32x16xf32>
    %443 = arith.mulf %442, %4 : vector<32x16xf32>
    %444 = vector.extract_strided_slice %440 {offsets = [0, 16], sizes = [32, 16], strides = [1, 1]} : vector<32x32xf32> to vector<32x16xf32>
    %445 = arith.addf %409, %444 : vector<32x16xf32>
    %c2_i32_255 = arith.constant 2 : i32
    %446 = tpu.dynamic_rotate %443 by %c2_i32_255 dim 0 : vector<32x16xf32>, i32 -> vector<32x16xf32>
    %c1_i32_256 = arith.constant 1 : i32
    %447 = tpu.dynamic_rotate %443 by %c1_i32_256 dim 0 : vector<32x16xf32>, i32 -> vector<32x16xf32>
    %c31_i32_257 = arith.constant 31 : i32
    %448 = tpu.dynamic_rotate %443 by %c31_i32_257 dim 0 : vector<32x16xf32>, i32 -> vector<32x16xf32>
    %c30_i32_258 = arith.constant 30 : i32
    %449 = tpu.dynamic_rotate %443 by %c30_i32_258 dim 0 : vector<32x16xf32>, i32 -> vector<32x16xf32>
    %450 = tpu.concatenate %446, %447, %443, %448, %449 in 1 : vector<32x16xf32>, vector<32x16xf32>, vector<32x16xf32>, vector<32x16xf32>, vector<32x16xf32> -> vector<32x80xf32>
    %451 = arith.mulf %450, %73 : vector<32x80xf32>
    %452 = arith.truncf %451 : vector<32x80xf32> to vector<32x80xbf16>
    %c2_259 = arith.constant 2 : index
    %c1_260 = arith.constant 1 : index
    %c0_261 = arith.constant 0 : index
    %c0_262 = arith.constant 0 : index
    %453 = vector.load %arg6[%c2_259, %c1_260, %c0_261, %c0_262] : memref<4x4x80x32xbf16, #tpu.memory_space<vmem>>, vector<1x1x80x32xbf16>
    %454 = vector.shape_cast %453 : vector<1x1x80x32xbf16> to vector<80x32xbf16>
    %cst_263 = arith.constant dense<0.000000e+00> : vector<32x32xf32>
    %455 = tpu.matmul %452, %454, %cst_263 {dimension_numbers = #tpu.dot_dimension_numbers<[1], [0], [0], [1], [0, 0, 1, 1], [], []>} : vector<32x80xbf16>, vector<80x32xbf16>, vector<32x32xf32> -> vector<32x32xf32>
    %c2_264 = arith.constant 2 : index
    %c1_265 = arith.constant 1 : index
    %c0_266 = arith.constant 0 : index
    %c0_267 = arith.constant 0 : index
    %456 = vector.load %arg7[%c2_264, %c1_265, %c0_266, %c0_267] : memref<4x4x1x32xf32, #tpu.memory_space<vmem>>, vector<1x1x1x32xf32>
    %457 = vector.shape_cast %456 : vector<1x1x1x32xf32> to vector<1x32xf32>
    %458 = vector.broadcast %457 : vector<1x32xf32> to vector<32x32xf32>
    %459 = arith.addf %455, %458 : vector<32x32xf32>
    %460 = vector.extract_strided_slice %459 {offsets = [0, 0], sizes = [32, 16], strides = [1, 1]} : vector<32x32xf32> to vector<32x16xf32>
    %461 = math.tanh %460 : vector<32x16xf32>
    %462 = vector.extract_strided_slice %459 {offsets = [0, 16], sizes = [32, 16], strides = [1, 1]} : vector<32x32xf32> to vector<32x16xf32>
    %463 = arith.negf %462 : vector<32x16xf32>
    %464 = math.exp %463 : vector<32x16xf32>
    %cst_268 = arith.constant 1.000000e+00 : f32
    %465 = vector.broadcast %cst_268 : f32 to vector<32x16xf32>
    %466 = arith.addf %465, %464 : vector<32x16xf32>
    %467 = arith.divf %465, %466 : vector<32x16xf32>
    %468 = arith.mulf %461, %467 : vector<32x16xf32>
    %469 = arith.truncf %468 : vector<32x16xf32> to vector<32x16xbf16>
    %c2_269 = arith.constant 2 : index
    %c1_270 = arith.constant 1 : index
    %c0_271 = arith.constant 0 : index
    %c0_272 = arith.constant 0 : index
    %470 = vector.load %arg8[%c2_269, %c1_270, %c0_271, %c0_272] : memref<4x4x16x32xbf16, #tpu.memory_space<vmem>>, vector<1x1x16x32xbf16>
    %471 = vector.shape_cast %470 : vector<1x1x16x32xbf16> to vector<16x32xbf16>
    %cst_273 = arith.constant dense<0.000000e+00> : vector<32x32xf32>
    %472 = tpu.matmul %469, %471, %cst_273 {dimension_numbers = #tpu.dot_dimension_numbers<[1], [0], [0], [1], [0, 0, 1, 1], [], []>} : vector<32x16xbf16>, vector<16x32xbf16>, vector<32x32xf32> -> vector<32x32xf32>
    %c2_274 = arith.constant 2 : index
    %c1_275 = arith.constant 1 : index
    %c0_276 = arith.constant 0 : index
    %c0_277 = arith.constant 0 : index
    %473 = vector.load %arg9[%c2_274, %c1_275, %c0_276, %c0_277] : memref<4x4x1x32xf32, #tpu.memory_space<vmem>>, vector<1x1x1x32xf32>
    %474 = vector.shape_cast %473 : vector<1x1x1x32xf32> to vector<1x32xf32>
    %475 = vector.broadcast %474 : vector<1x32xf32> to vector<32x32xf32>
    %476 = arith.addf %472, %475 : vector<32x32xf32>
    %477 = vector.extract_strided_slice %476 {offsets = [0, 0], sizes = [32, 16], strides = [1, 1]} : vector<32x32xf32> to vector<32x16xf32>
    %478 = arith.addf %443, %477 : vector<32x16xf32>
    %479 = arith.mulf %478, %4 : vector<32x16xf32>
    %480 = vector.extract_strided_slice %476 {offsets = [0, 16], sizes = [32, 16], strides = [1, 1]} : vector<32x32xf32> to vector<32x16xf32>
    %481 = arith.addf %445, %480 : vector<32x16xf32>
    %c2_i32_278 = arith.constant 2 : i32
    %482 = tpu.dynamic_rotate %479 by %c2_i32_278 dim 0 : vector<32x16xf32>, i32 -> vector<32x16xf32>
    %c1_i32_279 = arith.constant 1 : i32
    %483 = tpu.dynamic_rotate %479 by %c1_i32_279 dim 0 : vector<32x16xf32>, i32 -> vector<32x16xf32>
    %c31_i32_280 = arith.constant 31 : i32
    %484 = tpu.dynamic_rotate %479 by %c31_i32_280 dim 0 : vector<32x16xf32>, i32 -> vector<32x16xf32>
    %c30_i32_281 = arith.constant 30 : i32
    %485 = tpu.dynamic_rotate %479 by %c30_i32_281 dim 0 : vector<32x16xf32>, i32 -> vector<32x16xf32>
    %486 = tpu.concatenate %482, %483, %479, %484, %485 in 1 : vector<32x16xf32>, vector<32x16xf32>, vector<32x16xf32>, vector<32x16xf32>, vector<32x16xf32> -> vector<32x80xf32>
    %487 = arith.mulf %486, %73 : vector<32x80xf32>
    %488 = arith.truncf %487 : vector<32x80xf32> to vector<32x80xbf16>
    %c2_282 = arith.constant 2 : index
    %c2_283 = arith.constant 2 : index
    %c0_284 = arith.constant 0 : index
    %c0_285 = arith.constant 0 : index
    %489 = vector.load %arg6[%c2_282, %c2_283, %c0_284, %c0_285] : memref<4x4x80x32xbf16, #tpu.memory_space<vmem>>, vector<1x1x80x32xbf16>
    %490 = vector.shape_cast %489 : vector<1x1x80x32xbf16> to vector<80x32xbf16>
    %cst_286 = arith.constant dense<0.000000e+00> : vector<32x32xf32>
    %491 = tpu.matmul %488, %490, %cst_286 {dimension_numbers = #tpu.dot_dimension_numbers<[1], [0], [0], [1], [0, 0, 1, 1], [], []>} : vector<32x80xbf16>, vector<80x32xbf16>, vector<32x32xf32> -> vector<32x32xf32>
    %c2_287 = arith.constant 2 : index
    %c2_288 = arith.constant 2 : index
    %c0_289 = arith.constant 0 : index
    %c0_290 = arith.constant 0 : index
    %492 = vector.load %arg7[%c2_287, %c2_288, %c0_289, %c0_290] : memref<4x4x1x32xf32, #tpu.memory_space<vmem>>, vector<1x1x1x32xf32>
    %493 = vector.shape_cast %492 : vector<1x1x1x32xf32> to vector<1x32xf32>
    %494 = vector.broadcast %493 : vector<1x32xf32> to vector<32x32xf32>
    %495 = arith.addf %491, %494 : vector<32x32xf32>
    %496 = vector.extract_strided_slice %495 {offsets = [0, 0], sizes = [32, 16], strides = [1, 1]} : vector<32x32xf32> to vector<32x16xf32>
    %497 = math.tanh %496 : vector<32x16xf32>
    %498 = vector.extract_strided_slice %495 {offsets = [0, 16], sizes = [32, 16], strides = [1, 1]} : vector<32x32xf32> to vector<32x16xf32>
    %499 = arith.negf %498 : vector<32x16xf32>
    %500 = math.exp %499 : vector<32x16xf32>
    %cst_291 = arith.constant 1.000000e+00 : f32
    %501 = vector.broadcast %cst_291 : f32 to vector<32x16xf32>
    %502 = arith.addf %501, %500 : vector<32x16xf32>
    %503 = arith.divf %501, %502 : vector<32x16xf32>
    %504 = arith.mulf %497, %503 : vector<32x16xf32>
    %505 = arith.truncf %504 : vector<32x16xf32> to vector<32x16xbf16>
    %c2_292 = arith.constant 2 : index
    %c2_293 = arith.constant 2 : index
    %c0_294 = arith.constant 0 : index
    %c0_295 = arith.constant 0 : index
    %506 = vector.load %arg8[%c2_292, %c2_293, %c0_294, %c0_295] : memref<4x4x16x32xbf16, #tpu.memory_space<vmem>>, vector<1x1x16x32xbf16>
    %507 = vector.shape_cast %506 : vector<1x1x16x32xbf16> to vector<16x32xbf16>
    %cst_296 = arith.constant dense<0.000000e+00> : vector<32x32xf32>
    %508 = tpu.matmul %505, %507, %cst_296 {dimension_numbers = #tpu.dot_dimension_numbers<[1], [0], [0], [1], [0, 0, 1, 1], [], []>} : vector<32x16xbf16>, vector<16x32xbf16>, vector<32x32xf32> -> vector<32x32xf32>
    %c2_297 = arith.constant 2 : index
    %c2_298 = arith.constant 2 : index
    %c0_299 = arith.constant 0 : index
    %c0_300 = arith.constant 0 : index
    %509 = vector.load %arg9[%c2_297, %c2_298, %c0_299, %c0_300] : memref<4x4x1x32xf32, #tpu.memory_space<vmem>>, vector<1x1x1x32xf32>
    %510 = vector.shape_cast %509 : vector<1x1x1x32xf32> to vector<1x32xf32>
    %511 = vector.broadcast %510 : vector<1x32xf32> to vector<32x32xf32>
    %512 = arith.addf %508, %511 : vector<32x32xf32>
    %513 = vector.extract_strided_slice %512 {offsets = [0, 0], sizes = [32, 16], strides = [1, 1]} : vector<32x32xf32> to vector<32x16xf32>
    %514 = arith.addf %479, %513 : vector<32x16xf32>
    %515 = arith.mulf %514, %4 : vector<32x16xf32>
    %516 = vector.extract_strided_slice %512 {offsets = [0, 16], sizes = [32, 16], strides = [1, 1]} : vector<32x32xf32> to vector<32x16xf32>
    %517 = arith.addf %481, %516 : vector<32x16xf32>
    %c2_i32_301 = arith.constant 2 : i32
    %518 = tpu.dynamic_rotate %515 by %c2_i32_301 dim 0 : vector<32x16xf32>, i32 -> vector<32x16xf32>
    %c1_i32_302 = arith.constant 1 : i32
    %519 = tpu.dynamic_rotate %515 by %c1_i32_302 dim 0 : vector<32x16xf32>, i32 -> vector<32x16xf32>
    %c31_i32_303 = arith.constant 31 : i32
    %520 = tpu.dynamic_rotate %515 by %c31_i32_303 dim 0 : vector<32x16xf32>, i32 -> vector<32x16xf32>
    %c30_i32_304 = arith.constant 30 : i32
    %521 = tpu.dynamic_rotate %515 by %c30_i32_304 dim 0 : vector<32x16xf32>, i32 -> vector<32x16xf32>
    %522 = tpu.concatenate %518, %519, %515, %520, %521 in 1 : vector<32x16xf32>, vector<32x16xf32>, vector<32x16xf32>, vector<32x16xf32>, vector<32x16xf32> -> vector<32x80xf32>
    %523 = arith.mulf %522, %73 : vector<32x80xf32>
    %524 = arith.truncf %523 : vector<32x80xf32> to vector<32x80xbf16>
    %c2_305 = arith.constant 2 : index
    %c3_306 = arith.constant 3 : index
    %c0_307 = arith.constant 0 : index
    %c0_308 = arith.constant 0 : index
    %525 = vector.load %arg6[%c2_305, %c3_306, %c0_307, %c0_308] : memref<4x4x80x32xbf16, #tpu.memory_space<vmem>>, vector<1x1x80x32xbf16>
    %526 = vector.shape_cast %525 : vector<1x1x80x32xbf16> to vector<80x32xbf16>
    %cst_309 = arith.constant dense<0.000000e+00> : vector<32x32xf32>
    %527 = tpu.matmul %524, %526, %cst_309 {dimension_numbers = #tpu.dot_dimension_numbers<[1], [0], [0], [1], [0, 0, 1, 1], [], []>} : vector<32x80xbf16>, vector<80x32xbf16>, vector<32x32xf32> -> vector<32x32xf32>
    %c2_310 = arith.constant 2 : index
    %c3_311 = arith.constant 3 : index
    %c0_312 = arith.constant 0 : index
    %c0_313 = arith.constant 0 : index
    %528 = vector.load %arg7[%c2_310, %c3_311, %c0_312, %c0_313] : memref<4x4x1x32xf32, #tpu.memory_space<vmem>>, vector<1x1x1x32xf32>
    %529 = vector.shape_cast %528 : vector<1x1x1x32xf32> to vector<1x32xf32>
    %530 = vector.broadcast %529 : vector<1x32xf32> to vector<32x32xf32>
    %531 = arith.addf %527, %530 : vector<32x32xf32>
    %532 = vector.extract_strided_slice %531 {offsets = [0, 0], sizes = [32, 16], strides = [1, 1]} : vector<32x32xf32> to vector<32x16xf32>
    %533 = math.tanh %532 : vector<32x16xf32>
    %534 = vector.extract_strided_slice %531 {offsets = [0, 16], sizes = [32, 16], strides = [1, 1]} : vector<32x32xf32> to vector<32x16xf32>
    %535 = arith.negf %534 : vector<32x16xf32>
    %536 = math.exp %535 : vector<32x16xf32>
    %cst_314 = arith.constant 1.000000e+00 : f32
    %537 = vector.broadcast %cst_314 : f32 to vector<32x16xf32>
    %538 = arith.addf %537, %536 : vector<32x16xf32>
    %539 = arith.divf %537, %538 : vector<32x16xf32>
    %540 = arith.mulf %533, %539 : vector<32x16xf32>
    %541 = arith.truncf %540 : vector<32x16xf32> to vector<32x16xbf16>
    %c2_315 = arith.constant 2 : index
    %c3_316 = arith.constant 3 : index
    %c0_317 = arith.constant 0 : index
    %c0_318 = arith.constant 0 : index
    %542 = vector.load %arg8[%c2_315, %c3_316, %c0_317, %c0_318] : memref<4x4x16x32xbf16, #tpu.memory_space<vmem>>, vector<1x1x16x32xbf16>
    %543 = vector.shape_cast %542 : vector<1x1x16x32xbf16> to vector<16x32xbf16>
    %cst_319 = arith.constant dense<0.000000e+00> : vector<32x32xf32>
    %544 = tpu.matmul %541, %543, %cst_319 {dimension_numbers = #tpu.dot_dimension_numbers<[1], [0], [0], [1], [0, 0, 1, 1], [], []>} : vector<32x16xbf16>, vector<16x32xbf16>, vector<32x32xf32> -> vector<32x32xf32>
    %c2_320 = arith.constant 2 : index
    %c3_321 = arith.constant 3 : index
    %c0_322 = arith.constant 0 : index
    %c0_323 = arith.constant 0 : index
    %545 = vector.load %arg9[%c2_320, %c3_321, %c0_322, %c0_323] : memref<4x4x1x32xf32, #tpu.memory_space<vmem>>, vector<1x1x1x32xf32>
    %546 = vector.shape_cast %545 : vector<1x1x1x32xf32> to vector<1x32xf32>
    %547 = vector.broadcast %546 : vector<1x32xf32> to vector<32x32xf32>
    %548 = arith.addf %544, %547 : vector<32x32xf32>
    %549 = vector.extract_strided_slice %548 {offsets = [0, 16], sizes = [32, 16], strides = [1, 1]} : vector<32x32xf32> to vector<32x16xf32>
    %550 = arith.addf %517, %549 : vector<32x16xf32>
    %551 = arith.mulf %550, %4 : vector<32x16xf32>
    %552 = arith.truncf %551 : vector<32x16xf32> to vector<32x16xbf16>
    %c2_324 = arith.constant 2 : index
    %c0_325 = arith.constant 0 : index
    %c0_326 = arith.constant 0 : index
    %553 = vector.load %arg10[%c2_324, %c0_325, %c0_326] : memref<4x16x4xbf16, #tpu.memory_space<vmem>>, vector<1x16x4xbf16>
    %554 = vector.shape_cast %553 : vector<1x16x4xbf16> to vector<16x4xbf16>
    %cst_327 = arith.constant dense<0.000000e+00> : vector<32x4xf32>
    %555 = tpu.matmul %552, %554, %cst_327 {dimension_numbers = #tpu.dot_dimension_numbers<[1], [0], [0], [1], [0, 0, 1, 1], [], []>} : vector<32x16xbf16>, vector<16x4xbf16>, vector<32x4xf32> -> vector<32x4xf32>
    %c2_328 = arith.constant 2 : index
    %c0_329 = arith.constant 0 : index
    %c0_330 = arith.constant 0 : index
    %556 = vector.load %arg11[%c2_328, %c0_329, %c0_330] : memref<4x1x4xf32, #tpu.memory_space<vmem>>, vector<1x1x4xf32>
    %557 = vector.shape_cast %556 : vector<1x1x4xf32> to vector<1x4xf32>
    %558 = vector.broadcast %557 : vector<1x4xf32> to vector<32x4xf32>
    %559 = arith.addf %555, %558 : vector<32x4xf32>
    %560 = arith.mulf %559, %6 : vector<32x4xf32>
    %561 = arith.mulf %236, %6 : vector<32x4xf32>
    %562 = arith.addf %560, %561 : vector<32x4xf32>
    %563 = arith.truncf %562 : vector<32x4xf32> to vector<32x4xbf16>
    %c3_331 = arith.constant 3 : index
    %c0_332 = arith.constant 0 : index
    %c0_333 = arith.constant 0 : index
    %564 = vector.load %arg4[%c3_331, %c0_332, %c0_333] : memref<4x4x16xbf16, #tpu.memory_space<vmem>>, vector<1x4x16xbf16>
    %565 = vector.shape_cast %564 : vector<1x4x16xbf16> to vector<4x16xbf16>
    %cst_334 = arith.constant dense<0.000000e+00> : vector<32x16xf32>
    %566 = tpu.matmul %563, %565, %cst_334 {dimension_numbers = #tpu.dot_dimension_numbers<[1], [0], [0], [1], [0, 0, 1, 1], [], []>} : vector<32x4xbf16>, vector<4x16xbf16>, vector<32x16xf32> -> vector<32x16xf32>
    %c3_335 = arith.constant 3 : index
    %c0_336 = arith.constant 0 : index
    %c0_337 = arith.constant 0 : index
    %567 = vector.load %arg5[%c3_335, %c0_336, %c0_337] : memref<4x1x16xf32, #tpu.memory_space<vmem>>, vector<1x1x16xf32>
    %568 = vector.shape_cast %567 : vector<1x1x16xf32> to vector<1x16xf32>
    %569 = vector.broadcast %568 : vector<1x16xf32> to vector<32x16xf32>
    %570 = arith.addf %566, %569 : vector<32x16xf32>
    %571 = arith.mulf %570, %4 : vector<32x16xf32>
    %cst_338 = arith.constant 0.000000e+00 : f32
    %572 = vector.broadcast %cst_338 : f32 to vector<32x16xf32>
    %c2_i32_339 = arith.constant 2 : i32
    %573 = tpu.dynamic_rotate %571 by %c2_i32_339 dim 0 : vector<32x16xf32>, i32 -> vector<32x16xf32>
    %c1_i32_340 = arith.constant 1 : i32
    %574 = tpu.dynamic_rotate %571 by %c1_i32_340 dim 0 : vector<32x16xf32>, i32 -> vector<32x16xf32>
    %c31_i32_341 = arith.constant 31 : i32
    %575 = tpu.dynamic_rotate %571 by %c31_i32_341 dim 0 : vector<32x16xf32>, i32 -> vector<32x16xf32>
    %c30_i32_342 = arith.constant 30 : i32
    %576 = tpu.dynamic_rotate %571 by %c30_i32_342 dim 0 : vector<32x16xf32>, i32 -> vector<32x16xf32>
    %577 = tpu.concatenate %573, %574, %571, %575, %576 in 1 : vector<32x16xf32>, vector<32x16xf32>, vector<32x16xf32>, vector<32x16xf32>, vector<32x16xf32> -> vector<32x80xf32>
    %578 = arith.mulf %577, %73 : vector<32x80xf32>
    %579 = arith.truncf %578 : vector<32x80xf32> to vector<32x80xbf16>
    %c3_343 = arith.constant 3 : index
    %c0_344 = arith.constant 0 : index
    %c0_345 = arith.constant 0 : index
    %c0_346 = arith.constant 0 : index
    %580 = vector.load %arg6[%c3_343, %c0_344, %c0_345, %c0_346] : memref<4x4x80x32xbf16, #tpu.memory_space<vmem>>, vector<1x1x80x32xbf16>
    %581 = vector.shape_cast %580 : vector<1x1x80x32xbf16> to vector<80x32xbf16>
    %cst_347 = arith.constant dense<0.000000e+00> : vector<32x32xf32>
    %582 = tpu.matmul %579, %581, %cst_347 {dimension_numbers = #tpu.dot_dimension_numbers<[1], [0], [0], [1], [0, 0, 1, 1], [], []>} : vector<32x80xbf16>, vector<80x32xbf16>, vector<32x32xf32> -> vector<32x32xf32>
    %c3_348 = arith.constant 3 : index
    %c0_349 = arith.constant 0 : index
    %c0_350 = arith.constant 0 : index
    %c0_351 = arith.constant 0 : index
    %583 = vector.load %arg7[%c3_348, %c0_349, %c0_350, %c0_351] : memref<4x4x1x32xf32, #tpu.memory_space<vmem>>, vector<1x1x1x32xf32>
    %584 = vector.shape_cast %583 : vector<1x1x1x32xf32> to vector<1x32xf32>
    %585 = vector.broadcast %584 : vector<1x32xf32> to vector<32x32xf32>
    %586 = arith.addf %582, %585 : vector<32x32xf32>
    %587 = vector.extract_strided_slice %586 {offsets = [0, 0], sizes = [32, 16], strides = [1, 1]} : vector<32x32xf32> to vector<32x16xf32>
    %588 = math.tanh %587 : vector<32x16xf32>
    %589 = vector.extract_strided_slice %586 {offsets = [0, 16], sizes = [32, 16], strides = [1, 1]} : vector<32x32xf32> to vector<32x16xf32>
    %590 = arith.negf %589 : vector<32x16xf32>
    %591 = math.exp %590 : vector<32x16xf32>
    %cst_352 = arith.constant 1.000000e+00 : f32
    %592 = vector.broadcast %cst_352 : f32 to vector<32x16xf32>
    %593 = arith.addf %592, %591 : vector<32x16xf32>
    %594 = arith.divf %592, %593 : vector<32x16xf32>
    %595 = arith.mulf %588, %594 : vector<32x16xf32>
    %596 = arith.truncf %595 : vector<32x16xf32> to vector<32x16xbf16>
    %c3_353 = arith.constant 3 : index
    %c0_354 = arith.constant 0 : index
    %c0_355 = arith.constant 0 : index
    %c0_356 = arith.constant 0 : index
    %597 = vector.load %arg8[%c3_353, %c0_354, %c0_355, %c0_356] : memref<4x4x16x32xbf16, #tpu.memory_space<vmem>>, vector<1x1x16x32xbf16>
    %598 = vector.shape_cast %597 : vector<1x1x16x32xbf16> to vector<16x32xbf16>
    %cst_357 = arith.constant dense<0.000000e+00> : vector<32x32xf32>
    %599 = tpu.matmul %596, %598, %cst_357 {dimension_numbers = #tpu.dot_dimension_numbers<[1], [0], [0], [1], [0, 0, 1, 1], [], []>} : vector<32x16xbf16>, vector<16x32xbf16>, vector<32x32xf32> -> vector<32x32xf32>
    %c3_358 = arith.constant 3 : index
    %c0_359 = arith.constant 0 : index
    %c0_360 = arith.constant 0 : index
    %c0_361 = arith.constant 0 : index
    %600 = vector.load %arg9[%c3_358, %c0_359, %c0_360, %c0_361] : memref<4x4x1x32xf32, #tpu.memory_space<vmem>>, vector<1x1x1x32xf32>
    %601 = vector.shape_cast %600 : vector<1x1x1x32xf32> to vector<1x32xf32>
    %602 = vector.broadcast %601 : vector<1x32xf32> to vector<32x32xf32>
    %603 = arith.addf %599, %602 : vector<32x32xf32>
    %604 = vector.extract_strided_slice %603 {offsets = [0, 0], sizes = [32, 16], strides = [1, 1]} : vector<32x32xf32> to vector<32x16xf32>
    %605 = arith.addf %571, %604 : vector<32x16xf32>
    %606 = arith.mulf %605, %4 : vector<32x16xf32>
    %607 = vector.extract_strided_slice %603 {offsets = [0, 16], sizes = [32, 16], strides = [1, 1]} : vector<32x32xf32> to vector<32x16xf32>
    %608 = arith.addf %572, %607 : vector<32x16xf32>
    %c2_i32_362 = arith.constant 2 : i32
    %609 = tpu.dynamic_rotate %606 by %c2_i32_362 dim 0 : vector<32x16xf32>, i32 -> vector<32x16xf32>
    %c1_i32_363 = arith.constant 1 : i32
    %610 = tpu.dynamic_rotate %606 by %c1_i32_363 dim 0 : vector<32x16xf32>, i32 -> vector<32x16xf32>
    %c31_i32_364 = arith.constant 31 : i32
    %611 = tpu.dynamic_rotate %606 by %c31_i32_364 dim 0 : vector<32x16xf32>, i32 -> vector<32x16xf32>
    %c30_i32_365 = arith.constant 30 : i32
    %612 = tpu.dynamic_rotate %606 by %c30_i32_365 dim 0 : vector<32x16xf32>, i32 -> vector<32x16xf32>
    %613 = tpu.concatenate %609, %610, %606, %611, %612 in 1 : vector<32x16xf32>, vector<32x16xf32>, vector<32x16xf32>, vector<32x16xf32>, vector<32x16xf32> -> vector<32x80xf32>
    %614 = arith.mulf %613, %73 : vector<32x80xf32>
    %615 = arith.truncf %614 : vector<32x80xf32> to vector<32x80xbf16>
    %c3_366 = arith.constant 3 : index
    %c1_367 = arith.constant 1 : index
    %c0_368 = arith.constant 0 : index
    %c0_369 = arith.constant 0 : index
    %616 = vector.load %arg6[%c3_366, %c1_367, %c0_368, %c0_369] : memref<4x4x80x32xbf16, #tpu.memory_space<vmem>>, vector<1x1x80x32xbf16>
    %617 = vector.shape_cast %616 : vector<1x1x80x32xbf16> to vector<80x32xbf16>
    %cst_370 = arith.constant dense<0.000000e+00> : vector<32x32xf32>
    %618 = tpu.matmul %615, %617, %cst_370 {dimension_numbers = #tpu.dot_dimension_numbers<[1], [0], [0], [1], [0, 0, 1, 1], [], []>} : vector<32x80xbf16>, vector<80x32xbf16>, vector<32x32xf32> -> vector<32x32xf32>
    %c3_371 = arith.constant 3 : index
    %c1_372 = arith.constant 1 : index
    %c0_373 = arith.constant 0 : index
    %c0_374 = arith.constant 0 : index
    %619 = vector.load %arg7[%c3_371, %c1_372, %c0_373, %c0_374] : memref<4x4x1x32xf32, #tpu.memory_space<vmem>>, vector<1x1x1x32xf32>
    %620 = vector.shape_cast %619 : vector<1x1x1x32xf32> to vector<1x32xf32>
    %621 = vector.broadcast %620 : vector<1x32xf32> to vector<32x32xf32>
    %622 = arith.addf %618, %621 : vector<32x32xf32>
    %623 = vector.extract_strided_slice %622 {offsets = [0, 0], sizes = [32, 16], strides = [1, 1]} : vector<32x32xf32> to vector<32x16xf32>
    %624 = math.tanh %623 : vector<32x16xf32>
    %625 = vector.extract_strided_slice %622 {offsets = [0, 16], sizes = [32, 16], strides = [1, 1]} : vector<32x32xf32> to vector<32x16xf32>
    %626 = arith.negf %625 : vector<32x16xf32>
    %627 = math.exp %626 : vector<32x16xf32>
    %cst_375 = arith.constant 1.000000e+00 : f32
    %628 = vector.broadcast %cst_375 : f32 to vector<32x16xf32>
    %629 = arith.addf %628, %627 : vector<32x16xf32>
    %630 = arith.divf %628, %629 : vector<32x16xf32>
    %631 = arith.mulf %624, %630 : vector<32x16xf32>
    %632 = arith.truncf %631 : vector<32x16xf32> to vector<32x16xbf16>
    %c3_376 = arith.constant 3 : index
    %c1_377 = arith.constant 1 : index
    %c0_378 = arith.constant 0 : index
    %c0_379 = arith.constant 0 : index
    %633 = vector.load %arg8[%c3_376, %c1_377, %c0_378, %c0_379] : memref<4x4x16x32xbf16, #tpu.memory_space<vmem>>, vector<1x1x16x32xbf16>
    %634 = vector.shape_cast %633 : vector<1x1x16x32xbf16> to vector<16x32xbf16>
    %cst_380 = arith.constant dense<0.000000e+00> : vector<32x32xf32>
    %635 = tpu.matmul %632, %634, %cst_380 {dimension_numbers = #tpu.dot_dimension_numbers<[1], [0], [0], [1], [0, 0, 1, 1], [], []>} : vector<32x16xbf16>, vector<16x32xbf16>, vector<32x32xf32> -> vector<32x32xf32>
    %c3_381 = arith.constant 3 : index
    %c1_382 = arith.constant 1 : index
    %c0_383 = arith.constant 0 : index
    %c0_384 = arith.constant 0 : index
    %636 = vector.load %arg9[%c3_381, %c1_382, %c0_383, %c0_384] : memref<4x4x1x32xf32, #tpu.memory_space<vmem>>, vector<1x1x1x32xf32>
    %637 = vector.shape_cast %636 : vector<1x1x1x32xf32> to vector<1x32xf32>
    %638 = vector.broadcast %637 : vector<1x32xf32> to vector<32x32xf32>
    %639 = arith.addf %635, %638 : vector<32x32xf32>
    %640 = vector.extract_strided_slice %639 {offsets = [0, 0], sizes = [32, 16], strides = [1, 1]} : vector<32x32xf32> to vector<32x16xf32>
    %641 = arith.addf %606, %640 : vector<32x16xf32>
    %642 = arith.mulf %641, %4 : vector<32x16xf32>
    %643 = vector.extract_strided_slice %639 {offsets = [0, 16], sizes = [32, 16], strides = [1, 1]} : vector<32x32xf32> to vector<32x16xf32>
    %644 = arith.addf %608, %643 : vector<32x16xf32>
    %c2_i32_385 = arith.constant 2 : i32
    %645 = tpu.dynamic_rotate %642 by %c2_i32_385 dim 0 : vector<32x16xf32>, i32 -> vector<32x16xf32>
    %c1_i32_386 = arith.constant 1 : i32
    %646 = tpu.dynamic_rotate %642 by %c1_i32_386 dim 0 : vector<32x16xf32>, i32 -> vector<32x16xf32>
    %c31_i32_387 = arith.constant 31 : i32
    %647 = tpu.dynamic_rotate %642 by %c31_i32_387 dim 0 : vector<32x16xf32>, i32 -> vector<32x16xf32>
    %c30_i32_388 = arith.constant 30 : i32
    %648 = tpu.dynamic_rotate %642 by %c30_i32_388 dim 0 : vector<32x16xf32>, i32 -> vector<32x16xf32>
    %649 = tpu.concatenate %645, %646, %642, %647, %648 in 1 : vector<32x16xf32>, vector<32x16xf32>, vector<32x16xf32>, vector<32x16xf32>, vector<32x16xf32> -> vector<32x80xf32>
    %650 = arith.mulf %649, %73 : vector<32x80xf32>
    %651 = arith.truncf %650 : vector<32x80xf32> to vector<32x80xbf16>
    %c3_389 = arith.constant 3 : index
    %c2_390 = arith.constant 2 : index
    %c0_391 = arith.constant 0 : index
    %c0_392 = arith.constant 0 : index
    %652 = vector.load %arg6[%c3_389, %c2_390, %c0_391, %c0_392] : memref<4x4x80x32xbf16, #tpu.memory_space<vmem>>, vector<1x1x80x32xbf16>
    %653 = vector.shape_cast %652 : vector<1x1x80x32xbf16> to vector<80x32xbf16>
    %cst_393 = arith.constant dense<0.000000e+00> : vector<32x32xf32>
    %654 = tpu.matmul %651, %653, %cst_393 {dimension_numbers = #tpu.dot_dimension_numbers<[1], [0], [0], [1], [0, 0, 1, 1], [], []>} : vector<32x80xbf16>, vector<80x32xbf16>, vector<32x32xf32> -> vector<32x32xf32>
    %c3_394 = arith.constant 3 : index
    %c2_395 = arith.constant 2 : index
    %c0_396 = arith.constant 0 : index
    %c0_397 = arith.constant 0 : index
    %655 = vector.load %arg7[%c3_394, %c2_395, %c0_396, %c0_397] : memref<4x4x1x32xf32, #tpu.memory_space<vmem>>, vector<1x1x1x32xf32>
    %656 = vector.shape_cast %655 : vector<1x1x1x32xf32> to vector<1x32xf32>
    %657 = vector.broadcast %656 : vector<1x32xf32> to vector<32x32xf32>
    %658 = arith.addf %654, %657 : vector<32x32xf32>
    %659 = vector.extract_strided_slice %658 {offsets = [0, 0], sizes = [32, 16], strides = [1, 1]} : vector<32x32xf32> to vector<32x16xf32>
    %660 = math.tanh %659 : vector<32x16xf32>
    %661 = vector.extract_strided_slice %658 {offsets = [0, 16], sizes = [32, 16], strides = [1, 1]} : vector<32x32xf32> to vector<32x16xf32>
    %662 = arith.negf %661 : vector<32x16xf32>
    %663 = math.exp %662 : vector<32x16xf32>
    %cst_398 = arith.constant 1.000000e+00 : f32
    %664 = vector.broadcast %cst_398 : f32 to vector<32x16xf32>
    %665 = arith.addf %664, %663 : vector<32x16xf32>
    %666 = arith.divf %664, %665 : vector<32x16xf32>
    %667 = arith.mulf %660, %666 : vector<32x16xf32>
    %668 = arith.truncf %667 : vector<32x16xf32> to vector<32x16xbf16>
    %c3_399 = arith.constant 3 : index
    %c2_400 = arith.constant 2 : index
    %c0_401 = arith.constant 0 : index
    %c0_402 = arith.constant 0 : index
    %669 = vector.load %arg8[%c3_399, %c2_400, %c0_401, %c0_402] : memref<4x4x16x32xbf16, #tpu.memory_space<vmem>>, vector<1x1x16x32xbf16>
    %670 = vector.shape_cast %669 : vector<1x1x16x32xbf16> to vector<16x32xbf16>
    %cst_403 = arith.constant dense<0.000000e+00> : vector<32x32xf32>
    %671 = tpu.matmul %668, %670, %cst_403 {dimension_numbers = #tpu.dot_dimension_numbers<[1], [0], [0], [1], [0, 0, 1, 1], [], []>} : vector<32x16xbf16>, vector<16x32xbf16>, vector<32x32xf32> -> vector<32x32xf32>
    %c3_404 = arith.constant 3 : index
    %c2_405 = arith.constant 2 : index
    %c0_406 = arith.constant 0 : index
    %c0_407 = arith.constant 0 : index
    %672 = vector.load %arg9[%c3_404, %c2_405, %c0_406, %c0_407] : memref<4x4x1x32xf32, #tpu.memory_space<vmem>>, vector<1x1x1x32xf32>
    %673 = vector.shape_cast %672 : vector<1x1x1x32xf32> to vector<1x32xf32>
    %674 = vector.broadcast %673 : vector<1x32xf32> to vector<32x32xf32>
    %675 = arith.addf %671, %674 : vector<32x32xf32>
    %676 = vector.extract_strided_slice %675 {offsets = [0, 0], sizes = [32, 16], strides = [1, 1]} : vector<32x32xf32> to vector<32x16xf32>
    %677 = arith.addf %642, %676 : vector<32x16xf32>
    %678 = arith.mulf %677, %4 : vector<32x16xf32>
    %679 = vector.extract_strided_slice %675 {offsets = [0, 16], sizes = [32, 16], strides = [1, 1]} : vector<32x32xf32> to vector<32x16xf32>
    %680 = arith.addf %644, %679 : vector<32x16xf32>
    %c2_i32_408 = arith.constant 2 : i32
    %681 = tpu.dynamic_rotate %678 by %c2_i32_408 dim 0 : vector<32x16xf32>, i32 -> vector<32x16xf32>
    %c1_i32_409 = arith.constant 1 : i32
    %682 = tpu.dynamic_rotate %678 by %c1_i32_409 dim 0 : vector<32x16xf32>, i32 -> vector<32x16xf32>
    %c31_i32_410 = arith.constant 31 : i32
    %683 = tpu.dynamic_rotate %678 by %c31_i32_410 dim 0 : vector<32x16xf32>, i32 -> vector<32x16xf32>
    %c30_i32_411 = arith.constant 30 : i32
    %684 = tpu.dynamic_rotate %678 by %c30_i32_411 dim 0 : vector<32x16xf32>, i32 -> vector<32x16xf32>
    %685 = tpu.concatenate %681, %682, %678, %683, %684 in 1 : vector<32x16xf32>, vector<32x16xf32>, vector<32x16xf32>, vector<32x16xf32>, vector<32x16xf32> -> vector<32x80xf32>
    %686 = arith.mulf %685, %73 : vector<32x80xf32>
    %687 = arith.truncf %686 : vector<32x80xf32> to vector<32x80xbf16>
    %c3_412 = arith.constant 3 : index
    %c3_413 = arith.constant 3 : index
    %c0_414 = arith.constant 0 : index
    %c0_415 = arith.constant 0 : index
    %688 = vector.load %arg6[%c3_412, %c3_413, %c0_414, %c0_415] : memref<4x4x80x32xbf16, #tpu.memory_space<vmem>>, vector<1x1x80x32xbf16>
    %689 = vector.shape_cast %688 : vector<1x1x80x32xbf16> to vector<80x32xbf16>
    %cst_416 = arith.constant dense<0.000000e+00> : vector<32x32xf32>
    %690 = tpu.matmul %687, %689, %cst_416 {dimension_numbers = #tpu.dot_dimension_numbers<[1], [0], [0], [1], [0, 0, 1, 1], [], []>} : vector<32x80xbf16>, vector<80x32xbf16>, vector<32x32xf32> -> vector<32x32xf32>
    %c3_417 = arith.constant 3 : index
    %c3_418 = arith.constant 3 : index
    %c0_419 = arith.constant 0 : index
    %c0_420 = arith.constant 0 : index
    %691 = vector.load %arg7[%c3_417, %c3_418, %c0_419, %c0_420] : memref<4x4x1x32xf32, #tpu.memory_space<vmem>>, vector<1x1x1x32xf32>
    %692 = vector.shape_cast %691 : vector<1x1x1x32xf32> to vector<1x32xf32>
    %693 = vector.broadcast %692 : vector<1x32xf32> to vector<32x32xf32>
    %694 = arith.addf %690, %693 : vector<32x32xf32>
    %695 = vector.extract_strided_slice %694 {offsets = [0, 0], sizes = [32, 16], strides = [1, 1]} : vector<32x32xf32> to vector<32x16xf32>
    %696 = math.tanh %695 : vector<32x16xf32>
    %697 = vector.extract_strided_slice %694 {offsets = [0, 16], sizes = [32, 16], strides = [1, 1]} : vector<32x32xf32> to vector<32x16xf32>
    %698 = arith.negf %697 : vector<32x16xf32>
    %699 = math.exp %698 : vector<32x16xf32>
    %cst_421 = arith.constant 1.000000e+00 : f32
    %700 = vector.broadcast %cst_421 : f32 to vector<32x16xf32>
    %701 = arith.addf %700, %699 : vector<32x16xf32>
    %702 = arith.divf %700, %701 : vector<32x16xf32>
    %703 = arith.mulf %696, %702 : vector<32x16xf32>
    %704 = arith.truncf %703 : vector<32x16xf32> to vector<32x16xbf16>
    %c3_422 = arith.constant 3 : index
    %c3_423 = arith.constant 3 : index
    %c0_424 = arith.constant 0 : index
    %c0_425 = arith.constant 0 : index
    %705 = vector.load %arg8[%c3_422, %c3_423, %c0_424, %c0_425] : memref<4x4x16x32xbf16, #tpu.memory_space<vmem>>, vector<1x1x16x32xbf16>
    %706 = vector.shape_cast %705 : vector<1x1x16x32xbf16> to vector<16x32xbf16>
    %cst_426 = arith.constant dense<0.000000e+00> : vector<32x32xf32>
    %707 = tpu.matmul %704, %706, %cst_426 {dimension_numbers = #tpu.dot_dimension_numbers<[1], [0], [0], [1], [0, 0, 1, 1], [], []>} : vector<32x16xbf16>, vector<16x32xbf16>, vector<32x32xf32> -> vector<32x32xf32>
    %c3_427 = arith.constant 3 : index
    %c3_428 = arith.constant 3 : index
    %c0_429 = arith.constant 0 : index
    %c0_430 = arith.constant 0 : index
    %708 = vector.load %arg9[%c3_427, %c3_428, %c0_429, %c0_430] : memref<4x4x1x32xf32, #tpu.memory_space<vmem>>, vector<1x1x1x32xf32>
    %709 = vector.shape_cast %708 : vector<1x1x1x32xf32> to vector<1x32xf32>
    %710 = vector.broadcast %709 : vector<1x32xf32> to vector<32x32xf32>
    %711 = arith.addf %707, %710 : vector<32x32xf32>
    %712 = vector.extract_strided_slice %711 {offsets = [0, 16], sizes = [32, 16], strides = [1, 1]} : vector<32x32xf32> to vector<32x16xf32>
    %713 = arith.addf %680, %712 : vector<32x16xf32>
    %714 = arith.mulf %713, %4 : vector<32x16xf32>
    %715 = arith.truncf %714 : vector<32x16xf32> to vector<32x16xbf16>
    %c3_431 = arith.constant 3 : index
    %c0_432 = arith.constant 0 : index
    %c0_433 = arith.constant 0 : index
    %716 = vector.load %arg10[%c3_431, %c0_432, %c0_433] : memref<4x16x4xbf16, #tpu.memory_space<vmem>>, vector<1x16x4xbf16>
    %717 = vector.shape_cast %716 : vector<1x16x4xbf16> to vector<16x4xbf16>
    %cst_434 = arith.constant dense<0.000000e+00> : vector<32x4xf32>
    %718 = tpu.matmul %715, %717, %cst_434 {dimension_numbers = #tpu.dot_dimension_numbers<[1], [0], [0], [1], [0, 0, 1, 1], [], []>} : vector<32x16xbf16>, vector<16x4xbf16>, vector<32x4xf32> -> vector<32x4xf32>
    %c3_435 = arith.constant 3 : index
    %c0_436 = arith.constant 0 : index
    %c0_437 = arith.constant 0 : index
    %719 = vector.load %arg11[%c3_435, %c0_436, %c0_437] : memref<4x1x4xf32, #tpu.memory_space<vmem>>, vector<1x1x4xf32>
    %720 = vector.shape_cast %719 : vector<1x1x4xf32> to vector<1x4xf32>
    %721 = vector.broadcast %720 : vector<1x4xf32> to vector<32x4xf32>
    %722 = arith.addf %718, %721 : vector<32x4xf32>
    %723 = arith.mulf %722, %6 : vector<32x4xf32>
    %724 = arith.mulf %399, %6 : vector<32x4xf32>
    %725 = arith.addf %723, %724 : vector<32x4xf32>
    %726 = tpu.concatenate %725, %562 in 1 : vector<32x4xf32>, vector<32x4xf32> -> vector<32x8xf32>
    %c0_438 = arith.constant 0 : index
    %c0_439 = arith.constant 0 : index
    %727 = vector.load %arg12[%c0_438, %c0_439] : memref<32x8xf32, #tpu.memory_space<vmem>>, vector<32x8xf32>
    tpu.vector_store %arg12[%c0_438, %c0_439], %726 {strides = array<i32>} : memref<32x8xf32, #tpu.memory_space<vmem>>, vector<32x8xf32>,
    return
  }
  func.func @transform_0(%arg0: i32) -> (i32, i32) {
    %c0_i32 = arith.constant 0 : i32
    %c0_i32_0 = arith.constant 0 : i32
    %c0_i32_1 = arith.constant 0 : i32
    return %c0_i32, %c0_i32_0 : i32, i32
  }
  func.func @transform_1(%arg0: i32) -> (i32, i32) {
    %c0_i32 = arith.constant 0 : i32
    %c0_i32_0 = arith.constant 0 : i32
    %c0_i32_1 = arith.constant 0 : i32
    return %c0_i32, %c0_i32_0 : i32, i32
  }
  func.func @transform_2(%arg0: i32) -> (i32, i32) {
    %c0_i32 = arith.constant 0 : i32
    %c0_i32_0 = arith.constant 0 : i32
    %c0_i32_1 = arith.constant 0 : i32
    return %c0_i32, %c0_i32_0 : i32, i32
  }
  func.func @transform_3(%arg0: i32) -> (i32, i32, i32) {
    %c0_i32 = arith.constant 0 : i32
    %c0_i32_0 = arith.constant 0 : i32
    %c0_i32_1 = arith.constant 0 : i32
    %c0_i32_2 = arith.constant 0 : i32
    return %c0_i32, %c0_i32_0, %c0_i32_1 : i32, i32, i32
  }
  func.func @transform_4(%arg0: i32) -> (i32, i32, i32) {
    %c0_i32 = arith.constant 0 : i32
    %c0_i32_0 = arith.constant 0 : i32
    %c0_i32_1 = arith.constant 0 : i32
    %c0_i32_2 = arith.constant 0 : i32
    return %c0_i32, %c0_i32_0, %c0_i32_1 : i32, i32, i32
  }
  func.func @transform_5(%arg0: i32) -> (i32, i32, i32, i32) {
    %c0_i32 = arith.constant 0 : i32
    %c0_i32_0 = arith.constant 0 : i32
    %c0_i32_1 = arith.constant 0 : i32
    %c0_i32_2 = arith.constant 0 : i32
    %c0_i32_3 = arith.constant 0 : i32
    return %c0_i32, %c0_i32_0, %c0_i32_1, %c0_i32_2 : i32, i32, i32, i32
  }
  func.func @transform_6(%arg0: i32) -> (i32, i32, i32, i32) {
    %c0_i32 = arith.constant 0 : i32
    %c0_i32_0 = arith.constant 0 : i32
    %c0_i32_1 = arith.constant 0 : i32
    %c0_i32_2 = arith.constant 0 : i32
    %c0_i32_3 = arith.constant 0 : i32
    return %c0_i32, %c0_i32_0, %c0_i32_1, %c0_i32_2 : i32, i32, i32, i32
  }
  func.func @transform_7(%arg0: i32) -> (i32, i32, i32, i32) {
    %c0_i32 = arith.constant 0 : i32
    %c0_i32_0 = arith.constant 0 : i32
    %c0_i32_1 = arith.constant 0 : i32
    %c0_i32_2 = arith.constant 0 : i32
    %c0_i32_3 = arith.constant 0 : i32
    return %c0_i32, %c0_i32_0, %c0_i32_1, %c0_i32_2 : i32, i32, i32, i32
  }
  func.func @transform_8(%arg0: i32) -> (i32, i32, i32, i32) {
    %c0_i32 = arith.constant 0 : i32
    %c0_i32_0 = arith.constant 0 : i32
    %c0_i32_1 = arith.constant 0 : i32
    %c0_i32_2 = arith.constant 0 : i32
    %c0_i32_3 = arith.constant 0 : i32
    return %c0_i32, %c0_i32_0, %c0_i32_1, %c0_i32_2 : i32, i32, i32, i32
  }
  func.func @transform_9(%arg0: i32) -> (i32, i32, i32) {
    %c0_i32 = arith.constant 0 : i32
    %c0_i32_0 = arith.constant 0 : i32
    %c0_i32_1 = arith.constant 0 : i32
    %c0_i32_2 = arith.constant 0 : i32
    return %c0_i32, %c0_i32_0, %c0_i32_1 : i32, i32, i32
  }
  func.func @transform_10(%arg0: i32) -> (i32, i32, i32) {
    %c0_i32 = arith.constant 0 : i32
    %c0_i32_0 = arith.constant 0 : i32
    %c0_i32_1 = arith.constant 0 : i32
    %c0_i32_2 = arith.constant 0 : i32
    return %c0_i32, %c0_i32_0, %c0_i32_1 : i32, i32, i32
  }
  func.func @transform_11(%arg0: i32) -> (i32, i32) {
    %c0_i32 = arith.constant 0 : i32
    %c0_i32_0 = arith.constant 0 : i32
    %c0_i32_1 = arith.constant 0 : i32
    return %c0_i32, %c0_i32_0 : i32, i32
  }
}

</mosaic_0001>

<bundles_post_ra>
// kernel: tpu_custom_call.1
= control target key start
LH: loop header
LB: loop body
LE: loop exit
PB: predicated region body
PF: predicated region fallthrough
CT: control target
= control target key end

     0   :  { %vm261_vm0 = vcmask 1041408   ;;  %vm254_vm1 = vcmask 31744   ;;  %v8187_v3 = vmov 0   ;;  %v71_v17 = vlaneseq  ;;  %s8189_s22 = smov 16   ;;  %s8190_s23 = smov 48   ;;  %s10864_s3 = inlined_call_operand.vmem [shape: bf16[4,4,16], index: 3, kind: input, shape index: {}]   ;;  %s10865_s0 = inlined_call_operand.vmem [shape: f32[32,4], index: 0, kind: input, shape index: {}]   ;;  %s10866_s2 = inlined_call_operand.vmem [shape: f32[32,1], index: 2, kind: input, shape index: {}]   ;;  %s10867_s4 = inlined_call_operand.vmem [shape: f32[4,1,16], index: 4, kind: input, shape index: {}]   ;;  %s10868_s5 = inlined_call_operand.vmem [shape: bf16[4,4,80,32], index: 5, kind: input, shape index: {}]   ;;  %s10869_s6 = inlined_call_operand.vmem [shape: f32[4,4,1,32], index: 6, kind: input, shape index: {}]   ;;  %s10870_s7 = inlined_call_operand.vmem [shape: bf16[4,4,16,32], index: 7, kind: input, shape index: {}]   ;;  %s10871_s8 = inlined_call_operand.vmem [shape: f32[4,4,1,32], index: 8, kind: input, shape index: {}]   ;;  %s10872_s9 = inlined_call_operand.vmem [shape: bf16[4,16,4], index: 9, kind: input, shape index: {}]   ;;  %s10873_s10 = inlined_call_operand.vmem [shape: f32[4,1,4], index: 10, kind: input, shape index: {}]   ;;  %s10874_s1 = inlined_call_operand.vmem [shape: f32[32,4], index: 1, kind: input, shape index: {}]   ;;  %s10875_s11 = inlined_call_operand.vmem [shape: f32[32,8], index: 11, kind: output, shape index: {}]  }
   0x1   :  { %v246_v0 = vld [vmem:[%s10864_s3] sm:$0x3]  ;;  %v40_v2 = vld [vmem:[%s10865_s0 + $0x8] sm:$0xff]  ;;  %7698 = vset.pattern.permute.xlu1 %v8187_v3  ;;  %7697 = vset.pattern.permute.xlu0 %v8187_v3  ;;  %v41_v6 = vld [vmem:[%s10865_s0 + $0x10] sm:$0xff]  ;;  %s8191_s30 = smov 64   ;;  %vm224_vm9 = vcmask 130048  }
   0x2   :  { %v39_v1 = vld [vmem:[%s10865_s0] sm:$0xff]  ;;  %7685 = vmatprep.subr.msk.bf16.mxu0 %vm261_vm0, %v246_v0  ;;  %v263_v4 = vsel %vm261_vm0, %v246_v0, 0  ;;  %v42_v7 = vld [vmem:[%s10865_s0 + $0x18] sm:$0xff]  ;;  %v49_v11 = vld [vmem:[%s10866_s2 + $0x10] sm:$0xff]  ;;  %v8298_v24 = vshrl.u32 %v71_v17, 7  ;;  %vm229_vm12 = vcmask 261120  }
   0x3   :  { %v244_v5 = vpack.c.bf16 %v40_v2, %v39_v1  ;;  %v50_v8 = vld [vmem:[%s10866_s2 + $0x18] sm:$0xff]  ;;  %7318 = vmatpush3.bf16.msra.mxu0 %v263_v4  ;;  %v245_v9 = vpack.c.bf16 %v42_v7, %v41_v6  ;;  %v47_v10 = vld [vmem:[%s10866_s2] sm:$0xff]  ;;  %v48_v12 = vld [vmem:[%s10866_s2 + $0x8] sm:$0xff]  ;;  %s8188_s2 = smov 32   ;;  %vm234_vm14 = vcmask 392192   ;;  %s8193_s16 = smov 112  }
   0x4   :  { %68 = vperm.xlu1 %7698, %v50_v8   ;;  %53 = vperm.xlu0 %7697, %v47_v10   ;;  %v6624_v14 = vld [vmem:[%s10867_s4] ss:$0 sm:$0xff]  ;;  %vm331_vm2 = vcmp.lt.s32.totalorder %v8298_v24, 1  ;;  %vm340_vm3 = vcmp.lt.s32.totalorder %v8298_v24, 7  ;;  %v7700_v37 = vld [vmem:[%s10868_s5 + $0x18] sm:$0xff]   ;;  %v7701_v44 = vld [vmem:[%s10868_s5 + $0x10] sm:$0xff]  }
   0x5   :  { %7319 = vmatprep.mubr.msk.bf16.mxu0 %vm254_vm1, %v244_v5  ;;  %v7699_v32 = vld [vmem:[%s10868_s5 + $0x20] sm:$0xff]   ;;  %v7702_v48 = vld [vmem:[%s10868_s5 + $0x8] sm:$0xff]   ;;  %vm349_vm4 = vcmp.lt.s32.totalorder %v8298_v24, 6  ;;  %vm76_vm5 = vcmp.ge.s32.totalorder %v8298_v24, 2  ;;  %v74_v2 = vadd.s32 16, %v8298_v24  ;;  %vm112_vm6 = vcmp.ge.s32.totalorder %v8298_v24, 1 }
   0x6   :  { %7320 = vmatmul.mubr.msk.bf16.vlgmr.msra.gmra.mxu0 %vm254_vm1, %v245_v9  ;;  %7323 = vmatprep.subr.bf16.mxu1 %v7699_v32  ;;  %v7703_v52 = vld [vmem:[%s10868_s5] sm:$0xff]   ;;  %v8192_v5 = vmov 0.0   ;;  %v73_v8 = vadd.s32 8, %v8298_v24  ;;  %vm322_vm10 = vcmp.lt.s32.totalorder %v8298_v24, 2 }
   0x7   :  { %7324 = vmatpush3.bf16.msra.mxu1 %v7699_v32  ;;  %v6616_v6 = vsel %vm76_vm5, 1.0, %v8192_v5  ;;  %v6618_v7 = vsel %vm112_vm6, 1.0, %v8192_v5  ;;  %vm90_vm7 = vcmp.ge.s32.totalorder %v74_v2, 18  ;;  %vm122_vm8 = vcmp.ge.s32.totalorder %v74_v2, 17 }
   0x8   :  { %63 = vperm.xlu1 %7698, %v49_v11   ;;  %58 = vperm.xlu0 %7697, %v48_v12   ;;  %v225_v12 = vsel %vm224_vm9, %v6616_v6, %v6618_v7  ;;  %vm169_vm11 = vcmp.lt.s32.totalorder %v73_v8, 15  ;;  %vm197_vm13 = vcmp.lt.s32.totalorder %v73_v8, 14  ;;  %vm239_vm5 = vcmask 523264  }
   0x9   :  { %7325 = vmatprep.subr.bf16.mxu1 %v7700_v37 }
   0xb   :  { %7326 = vmatpush3.bf16.msra.mxu1 %v7700_v37 }
   0xc   :  { %7327 = vmatprep.subr.bf16.mxu1 %v7701_v44 }
   0xf   :  { %7328 = vmatpush3.bf16.msra.mxu1 %v7701_v44 }
  0x10   :  { %7329 = vmatprep.subr.bf16.mxu1 %v7702_v48 }
  0x13   :  { %7330 = vmatpush3.bf16.msra.mxu1 %v7702_v48 }
  0x14   :  { %7331 = vmatprep.subr.bf16.mxu1 %v7703_v52 }
  0x17   :  { %7332 = vmatpush3.bf16.msra.mxu1 %v7703_v52 }
  0x7f   :  { %v8286_v13 = vpop.permute.xlu1 %68  ;;  %v8296_v22 = vpop.permute.xlu0 %53 }
  0x83   :  { %v8291_v16 = vpop.permute.xlu1 %63  ;;  %v8318_v33 = vpop.permute.xlu0 %58 }
  0xc6   :  { %v7321_v15 = vpop.f32.mrf.mxu0 }
  0xc7   :  { %v308_v18 = vadd.f32 %v7321_v15, %v6624_v14  ;;  %v6619_v15 = vsel %vm122_vm8, 1.0, %v8192_v5 }
  0xc8   :  { %v299_v19 = vpop.f32.mrf.mxu0 }
  0xc9   :  { %v300_v20 = vadd.f32 %v6624_v14, %v299_v19  ;;  %v8294_v21 = vmul.f32 %v308_v18, %v8291_v16  ;;  %v75_v18 = vadd.s32 24, %v8298_v24 }
  0xca   :  { %v7322_v23 = vpop.f32.mrf.mxu0 }
  0xcb   :  { %v8301_v25 = vmul.f32 %v300_v20, %v8296_v22  ;;  %v311_v26 = vadd.f32 %v7322_v23, %v6624_v14  ;;  %378 = vrot.lane.b32.xlu0 %v8294_v21, %s8188_s2  ;;  %v329_v38 = vrot.slane %v8294_v21, 7  ;;  %v338_v39 = vrot.slane %v8294_v21, 1 }
  0xcc   :  { %v302_v27 = vpop.f32.mrf.mxu0  ;;  %v347_v57 = vrot.slane %v8294_v21, 2  ;;  %v320_v20 = vrot.slane %v8294_v21, 6  ;;  %vm179_vm15 = vcmp.lt.s32.totalorder %v75_v18, 31  ;;  %vm207_vm6 = vcmp.lt.s32.totalorder %v75_v18, 30 }
  0xcd   :  { %v8306_v28 = vmul.f32 %v311_v26, %v8286_v13  ;;  %v303_v29 = vadd.f32 %v6624_v14, %v302_v27  ;;  %v327_v30 = vrot.slane %v8301_v25, 7  ;;  %v336_v43 = vrot.slane %v8301_v25, 1 }
  0xce   :  { %v345_v53 = vrot.slane %v8301_v25, 2  ;;  %v6617_v14 = vsel %vm90_vm7, 1.0, %v8192_v5  ;;  %v318_v19 = vrot.slane %v8301_v25, 6  ;;  %v230_v27 = vsel %vm229_vm12, %v225_v12, 1.0 }
  0xcf   :  { %380 = vrot.lane.b32.xlu1 %v8306_v28, %s8188_s2  ;;  %374 = vrot.lane.b32.xlu0 %v8301_v25, %s8188_s2  ;;  %v330_v31 = vrot.slane %v8306_v28, 7  ;;  %v8321_v34 = vmul.f32 %v303_v29, %v8318_v33  ;;  %v339_v36 = vrot.slane %v8306_v28, 1  ;;  %v348_v54 = vrot.slane %v8306_v28, 2 }
  0xd0   :  { %v321_v11 = vrot.slane %v8306_v28, 6  ;;  %v227_v29 = vsel %vm224_vm9, %v6617_v14, %v6619_v15  ;;  %v235_v37 = vsel %vm234_vm14, %v230_v27, 1.0  ;;  %vm487_vm7 = vcmask 654336  }
  0xd1   :  { %v335_v35 = vsel %vm331_vm2, %v330_v31, %v327_v30  ;;  %v332_v40 = vsel %vm331_vm2, %v329_v38, %v330_v31  ;;  %v341_v41 = vsel %vm340_vm3, %v338_v39, %v339_v36  ;;  %v328_v42 = vrot.slane %v8321_v34, 7 }
  0xd2   :  { %v344_v45 = vsel %vm340_vm3, %v339_v36, %v336_v43  ;;  %v337_v47 = vrot.slane %v8321_v34, 1  ;;  %v346_v51 = vrot.slane %v8321_v34, 2  ;;  %v350_v58 = vsel %vm349_vm4, %v347_v57, %v348_v54 }
  0xd3   :  { %376 = vrot.lane.b32.xlu1 %v8321_v34, %s8188_s2  ;;  %358 = vrot.lane.b32.xlu0 %v335_v35, %s8189_s22  ;;  %v333_v46 = vsel %vm331_vm2, %v328_v42, %v329_v38  ;;  %v334_v50 = vsel %vm331_vm2, %v327_v30, %v328_v42  ;;  %v353_v60 = vsel %vm349_vm4, %v348_v54, %v345_v53  ;;  %v319_v17 = vrot.slane %v8321_v34, 6 }
  0xd4   :  { %v343_v49 = vsel %vm340_vm3, %v336_v43, %v337_v47  ;;  %v352_v55 = vsel %vm349_vm4, %v345_v53, %v346_v51  ;;  %v342_v56 = vsel %vm340_vm3, %v337_v47, %v338_v39  ;;  %v351_v59 = vsel %vm349_vm4, %v346_v51, %v347_v57 }
  0xd5   :  { %v326_v30 = vsel %vm322_vm10, %v321_v11, %v318_v19  ;;  %v6620_v31 = vsel %vm169_vm11, 1.0, %v8192_v5  ;;  %v324_v35 = vsel %vm322_vm10, %v319_v17, %v320_v20  ;;  %v325_v36 = vsel %vm322_vm10, %v318_v19, %v319_v17 }
  0xd6   :  { %v232_v38 = vsel %vm229_vm12, %v227_v29, 1.0  ;;  %v6622_v43 = vsel %vm197_vm13, 1.0, %v8192_v5  ;;  %v236_v44 = vsel %vm234_vm14, 1.0, %v6620_v31  ;;  %v323_v47 = vsel %vm322_vm10, %v320_v20, %v321_v11 }
  0xd7   :  { %364 = vrot.lane.b32.xlu1 %v332_v40, %s8189_s22  ;;  %394 = vrot.lane.b32.xlu0 %v341_v41, %s8190_s23  ;;  %v8426_v54 = vsel %vm239_vm5, %v236_v44, %v6622_v43 }
  0xdb   :  { %396 = vrot.lane.b32.xlu1 %v344_v45, %s8190_s23  ;;  %362 = vrot.lane.b32.xlu0 %v333_v46, %s8189_s22  ;;  %v6621_v46 = vsel %vm179_vm15, 1.0, %v8192_v5 }
  0xdf   :  { %390 = vrot.lane.b32.xlu0 %v343_v49, %s8190_s23  ;;  %360 = vrot.lane.b32.xlu1 %v334_v50, %s8189_s22  ;;  %v8419_v49 = vsel %vm239_vm5, %v235_v37, 1.0  ;;  %v237_v50 = vsel %vm234_vm14, %v232_v38, 1.0 }
  0xe3   :  { %406 = vrot.lane.b32.xlu0 %v352_v55, %s8191_s30  ;;  %392 = vrot.lane.b32.xlu1 %v342_v56, %s8190_s23 }
  0xe7   :  { %410 = vrot.lane.b32.xlu0 %v350_v58, %s8191_s30  ;;  %408 = vrot.lane.b32.xlu1 %v351_v59, %s8191_s30  ;;  %v6623_v59 = vsel %vm207_vm6, 1.0, %v8192_v5 }
  0xeb   :  { %412 = vrot.lane.b32.xlu1 %v353_v60, %s8191_s30  ;;  %v238_v60 = vsel %vm234_vm14, 1.0, %v6621_v46 }
  0xec   :  { %v8443_v5 = vsel %vm239_vm5, %v238_v60, %v6623_v59 }
 0x13d   :  { %v379_v61 = vpop.permute.xlu0 %378 }
 0x141   :  { %v8385_v62 = vpop.permute.xlu1 %380  ;;  %v375_v63 = vpop.permute.xlu0 %374 }
 0x145   :  { %v377_v0 = vpop.permute.xlu1 %376  ;;  %v359_v1 = vpop.permute.xlu0 %358 }
 0x146   :  { %v418_v32 = vsel %vm224_vm9, %v326_v30, %v359_v1  ;;  %v8434_v1 = vsel %vm239_vm5, %v237_v50, 1.0 }
 0x147   :  { %v422_v45 = vsel %vm229_vm12, %v418_v32, %v375_v63 }
 0x149   :  { %v365_v3 = vpop.permute.xlu1 %364  ;;  %v8390_v4 = vpop.permute.xlu0 %394 }
 0x14a   :  { %v421_v55 = vsel %vm224_vm9, %v323_v47, %v365_v3 }
 0x14b   :  { %v425_v3 = vsel %vm229_vm12, %v421_v55, %v8385_v62  ;;  %v6627_v62 = vld [vmem:[%s10869_s6] ss:$0 sm:$0xff] }
 0x14d   :  { %v397_v9 = vpop.permute.xlu1 %396  ;;  %v363_v10 = vpop.permute.xlu0 %362 }
 0x14e   :  { %v420_v39 = vsel %vm224_vm9, %v324_v35, %v363_v10  ;;  %v429_v7 = vsel %vm234_vm14, %v425_v3, %v397_v9 }
 0x14f   :  { %v424_v51 = vsel %vm229_vm12, %v420_v39, %v379_v61 }
 0x151   :  { %v391_v23 = vpop.permute.xlu0 %390  ;;  %v361_v26 = vpop.permute.xlu1 %360 }
 0x152   :  { %v419_v40 = vsel %vm224_vm9, %v325_v36, %v361_v26  ;;  %v426_v48 = vsel %vm234_vm14, %v422_v45, %v391_v23 }
 0x153   :  { %v423_v53 = vsel %vm229_vm12, %v419_v40, %v377_v0  ;;  %v428_v0 = vsel %vm234_vm14, %v424_v51, %v8390_v4 }
 0x155   :  { %v407_v41 = vpop.permute.xlu0 %406  ;;  %v393_v42 = vpop.permute.xlu1 %392 }
 0x156   :  { %v430_v52 = vsel %vm239_vm5, %v426_v48, %v407_v41  ;;  %v427_v56 = vsel %vm234_vm14, %v423_v53, %v393_v42  ;;  %v7704_v42 = vld [vmem:[%s10870_s7] sm:$0xff]  }
 0x157   :  { %v434_v61 = vmul.f32 %v430_v52, %v8419_v49  ;;  %7337 = vmatprep.subr.bf16.mxu0 %v7704_v42 }
 0x158   :  { %7338 = vmatpush3.bf16.msra.mxu0 %v7704_v42 }
 0x159   :  { %v411_v57 = vpop.permute.xlu0 %410  ;;  %v409_v58 = vpop.permute.xlu1 %408 }
 0x15a   :  { %v431_v63 = vsel %vm239_vm5, %v427_v56, %v409_v58  ;;  %v432_v6 = vsel %vm239_vm5, %v428_v0, %v411_v57  ;;  %v6639_v0 = vld [vmem:[%s10871_s8] ss:$0 sm:$0xff] }
 0x15b   :  { %v435_v2 = vmul.f32 %v431_v63, %v8426_v54  ;;  %v436_v12 = vmul.f32 %v432_v6, %v8434_v1 }
 0x15d   :  { %v413_v8 = vpop.permute.xlu1 %412  ;;  %v438_v10 = vpack.c.bf16 %v435_v2, %v434_v61 }
 0x15e   :  { %v433_v11 = vsel %vm239_vm5, %v429_v7, %v413_v8 }
 0x15f   :  { %v437_v4 = vmul.f32 %v433_v11, %v8443_v5  ;;  %7333 = vmatprep.mubr.msk.bf16.mxu1 %vm487_vm7, %v438_v10 }
 0x161   :  { %v439_v14 = vpack.c.bf16 %v437_v4, %v436_v12 }
 0x163   :  { %7334 = vmatmul.mubr.msk.bf16.vlgmr.msra.gmra.mxu1 %vm487_vm7, %v439_v14 }
 0x223   :  { %v7335_v15 = vpop.f32.mrf.mxu1 }
 0x224   :  { %v537_v17 = vadd.f32 %v7335_v15, %v6627_v62 }
 0x225   :  { %v528_v9 = vpop.f32.mrf.mxu1 }
 0x226   :  { %v6637_v18 = vmul.f32 -1.442695, %v537_v17  ;;  %v529_v19 = vadd.f32 %v6627_v62, %v528_v9 }
 0x227   :  { %v7336_v20 = vpop.f32.mrf.mxu1 }
 0x228   :  { %v6635_v23 = vmul.f32 -1.442695, %v529_v19  ;;  %v540_v26 = vadd.f32 %v7336_v20, %v6627_v62  ;;  %7799 = vpow2.f32 %v6637_v18  ;;  %v7705_v18 = vld [vmem:[%s10868_s5 + $0x48] sm:$0xff]  }
 0x229   :  { %v531_v27 = vpop.f32.mrf.mxu1  ;;  %7343 = vmatprep.subr.bf16.mxu0 %v7705_v18 }
 0x22a   :  { %7801 = vpow2.f32 %v6635_v23  ;;  %v6638_v29 = vmul.f32 -1.442695, %v540_v26  ;;  %v532_v30 = vadd.f32 %v6627_v62, %v531_v27  ;;  %v7706_v23 = vld [vmem:[%s10868_s5 + $0x40] sm:$0xff]  }
 0x22c   :  { %7803 = vpow2.f32 %v6638_v29  ;;  %v6636_v31 = vmul.f32 -1.442695, %v532_v30 }
 0x22e   :  { %7805 = vpow2.f32 %v6636_v31 }
 0x235   :  { %v7800_v32 = vpop.eup %7799 }
 0x236   :  { %v561_v38 = vadd.f32 1.0, %v7800_v32  ;;  %v7707_v32 = vld [vmem:[%s10868_s5 + $0x38] sm:$0xff]  }
 0x237   :  { %v7802_v35 = vpop.eup %7801 }
 0x238   :  { %v559_v36 = vadd.f32 1.0, %v7802_v35 }
 0x239   :  { %v7804_v37 = vpop.eup %7803 }
 0x23a   :  { %7807 = vrcp.f32 %v559_v36  ;;  %v562_v40 = vadd.f32 1.0, %v7804_v37 }
 0x23b   :  { %v7806_v39 = vpop.eup %7805  ;;  %7809 = vrcp.f32 %v561_v38 }
 0x23c   :  { %v560_v41 = vadd.f32 1.0, %v7806_v39  ;;  %v7708_v39 = vld [vmem:[%s10868_s5 + $0x30] sm:$0xff]  }
 0x23e   :  { %7811 = vrcp.f32 %v560_v41 }
 0x23f   :  { %7813 = vrcp.f32 %v562_v40 }
 0x240   :  { %7815 = vtanh.f32 %v529_v19 }
 0x241   :  { %7817 = vtanh.f32 %v532_v30 }
 0x242   :  { %7819 = vtanh.f32 %v537_v17 }
 0x243   :  { %7821 = vtanh.f32 %v540_v26 }
 0x247   :  { %v7808_v43 = vpop.eup %7807 }
 0x248   :  { %575 = vrot.lane.b32.xlu0 %v7808_v43, %s8193_s16  ;;  %v7810_v44 = vpop.eup %7809  ;;  %v7709_v43 = vld [vmem:[%s10868_s5 + $0x28] sm:$0xff]  }
 0x24b   :  { %v7812_v45 = vpop.eup %7811 }
 0x24c   :  { %577 = vrot.lane.b32.xlu1 %v7812_v45, %s8193_s16  ;;  %579 = vrot.lane.b32.xlu0 %v7810_v44, %s8193_s16  ;;  %v7814_v46 = vpop.eup %7813 }
 0x24d   :  { %v7816_v48 = vpop.eup %7815 }
 0x24e   :  { %v7818_v50 = vpop.eup %7817 }
 0x24f   :  { %v7820_v56 = vpop.eup %7819 }
 0x250   :  { %581 = vrot.lane.b32.xlu1 %v7814_v46, %s8193_s16  ;;  %v7822_v58 = vpop.eup %7821 }
 0x2ba   :  { %v576_v47 = vpop.permute.xlu0 %575 }
 0x2bb   :  { %v587_v52 = vmul.f32 %v7816_v48, %v576_v47 }
 0x2be   :  { %v578_v51 = vpop.permute.xlu1 %577  ;;  %v580_v55 = vpop.permute.xlu0 %579 }
 0x2bf   :  { %v588_v53 = vmul.f32 %v7818_v50, %v578_v51  ;;  %v589_v60 = vmul.f32 %v7820_v56, %v580_v55 }
 0x2c1   :  { %v591_v57 = vpack.c.bf16 %v588_v53, %v587_v52 }
 0x2c2   :  { %v582_v59 = vpop.permute.xlu1 %581 }
 0x2c3   :  { %v590_v63 = vmul.f32 %v7822_v58, %v582_v59  ;;  %7339 = vmatprep.mubr.msk.bf16.mxu0 %vm224_vm9, %v591_v57 }
 0x2c5   :  { %v592_v61 = vpack.c.bf16 %v590_v63, %v589_v60 }
 0x2c7   :  { %7340 = vmatmul.mubr.msk.bf16.vlgmr.msra.gmra.mxu0 %vm224_vm9, %v592_v61 }
 0x2c8   :  { %7344 = vmatpush3.bf16.msra.mxu0 %v7705_v18 }
 0x2c9   :  { %7345 = vmatprep.subr.bf16.mxu0 %v7706_v23 }
 0x2cc   :  { %7346 = vmatpush3.bf16.msra.mxu0 %v7706_v23 }
 0x2cd   :  { %7347 = vmatprep.subr.bf16.mxu0 %v7707_v32 }
 0x2d0   :  { %7348 = vmatpush3.bf16.msra.mxu0 %v7707_v32 }
 0x2d1   :  { %7349 = vmatprep.subr.bf16.mxu0 %v7708_v39 }
 0x2d4   :  { %7350 = vmatpush3.bf16.msra.mxu0 %v7708_v39 }
 0x2d5   :  { %7351 = vmatprep.subr.bf16.mxu0 %v7709_v43 }
 0x2d8   :  { %7352 = vmatpush3.bf16.msra.mxu0 %v7709_v43 }
 0x387   :  { %v7341_v2 = vpop.f32.mrf.mxu0 }
 0x388   :  { %v8466_v3 = vadd.f32 %v7341_v2, %v6639_v0 }
 0x389   :  { %v648_v6 = vpop.f32.mrf.mxu0 }
 0x38a   :  { %v665_v7 = vadd.f32 %v8466_v3, %v8294_v21  ;;  %v8470_v8 = vadd.f32 %v6639_v0, %v648_v6 }
 0x38b   :  { %v7342_v10 = vpop.f32.mrf.mxu0 }
 0x38c   :  { %v8473_v11 = vmul.f32 %v665_v7, %v8291_v16  ;;  %v663_v12 = vadd.f32 %v8470_v8, %v8301_v25  ;;  %v8477_v4 = vadd.f32 %v7342_v10, %v6639_v0 }
 0x38d   :  { %v651_v14 = vpop.f32.mrf.mxu0 }
 0x38e   :  { %v8480_v62 = vmul.f32 %v663_v12, %v8296_v22  ;;  %v666_v15 = vadd.f32 %v8477_v4, %v8306_v28  ;;  %v8484_v17 = vadd.f32 %v6639_v0, %v651_v14  ;;  %731 = vrot.lane.b32.xlu0 %v8473_v11, %s8188_s2  ;;  %v685_v26 = vrot.slane %v8473_v11, 7 }
 0x38f   :  { %v693_v27 = vrot.slane %v8473_v11, 1  ;;  %v701_v48 = vrot.slane %v8473_v11, 2  ;;  %v677_v14 = vrot.slane %v8473_v11, 6 }
 0x390   :  { %v8489_v21 = vmul.f32 %v666_v15, %v8286_v13  ;;  %v664_v25 = vadd.f32 %v8484_v17, %v8321_v34  ;;  %v683_v9 = vrot.slane %v8480_v62, 7  ;;  %v691_v35 = vrot.slane %v8480_v62, 1 }
 0x391   :  { %v699_v44 = vrot.slane %v8480_v62, 2  ;;  %v675_v2 = vrot.slane %v8480_v62, 6 }
 0x392   :  { %733 = vrot.lane.b32.xlu1 %v8489_v21, %s8188_s2  ;;  %727 = vrot.lane.b32.xlu0 %v8480_v62, %s8188_s2  ;;  %v686_v28 = vrot.slane %v8489_v21, 7  ;;  %v8503_v19 = vmul.f32 %v664_v25, %v8318_v33  ;;  %v694_v20 = vrot.slane %v8489_v21, 1  ;;  %v702_v47 = vrot.slane %v8489_v21, 2 }
 0x393   :  { %v678_v0 = vrot.slane %v8489_v21, 6 }
 0x394   :  { %v690_v34 = vsel %vm331_vm2, %v686_v28, %v683_v9  ;;  %v687_v29 = vsel %vm331_vm2, %v685_v26, %v686_v28  ;;  %v695_v30 = vsel %vm340_vm3, %v693_v27, %v694_v20  ;;  %v684_v31 = vrot.slane %v8503_v19, 7 }
 0x395   :  { %v698_v36 = vsel %vm340_vm3, %v694_v20, %v691_v35  ;;  %v692_v38 = vrot.slane %v8503_v19, 1  ;;  %v700_v42 = vrot.slane %v8503_v19, 2  ;;  %v703_v50 = vsel %vm349_vm4, %v701_v48, %v702_v47 }
 0x396   :  { %729 = vrot.lane.b32.xlu1 %v8503_v19, %s8188_s2  ;;  %711 = vrot.lane.b32.xlu0 %v690_v34, %s8189_s22  ;;  %v688_v37 = vsel %vm331_vm2, %v684_v31, %v685_v26  ;;  %v689_v41 = vsel %vm331_vm2, %v683_v9, %v684_v31  ;;  %v706_v52 = vsel %vm349_vm4, %v702_v47, %v699_v44  ;;  %v676_v6 = vrot.slane %v8503_v19, 6 }
 0x397   :  { %v697_v40 = vsel %vm340_vm3, %v691_v35, %v692_v38  ;;  %v705_v45 = vsel %vm349_vm4, %v699_v44, %v700_v42  ;;  %v696_v46 = vsel %vm340_vm3, %v692_v38, %v693_v27  ;;  %v704_v51 = vsel %vm349_vm4, %v700_v42, %v701_v48 }
 0x398   :  { %v682_v12 = vsel %vm322_vm10, %v678_v0, %v675_v2  ;;  %v680_v25 = vsel %vm322_vm10, %v676_v6, %v677_v14  ;;  %v681_v9 = vsel %vm322_vm10, %v675_v2, %v676_v6  ;;  %v679_v27 = vsel %vm322_vm10, %v677_v14, %v678_v0 }
 0x39a   :  { %717 = vrot.lane.b32.xlu1 %v687_v29, %s8189_s22  ;;  %747 = vrot.lane.b32.xlu0 %v695_v30, %s8190_s23 }
 0x39e   :  { %749 = vrot.lane.b32.xlu1 %v698_v36, %s8190_s23  ;;  %715 = vrot.lane.b32.xlu0 %v688_v37, %s8189_s22 }
 0x3a2   :  { %743 = vrot.lane.b32.xlu0 %v697_v40, %s8190_s23  ;;  %713 = vrot.lane.b32.xlu1 %v689_v41, %s8189_s22 }
 0x3a6   :  { %759 = vrot.lane.b32.xlu0 %v705_v45, %s8191_s30  ;;  %745 = vrot.lane.b32.xlu1 %v696_v46, %s8190_s23 }
 0x3aa   :  { %763 = vrot.lane.b32.xlu0 %v703_v50, %s8191_s30  ;;  %761 = vrot.lane.b32.xlu1 %v704_v51, %s8191_s30 }
 0x3ae   :  { %765 = vrot.lane.b32.xlu1 %v706_v52, %s8191_s30  ;;  %v6654_v52 = vld [vmem:[%s10869_s6 + $0x1] ss:$0 sm:$0xff] }
 0x400   :  { %v732_v53 = vpop.permute.xlu0 %731 }
 0x404   :  { %v734_v55 = vpop.permute.xlu1 %733  ;;  %v728_v56 = vpop.permute.xlu0 %727 }
 0x408   :  { %v730_v57 = vpop.permute.xlu1 %729  ;;  %v712_v58 = vpop.permute.xlu0 %711 }
 0x409   :  { %v771_v15 = vsel %vm224_vm9, %v682_v12, %v712_v58 }
 0x40a   :  { %v775_v23 = vsel %vm229_vm12, %v771_v15, %v728_v56 }
 0x40c   :  { %v718_v59 = vpop.permute.xlu1 %717  ;;  %v748_v60 = vpop.permute.xlu0 %747 }
 0x40d   :  { %v774_v32 = vsel %vm224_vm9, %v679_v27, %v718_v59 }
 0x40e   :  { %v778_v42 = vsel %vm229_vm12, %v774_v32, %v734_v55 }
 0x410   :  { %v750_v63 = vpop.permute.xlu1 %749  ;;  %v716_v61 = vpop.permute.xlu0 %715 }
 0x411   :  { %v773_v28 = vsel %vm224_vm9, %v680_v25, %v716_v61  ;;  %v782_v44 = vsel %vm234_vm14, %v778_v42, %v750_v63 }
 0x412   :  { %v777_v29 = vsel %vm229_vm12, %v773_v28, %v732_v53 }
 0x413   :  { %v781_v40 = vsel %vm234_vm14, %v777_v29, %v748_v60 }
 0x414   :  { %v744_v7 = vpop.permute.xlu0 %743  ;;  %v714_v10 = vpop.permute.xlu1 %713 }
 0x415   :  { %v772_v18 = vsel %vm224_vm9, %v681_v9, %v714_v10  ;;  %v779_v26 = vsel %vm234_vm14, %v775_v23, %v744_v7  ;;  %v7710_v9 = vld [vmem:[%s10870_s7 + $0x8] sm:$0xff]  }
 0x416   :  { %v776_v31 = vsel %vm229_vm12, %v772_v18, %v730_v57  ;;  %7357 = vmatprep.subr.bf16.mxu1 %v7710_v9 }
 0x417   :  { %7358 = vmatpush3.bf16.msra.mxu1 %v7710_v9 }
 0x418   :  { %v760_v34 = vpop.permute.xlu0 %759  ;;  %v746_v20 = vpop.permute.xlu1 %745 }
 0x419   :  { %v783_v30 = vsel %vm239_vm5, %v779_v26, %v760_v34  ;;  %v780_v35 = vsel %vm234_vm14, %v776_v31, %v746_v20 }
 0x41a   :  { %v787_v39 = vmul.f32 %v783_v30, %v8419_v49 }
 0x41c   :  { %v764_v36 = vpop.permute.xlu0 %763  ;;  %v762_v37 = vpop.permute.xlu1 %761 }
 0x41d   :  { %v784_v38 = vsel %vm239_vm5, %v780_v35, %v762_v37  ;;  %v785_v43 = vsel %vm239_vm5, %v781_v40, %v764_v36 }
 0x41e   :  { %v788_v41 = vmul.f32 %v784_v38, %v8426_v54  ;;  %v789_v48 = vmul.f32 %v785_v43, %v8434_v1 }
 0x420   :  { %v791_v45 = vpack.c.bf16 %v788_v41, %v787_v39  ;;  %v766_v46 = vpop.permute.xlu1 %765 }
 0x421   :  { %v786_v47 = vsel %vm239_vm5, %v782_v44, %v766_v46  ;;  %v6669_v44 = vld [vmem:[%s10871_s8 + $0x1] ss:$0 sm:$0xff] }
 0x422   :  { %v790_v50 = vmul.f32 %v786_v47, %v8443_v5  ;;  %7353 = vmatprep.mubr.msk.bf16.mxu0 %vm487_vm7, %v791_v45 }
 0x424   :  { %v792_v51 = vpack.c.bf16 %v790_v50, %v789_v48 }
 0x426   :  { %7354 = vmatmul.mubr.msk.bf16.vlgmr.msra.gmra.mxu0 %vm487_vm7, %v792_v51 }
 0x4e6   :  { %v7355_v53 = vpop.f32.mrf.mxu0 }
 0x4e7   :  { %v891_v55 = vadd.f32 %v7355_v53, %v6654_v52 }
 0x4e8   :  { %v882_v56 = vpop.f32.mrf.mxu0 }
 0x4e9   :  { %v6664_v57 = vmul.f32 -1.442695, %v891_v55  ;;  %v883_v58 = vadd.f32 %v6654_v52, %v882_v56 }
 0x4ea   :  { %v7356_v59 = vpop.f32.mrf.mxu0 }
 0x4eb   :  { %v6662_v60 = vmul.f32 -1.442695, %v883_v58  ;;  %v894_v63 = vadd.f32 %v7356_v59, %v6654_v52  ;;  %7823 = vpow2.f32 %v6664_v57 }
 0x4ec   :  { %v885_v61 = vpop.f32.mrf.mxu0 }
 0x4ed   :  { %7825 = vpow2.f32 %v6662_v60  ;;  %v6665_v0 = vmul.f32 -1.442695, %v894_v63  ;;  %v886_v2 = vadd.f32 %v6654_v52, %v885_v61 }
 0x4ef   :  { %v6663_v6 = vmul.f32 -1.442695, %v886_v2  ;;  %7827 = vpow2.f32 %v6665_v0 }
 0x4f1   :  { %7829 = vpow2.f32 %v6663_v6 }
 0x4f8   :  { %v7824_v7 = vpop.eup %7823 }
 0x4f9   :  { %v915_v14 = vadd.f32 1.0, %v7824_v7 }
 0x4fa   :  { %v7826_v10 = vpop.eup %7825 }
 0x4fb   :  { %v913_v12 = vadd.f32 1.0, %v7826_v10 }
 0x4fc   :  { %v7828_v15 = vpop.eup %7827 }
 0x4fd   :  { %7831 = vrcp.f32 %v913_v12  ;;  %v916_v18 = vadd.f32 1.0, %v7828_v15  ;;  %v7713_v15 = vld [vmem:[%s10868_s5 + $0x60] sm:$0xff]  }
 0x4fe   :  { %v7830_v25 = vpop.eup %7829  ;;  %7833 = vrcp.f32 %v915_v14 }
 0x4ff   :  { %v914_v28 = vadd.f32 1.0, %v7830_v25 }
 0x501   :  { %7835 = vrcp.f32 %v914_v28 }
 0x502   :  { %7837 = vrcp.f32 %v916_v18 }
 0x503   :  { %7839 = vtanh.f32 %v883_v58 }
 0x504   :  { %7841 = vtanh.f32 %v886_v2  ;;  %v7712_v2 = vld [vmem:[%s10868_s5 + $0x68] sm:$0xff]  }
 0x505   :  { %7843 = vtanh.f32 %v891_v55 }
 0x506   :  { %7845 = vtanh.f32 %v894_v63  ;;  %v7711_v63 = vld [vmem:[%s10868_s5 + $0x70] sm:$0xff]  }
 0x507   :  { %7363 = vmatprep.subr.bf16.mxu1 %v7711_v63 }
 0x50a   :  { %v7832_v34 = vpop.eup %7831 }
 0x50b   :  { %929 = vrot.lane.b32.xlu0 %v7832_v34, %s8193_s16  ;;  %v7834_v20 = vpop.eup %7833  ;;  %v7714_v34 = vld [vmem:[%s10868_s5 + $0x58] sm:$0xff]  }
 0x50e   :  { %v7836_v23 = vpop.eup %7835 }
 0x50f   :  { %931 = vrot.lane.b32.xlu1 %v7836_v23, %s8193_s16  ;;  %933 = vrot.lane.b32.xlu0 %v7834_v20, %s8193_s16  ;;  %v7838_v26 = vpop.eup %7837 }
 0x510   :  { %v7840_v29 = vpop.eup %7839 }
 0x511   :  { %v7842_v30 = vpop.eup %7841 }
 0x512   :  { %v7844_v37 = vpop.eup %7843 }
 0x513   :  { %935 = vrot.lane.b32.xlu1 %v7838_v26, %s8193_s16  ;;  %v7846_v39 = vpop.eup %7845 }
 0x57d   :  { %v930_v27 = vpop.permute.xlu0 %929 }
 0x57e   :  { %v941_v32 = vmul.f32 %v7840_v29, %v930_v27  ;;  %v7715_v27 = vld [vmem:[%s10868_s5 + $0x50] sm:$0xff]  }
 0x581   :  { %v932_v31 = vpop.permute.xlu1 %931  ;;  %v934_v36 = vpop.permute.xlu0 %933 }
 0x582   :  { %v942_v35 = vmul.f32 %v7842_v30, %v932_v31  ;;  %v943_v41 = vmul.f32 %v7844_v37, %v934_v36 }
 0x584   :  { %v945_v38 = vpack.c.bf16 %v942_v35, %v941_v32 }
 0x585   :  { %v936_v40 = vpop.permute.xlu1 %935 }
 0x586   :  { %v944_v42 = vmul.f32 %v7846_v39, %v936_v40  ;;  %7359 = vmatprep.mubr.msk.bf16.mxu1 %vm224_vm9, %v945_v38 }
 0x588   :  { %v946_v43 = vpack.c.bf16 %v944_v42, %v943_v41 }
 0x58a   :  { %7360 = vmatmul.mubr.msk.bf16.vlgmr.msra.gmra.mxu1 %vm224_vm9, %v946_v43 }
 0x58b   :  { %7364 = vmatpush3.bf16.msra.mxu1 %v7711_v63 }
 0x58c   :  { %7365 = vmatprep.subr.bf16.mxu1 %v7712_v2 }
 0x58f   :  { %7366 = vmatpush3.bf16.msra.mxu1 %v7712_v2 }
 0x590   :  { %7367 = vmatprep.subr.bf16.mxu1 %v7713_v15 }
 0x593   :  { %7368 = vmatpush3.bf16.msra.mxu1 %v7713_v15 }
 0x594   :  { %7369 = vmatprep.subr.bf16.mxu1 %v7714_v34 }
 0x597   :  { %7370 = vmatpush3.bf16.msra.mxu1 %v7714_v34 }
 0x598   :  { %7371 = vmatprep.subr.bf16.mxu1 %v7715_v27 }
 0x59b   :  { %7372 = vmatpush3.bf16.msra.mxu1 %v7715_v27 }
 0x64a   :  { %v7361_v45 = vpop.f32.mrf.mxu1 }
 0x64b   :  { %v8614_v46 = vadd.f32 %v7361_v45, %v6669_v44 }
 0x64c   :  { %v1004_v47 = vpop.f32.mrf.mxu1 }
 0x64d   :  { %v1021_v48 = vadd.f32 %v8614_v46, %v8473_v11  ;;  %v8618_v50 = vadd.f32 %v6669_v44, %v1004_v47 }
 0x64e   :  { %v7362_v51 = vpop.f32.mrf.mxu1 }
 0x64f   :  { %v8621_v52 = vmul.f32 %v1021_v48, %v8291_v16  ;;  %v1019_v53 = vadd.f32 %v8618_v50, %v8480_v62  ;;  %v8625_v55 = vadd.f32 %v7362_v51, %v6669_v44 }
 0x650   :  { %v1007_v56 = vpop.f32.mrf.mxu1 }
 0x651   :  { %v8628_v57 = vmul.f32 %v1019_v53, %v8296_v22  ;;  %v1022_v58 = vadd.f32 %v8625_v55, %v8489_v21  ;;  %v8632_v59 = vadd.f32 %v6669_v44, %v1007_v56  ;;  %1087 = vrot.lane.b32.xlu0 %v8621_v52, %s8188_s2  ;;  %v1041_v6 = vrot.slane %v8621_v52, 7 }
 0x652   :  { %v1049_v7 = vrot.slane %v8621_v52, 1  ;;  %v1057_v35 = vrot.slane %v8621_v52, 2 }
 0x653   :  { %v8637_v11 = vmul.f32 %v1022_v58, %v8286_v13  ;;  %v1020_v62 = vadd.f32 %v8632_v59, %v8503_v19  ;;  %v1039_v60 = vrot.slane %v8628_v57, 7  ;;  %v1047_v25 = vrot.slane %v8628_v57, 1 }
 0x654   :  { %v1055_v29 = vrot.slane %v8628_v57, 2  ;;  %v1031_v53 = vrot.slane %v8628_v57, 6 }
 0x655   :  { %1089 = vrot.lane.b32.xlu1 %v8637_v11, %s8188_s2  ;;  %1083 = vrot.lane.b32.xlu0 %v8628_v57, %s8188_s2  ;;  %v1042_v21 = vrot.slane %v8637_v11, 7  ;;  %v8651_v61 = vmul.f32 %v1020_v62, %v8318_v33  ;;  %v1050_v0 = vrot.slane %v8637_v11, 1  ;;  %v1058_v32 = vrot.slane %v8637_v11, 2 }
 0x656   :  { %v1034_v51 = vrot.slane %v8637_v11, 6 }
 0x657   :  { %v1046_v19 = vsel %vm331_vm2, %v1042_v21, %v1039_v60  ;;  %v1043_v10 = vsel %vm331_vm2, %v1041_v6, %v1042_v21  ;;  %v1051_v12 = vsel %vm340_vm3, %v1049_v7, %v1050_v0  ;;  %v1040_v14 = vrot.slane %v8651_v61, 7 }
 0x658   :  { %v1054_v9 = vsel %vm340_vm3, %v1050_v0, %v1047_v25  ;;  %v1048_v18 = vrot.slane %v8651_v61, 1  ;;  %v1056_v26 = vrot.slane %v8651_v61, 2  ;;  %v1059_v36 = vsel %vm349_vm4, %v1057_v35, %v1058_v32 }
 0x659   :  { %1085 = vrot.lane.b32.xlu1 %v8651_v61, %s8188_s2  ;;  %1067 = vrot.lane.b32.xlu0 %v1046_v19, %s8189_s22  ;;  %v1044_v28 = vsel %vm331_vm2, %v1040_v14, %v1041_v6  ;;  %v1045_v23 = vsel %vm331_vm2, %v1039_v60, %v1040_v14  ;;  %v1062_v38 = vsel %vm349_vm4, %v1058_v32, %v1055_v29  ;;  %v1032_v56 = vrot.slane %v8651_v61, 6 }
 0x65a   :  { %v1053_v20 = vsel %vm340_vm3, %v1047_v25, %v1048_v18  ;;  %v1061_v30 = vsel %vm349_vm4, %v1055_v29, %v1056_v26  ;;  %v1052_v31 = vsel %vm340_vm3, %v1048_v18, %v1049_v7  ;;  %v1060_v37 = vsel %vm349_vm4, %v1056_v26, %v1057_v35 }
 0x65b   :  { %v1038_v60 = vsel %vm322_vm10, %v1034_v51, %v1031_v53  ;;  %v1033_v21 = vrot.slane %v8621_v52, 6  ;;  %v1037_v0 = vsel %vm322_vm10, %v1031_v53, %v1032_v56 }
 0x65d   :  { %1073 = vrot.lane.b32.xlu1 %v1043_v10, %s8189_s22  ;;  %1103 = vrot.lane.b32.xlu0 %v1051_v12, %s8190_s23  ;;  %v1036_v19 = vsel %vm322_vm10, %v1032_v56, %v1033_v21  ;;  %v1035_v15 = vsel %vm322_vm10, %v1033_v21, %v1034_v51 }
 0x661   :  { %1105 = vrot.lane.b32.xlu1 %v1054_v9, %s8190_s23  ;;  %1071 = vrot.lane.b32.xlu0 %v1044_v28, %s8189_s22 }
 0x665   :  { %1099 = vrot.lane.b32.xlu0 %v1053_v20, %s8190_s23  ;;  %1069 = vrot.lane.b32.xlu1 %v1045_v23, %s8189_s22 }
 0x669   :  { %1115 = vrot.lane.b32.xlu0 %v1061_v30, %s8191_s30  ;;  %1101 = vrot.lane.b32.xlu1 %v1052_v31, %s8190_s23 }
 0x66d   :  { %1119 = vrot.lane.b32.xlu0 %v1059_v36, %s8191_s30  ;;  %1117 = vrot.lane.b32.xlu1 %v1060_v37, %s8191_s30 }
 0x671   :  { %1121 = vrot.lane.b32.xlu1 %v1062_v38, %s8191_s30 }
 0x6c3   :  { %v1088_v39 = vpop.permute.xlu0 %1087 }
 0x6c7   :  { %v1090_v40 = vpop.permute.xlu1 %1089  ;;  %v1084_v41 = vpop.permute.xlu0 %1083 }
 0x6cb   :  { %v1086_v42 = vpop.permute.xlu1 %1085  ;;  %v1068_v43 = vpop.permute.xlu0 %1067 }
 0x6cc   :  { %v1127_v63 = vsel %vm224_vm9, %v1038_v60, %v1068_v43 }
 0x6cd   :  { %v1131_v12 = vsel %vm229_vm12, %v1127_v63, %v1084_v41 }
 0x6cf   :  { %v1074_v44 = vpop.permute.xlu1 %1073  ;;  %v1104_v45 = vpop.permute.xlu0 %1103 }
 0x6d0   :  { %v1130_v18 = vsel %vm224_vm9, %v1035_v15, %v1074_v44 }
 0x6d1   :  { %v1134_v31 = vsel %vm229_vm12, %v1130_v18, %v1090_v40  ;;  %v6684_v40 = vld [vmem:[%s10869_s6 + $0x2] ss:$0 sm:$0xff] }
 0x6d3   :  { %v1106_v47 = vpop.permute.xlu1 %1105  ;;  %v1072_v48 = vpop.permute.xlu0 %1071 }
 0x6d4   :  { %v1129_v2 = vsel %vm224_vm9, %v1036_v19, %v1072_v48  ;;  %v1138_v35 = vsel %vm234_vm14, %v1134_v31, %v1106_v47 }
 0x6d5   :  { %v1133_v25 = vsel %vm229_vm12, %v1129_v2, %v1088_v39 }
 0x6d6   :  { %v1137_v29 = vsel %vm234_vm14, %v1133_v25, %v1104_v45 }
 0x6d7   :  { %v1100_v58 = vpop.permute.xlu0 %1099  ;;  %v1070_v62 = vpop.permute.xlu1 %1069 }
 0x6d8   :  { %v1128_v6 = vsel %vm224_vm9, %v1037_v0, %v1070_v62  ;;  %v1135_v14 = vsel %vm234_vm14, %v1131_v12, %v1100_v58 }
 0x6d9   :  { %v1132_v28 = vsel %vm229_vm12, %v1128_v6, %v1086_v42 }
 0x6db   :  { %v1116_v7 = vpop.permute.xlu0 %1115  ;;  %v1102_v10 = vpop.permute.xlu1 %1101 }
 0x6dc   :  { %v1139_v9 = vsel %vm239_vm5, %v1135_v14, %v1116_v7  ;;  %v1136_v34 = vsel %vm234_vm14, %v1132_v28, %v1102_v10  ;;  %v7716_v10 = vld [vmem:[%s10870_s7 + $0x10] sm:$0xff]  }
 0x6dd   :  { %v1143_v27 = vmul.f32 %v1139_v9, %v8419_v49  ;;  %7377 = vmatprep.subr.bf16.mxu0 %v7716_v10 }
 0x6de   :  { %7378 = vmatpush3.bf16.msra.mxu0 %v7716_v10 }
 0x6df   :  { %v1120_v20 = vpop.permute.xlu0 %1119  ;;  %v1118_v23 = vpop.permute.xlu1 %1117 }
 0x6e0   :  { %v1140_v26 = vsel %vm239_vm5, %v1136_v34, %v1118_v23  ;;  %v1141_v32 = vsel %vm239_vm5, %v1137_v29, %v1120_v20 }
 0x6e1   :  { %v1144_v30 = vmul.f32 %v1140_v26, %v8426_v54  ;;  %v1145_v39 = vmul.f32 %v1141_v32, %v8434_v1 }
 0x6e3   :  { %v1147_v36 = vpack.c.bf16 %v1144_v30, %v1143_v27  ;;  %v1122_v37 = vpop.permute.xlu1 %1121 }
 0x6e4   :  { %v1142_v38 = vsel %vm239_vm5, %v1138_v35, %v1122_v37 }
 0x6e5   :  { %v1146_v41 = vmul.f32 %v1142_v38, %v8443_v5  ;;  %7373 = vmatprep.mubr.msk.bf16.mxu1 %vm487_vm7, %v1147_v36 }
 0x6e7   :  { %v1148_v42 = vpack.c.bf16 %v1146_v41, %v1145_v39  ;;  %v6699_v39 = vld [vmem:[%s10871_s8 + $0x2] ss:$0 sm:$0xff] }
 0x6e9   :  { %7374 = vmatmul.mubr.msk.bf16.vlgmr.msra.gmra.mxu1 %vm487_vm7, %v1148_v42  ;;  %v1029_v42 = vadd.f32 %v8614_v46, %v8466_v3 }
 0x7a9   :  { %v7375_v43 = vpop.f32.mrf.mxu1 }
 0x7aa   :  { %v1247_v44 = vadd.f32 %v7375_v43, %v6684_v40 }
 0x7ab   :  { %v1238_v45 = vpop.f32.mrf.mxu1 }
 0x7ac   :  { %v6694_v47 = vmul.f32 -1.442695, %v1247_v44  ;;  %v1239_v48 = vadd.f32 %v6684_v40, %v1238_v45 }
 0x7ad   :  { %v7376_v51 = vpop.f32.mrf.mxu1 }
 0x7ae   :  { %v6692_v53 = vmul.f32 -1.442695, %v1239_v48  ;;  %v1250_v56 = vadd.f32 %v7376_v51, %v6684_v40  ;;  %7847 = vpow2.f32 %v6694_v47  ;;  %v1030_v51 = vadd.f32 %v8625_v55, %v8477_v4 }
 0x7af   :  { %v1241_v58 = vpop.f32.mrf.mxu1 }
 0x7b0   :  { %7849 = vpow2.f32 %v6692_v53  ;;  %v6695_v62 = vmul.f32 -1.442695, %v1250_v56  ;;  %v1242_v60 = vadd.f32 %v6684_v40, %v1241_v58 }
 0x7b2   :  { %v6693_v21 = vmul.f32 -1.442695, %v1242_v60  ;;  %7851 = vpow2.f32 %v6695_v62 }
 0x7b4   :  { %7853 = vpow2.f32 %v6693_v21 }
 0x7bb   :  { %v7848_v63 = vpop.eup %7847 }
 0x7bc   :  { %v1271_v2 = vadd.f32 1.0, %v7848_v63  ;;  %v7717_v63 = vld [vmem:[%s10868_s5 + $0x98] sm:$0xff]  }
 0x7bd   :  { %v7850_v19 = vpop.eup %7849  ;;  %7383 = vmatprep.subr.bf16.mxu0 %v7717_v63 }
 0x7be   :  { %v1269_v0 = vadd.f32 1.0, %v7850_v19 }
 0x7bf   :  { %v7852_v6 = vpop.eup %7851 }
 0x7c0   :  { %7855 = vrcp.f32 %v1269_v0  ;;  %v1272_v14 = vadd.f32 1.0, %v7852_v6 }
 0x7c1   :  { %v7854_v7 = vpop.eup %7853  ;;  %7857 = vrcp.f32 %v1271_v2 }
 0x7c2   :  { %v1270_v12 = vadd.f32 1.0, %v7854_v7  ;;  %v7718_v7 = vld [vmem:[%s10868_s5 + $0x90] sm:$0xff]  }
 0x7c4   :  { %7859 = vrcp.f32 %v1270_v12 }
 0x7c5   :  { %7861 = vrcp.f32 %v1272_v14 }
 0x7c6   :  { %7863 = vtanh.f32 %v1239_v48 }
 0x7c7   :  { %7865 = vtanh.f32 %v1242_v60 }
 0x7c8   :  { %7867 = vtanh.f32 %v1247_v44  ;;  %v1027_v44 = vadd.f32 %v8618_v50, %v8470_v8  ;;  %v1028_v8 = vadd.f32 %v8632_v59, %v8484_v17 }
 0x7c9   :  { %7869 = vtanh.f32 %v1250_v56 }
 0x7cd   :  { %v7856_v15 = vpop.eup %7855 }
 0x7ce   :  { %1285 = vrot.lane.b32.xlu0 %v7856_v15, %s8193_s16  ;;  %v7858_v25 = vpop.eup %7857 }
 0x7d1   :  { %v7860_v9 = vpop.eup %7859 }
 0x7d2   :  { %1287 = vrot.lane.b32.xlu1 %v7860_v9, %s8193_s16  ;;  %1289 = vrot.lane.b32.xlu0 %v7858_v25, %s8193_s16  ;;  %v7862_v28 = vpop.eup %7861 }
 0x7d3   :  { %v7864_v34 = vpop.eup %7863 }
 0x7d4   :  { %v7866_v20 = vpop.eup %7865 }
 0x7d5   :  { %v7868_v30 = vpop.eup %7867 }
 0x7d6   :  { %1291 = vrot.lane.b32.xlu1 %v7862_v28, %s8193_s16  ;;  %v7870_v32 = vpop.eup %7869 }
 0x840   :  { %v1286_v18 = vpop.permute.xlu0 %1285 }
 0x841   :  { %v1297_v26 = vmul.f32 %v7864_v34, %v1286_v18 }
 0x844   :  { %v1288_v23 = vpop.permute.xlu1 %1287  ;;  %v1290_v29 = vpop.permute.xlu0 %1289 }
 0x845   :  { %v1298_v27 = vmul.f32 %v7866_v20, %v1288_v23  ;;  %v1299_v36 = vmul.f32 %v7868_v30, %v1290_v29  ;;  %v7719_v23 = vld [vmem:[%s10868_s5 + $0x88] sm:$0xff]  }
 0x847   :  { %v1301_v31 = vpack.c.bf16 %v1298_v27, %v1297_v26 }
 0x848   :  { %v1292_v35 = vpop.permute.xlu1 %1291 }
 0x849   :  { %v1300_v37 = vmul.f32 %v7870_v32, %v1292_v35  ;;  %7379 = vmatprep.mubr.msk.bf16.mxu0 %vm224_vm9, %v1301_v31  ;;  %v7720_v31 = vld [vmem:[%s10868_s5 + $0x80] sm:$0xff]  }
 0x84b   :  { %v1302_v38 = vpack.c.bf16 %v1300_v37, %v1299_v36  ;;  %v7721_v37 = vld [vmem:[%s10868_s5 + $0x78] sm:$0xff]  }
 0x84d   :  { %7380 = vmatmul.mubr.msk.bf16.vlgmr.msra.gmra.mxu0 %vm224_vm9, %v1302_v38 }
 0x84e   :  { %7384 = vmatpush3.bf16.msra.mxu0 %v7717_v63 }
 0x84f   :  { %7385 = vmatprep.subr.bf16.mxu0 %v7718_v7 }
 0x852   :  { %7386 = vmatpush3.bf16.msra.mxu0 %v7718_v7 }
 0x853   :  { %7387 = vmatprep.subr.bf16.mxu0 %v7719_v23 }
 0x856   :  { %7388 = vmatpush3.bf16.msra.mxu0 %v7719_v23 }
 0x857   :  { %7389 = vmatprep.subr.bf16.mxu0 %v7720_v31 }
 0x85a   :  { %7390 = vmatpush3.bf16.msra.mxu0 %v7720_v31  ;;  %v6714_v31 = vld [vmem:[%s10869_s6 + $0x3] ss:$0 sm:$0xff] }
 0x85b   :  { %7391 = vmatprep.subr.bf16.mxu0 %v7721_v37 }
 0x85e   :  { %7392 = vmatpush3.bf16.msra.mxu0 %v7721_v37 }
 0x90d   :  { %v7381_v41 = vpop.f32.mrf.mxu0 }
 0x90e   :  { %v1369_v40 = vadd.f32 %v7381_v41, %v6699_v39 }
 0x90f   :  { %v1360_v43 = vpop.f32.mrf.mxu0 }
 0x910   :  { %v1377_v45 = vadd.f32 %v1369_v40, %v8621_v52  ;;  %v8767_v47 = vadd.f32 %v1369_v40, %v1029_v42  ;;  %v1361_v48 = vadd.f32 %v6699_v39, %v1360_v43 }
 0x911   :  { %v7382_v53 = vpop.f32.mrf.mxu0 }
 0x912   :  { %v8772_v56 = vmul.f32 %v1377_v45, %v8291_v16  ;;  %v1375_v58 = vadd.f32 %v1361_v48, %v8628_v57  ;;  %v8775_v3 = vadd.f32 %v1361_v48, %v1027_v44  ;;  %v1372_v46 = vadd.f32 %v7382_v53, %v6699_v39 }
 0x913   :  { %v1363_v50 = vpop.f32.mrf.mxu0 }
 0x914   :  { %v8780_v52 = vmul.f32 %v1375_v58, %v8296_v22  ;;  %v1378_v62 = vadd.f32 %v1372_v46, %v8637_v11  ;;  %v8783_v60 = vadd.f32 %v1372_v46, %v1030_v51  ;;  %v1364_v4 = vadd.f32 %v6699_v39, %v1363_v50  ;;  %1443 = vrot.lane.b32.xlu0 %v8772_v56, %s8188_s2 }
 0x915   :  { %v1389_v2 = vrot.slane %v8772_v56, 6  ;;  %v1397_v15 = vrot.slane %v8772_v56, 7  ;;  %v1405_v25 = vrot.slane %v8772_v56, 1  ;;  %v1413_v40 = vrot.slane %v8772_v56, 2 }
 0x916   :  { %v8788_v55 = vmul.f32 %v1378_v62, %v8286_v13  ;;  %v1376_v57 = vadd.f32 %v1364_v4, %v8651_v61  ;;  %v8791_v21 = vadd.f32 %v1364_v4, %v1028_v8  ;;  %v1395_v59 = vrot.slane %v8780_v52, 7 }
 0x917   :  { %v1387_v0 = vrot.slane %v8780_v52, 6  ;;  %v1403_v26 = vrot.slane %v8780_v52, 1  ;;  %v1411_v38 = vrot.slane %v8780_v52, 2 }
 0x918   :  { %v1380_v17 = vmul.f32 %v1376_v57, %v8318_v33  ;;  %1445 = vrot.lane.b32.xlu1 %v8788_v55, %s8188_s2  ;;  %1439 = vrot.lane.b32.xlu0 %v8780_v52, %s8188_s2  ;;  %v1398_v11 = vrot.slane %v8788_v55, 7  ;;  %v1390_v61 = vrot.slane %v8788_v55, 6  ;;  %v1406_v6 = vrot.slane %v8788_v55, 1 }
 0x919   :  { %v1414_v42 = vrot.slane %v8788_v55, 2 }
 0x91a   :  { %v1402_v19 = vsel %vm331_vm2, %v1398_v11, %v1395_v59  ;;  %v1394_v10 = vsel %vm322_vm10, %v1390_v61, %v1387_v0  ;;  %v8818_v12 = vsel %vm322_vm10, %v1389_v2, %v1390_v61  ;;  %v1388_v14 = vrot.slane %v1380_v17, 6 }
 0x91b   :  { %v1399_v18 = vsel %vm331_vm2, %v1397_v15, %v1398_v11  ;;  %v1407_v34 = vsel %vm340_vm3, %v1405_v25, %v1406_v6  ;;  %v1396_v20 = vrot.slane %v1380_v17, 7  ;;  %v1410_v27 = vsel %vm340_vm3, %v1406_v6, %v1403_v26 }
 0x91c   :  { %1441 = vrot.lane.b32.xlu1 %v1380_v17, %s8188_s2  ;;  %1423 = vrot.lane.b32.xlu0 %v1402_v19, %s8189_s22  ;;  %v1392_v9 = vsel %vm322_vm10, %v1388_v14, %v1389_v2  ;;  %v1393_v28 = vsel %vm322_vm10, %v1387_v0, %v1388_v14  ;;  %v1404_v30 = vrot.slane %v1380_v17, 1  ;;  %v1412_v36 = vrot.slane %v1380_v17, 2 }
 0x91d   :  { %v1400_v29 = vsel %vm331_vm2, %v1396_v20, %v1397_v15  ;;  %v1401_v35 = vsel %vm331_vm2, %v1395_v59, %v1396_v20  ;;  %v1415_v43 = vsel %vm349_vm4, %v1413_v40, %v1414_v42  ;;  %v1418_v45 = vsel %vm349_vm4, %v1414_v42, %v1411_v38 }
 0x91e   :  { %v1409_v32 = vsel %vm340_vm3, %v1403_v26, %v1404_v30  ;;  %v1417_v39 = vsel %vm349_vm4, %v1411_v38, %v1412_v36  ;;  %v1408_v41 = vsel %vm340_vm3, %v1404_v30, %v1405_v25  ;;  %v1416_v44 = vsel %vm349_vm4, %v1412_v36, %v1413_v40 }
 0x920   :  { %1429 = vrot.lane.b32.xlu1 %v1399_v18, %s8189_s22  ;;  %1459 = vrot.lane.b32.xlu0 %v1407_v34, %s8190_s23 }
 0x924   :  { %1461 = vrot.lane.b32.xlu1 %v1410_v27, %s8190_s23  ;;  %1427 = vrot.lane.b32.xlu0 %v1400_v29, %s8189_s22 }
 0x928   :  { %1455 = vrot.lane.b32.xlu0 %v1409_v32, %s8190_s23  ;;  %1425 = vrot.lane.b32.xlu1 %v1401_v35, %s8189_s22 }
 0x92c   :  { %1471 = vrot.lane.b32.xlu0 %v1417_v39, %s8191_s30  ;;  %1457 = vrot.lane.b32.xlu1 %v1408_v41, %s8190_s23 }
 0x930   :  { %1475 = vrot.lane.b32.xlu0 %v1415_v43, %s8191_s30  ;;  %1473 = vrot.lane.b32.xlu1 %v1416_v44, %s8191_s30 }
 0x934   :  { %1477 = vrot.lane.b32.xlu1 %v1418_v45, %s8191_s30 }
 0x986   :  { %v1444_v48 = vpop.permute.xlu0 %1443 }
 0x98a   :  { %v1446_v51 = vpop.permute.xlu1 %1445  ;;  %v1440_v53 = vpop.permute.xlu0 %1439 }
 0x98e   :  { %v1442_v58 = vpop.permute.xlu1 %1441  ;;  %v1424_v56 = vpop.permute.xlu0 %1423 }
 0x98f   :  { %v1483_v55 = vsel %vm224_vm9, %v1394_v10, %v1424_v56 }
 0x990   :  { %v1487_v63 = vsel %vm229_vm12, %v1483_v55, %v1440_v53 }
 0x992   :  { %v1430_v46 = vpop.permute.xlu1 %1429  ;;  %v1460_v8 = vpop.permute.xlu0 %1459 }
 0x993   :  { %v1486_v6 = vsel %vm224_vm9, %v8818_v12, %v1430_v46 }
 0x994   :  { %v1490_v18 = vsel %vm229_vm12, %v1486_v6, %v1446_v51 }
 0x996   :  { %v1462_v50 = vpop.permute.xlu1 %1461  ;;  %v1428_v52 = vpop.permute.xlu0 %1427 }
 0x997   :  { %v1485_v57 = vsel %vm224_vm9, %v1392_v9, %v1428_v52  ;;  %v1494_v20 = vsel %vm234_vm14, %v1490_v18, %v1462_v50 }
 0x998   :  { %v1489_v19 = vsel %vm229_vm12, %v1485_v57, %v1444_v48 }
 0x999   :  { %v1493_v9 = vsel %vm234_vm14, %v1489_v19, %v1460_v8  ;;  %v7722_v8 = vld [vmem:[%s10870_s7 + $0x18] sm:$0xff]  }
 0x99a   :  { %v1456_v62 = vpop.permute.xlu0 %1455  ;;  %v1426_v4 = vpop.permute.xlu1 %1425  ;;  %7397 = vmatprep.subr.bf16.mxu1 %v7722_v8 }
 0x99b   :  { %v1484_v17 = vsel %vm224_vm9, %v1393_v28, %v1426_v4  ;;  %v1491_v61 = vsel %vm234_vm14, %v1487_v63, %v1456_v62  ;;  %7398 = vmatpush3.bf16.msra.mxu1 %v7722_v8 }
 0x99c   :  { %v1488_v2 = vsel %vm229_vm12, %v1484_v17, %v1442_v58 }
 0x99e   :  { %v1472_v59 = vpop.permute.xlu0 %1471  ;;  %v1458_v11 = vpop.permute.xlu1 %1457 }
 0x99f   :  { %v1495_v0 = vsel %vm239_vm5, %v1491_v61, %v1472_v59  ;;  %v1492_v7 = vsel %vm234_vm14, %v1488_v2, %v1458_v11 }
 0x9a0   :  { %v1499_v25 = vmul.f32 %v1495_v0, %v8419_v49 }
 0x9a2   :  { %v1476_v10 = vpop.permute.xlu0 %1475  ;;  %v1474_v14 = vpop.permute.xlu1 %1473 }
 0x9a3   :  { %v1496_v15 = vsel %vm239_vm5, %v1492_v7, %v1474_v14  ;;  %v1497_v34 = vsel %vm239_vm5, %v1493_v9, %v1476_v10  ;;  %v7723_v9 = vld [vmem:[%s10872_s9] sm:$0xff]  }
 0x9a4   :  { %v1500_v28 = vmul.f32 %v1496_v15, %v8426_v54  ;;  %v1501_v27 = vmul.f32 %v1497_v34, %v8434_v1  ;;  %7403 = vmatprep.subr.bf16.mxu1 %v7723_v9 }
 0x9a6   :  { %v1503_v23 = vpack.c.bf16 %v1500_v28, %v1499_v25  ;;  %v1478_v12 = vpop.permute.xlu1 %1477  ;;  %v6729_v28 = vld [vmem:[%s10871_s8 + $0x3] ss:$0 sm:$0xff] }
 0x9a7   :  { %v1498_v26 = vsel %vm239_vm5, %v1494_v20, %v1478_v12 }
 0x9a8   :  { %v1502_v29 = vmul.f32 %v1498_v26, %v8443_v5  ;;  %7393 = vmatprep.mubr.msk.bf16.mxu0 %vm487_vm7, %v1503_v23 }
 0x9aa   :  { %v1504_v30 = vpack.c.bf16 %v1502_v29, %v1501_v27 }
 0x9ac   :  { %7394 = vmatmul.mubr.msk.bf16.vlgmr.msra.gmra.mxu0 %vm487_vm7, %v1504_v30 }
 0xa6c   :  { %v7395_v32 = vpop.f32.mrf.mxu0 }
 0xa6d   :  { %v1603_v35 = vadd.f32 %v7395_v32, %v6714_v31 }
 0xa6e   :  { %v1594_v36 = vpop.f32.mrf.mxu0 }
 0xa6f   :  { %v6724_v37 = vmul.f32 -1.442695, %v1603_v35  ;;  %v1595_v38 = vadd.f32 %v6714_v31, %v1594_v36 }
 0xa70   :  { %v7396_v39 = vpop.f32.mrf.mxu0 }
 0xa71   :  { %v6722_v41 = vmul.f32 -1.442695, %v1595_v38  ;;  %v1606_v42 = vadd.f32 %v7396_v39, %v6714_v31  ;;  %7871 = vpow2.f32 %v6724_v37 }
 0xa72   :  { %v1597_v40 = vpop.f32.mrf.mxu0 }
 0xa73   :  { %7873 = vpow2.f32 %v6722_v41  ;;  %v6725_v43 = vmul.f32 -1.442695, %v1606_v42  ;;  %v1598_v44 = vadd.f32 %v6714_v31, %v1597_v40 }
 0xa75   :  { %v6723_v45 = vmul.f32 -1.442695, %v1598_v44  ;;  %7875 = vpow2.f32 %v6725_v43  ;;  %v6733_v43 = vld [vmem:[%s10873_s10] ss:$0 sm:$0xff] }
 0xa77   :  { %7877 = vpow2.f32 %v6723_v45 }
 0xa7e   :  { %v7872_v48 = vpop.eup %7871 }
 0xa7f   :  { %v1627_v58 = vadd.f32 1.0, %v7872_v48 }
 0xa80   :  { %v7874_v51 = vpop.eup %7873 }
 0xa81   :  { %v1625_v53 = vadd.f32 1.0, %v7874_v51 }
 0xa82   :  { %v7876_v56 = vpop.eup %7875 }
 0xa83   :  { %7879 = vrcp.f32 %v1625_v53  ;;  %v1628_v52 = vadd.f32 1.0, %v7876_v56  ;;  %v46_v53 = vld [vmem:[%s10874_s1 + $0x18] sm:$0xff]  ;;  %v43_v56 = vld [vmem:[%s10874_s1] sm:$0xff] }
 0xa84   :  { %v7878_v46 = vpop.eup %7877  ;;  %7881 = vrcp.f32 %v1627_v58 }
 0xa85   :  { %v1626_v50 = vadd.f32 1.0, %v7878_v46  ;;  %v44_v46 = vld [vmem:[%s10874_s1 + $0x8] sm:$0xff] }
 0xa87   :  { %7883 = vrcp.f32 %v1626_v50  ;;  %v45_v50 = vld [vmem:[%s10874_s1 + $0x10] sm:$0xff] }
 0xa88   :  { %7885 = vrcp.f32 %v1628_v52 }
 0xa89   :  { %7887 = vtanh.f32 %v1595_v38 }
 0xa8a   :  { %7889 = vtanh.f32 %v1598_v44 }
 0xa8b   :  { %7891 = vtanh.f32 %v1603_v35 }
 0xa8c   :  { %7893 = vtanh.f32 %v1606_v42 }
 0xa90   :  { %v7880_v62 = vpop.eup %7879 }
 0xa91   :  { %1641 = vrot.lane.b32.xlu0 %v7880_v62, %s8193_s16  ;;  %v7882_v4 = vpop.eup %7881 }
 0xa94   :  { %v7884_v55 = vpop.eup %7883 }
 0xa95   :  { %1643 = vrot.lane.b32.xlu1 %v7884_v55, %s8193_s16  ;;  %1645 = vrot.lane.b32.xlu0 %v7882_v4, %s8193_s16  ;;  %v7886_v57 = vpop.eup %7885 }
 0xa96   :  { %v7888_v59 = vpop.eup %7887 }
 0xa97   :  { %v7890_v11 = vpop.eup %7889 }
 0xa98   :  { %v7892_v2 = vpop.eup %7891 }
 0xa99   :  { %1647 = vrot.lane.b32.xlu1 %v7886_v57, %s8193_s16  ;;  %v7894_v7 = vpop.eup %7893  ;;  %v1824_v57 = vmul.f32 %v8286_v13, %v46_v53 }
 0xb03   :  { %v1642_v17 = vpop.permute.xlu0 %1641 }
 0xb04   :  { %v1653_v61 = vmul.f32 %v7888_v59, %v1642_v17  ;;  %v1821_v17 = vmul.f32 %v8296_v22, %v43_v56 }
 0xb07   :  { %v1644_v63 = vpop.permute.xlu1 %1643  ;;  %v1646_v0 = vpop.permute.xlu0 %1645 }
 0xb08   :  { %v1654_v19 = vmul.f32 %v7890_v11, %v1644_v63  ;;  %v1655_v14 = vmul.f32 %v7892_v2, %v1646_v0  ;;  %v1822_v11 = vmul.f32 %v8318_v33, %v44_v46  ;;  %v1823_v63 = vmul.f32 %v8291_v16, %v45_v50 }
 0xb0a   :  { %v1657_v6 = vpack.c.bf16 %v1654_v19, %v1653_v61 }
 0xb0b   :  { %v1648_v10 = vpop.permute.xlu1 %1647 }
 0xb0c   :  { %v1656_v15 = vmul.f32 %v7894_v7, %v1648_v10  ;;  %7399 = vmatprep.mubr.msk.bf16.mxu1 %vm224_vm9, %v1657_v6  ;;  %v6739_v10 = vld [vmem:[%s10867_s4 + $0x1] ss:$0 sm:$0xff] }
 0xb0e   :  { %v1658_v25 = vpack.c.bf16 %v1656_v15, %v1655_v14 }
 0xb10   :  { %7400 = vmatmul.mubr.msk.bf16.vlgmr.msra.gmra.mxu1 %vm224_vm9, %v1658_v25 }
 0xb11   :  { %7404 = vmatpush3.bf16.msra.mxu1 %v7723_v9 }
 0xbd0   :  { %v7401_v18 = vpop.f32.mrf.mxu1 }
 0xbd1   :  { %v1725_v34 = vadd.f32 %v7401_v18, %v6729_v28 }
 0xbd2   :  { %v1716_v20 = vpop.f32.mrf.mxu1 }
 0xbd3   :  { %v1717_v23 = vadd.f32 %v6729_v28, %v1716_v20  ;;  %v1733_v26 = vadd.f32 %v1725_v34, %v8767_v47 }
 0xbd4   :  { %v7402_v12 = vpop.f32.mrf.mxu1 }
 0xbd5   :  { %v1728_v27 = vadd.f32 %v7402_v12, %v6729_v28  ;;  %v1731_v30 = vadd.f32 %v1717_v23, %v8775_v3  ;;  %v1737_v35 = vmul.f32 %v1733_v26, %v8291_v16 }
 0xbd6   :  { %v1719_v29 = vpop.f32.mrf.mxu1 }
 0xbd7   :  { %v1734_v31 = vadd.f32 %v1728_v27, %v8783_v60  ;;  %v1720_v32 = vadd.f32 %v6729_v28, %v1719_v29  ;;  %v1735_v38 = vmul.f32 %v1731_v30, %v8296_v22  ;;  %v6737_v60 = vld [vmem:[%s10864_s3 + $0x2] sm:$0x3] }
 0xbd8   :  { %7686 = vmatprep.subr.msk.bf16.mxu0 %vm261_vm0, %v6737_v60  ;;  %v7724_v30 = vld [vmem:[%s10868_s5 + $0xc0] sm:$0xff]  }
 0xbd9   :  { %v1738_v36 = vmul.f32 %v1734_v31, %v8286_v13  ;;  %v1732_v37 = vadd.f32 %v1720_v32, %v8791_v21  ;;  %v1848_v21 = vsel %vm261_vm0, %v6737_v60, 0  ;;  %7415 = vmatprep.subr.bf16.mxu1 %v7724_v30 }
 0xbda   :  { %7410 = vmatpush3.bf16.msra.mxu0 %v1848_v21 }
 0xbdb   :  { %v1736_v39 = vmul.f32 %v1732_v37, %v8318_v33  ;;  %v1740_v41 = vpack.c.bf16 %v1738_v36, %v1737_v35  ;;  %v7725_v36 = vld [vmem:[%s10868_s5 + $0xb8] sm:$0xff]  }
 0xbdd   :  { %1754 = vrot.lane.b32.xlu1 %v1740_v41, %s8193_s16  ;;  %v1739_v47 = vpack.c.bf16 %v1736_v39, %v1735_v38 }
 0xbdf   :  { %1752 = vrot.lane.b32.xlu0 %v1739_v47, %s8193_s16 }
 0xc4f   :  { %v1755_v42 = vpop.permute.xlu1 %1754 }
 0xc51   :  { %v1753_v3 = vpop.permute.xlu0 %1752 }
 0xc52   :  { %7405 = vmatprep.mubr.msk.bf16.mxu1 %vm224_vm9, %v1753_v3  ;;  %v7726_v3 = vld [vmem:[%s10868_s5 + $0xb0] sm:$0xff]  }
 0xc53   :  { %7406 = vmatmul.mubr.msk.bf16.vlgmr.msra.gmra.mxu1 %vm224_vm9, %v1755_v42 }
 0xc54   :  { %7416 = vmatpush3.bf16.msra.mxu1 %v7724_v30 }
 0xc55   :  { %7417 = vmatprep.subr.bf16.mxu1 %v7725_v36 }
 0xc58   :  { %7418 = vmatpush3.bf16.msra.mxu1 %v7725_v36 }
 0xc59   :  { %7419 = vmatprep.subr.bf16.mxu1 %v7726_v3 }
 0xc5c   :  { %7420 = vmatpush3.bf16.msra.mxu1 %v7726_v3 }
 0xd13   :  { %v7407_v40 = vpop.f32.mrf.mxu1 }
 0xd14   :  { %v1811_v48 = vadd.f32 %v7407_v40, %v6733_v43 }
 0xd15   :  { %v1802_v44 = vpop.f32.mrf.mxu1 }
 0xd16   :  { %v1803_v45 = vadd.f32 %v6733_v43, %v1802_v44  ;;  %v1819_v55 = vmul.f32 %v1811_v48, %v8291_v16 }
 0xd17   :  { %v7408_v51 = vpop.f32.mrf.mxu1 }
 0xd18   :  { %v1814_v58 = vadd.f32 %v7408_v51, %v6733_v43  ;;  %v1817_v52 = vmul.f32 %v1803_v45, %v8296_v22  ;;  %v8959_v2 = vadd.f32 %v1823_v63, %v1819_v55  ;;  %v7728_v51 = vld [vmem:[%s10868_s5 + $0xa0] sm:$0xff]  }
 0xd19   :  { %v1805_v8 = vpop.f32.mrf.mxu1 }
 0xd1a   :  { %v1820_v62 = vmul.f32 %v1814_v58, %v8286_v13  ;;  %v1806_v4 = vadd.f32 %v6733_v43, %v1805_v8  ;;  %v8955_v19 = vadd.f32 %v1821_v17, %v1817_v52  ;;  %v7727_v43 = vld [vmem:[%s10868_s5 + $0xa8] sm:$0xff]  }
 0xd1b   :  { %7421 = vmatprep.subr.bf16.mxu1 %v7727_v43 }
 0xd1c   :  { %v1818_v59 = vmul.f32 %v1806_v4, %v8318_v33  ;;  %v8953_v61 = vadd.f32 %v1824_v57, %v1820_v62  ;;  %7422 = vmatpush3.bf16.msra.mxu1 %v7727_v43 }
 0xd1d   :  { %7423 = vmatprep.subr.bf16.mxu1 %v7728_v51 }
 0xd1e   :  { %v8957_v0 = vadd.f32 %v1822_v11, %v1818_v59  ;;  %v1830_v7 = vpack.c.bf16 %v8953_v61, %v8959_v2 }
 0xd20   :  { %v1829_v6 = vpack.c.bf16 %v8957_v0, %v8955_v19  ;;  %7424 = vmatpush3.bf16.msra.mxu1 %v7728_v51 }
 0xd22   :  { %7411 = vmatprep.mubr.msk.bf16.mxu0 %vm254_vm1, %v1829_v6 }
 0xd23   :  { %7412 = vmatmul.mubr.msk.bf16.vlgmr.msra.gmra.mxu0 %vm254_vm1, %v1830_v7 }
 0xde3   :  { %v7413_v14 = vpop.f32.mrf.mxu0 }
 0xde4   :  { %v1893_v15 = vadd.f32 %v7413_v14, %v6739_v10 }
 0xde5   :  { %v1884_v25 = vpop.f32.mrf.mxu0 }
 0xde6   :  { %v8971_v9 = vmul.f32 %v1893_v15, %v8291_v16  ;;  %v1885_v28 = vadd.f32 %v6739_v10, %v1884_v25 }
 0xde7   :  { %v7414_v18 = vpop.f32.mrf.mxu0 }
 0xde8   :  { %v8974_v34 = vmul.f32 %v1885_v28, %v8296_v22  ;;  %v1896_v20 = vadd.f32 %v7414_v18, %v6739_v10  ;;  %1959 = vrot.lane.b32.xlu0 %v8971_v9, %s8188_s2  ;;  %v1913_v37 = vrot.slane %v8971_v9, 7  ;;  %v1921_v38 = vrot.slane %v8971_v9, 1 }
 0xde9   :  { %v1887_v23 = vpop.f32.mrf.mxu0  ;;  %v1929_v8 = vrot.slane %v8971_v9, 2 }
 0xdea   :  { %v8979_v12 = vmul.f32 %v1896_v20, %v8286_v13  ;;  %v1888_v26 = vadd.f32 %v6739_v10, %v1887_v23  ;;  %v1911_v27 = vrot.slane %v8974_v34, 7  ;;  %v1919_v42 = vrot.slane %v8974_v34, 1 }
 0xdeb   :  { %v1927_v53 = vrot.slane %v8974_v34, 2  ;;  %v1903_v14 = vrot.slane %v8974_v34, 6  ;;  %v1905_v20 = vrot.slane %v8971_v9, 6 }
 0xdec   :  { %1961 = vrot.lane.b32.xlu1 %v8979_v12, %s8188_s2  ;;  %1955 = vrot.lane.b32.xlu0 %v8974_v34, %s8188_s2  ;;  %v1914_v29 = vrot.slane %v8979_v12, 7  ;;  %v8991_v31 = vmul.f32 %v1888_v26, %v8318_v33  ;;  %v1922_v35 = vrot.slane %v8979_v12, 1  ;;  %v1930_v46 = vrot.slane %v8979_v12, 2 }
 0xded   :  { %v1906_v10 = vrot.slane %v8979_v12, 6 }
 0xdee   :  { %v1918_v32 = vsel %vm331_vm2, %v1914_v29, %v1911_v27  ;;  %v1915_v39 = vsel %vm331_vm2, %v1913_v37, %v1914_v29  ;;  %v1923_v41 = vsel %vm340_vm3, %v1921_v38, %v1922_v35  ;;  %v1912_v47 = vrot.slane %v8991_v31, 7 }
 0xdef   :  { %v1926_v60 = vsel %vm340_vm3, %v1922_v35, %v1919_v42  ;;  %v1920_v40 = vrot.slane %v8991_v31, 1  ;;  %v1928_v48 = vrot.slane %v8991_v31, 2  ;;  %v1931_v50 = vsel %vm349_vm4, %v1929_v8, %v1930_v46 }
 0xdf0   :  { %1957 = vrot.lane.b32.xlu1 %v8991_v31, %s8188_s2  ;;  %1939 = vrot.lane.b32.xlu0 %v1918_v32, %s8189_s22  ;;  %v1916_v21 = vsel %vm331_vm2, %v1912_v47, %v1913_v37  ;;  %v1917_v45 = vsel %vm331_vm2, %v1911_v27, %v1912_v47  ;;  %v1934_v62 = vsel %vm349_vm4, %v1930_v46, %v1927_v53  ;;  %v1904_v15 = vrot.slane %v8991_v31, 6 }
 0xdf1   :  { %v1925_v44 = vsel %vm340_vm3, %v1919_v42, %v1920_v40  ;;  %v1933_v58 = vsel %vm349_vm4, %v1927_v53, %v1928_v48  ;;  %v1924_v56 = vsel %vm340_vm3, %v1920_v40, %v1921_v38  ;;  %v1932_v52 = vsel %vm349_vm4, %v1928_v48, %v1929_v8 }
 0xdf2   :  { %v1910_v18 = vsel %vm322_vm10, %v1906_v10, %v1903_v14  ;;  %v1908_v26 = vsel %vm322_vm10, %v1904_v15, %v1905_v20  ;;  %v1909_v27 = vsel %vm322_vm10, %v1903_v14, %v1904_v15  ;;  %v1907_v38 = vsel %vm322_vm10, %v1905_v20, %v1906_v10 }
 0xdf4   :  { %1945 = vrot.lane.b32.xlu1 %v1915_v39, %s8189_s22  ;;  %1975 = vrot.lane.b32.xlu0 %v1923_v41, %s8190_s23 }
 0xdf8   :  { %1977 = vrot.lane.b32.xlu1 %v1926_v60, %s8190_s23  ;;  %1943 = vrot.lane.b32.xlu0 %v1916_v21, %s8189_s22 }
 0xdfc   :  { %1971 = vrot.lane.b32.xlu0 %v1925_v44, %s8190_s23  ;;  %1941 = vrot.lane.b32.xlu1 %v1917_v45, %s8189_s22 }
 0xe00   :  { %1987 = vrot.lane.b32.xlu0 %v1933_v58, %s8191_s30  ;;  %1973 = vrot.lane.b32.xlu1 %v1924_v56, %s8190_s23 }
 0xe04   :  { %1991 = vrot.lane.b32.xlu0 %v1931_v50, %s8191_s30  ;;  %1989 = vrot.lane.b32.xlu1 %v1932_v52, %s8191_s30 }
 0xe08   :  { %1993 = vrot.lane.b32.xlu1 %v1934_v62, %s8191_s30  ;;  %v6753_v62 = vld [vmem:[%s10869_s6 + $0x4] ss:$0 sm:$0xff] }
 0xe5a   :  { %v1960_v4 = vpop.permute.xlu0 %1959 }
 0xe5e   :  { %v1962_v55 = vpop.permute.xlu1 %1961  ;;  %v1956_v57 = vpop.permute.xlu0 %1955 }
 0xe62   :  { %v1958_v17 = vpop.permute.xlu1 %1957  ;;  %v1940_v59 = vpop.permute.xlu0 %1939 }
 0xe63   :  { %v1999_v23 = vsel %vm224_vm9, %v1910_v18, %v1940_v59 }
 0xe64   :  { %v2003_v36 = vsel %vm229_vm12, %v1999_v23, %v1956_v57 }
 0xe66   :  { %v1946_v11 = vpop.permute.xlu1 %1945  ;;  %v1976_v63 = vpop.permute.xlu0 %1975 }
 0xe67   :  { %v2002_v3 = vsel %vm224_vm9, %v1907_v38, %v1946_v11 }
 0xe68   :  { %v2006_v48 = vsel %vm229_vm12, %v2002_v3, %v1962_v55 }
 0xe6a   :  { %v1978_v6 = vpop.permute.xlu1 %1977  ;;  %v1944_v7 = vpop.permute.xlu0 %1943 }
 0xe6b   :  { %v2001_v29 = vsel %vm224_vm9, %v1908_v26, %v1944_v7  ;;  %v2010_v53 = vsel %vm234_vm14, %v2006_v48, %v1978_v6 }
 0xe6c   :  { %v2005_v39 = vsel %vm229_vm12, %v2001_v29, %v1960_v4 }
 0xe6d   :  { %v2009_v44 = vsel %vm234_vm14, %v2005_v39, %v1976_v63 }
 0xe6e   :  { %v1972_v25 = vpop.permute.xlu0 %1971  ;;  %v1942_v28 = vpop.permute.xlu1 %1941 }
 0xe6f   :  { %v2000_v30 = vsel %vm224_vm9, %v1909_v27, %v1942_v28  ;;  %v2007_v37 = vsel %vm234_vm14, %v2003_v36, %v1972_v25  ;;  %v7729_v27 = vld [vmem:[%s10870_s7 + $0x20] sm:$0xff]  }
 0xe70   :  { %v2004_v47 = vsel %vm229_vm12, %v2000_v30, %v1958_v17  ;;  %7429 = vmatprep.subr.bf16.mxu0 %v7729_v27 }
 0xe71   :  { %7430 = vmatpush3.bf16.msra.mxu0 %v7729_v27 }
 0xe72   :  { %v1988_v32 = vpop.permute.xlu0 %1987  ;;  %v1974_v35 = vpop.permute.xlu1 %1973 }
 0xe73   :  { %v2011_v41 = vsel %vm239_vm5, %v2007_v37, %v1988_v32  ;;  %v2008_v42 = vsel %vm234_vm14, %v2004_v47, %v1974_v35 }
 0xe74   :  { %v2015_v43 = vmul.f32 %v2011_v41, %v8419_v49 }
 0xe76   :  { %v1992_v60 = vpop.permute.xlu0 %1991  ;;  %v1990_v21 = vpop.permute.xlu1 %1989 }
 0xe77   :  { %v2012_v40 = vsel %vm239_vm5, %v2008_v42, %v1990_v21  ;;  %v2013_v51 = vsel %vm239_vm5, %v2009_v44, %v1992_v60 }
 0xe78   :  { %v2016_v45 = vmul.f32 %v2012_v40, %v8426_v54  ;;  %v2017_v8 = vmul.f32 %v2013_v51, %v8434_v1 }
 0xe7a   :  { %v2019_v58 = vpack.c.bf16 %v2016_v45, %v2015_v43  ;;  %v1994_v56 = vpop.permute.xlu1 %1993 }
 0xe7b   :  { %v2014_v46 = vsel %vm239_vm5, %v2010_v53, %v1994_v56  ;;  %v6768_v53 = vld [vmem:[%s10871_s8 + $0x4] ss:$0 sm:$0xff] }
 0xe7c   :  { %v2018_v50 = vmul.f32 %v2014_v46, %v8443_v5  ;;  %7425 = vmatprep.mubr.msk.bf16.mxu1 %vm487_vm7, %v2019_v58 }
 0xe7e   :  { %v2020_v52 = vpack.c.bf16 %v2018_v50, %v2017_v8 }
 0xe80   :  { %7426 = vmatmul.mubr.msk.bf16.vlgmr.msra.gmra.mxu1 %vm487_vm7, %v2020_v52 }
 0xf40   :  { %v7427_v4 = vpop.f32.mrf.mxu1 }
 0xf41   :  { %v2119_v55 = vadd.f32 %v7427_v4, %v6753_v62 }
 0xf42   :  { %v2110_v57 = vpop.f32.mrf.mxu1 }
 0xf43   :  { %v6763_v17 = vmul.f32 -1.442695, %v2119_v55  ;;  %v2111_v59 = vadd.f32 %v6753_v62, %v2110_v57 }
 0xf44   :  { %v7428_v11 = vpop.f32.mrf.mxu1 }
 0xf45   :  { %v6761_v63 = vmul.f32 -1.442695, %v2111_v59  ;;  %v2122_v6 = vadd.f32 %v7428_v11, %v6753_v62  ;;  %7895 = vpow2.f32 %v6763_v17 }
 0xf46   :  { %v2113_v7 = vpop.f32.mrf.mxu1 }
 0xf47   :  { %7897 = vpow2.f32 %v6761_v63  ;;  %v6764_v10 = vmul.f32 -1.442695, %v2122_v6  ;;  %v2114_v14 = vadd.f32 %v6753_v62, %v2113_v7 }
 0xf49   :  { %v6762_v15 = vmul.f32 -1.442695, %v2114_v14  ;;  %7899 = vpow2.f32 %v6764_v10 }
 0xf4b   :  { %7901 = vpow2.f32 %v6762_v15 }
 0xf52   :  { %v7896_v25 = vpop.eup %7895 }
 0xf53   :  { %v2143_v20 = vadd.f32 1.0, %v7896_v25 }
 0xf54   :  { %v7898_v28 = vpop.eup %7897 }
 0xf55   :  { %v2141_v18 = vadd.f32 1.0, %v7898_v28 }
 0xf56   :  { %v7900_v23 = vpop.eup %7899 }
 0xf57   :  { %7903 = vrcp.f32 %v2141_v18  ;;  %v2144_v30 = vadd.f32 1.0, %v7900_v23  ;;  %v7732_v23 = vld [vmem:[%s10868_s5 + $0xd8] sm:$0xff]  }
 0xf58   :  { %v7902_v26 = vpop.eup %7901  ;;  %7905 = vrcp.f32 %v2143_v20 }
 0xf59   :  { %v2142_v29 = vadd.f32 1.0, %v7902_v26 }
 0xf5b   :  { %7907 = vrcp.f32 %v2142_v29 }
 0xf5c   :  { %7909 = vrcp.f32 %v2144_v30 }
 0xf5d   :  { %7911 = vtanh.f32 %v2111_v59 }
 0xf5e   :  { %7913 = vtanh.f32 %v2114_v14  ;;  %v7731_v14 = vld [vmem:[%s10868_s5 + $0xe0] sm:$0xff]  }
 0xf5f   :  { %7915 = vtanh.f32 %v2119_v55 }
 0xf60   :  { %7917 = vtanh.f32 %v2122_v6  ;;  %v7730_v6 = vld [vmem:[%s10868_s5 + $0xe8] sm:$0xff]  }
 0xf61   :  { %7435 = vmatprep.subr.bf16.mxu0 %v7730_v6 }
 0xf64   :  { %v7904_v32 = vpop.eup %7903 }
 0xf65   :  { %2157 = vrot.lane.b32.xlu0 %v7904_v32, %s8193_s16  ;;  %v7906_v35 = vpop.eup %7905  ;;  %v7733_v32 = vld [vmem:[%s10868_s5 + $0xd0] sm:$0xff]  }
 0xf68   :  { %v7908_v36 = vpop.eup %7907 }
 0xf69   :  { %2159 = vrot.lane.b32.xlu1 %v7908_v36, %s8193_s16  ;;  %2161 = vrot.lane.b32.xlu0 %v7906_v35, %s8193_s16  ;;  %v7910_v37 = vpop.eup %7909 }
 0xf6a   :  { %v7912_v39 = vpop.eup %7911 }
 0xf6b   :  { %v7914_v41 = vpop.eup %7913 }
 0xf6c   :  { %v7916_v21 = vpop.eup %7915 }
 0xf6d   :  { %2163 = vrot.lane.b32.xlu1 %v7910_v37, %s8193_s16  ;;  %v7918_v43 = vpop.eup %7917 }
 0xfd7   :  { %v2158_v38 = vpop.permute.xlu0 %2157 }
 0xfd8   :  { %v2169_v3 = vmul.f32 %v7912_v39, %v2158_v38  ;;  %v7734_v38 = vld [vmem:[%s10868_s5 + $0xc8] sm:$0xff]  }
 0xfdb   :  { %v2160_v47 = vpop.permute.xlu1 %2159  ;;  %v2162_v60 = vpop.permute.xlu0 %2161 }
 0xfdc   :  { %v2170_v42 = vmul.f32 %v7914_v41, %v2160_v47  ;;  %v2171_v45 = vmul.f32 %v7916_v21, %v2162_v60 }
 0xfde   :  { %v2173_v40 = vpack.c.bf16 %v2170_v42, %v2169_v3 }
 0xfdf   :  { %v2164_v44 = vpop.permute.xlu1 %2163 }
 0xfe0   :  { %v2172_v48 = vmul.f32 %v7918_v43, %v2164_v44  ;;  %7431 = vmatprep.mubr.msk.bf16.mxu0 %vm224_vm9, %v2173_v40 }
 0xfe2   :  { %v2174_v51 = vpack.c.bf16 %v2172_v48, %v2171_v45 }
 0xfe4   :  { %7432 = vmatmul.mubr.msk.bf16.vlgmr.msra.gmra.mxu0 %vm224_vm9, %v2174_v51 }
 0xfe5   :  { %7436 = vmatpush3.bf16.msra.mxu0 %v7730_v6 }
 0xfe6   :  { %7437 = vmatprep.subr.bf16.mxu0 %v7731_v14 }
 0xfe9   :  { %7438 = vmatpush3.bf16.msra.mxu0 %v7731_v14 }
 0xfea   :  { %7439 = vmatprep.subr.bf16.mxu0 %v7732_v23 }
 0xfed   :  { %7440 = vmatpush3.bf16.msra.mxu0 %v7732_v23 }
 0xfee   :  { %7441 = vmatprep.subr.bf16.mxu0 %v7733_v32 }
 0xff1   :  { %7442 = vmatpush3.bf16.msra.mxu0 %v7733_v32 }
 0xff2   :  { %7443 = vmatprep.subr.bf16.mxu0 %v7734_v38 }
 0xff5   :  { %7444 = vmatpush3.bf16.msra.mxu0 %v7734_v38 }
0x10a4   :  { %v7433_v58 = vpop.f32.mrf.mxu0 }
0x10a5   :  { %v9102_v56 = vadd.f32 %v7433_v58, %v6768_v53 }
0x10a6   :  { %v2232_v46 = vpop.f32.mrf.mxu0 }
0x10a7   :  { %v2249_v8 = vadd.f32 %v9102_v56, %v8971_v9  ;;  %v9106_v50 = vadd.f32 %v6768_v53, %v2232_v46 }
0x10a8   :  { %v7434_v52 = vpop.f32.mrf.mxu0 }
0x10a9   :  { %v9109_v62 = vmul.f32 %v2249_v8, %v8291_v16  ;;  %v2247_v4 = vadd.f32 %v9106_v50, %v8974_v34  ;;  %v9113_v55 = vadd.f32 %v7434_v52, %v6768_v53 }
0x10aa   :  { %v2235_v57 = vpop.f32.mrf.mxu0 }
0x10ab   :  { %v9116_v17 = vmul.f32 %v2247_v4, %v8296_v22  ;;  %v2250_v59 = vadd.f32 %v9113_v55, %v8979_v12  ;;  %v9120_v11 = vadd.f32 %v6768_v53, %v2235_v57  ;;  %2315 = vrot.lane.b32.xlu0 %v9109_v62, %s8188_s2  ;;  %v2269_v15 = vrot.slane %v9109_v62, 7 }
0x10ac   :  { %v2277_v25 = vrot.slane %v9109_v62, 1  ;;  %v2285_v42 = vrot.slane %v9109_v62, 2 }
0x10ad   :  { %v9125_v9 = vmul.f32 %v2250_v59, %v8286_v13  ;;  %v2248_v34 = vadd.f32 %v9120_v11, %v8991_v31  ;;  %v2267_v63 = vrot.slane %v9116_v17, 7  ;;  %v2275_v26 = vrot.slane %v9116_v17, 1 }
0x10ae   :  { %v2283_v39 = vrot.slane %v9116_v17, 2  ;;  %v2259_v4 = vrot.slane %v9116_v17, 6 }
0x10af   :  { %2317 = vrot.lane.b32.xlu1 %v9125_v9, %s8188_s2  ;;  %2311 = vrot.lane.b32.xlu0 %v9116_v17, %s8188_s2  ;;  %v2270_v12 = vrot.slane %v9125_v9, 7  ;;  %v9139_v7 = vmul.f32 %v2248_v34, %v8318_v33  ;;  %v2278_v10 = vrot.slane %v9125_v9, 1  ;;  %v2286_v3 = vrot.slane %v9125_v9, 2 }
0x10b0   :  { %v2262_v52 = vrot.slane %v9125_v9, 6 }
0x10b1   :  { %v2274_v31 = vsel %vm331_vm2, %v2270_v12, %v2267_v63  ;;  %v2271_v28 = vsel %vm331_vm2, %v2269_v15, %v2270_v12  ;;  %v2279_v18 = vsel %vm340_vm3, %v2277_v25, %v2278_v10  ;;  %v2268_v20 = vrot.slane %v9139_v7, 7 }
0x10b2   :  { %v2282_v27 = vsel %vm340_vm3, %v2278_v10, %v2275_v26  ;;  %v2276_v30 = vrot.slane %v9139_v7, 1  ;;  %v2284_v37 = vrot.slane %v9139_v7, 2  ;;  %v2287_v60 = vsel %vm349_vm4, %v2285_v42, %v2286_v3 }
0x10b3   :  { %2313 = vrot.lane.b32.xlu1 %v9139_v7, %s8188_s2  ;;  %2295 = vrot.lane.b32.xlu0 %v2274_v31, %s8189_s22  ;;  %v2272_v29 = vsel %vm331_vm2, %v2268_v20, %v2269_v15  ;;  %v2273_v36 = vsel %vm331_vm2, %v2267_v63, %v2268_v20  ;;  %v2290_v40 = vsel %vm349_vm4, %v2286_v3, %v2283_v39  ;;  %v2260_v57 = vrot.slane %v9139_v7, 6 }
0x10b4   :  { %v2281_v35 = vsel %vm340_vm3, %v2275_v26, %v2276_v30  ;;  %v2289_v41 = vsel %vm349_vm4, %v2283_v39, %v2284_v37  ;;  %v2280_v47 = vsel %vm340_vm3, %v2276_v30, %v2277_v25  ;;  %v2288_v21 = vsel %vm349_vm4, %v2284_v37, %v2285_v42 }
0x10b5   :  { %v2266_v63 = vsel %vm322_vm10, %v2262_v52, %v2259_v4  ;;  %v2261_v12 = vrot.slane %v9109_v62, 6  ;;  %v2265_v10 = vsel %vm322_vm10, %v2259_v4, %v2260_v57 }
0x10b7   :  { %2301 = vrot.lane.b32.xlu1 %v2271_v28, %s8189_s22  ;;  %2331 = vrot.lane.b32.xlu0 %v2279_v18, %s8190_s23  ;;  %v2264_v31 = vsel %vm322_vm10, %v2260_v57, %v2261_v12  ;;  %v2263_v23 = vsel %vm322_vm10, %v2261_v12, %v2262_v52 }
0x10bb   :  { %2333 = vrot.lane.b32.xlu1 %v2282_v27, %s8190_s23  ;;  %2299 = vrot.lane.b32.xlu0 %v2272_v29, %s8189_s22 }
0x10bf   :  { %2327 = vrot.lane.b32.xlu0 %v2281_v35, %s8190_s23  ;;  %2297 = vrot.lane.b32.xlu1 %v2273_v36, %s8189_s22 }
0x10c3   :  { %2343 = vrot.lane.b32.xlu0 %v2289_v41, %s8191_s30  ;;  %2329 = vrot.lane.b32.xlu1 %v2280_v47, %s8190_s23 }
0x10c7   :  { %2347 = vrot.lane.b32.xlu0 %v2287_v60, %s8191_s30  ;;  %2345 = vrot.lane.b32.xlu1 %v2288_v21, %s8191_s30 }
0x10cb   :  { %2349 = vrot.lane.b32.xlu1 %v2290_v40, %s8191_s30 }
0x111d   :  { %v2316_v43 = vpop.permute.xlu0 %2315 }
0x1121   :  { %v2318_v44 = vpop.permute.xlu1 %2317  ;;  %v2312_v45 = vpop.permute.xlu0 %2311 }
0x1125   :  { %v2314_v48 = vpop.permute.xlu1 %2313  ;;  %v2296_v51 = vpop.permute.xlu0 %2295 }
0x1126   :  { %v2355_v6 = vsel %vm224_vm9, %v2266_v63, %v2296_v51 }
0x1127   :  { %v2359_v18 = vsel %vm229_vm12, %v2355_v6, %v2312_v45 }
0x1129   :  { %v2302_v53 = vpop.permute.xlu1 %2301  ;;  %v2332_v58 = vpop.permute.xlu0 %2331 }
0x112a   :  { %v2358_v30 = vsel %vm224_vm9, %v2263_v23, %v2302_v53 }
0x112b   :  { %v2362_v47 = vsel %vm229_vm12, %v2358_v30, %v2318_v44  ;;  %v6783_v44 = vld [vmem:[%s10869_s6 + $0x5] ss:$0 sm:$0xff] }
0x112d   :  { %v2334_v46 = vpop.permute.xlu1 %2333  ;;  %v2300_v8 = vpop.permute.xlu0 %2299 }
0x112e   :  { %v2357_v14 = vsel %vm224_vm9, %v2264_v31, %v2300_v8  ;;  %v2366_v42 = vsel %vm234_vm14, %v2362_v47, %v2334_v46 }
0x112f   :  { %v2361_v26 = vsel %vm229_vm12, %v2357_v14, %v2316_v43 }
0x1130   :  { %v2365_v39 = vsel %vm234_vm14, %v2361_v26, %v2332_v58 }
0x1131   :  { %v2328_v59 = vpop.permute.xlu0 %2327  ;;  %v2298_v34 = vpop.permute.xlu1 %2297 }
0x1132   :  { %v2356_v15 = vsel %vm224_vm9, %v2265_v10, %v2298_v34  ;;  %v2363_v20 = vsel %vm234_vm14, %v2359_v18, %v2328_v59 }
0x1133   :  { %v2360_v29 = vsel %vm229_vm12, %v2356_v15, %v2314_v48 }
0x1135   :  { %v2344_v25 = vpop.permute.xlu0 %2343  ;;  %v2330_v28 = vpop.permute.xlu1 %2329 }
0x1136   :  { %v2367_v27 = vsel %vm239_vm5, %v2363_v20, %v2344_v25  ;;  %v2364_v32 = vsel %vm234_vm14, %v2360_v29, %v2330_v28  ;;  %v7735_v28 = vld [vmem:[%s10870_s7 + $0x28] sm:$0xff]  }
0x1137   :  { %v2371_v38 = vmul.f32 %v2367_v27, %v8419_v49  ;;  %7449 = vmatprep.subr.bf16.mxu1 %v7735_v28 }
0x1138   :  { %7450 = vmatpush3.bf16.msra.mxu1 %v7735_v28 }
0x1139   :  { %v2348_v35 = vpop.permute.xlu0 %2347  ;;  %v2346_v36 = vpop.permute.xlu1 %2345 }
0x113a   :  { %v2368_v37 = vsel %vm239_vm5, %v2364_v32, %v2346_v36  ;;  %v2369_v3 = vsel %vm239_vm5, %v2365_v39, %v2348_v35 }
0x113b   :  { %v2372_v41 = vmul.f32 %v2368_v37, %v8426_v54  ;;  %v2373_v43 = vmul.f32 %v2369_v3, %v8434_v1 }
0x113d   :  { %v2375_v60 = vpack.c.bf16 %v2372_v41, %v2371_v38  ;;  %v2350_v21 = vpop.permute.xlu1 %2349 }
0x113e   :  { %v2370_v40 = vsel %vm239_vm5, %v2366_v42, %v2350_v21 }
0x113f   :  { %v2374_v45 = vmul.f32 %v2370_v40, %v8443_v5  ;;  %7445 = vmatprep.mubr.msk.bf16.mxu0 %vm487_vm7, %v2375_v60 }
0x1141   :  { %v2376_v48 = vpack.c.bf16 %v2374_v45, %v2373_v43  ;;  %v6798_v43 = vld [vmem:[%s10871_s8 + $0x5] ss:$0 sm:$0xff] }
0x1143   :  { %7446 = vmatmul.mubr.msk.bf16.vlgmr.msra.gmra.mxu0 %vm487_vm7, %v2376_v48 }
0x1203   :  { %v7447_v51 = vpop.f32.mrf.mxu0 }
0x1204   :  { %v2475_v53 = vadd.f32 %v7447_v51, %v6783_v44 }
0x1205   :  { %v2466_v58 = vpop.f32.mrf.mxu0 }
0x1206   :  { %v6793_v46 = vmul.f32 -1.442695, %v2475_v53  ;;  %v2467_v8 = vadd.f32 %v6783_v44, %v2466_v58 }
0x1207   :  { %v7448_v52 = vpop.f32.mrf.mxu0 }
0x1208   :  { %v6791_v4 = vmul.f32 -1.442695, %v2467_v8  ;;  %v2478_v57 = vadd.f32 %v7448_v52, %v6783_v44  ;;  %7919 = vpow2.f32 %v6793_v46 }
0x1209   :  { %v2469_v59 = vpop.f32.mrf.mxu0 }
0x120a   :  { %7921 = vpow2.f32 %v6791_v4  ;;  %v6794_v34 = vmul.f32 -1.442695, %v2478_v57  ;;  %v2470_v63 = vadd.f32 %v6783_v44, %v2469_v59 }
0x120c   :  { %v6792_v12 = vmul.f32 -1.442695, %v2470_v63  ;;  %7923 = vpow2.f32 %v6794_v34 }
0x120e   :  { %7925 = vpow2.f32 %v6792_v12  ;;  %v7736_v12 = vld [vmem:[%s10868_s5 + $0x110] sm:$0xff]  }
0x120f   :  { %7455 = vmatprep.subr.bf16.mxu1 %v7736_v12 }
0x1215   :  { %v7920_v6 = vpop.eup %7919 }
0x1216   :  { %v2499_v14 = vadd.f32 1.0, %v7920_v6 }
0x1217   :  { %v7922_v31 = vpop.eup %7921 }
0x1218   :  { %v2497_v10 = vadd.f32 1.0, %v7922_v31 }
0x1219   :  { %v7924_v15 = vpop.eup %7923 }
0x121a   :  { %7927 = vrcp.f32 %v2497_v10  ;;  %v2500_v20 = vadd.f32 1.0, %v7924_v15  ;;  %v7737_v10 = vld [vmem:[%s10868_s5 + $0x108] sm:$0xff]  }
0x121b   :  { %v7926_v25 = vpop.eup %7925  ;;  %7929 = vrcp.f32 %v2499_v14 }
0x121c   :  { %v2498_v18 = vadd.f32 1.0, %v7926_v25 }
0x121e   :  { %7931 = vrcp.f32 %v2498_v18 }
0x121f   :  { %7933 = vrcp.f32 %v2500_v20  ;;  %v7738_v20 = vld [vmem:[%s10868_s5 + $0x100] sm:$0xff]  }
0x1220   :  { %7935 = vtanh.f32 %v2467_v8 }
0x1221   :  { %7937 = vtanh.f32 %v2470_v63 }
0x1222   :  { %7939 = vtanh.f32 %v2475_v53 }
0x1223   :  { %7941 = vtanh.f32 %v2478_v57 }
0x1227   :  { %v7928_v23 = vpop.eup %7927 }
0x1228   :  { %2513 = vrot.lane.b32.xlu0 %v7928_v23, %s8193_s16  ;;  %v7930_v26 = vpop.eup %7929 }
0x122b   :  { %v7932_v27 = vpop.eup %7931 }
0x122c   :  { %2515 = vrot.lane.b32.xlu1 %v7932_v27, %s8193_s16  ;;  %2517 = vrot.lane.b32.xlu0 %v7930_v26, %s8193_s16  ;;  %v7934_v29 = vpop.eup %7933 }
0x122d   :  { %v7936_v32 = vpop.eup %7935 }
0x122e   :  { %v7938_v35 = vpop.eup %7937 }
0x122f   :  { %v7940_v41 = vpop.eup %7939 }
0x1230   :  { %2519 = vrot.lane.b32.xlu1 %v7934_v29, %s8193_s16  ;;  %v7942_v3 = vpop.eup %7941 }
0x129a   :  { %v2514_v30 = vpop.permute.xlu0 %2513 }
0x129b   :  { %v2525_v37 = vmul.f32 %v7936_v32, %v2514_v30  ;;  %v7739_v30 = vld [vmem:[%s10868_s5 + $0xf8] sm:$0xff]  }
0x129e   :  { %v2516_v36 = vpop.permute.xlu1 %2515  ;;  %v2518_v39 = vpop.permute.xlu0 %2517 }
0x129f   :  { %v2526_v38 = vmul.f32 %v7938_v35, %v2516_v36  ;;  %v2527_v60 = vmul.f32 %v7940_v41, %v2518_v39 }
0x12a1   :  { %v2529_v47 = vpack.c.bf16 %v2526_v38, %v2525_v37  ;;  %v7740_v37 = vld [vmem:[%s10868_s5 + $0xf0] sm:$0xff]  }
0x12a2   :  { %v2520_v42 = vpop.permute.xlu1 %2519 }
0x12a3   :  { %v2528_v21 = vmul.f32 %v7942_v3, %v2520_v42  ;;  %7451 = vmatprep.mubr.msk.bf16.mxu1 %vm224_vm9, %v2529_v47 }
0x12a5   :  { %v2530_v40 = vpack.c.bf16 %v2528_v21, %v2527_v60 }
0x12a7   :  { %7452 = vmatmul.mubr.msk.bf16.vlgmr.msra.gmra.mxu1 %vm224_vm9, %v2530_v40 }
0x12a8   :  { %7456 = vmatpush3.bf16.msra.mxu1 %v7736_v12 }
0x12a9   :  { %7457 = vmatprep.subr.bf16.mxu1 %v7737_v10 }
0x12ac   :  { %7458 = vmatpush3.bf16.msra.mxu1 %v7737_v10 }
0x12ad   :  { %7459 = vmatprep.subr.bf16.mxu1 %v7738_v20 }
0x12b0   :  { %7460 = vmatpush3.bf16.msra.mxu1 %v7738_v20 }
0x12b1   :  { %7461 = vmatprep.subr.bf16.mxu1 %v7739_v30 }
0x12b4   :  { %7462 = vmatpush3.bf16.msra.mxu1 %v7739_v30 }
0x12b5   :  { %7463 = vmatprep.subr.bf16.mxu1 %v7740_v37 }
0x12b8   :  { %7464 = vmatpush3.bf16.msra.mxu1 %v7740_v37 }
0x1367   :  { %v7453_v45 = vpop.f32.mrf.mxu1 }
0x1368   :  { %v9250_v48 = vadd.f32 %v7453_v45, %v6798_v43 }
0x1369   :  { %v2588_v44 = vpop.f32.mrf.mxu1 }
0x136a   :  { %v2605_v51 = vadd.f32 %v9250_v48, %v9109_v62  ;;  %v9254_v53 = vadd.f32 %v6798_v43, %v2588_v44 }
0x136b   :  { %v7454_v58 = vpop.f32.mrf.mxu1 }
0x136c   :  { %v9257_v46 = vmul.f32 %v2605_v51, %v8291_v16  ;;  %v2603_v8 = vadd.f32 %v9254_v53, %v9116_v17  ;;  %v9261_v52 = vadd.f32 %v7454_v58, %v6798_v43 }
0x136d   :  { %v2591_v4 = vpop.f32.mrf.mxu1 }
0x136e   :  { %v9264_v57 = vmul.f32 %v2603_v8, %v8296_v22  ;;  %v2606_v59 = vadd.f32 %v9261_v52, %v9125_v9  ;;  %v9268_v34 = vadd.f32 %v6798_v43, %v2591_v4  ;;  %2671 = vrot.lane.b32.xlu0 %v9257_v46, %s8188_s2  ;;  %v2625_v14 = vrot.slane %v9257_v46, 7 }
0x136f   :  { %v2633_v15 = vrot.slane %v9257_v46, 1  ;;  %v2641_v3 = vrot.slane %v9257_v46, 2  ;;  %v2617_v10 = vrot.slane %v9257_v46, 6 }
0x1370   :  { %v9273_v62 = vmul.f32 %v2606_v59, %v8286_v13  ;;  %v2604_v17 = vadd.f32 %v9268_v34, %v9139_v7  ;;  %v2623_v63 = vrot.slane %v9264_v57, 7  ;;  %v2631_v23 = vrot.slane %v9264_v57, 1 }
0x1371   :  { %v2639_v38 = vrot.slane %v9264_v57, 2 }
0x1372   :  { %2673 = vrot.lane.b32.xlu1 %v9273_v62, %s8188_s2  ;;  %2667 = vrot.lane.b32.xlu0 %v9264_v57, %s8188_s2  ;;  %v2626_v9 = vrot.slane %v9273_v62, 7  ;;  %v9287_v6 = vmul.f32 %v2604_v17, %v8318_v33  ;;  %v2634_v31 = vrot.slane %v9273_v62, 1  ;;  %v2642_v47 = vrot.slane %v9273_v62, 2 }
0x1373   :  { %v2618_v17 = vrot.slane %v9273_v62, 6 }
0x1374   :  { %v2630_v7 = vsel %vm331_vm2, %v2626_v9, %v2623_v63  ;;  %v2627_v25 = vsel %vm331_vm2, %v2625_v14, %v2626_v9  ;;  %v2635_v28 = vsel %vm340_vm3, %v2633_v15, %v2634_v31  ;;  %v2624_v18 = vrot.slane %v9287_v6, 7 }
0x1375   :  { %v2638_v26 = vsel %vm340_vm3, %v2634_v31, %v2631_v23  ;;  %v2632_v29 = vrot.slane %v9287_v6, 1  ;;  %v2640_v36 = vrot.slane %v9287_v6, 2  ;;  %v2643_v42 = vsel %vm349_vm4, %v2641_v3, %v2642_v47 }
0x1376   :  { %2669 = vrot.lane.b32.xlu1 %v9287_v6, %s8188_s2  ;;  %2651 = vrot.lane.b32.xlu0 %v2630_v7, %s8189_s22  ;;  %v2628_v27 = vsel %vm331_vm2, %v2624_v18, %v2625_v14  ;;  %v2629_v35 = vsel %vm331_vm2, %v2623_v63, %v2624_v18  ;;  %v2646_v21 = vsel %vm349_vm4, %v2642_v47, %v2639_v38  ;;  %v2615_v63 = vrot.slane %v9264_v57, 6 }
0x1377   :  { %v2637_v32 = vsel %vm340_vm3, %v2631_v23, %v2632_v29  ;;  %v2645_v39 = vsel %vm349_vm4, %v2639_v38, %v2640_v36  ;;  %v2636_v41 = vsel %vm340_vm3, %v2632_v29, %v2633_v15  ;;  %v2644_v60 = vsel %vm349_vm4, %v2640_v36, %v2641_v3 }
0x1378   :  { %v2616_v9 = vrot.slane %v9287_v6, 6  ;;  %v2622_v31 = vsel %vm322_vm10, %v2618_v17, %v2615_v63  ;;  %v2619_v29 = vsel %vm322_vm10, %v2617_v10, %v2618_v17 }
0x137a   :  { %2657 = vrot.lane.b32.xlu1 %v2627_v25, %s8189_s22  ;;  %2687 = vrot.lane.b32.xlu0 %v2635_v28, %s8190_s23  ;;  %v2620_v15 = vsel %vm322_vm10, %v2616_v9, %v2617_v10  ;;  %v2621_v25 = vsel %vm322_vm10, %v2615_v63, %v2616_v9 }
0x137e   :  { %2689 = vrot.lane.b32.xlu1 %v2638_v26, %s8190_s23  ;;  %2655 = vrot.lane.b32.xlu0 %v2628_v27, %s8189_s22 }
0x1382   :  { %2683 = vrot.lane.b32.xlu0 %v2637_v32, %s8190_s23  ;;  %2653 = vrot.lane.b32.xlu1 %v2629_v35, %s8189_s22 }
0x1386   :  { %2699 = vrot.lane.b32.xlu0 %v2645_v39, %s8191_s30  ;;  %2685 = vrot.lane.b32.xlu1 %v2636_v41, %s8190_s23 }
0x138a   :  { %2703 = vrot.lane.b32.xlu0 %v2643_v42, %s8191_s30  ;;  %2701 = vrot.lane.b32.xlu1 %v2644_v60, %s8191_s30 }
0x138e   :  { %2705 = vrot.lane.b32.xlu1 %v2646_v21, %s8191_s30 }
0x13e0   :  { %v2672_v40 = vpop.permute.xlu0 %2671 }
0x13e4   :  { %v2674_v43 = vpop.permute.xlu1 %2673  ;;  %v2668_v45 = vpop.permute.xlu0 %2667 }
0x13e8   :  { %v2670_v44 = vpop.permute.xlu1 %2669  ;;  %v2652_v51 = vpop.permute.xlu0 %2651 }
0x13e9   :  { %v2711_v14 = vsel %vm224_vm9, %v2622_v31, %v2652_v51 }
0x13ea   :  { %v2715_v26 = vsel %vm229_vm12, %v2711_v14, %v2668_v45 }
0x13ec   :  { %v2658_v58 = vpop.permute.xlu1 %2657  ;;  %v2688_v8 = vpop.permute.xlu0 %2687 }
0x13ed   :  { %v2714_v36 = vsel %vm224_vm9, %v2619_v29, %v2658_v58 }
0x13ee   :  { %v2718_v60 = vsel %vm229_vm12, %v2714_v36, %v2674_v43  ;;  %v6813_v43 = vld [vmem:[%s10869_s6 + $0x6] ss:$0 sm:$0xff] }
0x13f0   :  { %v2690_v4 = vpop.permute.xlu1 %2689  ;;  %v2656_v59 = vpop.permute.xlu0 %2655 }
0x13f1   :  { %v2713_v28 = vsel %vm224_vm9, %v2620_v15, %v2656_v59 }
0x13f2   :  { %v2717_v30 = vsel %vm229_vm12, %v2713_v28, %v2672_v40  ;;  %v2722_v40 = vsel %vm234_vm14, %v2718_v60, %v2690_v4 }
0x13f3   :  { %v2721_v3 = vsel %vm234_vm14, %v2717_v30, %v2688_v8  ;;  %v7741_v30 = vld [vmem:[%s10870_s7 + $0x30] sm:$0xff]  }
0x13f4   :  { %v2684_v12 = vpop.permute.xlu0 %2683  ;;  %v2654_v7 = vpop.permute.xlu1 %2653  ;;  %7469 = vmatprep.subr.bf16.mxu0 %v7741_v30 }
0x13f5   :  { %v2712_v18 = vsel %vm224_vm9, %v2621_v25, %v2654_v7  ;;  %v2719_v27 = vsel %vm234_vm14, %v2715_v26, %v2684_v12  ;;  %7470 = vmatpush3.bf16.msra.mxu0 %v7741_v30 }
0x13f6   :  { %v2716_v35 = vsel %vm229_vm12, %v2712_v18, %v2670_v44 }
0x13f8   :  { %v2700_v20 = vpop.permute.xlu0 %2699  ;;  %v2686_v23 = vpop.permute.xlu1 %2685 }
0x13f9   :  { %v2723_v32 = vsel %vm239_vm5, %v2719_v27, %v2700_v20  ;;  %v2720_v37 = vsel %vm234_vm14, %v2716_v35, %v2686_v23 }
0x13fa   :  { %v2727_v47 = vmul.f32 %v2723_v32, %v8419_v49 }
0x13fc   :  { %v2704_v38 = vpop.permute.xlu0 %2703  ;;  %v2702_v39 = vpop.permute.xlu1 %2701 }
0x13fd   :  { %v2724_v41 = vsel %vm239_vm5, %v2720_v37, %v2702_v39  ;;  %v2725_v21 = vsel %vm239_vm5, %v2721_v3, %v2704_v38 }
0x13fe   :  { %v2728_v42 = vmul.f32 %v2724_v41, %v8426_v54  ;;  %v2729_v58 = vmul.f32 %v2725_v21, %v8434_v1 }
0x1400   :  { %v2731_v45 = vpack.c.bf16 %v2728_v42, %v2727_v47  ;;  %v2706_v44 = vpop.permute.xlu1 %2705 }
0x1401   :  { %v2726_v51 = vsel %vm239_vm5, %v2722_v40, %v2706_v44 }
0x1402   :  { %v2730_v59 = vmul.f32 %v2726_v51, %v8443_v5  ;;  %7465 = vmatprep.mubr.msk.bf16.mxu1 %vm487_vm7, %v2731_v45 }
0x1404   :  { %v2732_v17 = vpack.c.bf16 %v2730_v59, %v2729_v58 }
0x1406   :  { %7466 = vmatmul.mubr.msk.bf16.vlgmr.msra.gmra.mxu1 %vm487_vm7, %v2732_v17 }
0x14c6   :  { %v7467_v8 = vpop.f32.mrf.mxu1 }
0x14c7   :  { %v2831_v63 = vadd.f32 %v7467_v8, %v6813_v43  ;;  %v6828_v8 = vld [vmem:[%s10871_s8 + $0x6] ss:$0 sm:$0xff] }
0x14c8   :  { %v2822_v4 = vpop.f32.mrf.mxu1 }
0x14c9   :  { %v6823_v9 = vmul.f32 -1.442695, %v2831_v63  ;;  %v2823_v12 = vadd.f32 %v6813_v43, %v2822_v4  ;;  %v2613_v4 = vadd.f32 %v9250_v48, %v9102_v56 }
0x14ca   :  { %v7468_v7 = vpop.f32.mrf.mxu1 }
0x14cb   :  { %v6821_v31 = vmul.f32 -1.442695, %v2823_v12  ;;  %v2834_v10 = vadd.f32 %v7468_v7, %v6813_v43  ;;  %7943 = vpow2.f32 %v6823_v9  ;;  %v2611_v7 = vadd.f32 %v9254_v53, %v9106_v50 }
0x14cc   :  { %v2825_v14 = vpop.f32.mrf.mxu1  ;;  %v2612_v50 = vadd.f32 %v9268_v34, %v9120_v11 }
0x14cd   :  { %7945 = vpow2.f32 %v6821_v31  ;;  %v6824_v15 = vmul.f32 -1.442695, %v2834_v10  ;;  %v2826_v25 = vadd.f32 %v6813_v43, %v2825_v14 }
0x14cf   :  { %v6822_v28 = vmul.f32 -1.442695, %v2826_v25  ;;  %7947 = vpow2.f32 %v6824_v15  ;;  %v2614_v15 = vadd.f32 %v9261_v52, %v9113_v55 }
0x14d1   :  { %7949 = vpow2.f32 %v6822_v28 }
0x14d8   :  { %v7944_v18 = vpop.eup %7943 }
0x14d9   :  { %v2855_v26 = vadd.f32 1.0, %v7944_v18 }
0x14da   :  { %v7946_v20 = vpop.eup %7945 }
0x14db   :  { %v2853_v23 = vadd.f32 1.0, %v7946_v20 }
0x14dc   :  { %v7948_v27 = vpop.eup %7947 }
0x14dd   :  { %7951 = vrcp.f32 %v2853_v23  ;;  %v2856_v35 = vadd.f32 1.0, %v7948_v27  ;;  %v7742_v27 = vld [vmem:[%s10868_s5 + $0x138] sm:$0xff]  }
0x14de   :  { %v7950_v29 = vpop.eup %7949  ;;  %7953 = vrcp.f32 %v2855_v26  ;;  %7475 = vmatprep.subr.bf16.mxu0 %v7742_v27 }
0x14df   :  { %v2854_v32 = vadd.f32 1.0, %v7950_v29 }
0x14e1   :  { %7955 = vrcp.f32 %v2854_v32 }
0x14e2   :  { %7957 = vrcp.f32 %v2856_v35 }
0x14e3   :  { %7959 = vtanh.f32 %v2823_v12 }
0x14e4   :  { %7961 = vtanh.f32 %v2826_v25 }
0x14e5   :  { %7963 = vtanh.f32 %v2831_v63 }
0x14e6   :  { %7965 = vtanh.f32 %v2834_v10 }
0x14ea   :  { %v7952_v36 = vpop.eup %7951 }
0x14eb   :  { %2869 = vrot.lane.b32.xlu0 %v7952_v36, %s8193_s16  ;;  %v7954_v37 = vpop.eup %7953  ;;  %v7743_v36 = vld [vmem:[%s10868_s5 + $0x130] sm:$0xff]  }
0x14ee   :  { %v7956_v38 = vpop.eup %7955 }
0x14ef   :  { %2871 = vrot.lane.b32.xlu1 %v7956_v38, %s8193_s16  ;;  %2873 = vrot.lane.b32.xlu0 %v7954_v37, %s8193_s16  ;;  %v7958_v39 = vpop.eup %7957 }
0x14f0   :  { %v7960_v47 = vpop.eup %7959 }
0x14f1   :  { %v7962_v3 = vpop.eup %7961 }
0x14f2   :  { %v7964_v45 = vpop.eup %7963 }
0x14f3   :  { %2875 = vrot.lane.b32.xlu1 %v7958_v39, %s8193_s16  ;;  %v7966_v51 = vpop.eup %7965 }
0x155d   :  { %v2870_v41 = vpop.permute.xlu0 %2869 }
0x155e   :  { %v2881_v60 = vmul.f32 %v7960_v47, %v2870_v41 }
0x1561   :  { %v2872_v42 = vpop.permute.xlu1 %2871  ;;  %v2874_v40 = vpop.permute.xlu0 %2873 }
0x1562   :  { %v2882_v21 = vmul.f32 %v7962_v3, %v2872_v42  ;;  %v2883_v59 = vmul.f32 %v7964_v45, %v2874_v40  ;;  %v7744_v45 = vld [vmem:[%s10868_s5 + $0x128] sm:$0xff]  }
0x1564   :  { %v2885_v44 = vpack.c.bf16 %v2882_v21, %v2881_v60 }
0x1565   :  { %v2876_v58 = vpop.permute.xlu1 %2875 }
0x1566   :  { %v2884_v17 = vmul.f32 %v7966_v51, %v2876_v58  ;;  %7471 = vmatprep.mubr.msk.bf16.mxu0 %vm224_vm9, %v2885_v44 }
0x1568   :  { %v2886_v43 = vpack.c.bf16 %v2884_v17, %v2883_v59  ;;  %v7745_v17 = vld [vmem:[%s10868_s5 + $0x120] sm:$0xff]  }
0x156a   :  { %7472 = vmatmul.mubr.msk.bf16.vlgmr.msra.gmra.mxu0 %vm224_vm9, %v2886_v43 }
0x156b   :  { %7476 = vmatpush3.bf16.msra.mxu0 %v7742_v27 }
0x156c   :  { %7477 = vmatprep.subr.bf16.mxu0 %v7743_v36 }
0x156f   :  { %7478 = vmatpush3.bf16.msra.mxu0 %v7743_v36 }
0x1570   :  { %7479 = vmatprep.subr.bf16.mxu0 %v7744_v45 }
0x1573   :  { %7480 = vmatpush3.bf16.msra.mxu0 %v7744_v45 }
0x1574   :  { %7481 = vmatprep.subr.bf16.mxu0 %v7745_v17 }
0x1577   :  { %7482 = vmatpush3.bf16.msra.mxu0 %v7745_v17 }
0x162a   :  { %v7473_v63 = vpop.f32.mrf.mxu0 }
0x162b   :  { %v2953_v9 = vadd.f32 %v7473_v63, %v6828_v8 }
0x162c   :  { %v2944_v12 = vpop.f32.mrf.mxu0 }
0x162d   :  { %v2961_v31 = vadd.f32 %v2953_v9, %v9257_v46  ;;  %v9403_v10 = vadd.f32 %v2953_v9, %v2613_v4  ;;  %v2945_v14 = vadd.f32 %v6828_v8, %v2944_v12  ;;  %v7746_v4 = vld [vmem:[%s10868_s5 + $0x118] sm:$0xff]  }
0x162e   :  { %v7474_v25 = vpop.f32.mrf.mxu0  ;;  %7483 = vmatprep.subr.bf16.mxu0 %v7746_v4 }
0x162f   :  { %v9408_v28 = vmul.f32 %v2961_v31, %v8291_v16  ;;  %v2959_v18 = vadd.f32 %v2945_v14, %v9264_v57  ;;  %v9411_v56 = vadd.f32 %v2945_v14, %v2611_v7  ;;  %v2956_v48 = vadd.f32 %v7474_v25, %v6828_v8  ;;  %7484 = vmatpush3.bf16.msra.mxu0 %v7746_v4  ;;  %v6843_v4 = vld [vmem:[%s10869_s6 + $0x7] ss:$0 sm:$0xff] }
0x1630   :  { %v2947_v53 = vpop.f32.mrf.mxu0 }
0x1631   :  { %v9416_v46 = vmul.f32 %v2959_v18, %v8296_v22  ;;  %v2962_v20 = vadd.f32 %v2956_v48, %v9273_v62  ;;  %v9419_v23 = vadd.f32 %v2956_v48, %v2614_v15  ;;  %v2948_v55 = vadd.f32 %v6828_v8, %v2947_v53  ;;  %3027 = vrot.lane.b32.xlu0 %v9408_v28, %s8188_s2 }
0x1632   :  { %v2973_v32 = vrot.slane %v9408_v28, 6  ;;  %v2981_v41 = vrot.slane %v9408_v28, 7  ;;  %v2989_v47 = vrot.slane %v9408_v28, 1  ;;  %v2997_v14 = vrot.slane %v9408_v28, 2 }
0x1633   :  { %v9424_v52 = vmul.f32 %v2962_v20, %v8286_v13  ;;  %v2960_v57 = vadd.f32 %v2948_v55, %v9287_v6  ;;  %v9427_v26 = vadd.f32 %v2948_v55, %v2612_v50  ;;  %v2979_v34 = vrot.slane %v9416_v46, 7 }
0x1634   :  { %v2971_v30 = vrot.slane %v9416_v46, 6  ;;  %v2987_v44 = vrot.slane %v9416_v46, 1  ;;  %v2995_v9 = vrot.slane %v9416_v46, 2 }
0x1635   :  { %v2964_v11 = vmul.f32 %v2960_v57, %v8318_v33  ;;  %3029 = vrot.lane.b32.xlu1 %v9424_v52, %s8188_s2  ;;  %3023 = vrot.lane.b32.xlu0 %v9416_v46, %s8188_s2  ;;  %v2982_v62 = vrot.slane %v9424_v52, 7  ;;  %v2974_v6 = vrot.slane %v9424_v52, 6  ;;  %v2990_v35 = vrot.slane %v9424_v52, 1 }
0x1636   :  { %v2998_v31 = vrot.slane %v9424_v52, 2 }
0x1637   :  { %v2986_v29 = vsel %vm331_vm2, %v2982_v62, %v2979_v34  ;;  %v2978_v37 = vsel %vm322_vm10, %v2974_v6, %v2971_v30  ;;  %v9454_v38 = vsel %vm322_vm10, %v2973_v32, %v2974_v6  ;;  %v2972_v39 = vrot.slane %v2964_v11, 6 }
0x1638   :  { %v2983_v60 = vsel %vm331_vm2, %v2981_v41, %v2982_v62  ;;  %v2991_v21 = vsel %vm340_vm3, %v2989_v47, %v2990_v35  ;;  %v2980_v40 = vrot.slane %v2964_v11, 7  ;;  %v2994_v51 = vsel %vm340_vm3, %v2990_v35, %v2987_v44 }
0x1639   :  { %3025 = vrot.lane.b32.xlu1 %v2964_v11, %s8188_s2  ;;  %3007 = vrot.lane.b32.xlu0 %v2986_v29, %s8189_s22  ;;  %v2976_v3 = vsel %vm322_vm10, %v2972_v39, %v2973_v32  ;;  %v2977_v42 = vsel %vm322_vm10, %v2971_v30, %v2972_v39  ;;  %v2988_v59 = vrot.slane %v2964_v11, 1  ;;  %v2996_v63 = vrot.slane %v2964_v11, 2 }
0x163a   :  { %v2984_v58 = vsel %vm331_vm2, %v2980_v40, %v2981_v41  ;;  %v2985_v8 = vsel %vm331_vm2, %v2979_v34, %v2980_v40  ;;  %v2999_v15 = vsel %vm349_vm4, %v2997_v14, %v2998_v31  ;;  %v3002_v18 = vsel %vm349_vm4, %v2998_v31, %v2995_v9 }
0x163b   :  { %v2993_v43 = vsel %vm340_vm3, %v2987_v44, %v2988_v59  ;;  %v3001_v12 = vsel %vm349_vm4, %v2995_v9, %v2996_v63  ;;  %v2992_v7 = vsel %vm340_vm3, %v2988_v59, %v2989_v47  ;;  %v3000_v25 = vsel %vm349_vm4, %v2996_v63, %v2997_v14 }
0x163d   :  { %3013 = vrot.lane.b32.xlu1 %v2983_v60, %s8189_s22  ;;  %3043 = vrot.lane.b32.xlu0 %v2991_v21, %s8190_s23 }
0x1641   :  { %3045 = vrot.lane.b32.xlu1 %v2994_v51, %s8190_s23  ;;  %3011 = vrot.lane.b32.xlu0 %v2984_v58, %s8189_s22 }
0x1645   :  { %3039 = vrot.lane.b32.xlu0 %v2993_v43, %s8190_s23  ;;  %3009 = vrot.lane.b32.xlu1 %v2985_v8, %s8189_s22 }
0x1649   :  { %3055 = vrot.lane.b32.xlu0 %v3001_v12, %s8191_s30  ;;  %3041 = vrot.lane.b32.xlu1 %v2992_v7, %s8190_s23 }
0x164d   :  { %3059 = vrot.lane.b32.xlu0 %v2999_v15, %s8191_s30  ;;  %3057 = vrot.lane.b32.xlu1 %v3000_v25, %s8191_s30 }
0x1651   :  { %3061 = vrot.lane.b32.xlu1 %v3002_v18, %s8191_s30 }
0x16a3   :  { %v3028_v48 = vpop.permute.xlu0 %3027 }
0x16a7   :  { %v3030_v50 = vpop.permute.xlu1 %3029  ;;  %v3024_v53 = vpop.permute.xlu0 %3023 }
0x16ab   :  { %v3026_v46 = vpop.permute.xlu1 %3025  ;;  %v3008_v28 = vpop.permute.xlu0 %3007 }
0x16ac   :  { %v3067_v62 = vsel %vm224_vm9, %v2978_v37, %v3008_v28 }
0x16ad   :  { %v3071_v32 = vsel %vm229_vm12, %v3067_v62, %v3024_v53 }
0x16af   :  { %v3014_v20 = vpop.permute.xlu1 %3013  ;;  %v3044_v55 = vpop.permute.xlu0 %3043 }
0x16b0   :  { %v3070_v47 = vsel %vm224_vm9, %v9454_v38, %v3014_v20 }
0x16b1   :  { %v3074_v44 = vsel %vm229_vm12, %v3070_v47, %v3030_v50 }
0x16b3   :  { %v3046_v52 = vpop.permute.xlu1 %3045  ;;  %v3012_v57 = vpop.permute.xlu0 %3011 }
0x16b4   :  { %v3069_v27 = vsel %vm224_vm9, %v2976_v3, %v3012_v57  ;;  %v3078_v58 = vsel %vm234_vm14, %v3074_v44, %v3046_v52 }
0x16b5   :  { %v3073_v36 = vsel %vm229_vm12, %v3069_v27, %v3028_v48 }
0x16b6   :  { %v3077_v40 = vsel %vm234_vm14, %v3073_v36, %v3044_v55 }
0x16b7   :  { %v3040_v11 = vpop.permute.xlu0 %3039  ;;  %v3010_v34 = vpop.permute.xlu1 %3009 }
0x16b8   :  { %v3068_v6 = vsel %vm224_vm9, %v2977_v42, %v3010_v34  ;;  %v3075_v35 = vsel %vm234_vm14, %v3071_v32, %v3040_v11  ;;  %v7747_v34 = vld [vmem:[%s10870_s7 + $0x38] sm:$0xff]  }
0x16b9   :  { %v3072_v41 = vsel %vm229_vm12, %v3068_v6, %v3026_v46  ;;  %7489 = vmatprep.subr.bf16.mxu1 %v7747_v34 }
0x16ba   :  { %7490 = vmatpush3.bf16.msra.mxu1 %v7747_v34 }
0x16bb   :  { %v3056_v29 = vpop.permute.xlu0 %3055  ;;  %v3042_v30 = vpop.permute.xlu1 %3041 }
0x16bc   :  { %v3079_v39 = vsel %vm239_vm5, %v3075_v35, %v3056_v29  ;;  %v3076_v37 = vsel %vm234_vm14, %v3072_v41, %v3042_v30 }
0x16bd   :  { %v3083_v21 = vmul.f32 %v3079_v39, %v8419_v49 }
0x16bf   :  { %v3060_v3 = vpop.permute.xlu0 %3059  ;;  %v3058_v60 = vpop.permute.xlu1 %3057 }
0x16c0   :  { %v3080_v42 = vsel %vm239_vm5, %v3076_v37, %v3058_v60  ;;  %v3081_v51 = vsel %vm239_vm5, %v3077_v40, %v3060_v3 }
0x16c1   :  { %v3084_v45 = vmul.f32 %v3080_v42, %v8426_v54  ;;  %v3085_v43 = vmul.f32 %v3081_v51, %v8434_v1 }
0x16c3   :  { %v3087_v59 = vpack.c.bf16 %v3084_v45, %v3083_v21  ;;  %v3062_v38 = vpop.permute.xlu1 %3061 }
0x16c4   :  { %v3082_v17 = vsel %vm239_vm5, %v3078_v58, %v3062_v38  ;;  %v7748_v58 = vld [vmem:[%s10872_s9 + $0x8] sm:$0xff]  }
0x16c5   :  { %v3086_v8 = vmul.f32 %v3082_v17, %v8443_v5  ;;  %7485 = vmatprep.mubr.msk.bf16.mxu0 %vm487_vm7, %v3087_v59  ;;  %7495 = vmatprep.subr.bf16.mxu1 %v7748_v58  ;;  %v6858_v59 = vld [vmem:[%s10871_s8 + $0x7] ss:$0 sm:$0xff] }
0x16c7   :  { %v3088_v63 = vpack.c.bf16 %v3086_v8, %v3085_v43 }
0x16c9   :  { %7486 = vmatmul.mubr.msk.bf16.vlgmr.msra.gmra.mxu0 %vm487_vm7, %v3088_v63 }
0x1789   :  { %v7487_v9 = vpop.f32.mrf.mxu0 }
0x178a   :  { %v3187_v12 = vadd.f32 %v7487_v9, %v6843_v4 }
0x178b   :  { %v3178_v7 = vpop.f32.mrf.mxu0 }
0x178c   :  { %v6853_v31 = vmul.f32 -1.442695, %v3187_v12  ;;  %v3179_v14 = vadd.f32 %v6843_v4, %v3178_v7 }
0x178d   :  { %v7488_v15 = vpop.f32.mrf.mxu0 }
0x178e   :  { %v6851_v25 = vmul.f32 -1.442695, %v3179_v14  ;;  %v3190_v18 = vadd.f32 %v7488_v15, %v6843_v4  ;;  %7967 = vpow2.f32 %v6853_v31 }
0x178f   :  { %v3181_v48 = vpop.f32.mrf.mxu0 }
0x1790   :  { %7969 = vpow2.f32 %v6851_v25  ;;  %v6854_v50 = vmul.f32 -1.442695, %v3190_v18  ;;  %v3182_v53 = vadd.f32 %v6843_v4, %v3181_v48 }
0x1792   :  { %v6852_v46 = vmul.f32 -1.442695, %v3182_v53  ;;  %7971 = vpow2.f32 %v6854_v50 }
0x1794   :  { %7973 = vpow2.f32 %v6852_v46 }
0x179b   :  { %v7968_v28 = vpop.eup %7967 }
0x179c   :  { %v3211_v52 = vadd.f32 1.0, %v7968_v28 }
0x179d   :  { %v7970_v20 = vpop.eup %7969 }
0x179e   :  { %v3209_v55 = vadd.f32 1.0, %v7970_v20  ;;  %v6865_v20 = vld [vmem:[%s10873_s10 + $0x1] ss:$0 sm:$0xff] }
0x179f   :  { %v7972_v57 = vpop.eup %7971 }
0x17a0   :  { %7975 = vrcp.f32 %v3209_v55  ;;  %v3212_v27 = vadd.f32 1.0, %v7972_v57 }
0x17a1   :  { %v7974_v11 = vpop.eup %7973  ;;  %7977 = vrcp.f32 %v3211_v52 }
0x17a2   :  { %v3210_v62 = vadd.f32 1.0, %v7974_v11 }
0x17a4   :  { %7979 = vrcp.f32 %v3210_v62 }
0x17a5   :  { %7981 = vrcp.f32 %v3212_v27 }
0x17a6   :  { %7983 = vtanh.f32 %v3179_v14 }
0x17a7   :  { %7985 = vtanh.f32 %v3182_v53 }
0x17a8   :  { %7987 = vtanh.f32 %v3187_v12 }
0x17a9   :  { %7989 = vtanh.f32 %v3190_v18 }
0x17ad   :  { %v7976_v6 = vpop.eup %7975 }
0x17ae   :  { %3225 = vrot.lane.b32.xlu0 %v7976_v6, %s8193_s16  ;;  %v7978_v29 = vpop.eup %7977 }
0x17b1   :  { %v7980_v30 = vpop.eup %7979 }
0x17b2   :  { %3227 = vrot.lane.b32.xlu1 %v7980_v30, %s8193_s16  ;;  %3229 = vrot.lane.b32.xlu0 %v7978_v29, %s8193_s16  ;;  %v7982_v32 = vpop.eup %7981 }
0x17b3   :  { %v7984_v36 = vpop.eup %7983 }
0x17b4   :  { %v7986_v39 = vpop.eup %7985 }
0x17b5   :  { %v7988_v60 = vpop.eup %7987 }
0x17b6   :  { %3231 = vrot.lane.b32.xlu1 %v7982_v32, %s8193_s16  ;;  %v7990_v21 = vpop.eup %7989  ;;  %v8183_v32 = vld [vmem:[%s10865_s0 + $0x18] sm:$0xff] }
0x1820   :  { %v3226_v35 = vpop.permute.xlu0 %3225 }
0x1821   :  { %v3237_v47 = vmul.f32 %v7984_v36, %v3226_v35  ;;  %v3410_v35 = vmul.f32 %v8183_v32, %v8286_v13  ;;  %v8184_v36 = vld [vmem:[%s10865_s0] sm:$0xff] }
0x1824   :  { %v3228_v41 = vpop.permute.xlu1 %3227  ;;  %v3230_v3 = vpop.permute.xlu0 %3229 }
0x1825   :  { %v3238_v37 = vmul.f32 %v7986_v39, %v3228_v41  ;;  %v3239_v45 = vmul.f32 %v7988_v60, %v3230_v3  ;;  %v3407_v39 = vmul.f32 %v8184_v36, %v8296_v22  ;;  %v8186_v3 = vld [vmem:[%s10865_s0 + $0x10] sm:$0xff] }
0x1826   :  { %v3409_v60 = vmul.f32 %v8186_v3, %v8291_v16 }
0x1827   :  { %v3241_v42 = vpack.c.bf16 %v3238_v37, %v3237_v47  ;;  %v8185_v47 = vld [vmem:[%s10865_s0 + $0x8] sm:$0xff] }
0x1828   :  { %v3232_v40 = vpop.permute.xlu1 %3231  ;;  %v3408_v37 = vmul.f32 %v8185_v47, %v8318_v33 }
0x1829   :  { %v3240_v44 = vmul.f32 %v7990_v21, %v3232_v40  ;;  %7491 = vmatprep.mubr.msk.bf16.mxu1 %vm224_vm9, %v3241_v42 }
0x182b   :  { %v3242_v51 = vpack.c.bf16 %v3240_v44, %v3239_v45 }
0x182d   :  { %7492 = vmatmul.mubr.msk.bf16.vlgmr.msra.gmra.mxu1 %vm224_vm9, %v3242_v51 }
0x182e   :  { %7496 = vmatpush3.bf16.msra.mxu1 %v7748_v58  ;;  %v6871_v58 = vld [vmem:[%s10867_s4 + $0x2] ss:$0 sm:$0xff] }
0x18ed   :  { %v7493_v38 = vpop.f32.mrf.mxu1 }
0x18ee   :  { %v3309_v17 = vadd.f32 %v7493_v38, %v6858_v59 }
0x18ef   :  { %v3300_v43 = vpop.f32.mrf.mxu1 }
0x18f0   :  { %v3301_v8 = vadd.f32 %v6858_v59, %v3300_v43  ;;  %v3317_v4 = vadd.f32 %v3309_v17, %v9403_v10 }
0x18f1   :  { %v7494_v63 = vpop.f32.mrf.mxu1 }
0x18f2   :  { %v3312_v9 = vadd.f32 %v7494_v63, %v6858_v59  ;;  %v3315_v7 = vadd.f32 %v3301_v8, %v9411_v56  ;;  %v3321_v15 = vmul.f32 %v3317_v4, %v8291_v16 }
0x18f3   :  { %v3303_v12 = vpop.f32.mrf.mxu1 }
0x18f4   :  { %v3318_v31 = vadd.f32 %v3312_v9, %v9419_v23  ;;  %v3304_v14 = vadd.f32 %v6858_v59, %v3303_v12  ;;  %v3319_v48 = vmul.f32 %v3315_v7, %v8296_v22  ;;  %v6869_v23 = vld [vmem:[%s10864_s3 + $0x4] sm:$0x3] }
0x18f5   :  { %7687 = vmatprep.subr.msk.bf16.mxu0 %vm261_vm0, %v6869_v23 }
0x18f6   :  { %v3322_v25 = vmul.f32 %v3318_v31, %v8286_v13  ;;  %v3316_v18 = vadd.f32 %v3304_v14, %v9427_v26  ;;  %v3434_v26 = vsel %vm261_vm0, %v6869_v23, 0 }
0x18f7   :  { %7502 = vmatpush3.bf16.msra.mxu0 %v3434_v26 }
0x18f8   :  { %v3324_v50 = vpack.c.bf16 %v3322_v25, %v3321_v15  ;;  %v3320_v53 = vmul.f32 %v3316_v18, %v8318_v33  ;;  %v7749_v25 = vld [vmem:[%s10868_s5 + $0x160] sm:$0xff]  }
0x18f9   :  { %7507 = vmatprep.subr.bf16.mxu1 %v7749_v25 }
0x18fa   :  { %v3323_v46 = vpack.c.bf16 %v3320_v53, %v3319_v48  ;;  %3340 = vrot.lane.b32.xlu1 %v3324_v50, %s8193_s16  ;;  %v7750_v53 = vld [vmem:[%s10868_s5 + $0x158] sm:$0xff]  }
0x18fc   :  { %3338 = vrot.lane.b32.xlu0 %v3323_v46, %s8193_s16 }
0x196c   :  { %v3341_v56 = vpop.permute.xlu1 %3340 }
0x196e   :  { %v3339_v10 = vpop.permute.xlu0 %3338 }
0x196f   :  { %7497 = vmatprep.mubr.msk.bf16.mxu1 %vm224_vm9, %v3339_v10 }
0x1970   :  { %7498 = vmatmul.mubr.msk.bf16.vlgmr.msra.gmra.mxu1 %vm224_vm9, %v3341_v56 }
0x1971   :  { %7508 = vmatpush3.bf16.msra.mxu1 %v7749_v25 }
0x1972   :  { %7509 = vmatprep.subr.bf16.mxu1 %v7750_v53 }
0x1975   :  { %7510 = vmatpush3.bf16.msra.mxu1 %v7750_v53 }
0x1a30   :  { %v7499_v28 = vpop.f32.mrf.mxu1 }
0x1a31   :  { %v3397_v57 = vadd.f32 %v7499_v28, %v6865_v20  ;;  %v7751_v28 = vld [vmem:[%s10868_s5 + $0x150] sm:$0xff]  }
0x1a32   :  { %v3388_v55 = vpop.f32.mrf.mxu1  ;;  %7511 = vmatprep.subr.bf16.mxu1 %v7751_v28 }
0x1a33   :  { %v3389_v52 = vadd.f32 %v6865_v20, %v3388_v55  ;;  %v3405_v30 = vmul.f32 %v3397_v57, %v8291_v16  ;;  %7512 = vmatpush3.bf16.msra.mxu1 %v7751_v28 }
0x1a34   :  { %v7500_v11 = vpop.f32.mrf.mxu1 }
0x1a35   :  { %v3400_v34 = vadd.f32 %v7500_v11, %v6865_v20  ;;  %v3403_v27 = vmul.f32 %v3389_v52, %v8296_v22  ;;  %v9595_v45 = vadd.f32 %v3409_v60, %v3405_v30  ;;  %v7752_v11 = vld [vmem:[%s10868_s5 + $0x148] sm:$0xff]  }
0x1a36   :  { %v3391_v62 = vpop.f32.mrf.mxu1  ;;  %7513 = vmatprep.subr.bf16.mxu1 %v7752_v11 }
0x1a37   :  { %v3406_v6 = vmul.f32 %v3400_v34, %v8286_v13  ;;  %v3392_v29 = vadd.f32 %v6865_v20, %v3391_v62  ;;  %v9591_v21 = vadd.f32 %v3407_v39, %v3403_v27  ;;  %7514 = vmatpush3.bf16.msra.mxu1 %v7752_v11 }
0x1a39   :  { %v3404_v41 = vmul.f32 %v3392_v29, %v8318_v33  ;;  %v9589_v42 = vadd.f32 %v3410_v35, %v3406_v6  ;;  %v7753_v6 = vld [vmem:[%s10868_s5 + $0x140] sm:$0xff]  }
0x1a3a   :  { %7515 = vmatprep.subr.bf16.mxu1 %v7753_v6 }
0x1a3b   :  { %v9593_v40 = vadd.f32 %v3408_v37, %v3404_v41  ;;  %v3416_v51 = vpack.c.bf16 %v9589_v42, %v9595_v45  ;;  %7516 = vmatpush3.bf16.msra.mxu1 %v7753_v6 }
0x1a3d   :  { %v3415_v44 = vpack.c.bf16 %v9593_v40, %v9591_v21 }
0x1a3f   :  { %7503 = vmatprep.mubr.msk.bf16.mxu0 %vm254_vm1, %v3415_v44 }
0x1a40   :  { %7504 = vmatmul.mubr.msk.bf16.vlgmr.msra.gmra.mxu0 %vm254_vm1, %v3416_v51 }
0x1b00   :  { %v7505_v59 = vpop.f32.mrf.mxu0 }
0x1b01   :  { %v3479_v38 = vadd.f32 %v7505_v59, %v6871_v58 }
0x1b02   :  { %v3470_v17 = vpop.f32.mrf.mxu0 }
0x1b03   :  { %v9607_v43 = vmul.f32 %v3479_v38, %v8291_v16  ;;  %v3471_v8 = vadd.f32 %v6871_v58, %v3470_v17 }
0x1b04   :  { %v7506_v63 = vpop.f32.mrf.mxu0 }
0x1b05   :  { %v9610_v4 = vmul.f32 %v3471_v8, %v8296_v22  ;;  %v3482_v9 = vadd.f32 %v7506_v63, %v6871_v58  ;;  %3545 = vrot.lane.b32.xlu0 %v9607_v43, %s8188_s2  ;;  %v3499_v46 = vrot.slane %v9607_v43, 7  ;;  %v3507_v10 = vrot.slane %v9607_v43, 1 }
0x1b06   :  { %v3473_v12 = vpop.f32.mrf.mxu0  ;;  %v3515_v36 = vrot.slane %v9607_v43, 2 }
0x1b07   :  { %v9615_v7 = vmul.f32 %v3482_v9, %v8286_v13  ;;  %v3474_v31 = vadd.f32 %v6871_v58, %v3473_v12  ;;  %v3497_v14 = vrot.slane %v9610_v4, 7  ;;  %v3505_v20 = vrot.slane %v9610_v4, 1 }
0x1b08   :  { %v3513_v29 = vrot.slane %v9610_v4, 2  ;;  %v3489_v63 = vrot.slane %v9610_v4, 6 }
0x1b09   :  { %3547 = vrot.lane.b32.xlu1 %v9615_v7, %s8188_s2  ;;  %3541 = vrot.lane.b32.xlu0 %v9610_v4, %s8188_s2  ;;  %v3500_v15 = vrot.slane %v9615_v7, 7  ;;  %v9627_v18 = vmul.f32 %v3474_v31, %v8318_v33  ;;  %v3508_v50 = vrot.slane %v9615_v7, 1  ;;  %v3516_v35 = vrot.slane %v9615_v7, 2 }
0x1b0a   :  { %v3492_v8 = vrot.slane %v9615_v7, 6 }
0x1b0b   :  { %v3504_v48 = vsel %vm331_vm2, %v3500_v15, %v3497_v14  ;;  %v3501_v56 = vsel %vm331_vm2, %v3499_v46, %v3500_v15  ;;  %v3509_v23 = vsel %vm340_vm3, %v3507_v10, %v3508_v50  ;;  %v3498_v26 = vrot.slane %v9627_v18, 7 }
0x1b0c   :  { %v3512_v55 = vsel %vm340_vm3, %v3508_v50, %v3505_v20  ;;  %v3506_v57 = vrot.slane %v9627_v18, 1  ;;  %v3514_v27 = vrot.slane %v9627_v18, 2  ;;  %v3517_v39 = vsel %vm349_vm4, %v3515_v36, %v3516_v35 }
0x1b0d   :  { %3543 = vrot.lane.b32.xlu1 %v9627_v18, %s8188_s2  ;;  %3525 = vrot.lane.b32.xlu0 %v3504_v48, %s8189_s22  ;;  %v3502_v52 = vsel %vm331_vm2, %v3498_v26, %v3499_v46  ;;  %v3503_v62 = vsel %vm331_vm2, %v3497_v14, %v3498_v26  ;;  %v3520_v47 = vsel %vm349_vm4, %v3516_v35, %v3513_v29  ;;  %v3490_v9 = vrot.slane %v9627_v18, 6 }
0x1b0e   :  { %v3511_v34 = vsel %vm340_vm3, %v3505_v20, %v3506_v57  ;;  %v3519_v30 = vsel %vm349_vm4, %v3513_v29, %v3514_v27  ;;  %v3510_v32 = vsel %vm340_vm3, %v3506_v57, %v3507_v10  ;;  %v3518_v41 = vsel %vm349_vm4, %v3514_v27, %v3515_v36 }
0x1b0f   :  { %v3496_v14 = vsel %vm322_vm10, %v3492_v8, %v3489_v63  ;;  %v3491_v15 = vrot.slane %v9607_v43, 6  ;;  %v3495_v50 = vsel %vm322_vm10, %v3489_v63, %v3490_v9 }
0x1b11   :  { %3531 = vrot.lane.b32.xlu1 %v3501_v56, %s8189_s22  ;;  %3561 = vrot.lane.b32.xlu0 %v3509_v23, %s8190_s23  ;;  %v3494_v48 = vsel %vm322_vm10, %v3490_v9, %v3491_v15  ;;  %v3493_v28 = vsel %vm322_vm10, %v3491_v15, %v3492_v8 }
0x1b15   :  { %3563 = vrot.lane.b32.xlu1 %v3512_v55, %s8190_s23  ;;  %3529 = vrot.lane.b32.xlu0 %v3502_v52, %s8189_s22 }
0x1b19   :  { %3557 = vrot.lane.b32.xlu0 %v3511_v34, %s8190_s23  ;;  %3527 = vrot.lane.b32.xlu1 %v3503_v62, %s8189_s22 }
0x1b1d   :  { %3573 = vrot.lane.b32.xlu0 %v3519_v30, %s8191_s30  ;;  %3559 = vrot.lane.b32.xlu1 %v3510_v32, %s8190_s23 }
0x1b21   :  { %3577 = vrot.lane.b32.xlu0 %v3517_v39, %s8191_s30  ;;  %3575 = vrot.lane.b32.xlu1 %v3518_v41, %s8191_s30 }
0x1b25   :  { %3579 = vrot.lane.b32.xlu1 %v3520_v47, %s8191_s30 }
0x1b77   :  { %v3546_v37 = vpop.permute.xlu0 %3545 }
0x1b7b   :  { %v3548_v3 = vpop.permute.xlu1 %3547  ;;  %v3542_v60 = vpop.permute.xlu0 %3541 }
0x1b7f   :  { %v3544_v44 = vpop.permute.xlu1 %3543  ;;  %v3526_v51 = vpop.permute.xlu0 %3525 }
0x1b80   :  { %v3585_v25 = vsel %vm224_vm9, %v3496_v14, %v3526_v51 }
0x1b81   :  { %v3589_v23 = vsel %vm229_vm12, %v3585_v25, %v3542_v60 }
0x1b83   :  { %v3532_v58 = vpop.permute.xlu1 %3531  ;;  %v3562_v59 = vpop.permute.xlu0 %3561 }
0x1b84   :  { %v3588_v57 = vsel %vm224_vm9, %v3493_v28, %v3532_v58 }
0x1b85   :  { %v3592_v32 = vsel %vm229_vm12, %v3588_v57, %v3548_v3  ;;  %v6885_v3 = vld [vmem:[%s10869_s6 + $0x8] ss:$0 sm:$0xff] }
0x1b87   :  { %v3564_v38 = vpop.permute.xlu1 %3563  ;;  %v3530_v17 = vpop.permute.xlu0 %3529 }
0x1b88   :  { %v3587_v53 = vsel %vm224_vm9, %v3494_v48, %v3530_v17  ;;  %v3596_v36 = vsel %vm234_vm14, %v3592_v32, %v3564_v38 }
0x1b89   :  { %v3591_v20 = vsel %vm229_vm12, %v3587_v53, %v3546_v37 }
0x1b8a   :  { %v3595_v29 = vsel %vm234_vm14, %v3591_v20, %v3562_v59 }
0x1b8b   :  { %v3558_v12 = vpop.permute.xlu0 %3557  ;;  %v3528_v31 = vpop.permute.xlu1 %3527 }
0x1b8c   :  { %v3586_v46 = vsel %vm224_vm9, %v3495_v50, %v3528_v31  ;;  %v3593_v26 = vsel %vm234_vm14, %v3589_v23, %v3558_v12 }
0x1b8d   :  { %v3590_v52 = vsel %vm229_vm12, %v3586_v46, %v3544_v44 }
0x1b8f   :  { %v3574_v10 = vpop.permute.xlu0 %3573  ;;  %v3560_v56 = vpop.permute.xlu1 %3559 }
0x1b90   :  { %v3597_v55 = vsel %vm239_vm5, %v3593_v26, %v3574_v10  ;;  %v3594_v11 = vsel %vm234_vm14, %v3590_v52, %v3560_v56  ;;  %v7754_v56 = vld [vmem:[%s10870_s7 + $0x40] sm:$0xff]  }
0x1b91   :  { %v3601_v6 = vmul.f32 %v3597_v55, %v8419_v49  ;;  %7521 = vmatprep.subr.bf16.mxu0 %v7754_v56 }
0x1b92   :  { %7522 = vmatpush3.bf16.msra.mxu0 %v7754_v56 }
0x1b93   :  { %v3578_v34 = vpop.permute.xlu0 %3577  ;;  %v3576_v62 = vpop.permute.xlu1 %3575 }
0x1b94   :  { %v3598_v27 = vsel %vm239_vm5, %v3594_v11, %v3576_v62  ;;  %v3599_v35 = vsel %vm239_vm5, %v3595_v29, %v3578_v34 }
0x1b95   :  { %v3602_v30 = vmul.f32 %v3598_v27, %v8426_v54  ;;  %v3603_v37 = vmul.f32 %v3599_v35, %v8434_v1 }
0x1b97   :  { %v3605_v39 = vpack.c.bf16 %v3602_v30, %v3601_v6  ;;  %v3580_v41 = vpop.permute.xlu1 %3579 }
0x1b98   :  { %v3600_v47 = vsel %vm239_vm5, %v3596_v36, %v3580_v41 }
0x1b99   :  { %v3604_v60 = vmul.f32 %v3600_v47, %v8443_v5  ;;  %7517 = vmatprep.mubr.msk.bf16.mxu1 %vm487_vm7, %v3605_v39 }
0x1b9b   :  { %v3606_v44 = vpack.c.bf16 %v3604_v60, %v3603_v37  ;;  %v6900_v37 = vld [vmem:[%s10871_s8 + $0x8] ss:$0 sm:$0xff] }
0x1b9d   :  { %7518 = vmatmul.mubr.msk.bf16.vlgmr.msra.gmra.mxu1 %vm487_vm7, %v3606_v44 }
0x1c5d   :  { %v7519_v51 = vpop.f32.mrf.mxu1 }
0x1c5e   :  { %v3705_v58 = vadd.f32 %v7519_v51, %v6885_v3 }
0x1c5f   :  { %v3696_v59 = vpop.f32.mrf.mxu1 }
0x1c60   :  { %v6895_v38 = vmul.f32 -1.442695, %v3705_v58  ;;  %v3697_v17 = vadd.f32 %v6885_v3, %v3696_v59 }
0x1c61   :  { %v7520_v8 = vpop.f32.mrf.mxu1 }
0x1c62   :  { %v6893_v63 = vmul.f32 -1.442695, %v3697_v17  ;;  %v3708_v9 = vadd.f32 %v7520_v8, %v6885_v3  ;;  %7991 = vpow2.f32 %v6895_v38 }
0x1c63   :  { %v3699_v12 = vpop.f32.mrf.mxu1 }
0x1c64   :  { %7993 = vpow2.f32 %v6893_v63  ;;  %v6896_v31 = vmul.f32 -1.442695, %v3708_v9  ;;  %v3700_v14 = vadd.f32 %v6885_v3, %v3699_v12 }
0x1c66   :  { %v6894_v15 = vmul.f32 -1.442695, %v3700_v14  ;;  %7995 = vpow2.f32 %v6896_v31 }
0x1c68   :  { %7997 = vpow2.f32 %v6894_v15  ;;  %v7755_v15 = vld [vmem:[%s10868_s5 + $0x188] sm:$0xff]  }
0x1c69   :  { %7527 = vmatprep.subr.bf16.mxu0 %v7755_v15 }
0x1c6f   :  { %v7992_v25 = vpop.eup %7991 }
0x1c70   :  { %v3729_v53 = vadd.f32 1.0, %v7992_v25 }
0x1c71   :  { %v7994_v48 = vpop.eup %7993 }
0x1c72   :  { %v3727_v50 = vadd.f32 1.0, %v7994_v48 }
0x1c73   :  { %v7996_v46 = vpop.eup %7995 }
0x1c74   :  { %7999 = vrcp.f32 %v3727_v50  ;;  %v3730_v26 = vadd.f32 1.0, %v7996_v46  ;;  %v7756_v50 = vld [vmem:[%s10868_s5 + $0x180] sm:$0xff]  }
0x1c75   :  { %v7998_v10 = vpop.eup %7997  ;;  %8001 = vrcp.f32 %v3729_v53 }
0x1c76   :  { %v3728_v23 = vadd.f32 1.0, %v7998_v10 }
0x1c78   :  { %8003 = vrcp.f32 %v3728_v23 }
0x1c79   :  { %8005 = vrcp.f32 %v3730_v26  ;;  %v7757_v26 = vld [vmem:[%s10868_s5 + $0x178] sm:$0xff]  }
0x1c7a   :  { %8007 = vtanh.f32 %v3697_v17 }
0x1c7b   :  { %8009 = vtanh.f32 %v3700_v14 }
0x1c7c   :  { %8011 = vtanh.f32 %v3705_v58 }
0x1c7d   :  { %8013 = vtanh.f32 %v3708_v9 }
0x1c81   :  { %v8000_v28 = vpop.eup %7999 }
0x1c82   :  { %3743 = vrot.lane.b32.xlu0 %v8000_v28, %s8193_s16  ;;  %v8002_v20 = vpop.eup %8001 }
0x1c85   :  { %v8004_v55 = vpop.eup %8003 }
0x1c86   :  { %3745 = vrot.lane.b32.xlu1 %v8004_v55, %s8193_s16  ;;  %3747 = vrot.lane.b32.xlu0 %v8002_v20, %s8193_s16  ;;  %v8006_v52 = vpop.eup %8005 }
0x1c87   :  { %v8008_v11 = vpop.eup %8007 }
0x1c88   :  { %v8010_v34 = vpop.eup %8009 }
0x1c89   :  { %v8012_v30 = vpop.eup %8011 }
0x1c8a   :  { %3749 = vrot.lane.b32.xlu1 %v8006_v52, %s8193_s16  ;;  %v8014_v35 = vpop.eup %8013 }
0x1cf4   :  { %v3744_v57 = vpop.permute.xlu0 %3743 }
0x1cf5   :  { %v3755_v27 = vmul.f32 %v8008_v11, %v3744_v57  ;;  %v7758_v57 = vld [vmem:[%s10868_s5 + $0x170] sm:$0xff]  }
0x1cf8   :  { %v3746_v62 = vpop.permute.xlu1 %3745  ;;  %v3748_v29 = vpop.permute.xlu0 %3747 }
0x1cf9   :  { %v3756_v6 = vmul.f32 %v8010_v34, %v3746_v62  ;;  %v3757_v39 = vmul.f32 %v8012_v30, %v3748_v29 }
0x1cfb   :  { %v3759_v32 = vpack.c.bf16 %v3756_v6, %v3755_v27  ;;  %v7759_v27 = vld [vmem:[%s10868_s5 + $0x168] sm:$0xff]  }
0x1cfc   :  { %v3750_v36 = vpop.permute.xlu1 %3749 }
0x1cfd   :  { %v3758_v41 = vmul.f32 %v8014_v35, %v3750_v36  ;;  %7523 = vmatprep.mubr.msk.bf16.mxu0 %vm224_vm9, %v3759_v32 }
0x1cff   :  { %v3760_v47 = vpack.c.bf16 %v3758_v41, %v3757_v39 }
0x1d01   :  { %7524 = vmatmul.mubr.msk.bf16.vlgmr.msra.gmra.mxu0 %vm224_vm9, %v3760_v47 }
0x1d02   :  { %7528 = vmatpush3.bf16.msra.mxu0 %v7755_v15 }
0x1d03   :  { %7529 = vmatprep.subr.bf16.mxu0 %v7756_v50 }
0x1d06   :  { %7530 = vmatpush3.bf16.msra.mxu0 %v7756_v50 }
0x1d07   :  { %7531 = vmatprep.subr.bf16.mxu0 %v7757_v26 }
0x1d0a   :  { %7532 = vmatpush3.bf16.msra.mxu0 %v7757_v26 }
0x1d0b   :  { %7533 = vmatprep.subr.bf16.mxu0 %v7758_v57 }
0x1d0e   :  { %7534 = vmatpush3.bf16.msra.mxu0 %v7758_v57 }
0x1d0f   :  { %7535 = vmatprep.subr.bf16.mxu0 %v7759_v27 }
0x1d12   :  { %7536 = vmatpush3.bf16.msra.mxu0 %v7759_v27 }
0x1dc1   :  { %v7525_v60 = vpop.f32.mrf.mxu0 }
0x1dc2   :  { %v9738_v44 = vadd.f32 %v7525_v60, %v6900_v37 }
0x1dc3   :  { %v3818_v3 = vpop.f32.mrf.mxu0 }
0x1dc4   :  { %v3835_v51 = vadd.f32 %v9738_v44, %v9607_v43  ;;  %v9742_v58 = vadd.f32 %v6900_v37, %v3818_v3 }
0x1dc5   :  { %v7526_v59 = vpop.f32.mrf.mxu0 }
0x1dc6   :  { %v9745_v38 = vmul.f32 %v3835_v51, %v8291_v16  ;;  %v3833_v17 = vadd.f32 %v9742_v58, %v9610_v4  ;;  %v9749_v8 = vadd.f32 %v7526_v59, %v6900_v37 }
0x1dc7   :  { %v3821_v63 = vpop.f32.mrf.mxu0 }
0x1dc8   :  { %v9752_v9 = vmul.f32 %v3833_v17, %v8296_v22  ;;  %v3836_v12 = vadd.f32 %v9749_v8, %v9615_v7  ;;  %v9756_v31 = vadd.f32 %v6900_v37, %v3821_v63  ;;  %3901 = vrot.lane.b32.xlu0 %v9745_v38, %s8188_s2  ;;  %v3855_v53 = vrot.slane %v9745_v38, 7 }
0x1dc9   :  { %v3863_v46 = vrot.slane %v9745_v38, 1  ;;  %v3871_v35 = vrot.slane %v9745_v38, 2  ;;  %v3847_v50 = vrot.slane %v9745_v38, 6 }
0x1dca   :  { %v9761_v43 = vmul.f32 %v3836_v12, %v8286_v13  ;;  %v3834_v4 = vadd.f32 %v9756_v31, %v9627_v18  ;;  %v3853_v14 = vrot.slane %v9752_v9, 7  ;;  %v3861_v28 = vrot.slane %v9752_v9, 1 }
0x1dcb   :  { %v3869_v6 = vrot.slane %v9752_v9, 2 }
0x1dcc   :  { %3903 = vrot.lane.b32.xlu1 %v9761_v43, %s8188_s2  ;;  %3897 = vrot.lane.b32.xlu0 %v9752_v9, %s8188_s2  ;;  %v3856_v7 = vrot.slane %v9761_v43, 7  ;;  %v9775_v25 = vmul.f32 %v3834_v4, %v8318_v33  ;;  %v3864_v48 = vrot.slane %v9761_v43, 1  ;;  %v3872_v32 = vrot.slane %v9761_v43, 2 }
0x1dcd   :  { %v3848_v4 = vrot.slane %v9761_v43, 6 }
0x1dce   :  { %v3860_v18 = vsel %vm331_vm2, %v3856_v7, %v3853_v14  ;;  %v3857_v10 = vsel %vm331_vm2, %v3855_v53, %v3856_v7  ;;  %v3865_v56 = vsel %vm340_vm3, %v3863_v46, %v3864_v48  ;;  %v3854_v23 = vrot.slane %v9775_v25, 7 }
0x1dcf   :  { %v3868_v20 = vsel %vm340_vm3, %v3864_v48, %v3861_v28  ;;  %v3862_v52 = vrot.slane %v9775_v25, 1  ;;  %v3870_v62 = vrot.slane %v9775_v25, 2  ;;  %v3873_v36 = vsel %vm349_vm4, %v3871_v35, %v3872_v32 }
0x1dd0   :  { %3899 = vrot.lane.b32.xlu1 %v9775_v25, %s8188_s2  ;;  %3881 = vrot.lane.b32.xlu0 %v3860_v18, %s8189_s22  ;;  %v3858_v55 = vsel %vm331_vm2, %v3854_v23, %v3855_v53  ;;  %v3859_v34 = vsel %vm331_vm2, %v3853_v14, %v3854_v23  ;;  %v3876_v41 = vsel %vm349_vm4, %v3872_v32, %v3869_v6  ;;  %v3845_v14 = vrot.slane %v9752_v9, 6 }
0x1dd1   :  { %v3867_v11 = vsel %vm340_vm3, %v3861_v28, %v3862_v52  ;;  %v3875_v29 = vsel %vm349_vm4, %v3869_v6, %v3870_v62  ;;  %v3866_v30 = vsel %vm340_vm3, %v3862_v52, %v3863_v46  ;;  %v3874_v39 = vsel %vm349_vm4, %v3870_v62, %v3871_v35 }
0x1dd2   :  { %v3846_v7 = vrot.slane %v9775_v25, 6  ;;  %v3852_v48 = vsel %vm322_vm10, %v3848_v4, %v3845_v14  ;;  %v3849_v52 = vsel %vm322_vm10, %v3847_v50, %v3848_v4 }
0x1dd4   :  { %3887 = vrot.lane.b32.xlu1 %v3857_v10, %s8189_s22  ;;  %3917 = vrot.lane.b32.xlu0 %v3865_v56, %s8190_s23  ;;  %v3850_v46 = vsel %vm322_vm10, %v3846_v7, %v3847_v50  ;;  %v3851_v10 = vsel %vm322_vm10, %v3845_v14, %v3846_v7 }
0x1dd8   :  { %3919 = vrot.lane.b32.xlu1 %v3868_v20, %s8190_s23  ;;  %3885 = vrot.lane.b32.xlu0 %v3858_v55, %s8189_s22 }
0x1ddc   :  { %3913 = vrot.lane.b32.xlu0 %v3867_v11, %s8190_s23  ;;  %3883 = vrot.lane.b32.xlu1 %v3859_v34, %s8189_s22 }
0x1de0   :  { %3929 = vrot.lane.b32.xlu0 %v3875_v29, %s8191_s30  ;;  %3915 = vrot.lane.b32.xlu1 %v3866_v30, %s8190_s23 }
0x1de4   :  { %3933 = vrot.lane.b32.xlu0 %v3873_v36, %s8191_s30  ;;  %3931 = vrot.lane.b32.xlu1 %v3874_v39, %s8191_s30 }
0x1de8   :  { %3935 = vrot.lane.b32.xlu1 %v3876_v41, %s8191_s30 }
0x1e3a   :  { %v3902_v47 = vpop.permute.xlu0 %3901 }
0x1e3e   :  { %v3904_v37 = vpop.permute.xlu1 %3903  ;;  %v3898_v60 = vpop.permute.xlu0 %3897 }
0x1e42   :  { %v3900_v3 = vpop.permute.xlu1 %3899  ;;  %v3882_v51 = vpop.permute.xlu0 %3881 }
0x1e43   :  { %v3941_v53 = vsel %vm224_vm9, %v3852_v48, %v3882_v51 }
0x1e44   :  { %v3945_v20 = vsel %vm229_vm12, %v3941_v53, %v3898_v60 }
0x1e46   :  { %v3888_v59 = vpop.permute.xlu1 %3887  ;;  %v3918_v17 = vpop.permute.xlu0 %3917 }
0x1e47   :  { %v3944_v62 = vsel %vm224_vm9, %v3849_v52, %v3888_v59 }
0x1e48   :  { %v3948_v39 = vsel %vm229_vm12, %v3944_v62, %v3904_v37  ;;  %v6915_v37 = vld [vmem:[%s10869_s6 + $0x9] ss:$0 sm:$0xff] }
0x1e4a   :  { %v3920_v63 = vpop.permute.xlu1 %3919  ;;  %v3886_v12 = vpop.permute.xlu0 %3885 }
0x1e4b   :  { %v3943_v56 = vsel %vm224_vm9, %v3850_v46, %v3886_v12 }
0x1e4c   :  { %v3947_v57 = vsel %vm229_vm12, %v3943_v56, %v3902_v47  ;;  %v3952_v47 = vsel %vm234_vm14, %v3948_v39, %v3920_v63 }
0x1e4d   :  { %v3951_v35 = vsel %vm234_vm14, %v3947_v57, %v3918_v17  ;;  %v7760_v57 = vld [vmem:[%s10870_s7 + $0x48] sm:$0xff]  }
0x1e4e   :  { %v3914_v15 = vpop.permute.xlu0 %3913  ;;  %v3884_v18 = vpop.permute.xlu1 %3883  ;;  %7541 = vmatprep.subr.bf16.mxu1 %v7760_v57 }
0x1e4f   :  { %v3942_v23 = vsel %vm224_vm9, %v3851_v10, %v3884_v18  ;;  %v3949_v55 = vsel %vm234_vm14, %v3945_v20, %v3914_v15  ;;  %7542 = vmatpush3.bf16.msra.mxu1 %v7760_v57  ;;  %v7762_v57 = vld [vmem:[%s10868_s5 + $0x1a8] sm:$0xff]  }
0x1e50   :  { %v3946_v34 = vsel %vm229_vm12, %v3942_v23, %v3900_v3 }
0x1e52   :  { %v3930_v26 = vpop.permute.xlu0 %3929  ;;  %v3916_v28 = vpop.permute.xlu1 %3915 }
0x1e53   :  { %v3953_v11 = vsel %vm239_vm5, %v3949_v55, %v3930_v26  ;;  %v3950_v27 = vsel %vm234_vm14, %v3946_v34, %v3916_v28 }
0x1e54   :  { %v3957_v32 = vmul.f32 %v3953_v11, %v8419_v49 }
0x1e56   :  { %v3934_v6 = vpop.permute.xlu0 %3933  ;;  %v3932_v29 = vpop.permute.xlu1 %3931 }
0x1e57   :  { %v3954_v30 = vsel %vm239_vm5, %v3950_v27, %v3932_v29  ;;  %v3955_v41 = vsel %vm239_vm5, %v3951_v35, %v3934_v6 }
0x1e58   :  { %v3958_v36 = vmul.f32 %v3954_v30, %v8426_v54  ;;  %v3959_v59 = vmul.f32 %v3955_v41, %v8434_v1 }
0x1e5a   :  { %v3961_v60 = vpack.c.bf16 %v3958_v36, %v3957_v32  ;;  %v3936_v3 = vpop.permute.xlu1 %3935 }
0x1e5b   :  { %v3956_v51 = vsel %vm239_vm5, %v3952_v47, %v3936_v3 }
0x1e5c   :  { %v3960_v12 = vmul.f32 %v3956_v51, %v8443_v5  ;;  %7537 = vmatprep.mubr.msk.bf16.mxu0 %vm487_vm7, %v3961_v60 }
0x1e5e   :  { %v3962_v4 = vpack.c.bf16 %v3960_v12, %v3959_v59 }
0x1e60   :  { %7538 = vmatmul.mubr.msk.bf16.vlgmr.msra.gmra.mxu0 %vm487_vm7, %v3962_v4 }
0x1f20   :  { %v7539_v17 = vpop.f32.mrf.mxu0 }
0x1f21   :  { %v4061_v14 = vadd.f32 %v7539_v17, %v6915_v37  ;;  %v6930_v17 = vld [vmem:[%s10871_s8 + $0x9] ss:$0 sm:$0xff] }
0x1f22   :  { %v4052_v63 = vpop.f32.mrf.mxu0 }
0x1f23   :  { %v6925_v7 = vmul.f32 -1.442695, %v4061_v14  ;;  %v4053_v15 = vadd.f32 %v6915_v37, %v4052_v63 }
0x1f24   :  { %v7540_v18 = vpop.f32.mrf.mxu0 }
0x1f25   :  { %v6923_v48 = vmul.f32 -1.442695, %v4053_v15  ;;  %v4064_v50 = vadd.f32 %v7540_v18, %v6915_v37  ;;  %8015 = vpow2.f32 %v6925_v7 }
0x1f26   :  { %v4055_v53 = vpop.f32.mrf.mxu0 }
0x1f27   :  { %8017 = vpow2.f32 %v6923_v48  ;;  %v6926_v46 = vmul.f32 -1.442695, %v4064_v50  ;;  %v4056_v10 = vadd.f32 %v6915_v37, %v4055_v53 }
0x1f29   :  { %v6924_v56 = vmul.f32 -1.442695, %v4056_v10  ;;  %8019 = vpow2.f32 %v6926_v46 }
0x1f2b   :  { %8021 = vpow2.f32 %v6924_v56 }
0x1f32   :  { %v8016_v23 = vpop.eup %8015 }
0x1f33   :  { %v4085_v20 = vadd.f32 1.0, %v8016_v23 }
0x1f34   :  { %v8018_v26 = vpop.eup %8017 }
0x1f35   :  { %v4083_v28 = vadd.f32 1.0, %v8018_v26 }
0x1f36   :  { %v8020_v55 = vpop.eup %8019 }
0x1f37   :  { %8023 = vrcp.f32 %v4083_v28  ;;  %v4086_v34 = vadd.f32 1.0, %v8020_v55 }
0x1f38   :  { %v8022_v52 = vpop.eup %8021  ;;  %8025 = vrcp.f32 %v4085_v20  ;;  %v7761_v20 = vld [vmem:[%s10868_s5 + $0x1b0] sm:$0xff]  }
0x1f39   :  { %v4084_v11 = vadd.f32 1.0, %v8022_v52  ;;  %7547 = vmatprep.subr.bf16.mxu1 %v7761_v20 }
0x1f3b   :  { %8027 = vrcp.f32 %v4084_v11 }
0x1f3c   :  { %8029 = vrcp.f32 %v4086_v34 }
0x1f3d   :  { %8031 = vtanh.f32 %v4053_v15 }
0x1f3e   :  { %8033 = vtanh.f32 %v4056_v10 }
0x1f3f   :  { %8035 = vtanh.f32 %v4061_v14 }
0x1f40   :  { %8037 = vtanh.f32 %v4064_v50 }
0x1f44   :  { %v8024_v62 = vpop.eup %8023 }
0x1f45   :  { %4099 = vrot.lane.b32.xlu0 %v8024_v62, %s8193_s16  ;;  %v8026_v27 = vpop.eup %8025 }
0x1f48   :  { %v8028_v6 = vpop.eup %8027 }
0x1f49   :  { %4101 = vrot.lane.b32.xlu1 %v8028_v6, %s8193_s16  ;;  %4103 = vrot.lane.b32.xlu0 %v8026_v27, %s8193_s16  ;;  %v8030_v29 = vpop.eup %8029 }
0x1f4a   :  { %v8032_v32 = vpop.eup %8031 }
0x1f4b   :  { %v8034_v35 = vpop.eup %8033 }
0x1f4c   :  { %v8036_v60 = vpop.eup %8035 }
0x1f4d   :  { %4105 = vrot.lane.b32.xlu1 %v8030_v29, %s8193_s16  ;;  %v8038_v51 = vpop.eup %8037  ;;  %v7763_v29 = vld [vmem:[%s10868_s5 + $0x1a0] sm:$0xff]  }
0x1fb7   :  { %v4100_v30 = vpop.permute.xlu0 %4099 }
0x1fb8   :  { %v4111_v39 = vmul.f32 %v8032_v32, %v4100_v30 }
0x1fbb   :  { %v4102_v36 = vpop.permute.xlu1 %4101  ;;  %v4104_v47 = vpop.permute.xlu0 %4103 }
0x1fbc   :  { %v4112_v41 = vmul.f32 %v8034_v35, %v4102_v36  ;;  %v4113_v12 = vmul.f32 %v8036_v60, %v4104_v47 }
0x1fbe   :  { %v4115_v3 = vpack.c.bf16 %v4112_v41, %v4111_v39  ;;  %v7764_v39 = vld [vmem:[%s10868_s5 + $0x198] sm:$0xff]  }
0x1fbf   :  { %v4106_v59 = vpop.permute.xlu1 %4105 }
0x1fc0   :  { %v4114_v4 = vmul.f32 %v8038_v51, %v4106_v59  ;;  %7543 = vmatprep.mubr.msk.bf16.mxu1 %vm224_vm9, %v4115_v3  ;;  %v7765_v3 = vld [vmem:[%s10868_s5 + $0x190] sm:$0xff]  }
0x1fc2   :  { %v4116_v37 = vpack.c.bf16 %v4114_v4, %v4113_v12 }
0x1fc4   :  { %7544 = vmatmul.mubr.msk.bf16.vlgmr.msra.gmra.mxu1 %vm224_vm9, %v4116_v37 }
0x1fc5   :  { %7548 = vmatpush3.bf16.msra.mxu1 %v7761_v20 }
0x1fc6   :  { %7549 = vmatprep.subr.bf16.mxu1 %v7762_v57 }
0x1fc9   :  { %7550 = vmatpush3.bf16.msra.mxu1 %v7762_v57 }
0x1fca   :  { %7551 = vmatprep.subr.bf16.mxu1 %v7763_v29 }
0x1fcd   :  { %7552 = vmatpush3.bf16.msra.mxu1 %v7763_v29 }
0x1fce   :  { %7553 = vmatprep.subr.bf16.mxu1 %v7764_v39 }
0x1fd1   :  { %7554 = vmatpush3.bf16.msra.mxu1 %v7764_v39 }
0x1fd2   :  { %7555 = vmatprep.subr.bf16.mxu1 %v7765_v3 }
0x1fd5   :  { %7556 = vmatpush3.bf16.msra.mxu1 %v7765_v3 }
0x2084   :  { %v7545_v14 = vpop.f32.mrf.mxu1 }
0x2085   :  { %v9886_v63 = vadd.f32 %v7545_v14, %v6930_v17 }
0x2086   :  { %v4174_v7 = vpop.f32.mrf.mxu1 }
0x2087   :  { %v4191_v15 = vadd.f32 %v9886_v63, %v9745_v38  ;;  %v9890_v18 = vadd.f32 %v6930_v17, %v4174_v7 }
0x2088   :  { %v7546_v48 = vpop.f32.mrf.mxu1 }
0x2089   :  { %v9893_v50 = vmul.f32 %v4191_v15, %v8291_v16  ;;  %v4189_v53 = vadd.f32 %v9890_v18, %v9752_v9  ;;  %v9897_v46 = vadd.f32 %v7546_v48, %v6930_v17 }
0x208a   :  { %v4177_v10 = vpop.f32.mrf.mxu1 }
0x208b   :  { %v9900_v56 = vmul.f32 %v4189_v53, %v8296_v22  ;;  %v4192_v23 = vadd.f32 %v9897_v46, %v9761_v43  ;;  %v9904_v26 = vadd.f32 %v6930_v17, %v4177_v10  ;;  %4257 = vrot.lane.b32.xlu0 %v9893_v50, %s8188_s2  ;;  %v4211_v11 = vrot.slane %v9893_v50, 7 }
0x208c   :  { %v4219_v34 = vrot.slane %v9893_v50, 1  ;;  %v4227_v37 = vrot.slane %v9893_v50, 2 }
0x208d   :  { %v9909_v38 = vmul.f32 %v4192_v23, %v8286_v13  ;;  %v4190_v9 = vadd.f32 %v9904_v26, %v9775_v25  ;;  %v4209_v28 = vrot.slane %v9900_v56, 7  ;;  %v4217_v30 = vrot.slane %v9900_v56, 1 }
0x208e   :  { %v4225_v51 = vrot.slane %v9900_v56, 2 }
0x208f   :  { %4259 = vrot.lane.b32.xlu1 %v9909_v38, %s8188_s2  ;;  %4253 = vrot.lane.b32.xlu0 %v9900_v56, %s8188_s2  ;;  %v4212_v43 = vrot.slane %v9909_v38, 7  ;;  %v9923_v55 = vmul.f32 %v4190_v9, %v8318_v33  ;;  %v4220_v52 = vrot.slane %v9909_v38, 1  ;;  %v4228_v4 = vrot.slane %v9909_v38, 2 }
0x2091   :  { %v4216_v25 = vsel %vm331_vm2, %v4212_v43, %v4209_v28  ;;  %v4213_v62 = vsel %vm331_vm2, %v4211_v11, %v4212_v43  ;;  %v4221_v27 = vsel %vm340_vm3, %v4219_v34, %v4220_v52  ;;  %v4210_v6 = vrot.slane %v9923_v55, 7 }
0x2092   :  { %v4224_v32 = vsel %vm340_vm3, %v4220_v52, %v4217_v30  ;;  %v4218_v36 = vrot.slane %v9923_v55, 1  ;;  %v4226_v60 = vrot.slane %v9923_v55, 2  ;;  %v4229_v17 = vsel %vm349_vm4, %v4227_v37, %v4228_v4 }
0x2093   :  { %4255 = vrot.lane.b32.xlu1 %v9923_v55, %s8188_s2  ;;  %4237 = vrot.lane.b32.xlu0 %v4216_v25, %s8189_s22  ;;  %v4214_v35 = vsel %vm331_vm2, %v4210_v6, %v4211_v11  ;;  %v4215_v47 = vsel %vm331_vm2, %v4209_v28, %v4210_v6  ;;  %v4232_v7 = vsel %vm349_vm4, %v4228_v4, %v4225_v51  ;;  %v4204_v25 = vrot.slane %v9909_v38, 6 }
0x2094   :  { %v4223_v41 = vsel %vm340_vm3, %v4217_v30, %v4218_v36  ;;  %v4231_v59 = vsel %vm349_vm4, %v4225_v51, %v4226_v60  ;;  %v4222_v12 = vsel %vm340_vm3, %v4218_v36, %v4219_v34  ;;  %v4230_v14 = vsel %vm349_vm4, %v4226_v60, %v4227_v37 }
0x2095   :  { %v4201_v52 = vrot.slane %v9900_v56, 6  ;;  %v4202_v57 = vrot.slane %v9923_v55, 6 }
0x2097   :  { %4243 = vrot.lane.b32.xlu1 %v4213_v62, %s8189_s22  ;;  %4273 = vrot.lane.b32.xlu0 %v4221_v27, %s8190_s23  ;;  %v4208_v62 = vsel %vm322_vm10, %v4204_v25, %v4201_v52  ;;  %v4203_v27 = vrot.slane %v9893_v50, 6  ;;  %v4207_v30 = vsel %vm322_vm10, %v4201_v52, %v4202_v57 }
0x2099   :  { %v4206_v29 = vsel %vm322_vm10, %v4202_v57, %v4203_v27  ;;  %v4205_v60 = vsel %vm322_vm10, %v4203_v27, %v4204_v25 }
0x209b   :  { %4275 = vrot.lane.b32.xlu1 %v4224_v32, %s8190_s23  ;;  %4241 = vrot.lane.b32.xlu0 %v4214_v35, %s8189_s22 }
0x209f   :  { %4269 = vrot.lane.b32.xlu0 %v4223_v41, %s8190_s23  ;;  %4239 = vrot.lane.b32.xlu1 %v4215_v47, %s8189_s22 }
0x20a3   :  { %4285 = vrot.lane.b32.xlu0 %v4231_v59, %s8191_s30  ;;  %4271 = vrot.lane.b32.xlu1 %v4222_v12, %s8190_s23 }
0x20a7   :  { %4289 = vrot.lane.b32.xlu0 %v4229_v17, %s8191_s30  ;;  %4287 = vrot.lane.b32.xlu1 %v4230_v14, %s8191_s30 }
0x20ab   :  { %4291 = vrot.lane.b32.xlu1 %v4232_v7, %s8191_s30 }
0x20fd   :  { %v4258_v15 = vpop.permute.xlu0 %4257 }
0x2101   :  { %v4260_v48 = vpop.permute.xlu1 %4259  ;;  %v4254_v53 = vpop.permute.xlu0 %4253 }
0x2105   :  { %v4256_v10 = vpop.permute.xlu1 %4255  ;;  %v4238_v23 = vpop.permute.xlu0 %4237 }
0x2106   :  { %v4297_v6 = vsel %vm224_vm9, %v4208_v62, %v4238_v23 }
0x2107   :  { %v4301_v41 = vsel %vm229_vm12, %v4297_v6, %v4254_v53 }
0x2109   :  { %v4244_v9 = vpop.permute.xlu1 %4243  ;;  %v4274_v28 = vpop.permute.xlu0 %4273 }
0x210a   :  { %v4300_v12 = vsel %vm224_vm9, %v4205_v60, %v4244_v9 }
0x210d   :  { %v4276_v43 = vpop.permute.xlu1 %4275  ;;  %v4242_v20 = vpop.permute.xlu0 %4241 }
0x210e   :  { %v4299_v32 = vsel %vm224_vm9, %v4206_v29, %v4242_v20 }
0x210f   :  { %v4303_v3 = vsel %vm229_vm12, %v4299_v32, %v4258_v15  ;;  %v4304_v15 = vsel %vm229_vm12, %v4300_v12, %v4260_v48  ;;  %v6945_v48 = vld [vmem:[%s10869_s6 + $0xa] ss:$0 sm:$0xff] }
0x2110   :  { %v4307_v53 = vsel %vm234_vm14, %v4303_v3, %v4274_v28 }
0x2111   :  { %v4270_v11 = vpop.permute.xlu0 %4269  ;;  %v4240_v34 = vpop.permute.xlu1 %4239 }
0x2112   :  { %v4298_v35 = vsel %vm224_vm9, %v4207_v30, %v4240_v34  ;;  %v4305_v47 = vsel %vm234_vm14, %v4301_v41, %v4270_v11 }
0x2113   :  { %v4302_v59 = vsel %vm229_vm12, %v4298_v35, %v4256_v10  ;;  %v4308_v10 = vsel %vm234_vm14, %v4304_v15, %v4276_v43 }
0x2115   :  { %v4286_v36 = vpop.permute.xlu0 %4285  ;;  %v4272_v39 = vpop.permute.xlu1 %4271 }
0x2116   :  { %v4309_v51 = vsel %vm239_vm5, %v4305_v47, %v4286_v36  ;;  %v4306_v4 = vsel %vm234_vm14, %v4302_v59, %v4272_v39 }
0x2117   :  { %v4313_v7 = vmul.f32 %v4309_v51, %v8419_v49 }
0x2119   :  { %v4290_v37 = vpop.permute.xlu0 %4289  ;;  %v4288_v17 = vpop.permute.xlu1 %4287 }
0x211a   :  { %v4310_v14 = vsel %vm239_vm5, %v4306_v4, %v4288_v17  ;;  %v4311_v20 = vsel %vm239_vm5, %v4307_v53, %v4290_v37  ;;  %v7766_v4 = vld [vmem:[%s10870_s7 + $0x50] sm:$0xff]  }
0x211b   :  { %v4314_v23 = vmul.f32 %v4310_v14, %v8426_v54  ;;  %v4315_v57 = vmul.f32 %v4311_v20, %v8434_v1  ;;  %7561 = vmatprep.subr.bf16.mxu0 %v7766_v4 }
0x211c   :  { %7562 = vmatpush3.bf16.msra.mxu0 %v7766_v4 }
0x211d   :  { %v4317_v25 = vpack.c.bf16 %v4314_v23, %v4313_v7  ;;  %v4292_v9 = vpop.permute.xlu1 %4291 }
0x211e   :  { %v4312_v52 = vsel %vm239_vm5, %v4308_v10, %v4292_v9 }
0x211f   :  { %v4316_v11 = vmul.f32 %v4312_v52, %v8443_v5  ;;  %7557 = vmatprep.mubr.msk.bf16.mxu1 %vm487_vm7, %v4317_v25 }
0x2121   :  { %v4318_v34 = vpack.c.bf16 %v4316_v11, %v4315_v57 }
0x2123   :  { %7558 = vmatmul.mubr.msk.bf16.vlgmr.msra.gmra.mxu1 %vm487_vm7, %v4318_v34 }
0x21e3   :  { %v7559_v28 = vpop.f32.mrf.mxu1 }
0x21e4   :  { %v4417_v62 = vadd.f32 %v7559_v28, %v6945_v48 }
0x21e5   :  { %v4408_v43 = vpop.f32.mrf.mxu1 }
0x21e6   :  { %v6955_v27 = vmul.f32 -1.442695, %v4417_v62  ;;  %v4409_v6 = vadd.f32 %v6945_v48, %v4408_v43 }
0x21e7   :  { %v7560_v29 = vpop.f32.mrf.mxu1 }
0x21e8   :  { %v6953_v30 = vmul.f32 -1.442695, %v4409_v6  ;;  %v4420_v32 = vadd.f32 %v7560_v29, %v6945_v48  ;;  %8039 = vpow2.f32 %v6955_v27 }
0x21e9   :  { %v4411_v35 = vpop.f32.mrf.mxu1 }
0x21ea   :  { %8041 = vpow2.f32 %v6953_v30  ;;  %v6956_v36 = vmul.f32 -1.442695, %v4420_v32  ;;  %v4412_v39 = vadd.f32 %v6945_v48, %v4411_v35  ;;  %v4199_v30 = vadd.f32 %v9886_v63, %v9738_v44 }
0x21ec   :  { %v6954_v41 = vmul.f32 -1.442695, %v4412_v39  ;;  %8043 = vpow2.f32 %v6956_v36  ;;  %v4197_v36 = vadd.f32 %v9890_v18, %v9742_v58  ;;  %v4198_v58 = vadd.f32 %v9904_v26, %v9756_v31 }
0x21ee   :  { %8045 = vpow2.f32 %v6954_v41 }
0x21f5   :  { %v8040_v47 = vpop.eup %8039 }
0x21f6   :  { %v4441_v51 = vadd.f32 1.0, %v8040_v47 }
0x21f7   :  { %v8042_v60 = vpop.eup %8041 }
0x21f8   :  { %v4439_v3 = vadd.f32 1.0, %v8042_v60  ;;  %v4200_v60 = vadd.f32 %v9897_v46, %v9749_v8 }
0x21f9   :  { %v8044_v59 = vpop.eup %8043 }
0x21fa   :  { %8047 = vrcp.f32 %v4439_v3  ;;  %v4442_v17 = vadd.f32 1.0, %v8044_v59 }
0x21fb   :  { %v8046_v12 = vpop.eup %8045  ;;  %8049 = vrcp.f32 %v4441_v51 }
0x21fc   :  { %v4440_v37 = vadd.f32 1.0, %v8046_v12 }
0x21fe   :  { %8051 = vrcp.f32 %v4440_v37 }
0x21ff   :  { %8053 = vrcp.f32 %v4442_v17  ;;  %v7767_v17 = vld [vmem:[%s10868_s5 + $0x1d8] sm:$0xff]  }
0x2200   :  { %8055 = vtanh.f32 %v4409_v6  ;;  %7567 = vmatprep.subr.bf16.mxu0 %v7767_v17 }
0x2201   :  { %8057 = vtanh.f32 %v4412_v39 }
0x2202   :  { %8059 = vtanh.f32 %v4417_v62  ;;  %v6960_v62 = vld [vmem:[%s10871_s8 + $0xa] ss:$0 sm:$0xff] }
0x2203   :  { %8061 = vtanh.f32 %v4420_v32 }
0x2207   :  { %v8048_v14 = vpop.eup %8047 }
0x2208   :  { %4455 = vrot.lane.b32.xlu0 %v8048_v14, %s8193_s16  ;;  %v8050_v7 = vpop.eup %8049 }
0x220b   :  { %v8052_v53 = vpop.eup %8051 }
0x220c   :  { %4457 = vrot.lane.b32.xlu1 %v8052_v53, %s8193_s16  ;;  %4459 = vrot.lane.b32.xlu0 %v8050_v7, %s8193_s16  ;;  %v8054_v23 = vpop.eup %8053 }
0x220d   :  { %v8056_v20 = vpop.eup %8055 }
0x220e   :  { %v8058_v10 = vpop.eup %8057 }
0x220f   :  { %v8060_v11 = vpop.eup %8059 }
0x2210   :  { %4461 = vrot.lane.b32.xlu1 %v8054_v23, %s8193_s16  ;;  %v8062_v48 = vpop.eup %8061 }
0x227a   :  { %v4456_v15 = vpop.permute.xlu0 %4455 }
0x227b   :  { %v4467_v9 = vmul.f32 %v8056_v20, %v4456_v15  ;;  %v7768_v15 = vld [vmem:[%s10868_s5 + $0x1d0] sm:$0xff]  }
0x227e   :  { %v4458_v25 = vpop.permute.xlu1 %4457  ;;  %v4460_v57 = vpop.permute.xlu0 %4459 }
0x227f   :  { %v4468_v52 = vmul.f32 %v8058_v10, %v4458_v25  ;;  %v4469_v43 = vmul.f32 %v8060_v11, %v4460_v57 }
0x2281   :  { %v4471_v34 = vpack.c.bf16 %v4468_v52, %v4467_v9 }
0x2282   :  { %v4462_v28 = vpop.permute.xlu1 %4461 }
0x2283   :  { %v4470_v27 = vmul.f32 %v8062_v48, %v4462_v28  ;;  %7563 = vmatprep.mubr.msk.bf16.mxu0 %vm224_vm9, %v4471_v34 }
0x2285   :  { %v4472_v29 = vpack.c.bf16 %v4470_v27, %v4469_v43  ;;  %v7769_v43 = vld [vmem:[%s10868_s5 + $0x1c8] sm:$0xff]  }
0x2287   :  { %7564 = vmatmul.mubr.msk.bf16.vlgmr.msra.gmra.mxu0 %vm224_vm9, %v4472_v29 }
0x2288   :  { %7568 = vmatpush3.bf16.msra.mxu0 %v7767_v17 }
0x2289   :  { %7569 = vmatprep.subr.bf16.mxu0 %v7768_v15 }
0x228c   :  { %7570 = vmatpush3.bf16.msra.mxu0 %v7768_v15 }
0x228d   :  { %7571 = vmatprep.subr.bf16.mxu0 %v7769_v43 }
0x2290   :  { %7572 = vmatpush3.bf16.msra.mxu0 %v7769_v43 }
0x2347   :  { %v7565_v6 = vpop.f32.mrf.mxu0 }
0x2348   :  { %v4539_v32 = vadd.f32 %v7565_v6, %v6960_v62 }
0x2349   :  { %v4530_v35 = vpop.f32.mrf.mxu0 }
0x234a   :  { %v4547_v39 = vadd.f32 %v4539_v32, %v9893_v50  ;;  %v10039_v41 = vadd.f32 %v4539_v32, %v4199_v30  ;;  %v4531_v47 = vadd.f32 %v6960_v62, %v4530_v35  ;;  %v7770_v30 = vld [vmem:[%s10868_s5 + $0x1c0] sm:$0xff]  }
0x234b   :  { %v7566_v3 = vpop.f32.mrf.mxu0  ;;  %7573 = vmatprep.subr.bf16.mxu0 %v7770_v30 }
0x234c   :  { %v10044_v51 = vmul.f32 %v4547_v39, %v8291_v16  ;;  %v4545_v59 = vadd.f32 %v4531_v47, %v9900_v56  ;;  %v10047_v44 = vadd.f32 %v4531_v47, %v4197_v36  ;;  %v4542_v63 = vadd.f32 %v7566_v3, %v6960_v62  ;;  %7574 = vmatpush3.bf16.msra.mxu0 %v7770_v30  ;;  %v7771_v39 = vld [vmem:[%s10868_s5 + $0x1b8] sm:$0xff]  }
0x234d   :  { %v4533_v18 = vpop.f32.mrf.mxu0  ;;  %7575 = vmatprep.subr.bf16.mxu0 %v7771_v39 }
0x234e   :  { %v10052_v50 = vmul.f32 %v4545_v59, %v8296_v22  ;;  %v4548_v12 = vadd.f32 %v4542_v63, %v9909_v38  ;;  %v10055_v4 = vadd.f32 %v4542_v63, %v4200_v60  ;;  %v4534_v8 = vadd.f32 %v6960_v62, %v4533_v18  ;;  %4613 = vrot.lane.b32.xlu0 %v10044_v51, %s8188_s2 }
0x234f   :  { %v4559_v53 = vrot.slane %v10044_v51, 6  ;;  %v4567_v9 = vrot.slane %v10044_v51, 7  ;;  %v4575_v52 = vrot.slane %v10044_v51, 1  ;;  %v4583_v63 = vrot.slane %v10044_v51, 2 }
0x2350   :  { %v10060_v46 = vmul.f32 %v4548_v12, %v8286_v13  ;;  %v4546_v56 = vadd.f32 %v4534_v8, %v9923_v55  ;;  %v10063_v37 = vadd.f32 %v4534_v8, %v4198_v58  ;;  %v4565_v26 = vrot.slane %v10052_v50, 7  ;;  %7576 = vmatpush3.bf16.msra.mxu0 %v7771_v39 }
0x2351   :  { %v4557_v7 = vrot.slane %v10052_v50, 6  ;;  %v4573_v27 = vrot.slane %v10052_v50, 1  ;;  %v4581_v47 = vrot.slane %v10052_v50, 2 }
0x2352   :  { %v4550_v31 = vmul.f32 %v4546_v56, %v8318_v33  ;;  %4615 = vrot.lane.b32.xlu1 %v10060_v46, %s8188_s2  ;;  %4609 = vrot.lane.b32.xlu0 %v10052_v50, %s8188_s2  ;;  %v4568_v38 = vrot.slane %v10060_v46, 7  ;;  %v4560_v55 = vrot.slane %v10060_v46, 6  ;;  %v4576_v23 = vrot.slane %v10060_v46, 1 }
0x2353   :  { %v4584_v59 = vrot.slane %v10060_v46, 2 }
0x2354   :  { %v4572_v14 = vsel %vm331_vm2, %v4568_v38, %v4565_v26  ;;  %v4564_v20 = vsel %vm322_vm10, %v4560_v55, %v4557_v7  ;;  %v10090_v10 = vsel %vm322_vm10, %v4559_v53, %v4560_v55  ;;  %v4558_v25 = vrot.slane %v4550_v31, 6 }
0x2355   :  { %v4569_v34 = vsel %vm331_vm2, %v4567_v9, %v4568_v38  ;;  %v4577_v48 = vsel %vm340_vm3, %v4575_v52, %v4576_v23  ;;  %v4566_v28 = vrot.slane %v4550_v31, 7  ;;  %v4580_v29 = vsel %vm340_vm3, %v4576_v23, %v4573_v27 }
0x2356   :  { %4611 = vrot.lane.b32.xlu1 %v4550_v31, %s8188_s2  ;;  %4593 = vrot.lane.b32.xlu0 %v4572_v14, %s8189_s22  ;;  %v4562_v57 = vsel %vm322_vm10, %v4558_v25, %v4559_v53  ;;  %v4563_v11 = vsel %vm322_vm10, %v4557_v7, %v4558_v25  ;;  %v4574_v6 = vrot.slane %v4550_v31, 1  ;;  %v4582_v36 = vrot.slane %v4550_v31, 2 }
0x2357   :  { %v4570_v62 = vsel %vm331_vm2, %v4566_v28, %v4567_v9  ;;  %v4571_v35 = vsel %vm331_vm2, %v4565_v26, %v4566_v28  ;;  %v4585_v58 = vsel %vm349_vm4, %v4583_v63, %v4584_v59  ;;  %v4588_v50 = vsel %vm349_vm4, %v4584_v59, %v4581_v47  ;;  %v6975_v59 = vld [vmem:[%s10869_s6 + $0xb] ss:$0 sm:$0xff] }
0x2358   :  { %v4579_v32 = vsel %vm340_vm3, %v4573_v27, %v4574_v6  ;;  %v4587_v60 = vsel %vm349_vm4, %v4581_v47, %v4582_v36  ;;  %v4578_v3 = vsel %vm340_vm3, %v4574_v6, %v4575_v52  ;;  %v4586_v18 = vsel %vm349_vm4, %v4582_v36, %v4583_v63 }
0x235a   :  { %4599 = vrot.lane.b32.xlu1 %v4569_v34, %s8189_s22  ;;  %4629 = vrot.lane.b32.xlu0 %v4577_v48, %s8190_s23 }
0x235e   :  { %4631 = vrot.lane.b32.xlu1 %v4580_v29, %s8190_s23  ;;  %4597 = vrot.lane.b32.xlu0 %v4570_v62, %s8189_s22 }
0x2362   :  { %4625 = vrot.lane.b32.xlu0 %v4579_v32, %s8190_s23  ;;  %4595 = vrot.lane.b32.xlu1 %v4571_v35, %s8189_s22 }
0x2366   :  { %4641 = vrot.lane.b32.xlu0 %v4587_v60, %s8191_s30  ;;  %4627 = vrot.lane.b32.xlu1 %v4578_v3, %s8190_s23 }
0x236a   :  { %4645 = vrot.lane.b32.xlu0 %v4585_v58, %s8191_s30  ;;  %4643 = vrot.lane.b32.xlu1 %v4586_v18, %s8191_s30 }
0x236e   :  { %4647 = vrot.lane.b32.xlu1 %v4588_v50, %s8191_s30 }
0x23c0   :  { %v4614_v12 = vpop.permute.xlu0 %4613 }
0x23c4   :  { %v4616_v8 = vpop.permute.xlu1 %4615  ;;  %v4610_v46 = vpop.permute.xlu0 %4609 }
0x23c8   :  { %v4612_v56 = vpop.permute.xlu1 %4611  ;;  %v4594_v51 = vpop.permute.xlu0 %4593 }
0x23c9   :  { %v4653_v7 = vsel %vm224_vm9, %v4564_v20, %v4594_v51 }
0x23ca   :  { %v4657_v9 = vsel %vm229_vm12, %v4653_v7, %v4610_v46 }
0x23cc   :  { %v4600_v31 = vpop.permute.xlu1 %4599  ;;  %v4630_v26 = vpop.permute.xlu0 %4629 }
0x23cd   :  { %v4656_v43 = vsel %vm224_vm9, %v10090_v10, %v4600_v31 }
0x23ce   :  { %v4660_v30 = vsel %vm229_vm12, %v4656_v43, %v4616_v8 }
0x23d0   :  { %v4632_v38 = vpop.permute.xlu1 %4631  ;;  %v4598_v17 = vpop.permute.xlu0 %4597 }
0x23d1   :  { %v4655_v53 = vsel %vm224_vm9, %v4562_v57, %v4598_v17  ;;  %v4664_v35 = vsel %vm234_vm14, %v4660_v30, %v4632_v38 }
0x23d2   :  { %v4659_v34 = vsel %vm229_vm12, %v4655_v53, %v4614_v12 }
0x23d3   :  { %v4663_v62 = vsel %vm234_vm14, %v4659_v34, %v4630_v26 }
0x23d4   :  { %v4626_v55 = vpop.permute.xlu0 %4625  ;;  %v4596_v14 = vpop.permute.xlu1 %4595 }
0x23d5   :  { %v4654_v23 = vsel %vm224_vm9, %v4563_v11, %v4596_v14  ;;  %v4661_v52 = vsel %vm234_vm14, %v4657_v9, %v4626_v55 }
0x23d6   :  { %v4658_v28 = vsel %vm229_vm12, %v4654_v23, %v4612_v56 }
0x23d8   :  { %v4642_v15 = vpop.permute.xlu0 %4641  ;;  %v4628_v25 = vpop.permute.xlu1 %4627 }
0x23d9   :  { %v4665_v48 = vsel %vm239_vm5, %v4661_v52, %v4642_v15  ;;  %v4662_v20 = vsel %vm234_vm14, %v4658_v28, %v4628_v25  ;;  %v7772_v15 = vld [vmem:[%s10870_s7 + $0x58] sm:$0xff]  }
0x23da   :  { %v4669_v29 = vmul.f32 %v4665_v48, %v8419_v49  ;;  %7581 = vmatprep.subr.bf16.mxu1 %v7772_v15 }
0x23db   :  { %7582 = vmatpush3.bf16.msra.mxu1 %v7772_v15 }
0x23dc   :  { %v4646_v57 = vpop.permute.xlu0 %4645  ;;  %v4644_v27 = vpop.permute.xlu1 %4643 }
0x23dd   :  { %v4666_v11 = vsel %vm239_vm5, %v4662_v20, %v4644_v27  ;;  %v4667_v32 = vsel %vm239_vm5, %v4663_v62, %v4646_v57 }
0x23de   :  { %v4670_v6 = vmul.f32 %v4666_v11, %v8426_v54  ;;  %v4671_v47 = vmul.f32 %v4667_v32, %v8434_v1 }
0x23e0   :  { %v4673_v36 = vpack.c.bf16 %v4670_v6, %v4669_v29  ;;  %v4648_v10 = vpop.permute.xlu1 %4647 }
0x23e1   :  { %v4668_v39 = vsel %vm239_vm5, %v4664_v35, %v4648_v10 }
0x23e2   :  { %v4672_v60 = vmul.f32 %v4668_v39, %v8443_v5  ;;  %7577 = vmatprep.mubr.msk.bf16.mxu0 %vm487_vm7, %v4673_v36 }
0x23e4   :  { %v4674_v3 = vpack.c.bf16 %v4672_v60, %v4671_v47  ;;  %v7773_v47 = vld [vmem:[%s10872_s9 + $0x10] sm:$0xff]   ;;  %v6990_v60 = vld [vmem:[%s10871_s8 + $0xb] ss:$0 sm:$0xff] }
0x23e5   :  { %7587 = vmatprep.subr.bf16.mxu1 %v7773_v47 }
0x23e6   :  { %7578 = vmatmul.mubr.msk.bf16.vlgmr.msra.gmra.mxu0 %vm487_vm7, %v4674_v3 }
0x24a6   :  { %v7579_v63 = vpop.f32.mrf.mxu0 }
0x24a7   :  { %v4773_v58 = vadd.f32 %v7579_v63, %v6975_v59 }
0x24a8   :  { %v4764_v18 = vpop.f32.mrf.mxu0 }
0x24a9   :  { %v6985_v50 = vmul.f32 -1.442695, %v4773_v58  ;;  %v4765_v12 = vadd.f32 %v6975_v59, %v4764_v18 }
0x24aa   :  { %v7580_v8 = vpop.f32.mrf.mxu0 }
0x24ab   :  { %v6983_v46 = vmul.f32 -1.442695, %v4765_v12  ;;  %v4776_v56 = vadd.f32 %v7580_v8, %v6975_v59  ;;  %8063 = vpow2.f32 %v6985_v50 }
0x24ac   :  { %v4767_v51 = vpop.f32.mrf.mxu0 }
0x24ad   :  { %8065 = vpow2.f32 %v6983_v46  ;;  %v6986_v31 = vmul.f32 -1.442695, %v4776_v56  ;;  %v4768_v26 = vadd.f32 %v6975_v59, %v4767_v51 }
0x24af   :  { %v6984_v38 = vmul.f32 -1.442695, %v4768_v26  ;;  %8067 = vpow2.f32 %v6986_v31 }
0x24b1   :  { %8069 = vpow2.f32 %v6984_v38 }
0x24b8   :  { %v8064_v17 = vpop.eup %8063 }
0x24b9   :  { %v4797_v7 = vadd.f32 1.0, %v8064_v17 }
0x24ba   :  { %v8066_v55 = vpop.eup %8065 }
0x24bb   :  { %v4795_v14 = vadd.f32 1.0, %v8066_v55 }
0x24bc   :  { %v8068_v53 = vpop.eup %8067 }
0x24bd   :  { %8071 = vrcp.f32 %v4795_v14  ;;  %v4798_v9 = vadd.f32 1.0, %v8068_v53 }
0x24be   :  { %v8070_v23 = vpop.eup %8069  ;;  %8073 = vrcp.f32 %v4797_v7 }
0x24bf   :  { %v4796_v25 = vadd.f32 1.0, %v8070_v23  ;;  %v6997_v23 = vld [vmem:[%s10873_s10 + $0x2] ss:$0 sm:$0xff] }
0x24c1   :  { %8075 = vrcp.f32 %v4796_v25 }
0x24c2   :  { %8077 = vrcp.f32 %v4798_v9 }
0x24c3   :  { %8079 = vtanh.f32 %v4765_v12 }
0x24c4   :  { %8081 = vtanh.f32 %v4768_v26 }
0x24c5   :  { %8083 = vtanh.f32 %v4773_v58 }
0x24c6   :  { %8085 = vtanh.f32 %v4776_v56 }
0x24ca   :  { %v8072_v52 = vpop.eup %8071 }
0x24cb   :  { %4811 = vrot.lane.b32.xlu0 %v8072_v52, %s8193_s16  ;;  %v8074_v34 = vpop.eup %8073 }
0x24ce   :  { %v8076_v48 = vpop.eup %8075 }
0x24cf   :  { %4813 = vrot.lane.b32.xlu1 %v8076_v48, %s8193_s16  ;;  %4815 = vrot.lane.b32.xlu0 %v8074_v34, %s8193_s16  ;;  %v8078_v28 = vpop.eup %8077 }
0x24d0   :  { %v8080_v20 = vpop.eup %8079 }
0x24d1   :  { %v8082_v57 = vpop.eup %8081 }
0x24d2   :  { %v8084_v6 = vpop.eup %8083 }
0x24d3   :  { %4817 = vrot.lane.b32.xlu1 %v8078_v28, %s8193_s16  ;;  %v8086_v32 = vpop.eup %8085 }
0x253d   :  { %v4812_v43 = vpop.permute.xlu0 %4811 }
0x253e   :  { %v4823_v11 = vmul.f32 %v8080_v20, %v4812_v43 }
0x2541   :  { %v4814_v27 = vpop.permute.xlu1 %4813  ;;  %v4816_v62 = vpop.permute.xlu0 %4815 }
0x2542   :  { %v4824_v29 = vmul.f32 %v8082_v57, %v4814_v27  ;;  %v4825_v36 = vmul.f32 %v8084_v6, %v4816_v62  ;;  %v4996_v27 = vmul.f32 %v8953_v61, %v8286_v13  ;;  %v4994_v62 = vmul.f32 %v8957_v0, %v8318_v33  ;;  %v7003_v0 = vld [vmem:[%s10867_s4 + $0x3] ss:$0 sm:$0xff] }
0x2543   :  { %v4995_v6 = vmul.f32 %v8959_v2, %v8291_v16 }
0x2544   :  { %v4827_v30 = vpack.c.bf16 %v4824_v29, %v4823_v11  ;;  %v4993_v11 = vmul.f32 %v8955_v19, %v8296_v22 }
0x2545   :  { %v4818_v35 = vpop.permute.xlu1 %4817 }
0x2546   :  { %v4826_v10 = vmul.f32 %v8086_v32, %v4818_v35  ;;  %7583 = vmatprep.mubr.msk.bf16.mxu1 %vm224_vm9, %v4827_v30 }
0x2548   :  { %v4828_v39 = vpack.c.bf16 %v4826_v10, %v4825_v36 }
0x254a   :  { %7584 = vmatmul.mubr.msk.bf16.vlgmr.msra.gmra.mxu1 %vm224_vm9, %v4828_v39 }
0x254b   :  { %7588 = vmatpush3.bf16.msra.mxu1 %v7773_v47 }
0x260a   :  { %v7585_v3 = vpop.f32.mrf.mxu1 }
0x260b   :  { %v4895_v59 = vadd.f32 %v7585_v3, %v6990_v60 }
0x260c   :  { %v4886_v63 = vpop.f32.mrf.mxu1 }
0x260d   :  { %v4887_v58 = vadd.f32 %v6990_v60, %v4886_v63  ;;  %v4903_v50 = vadd.f32 %v4895_v59, %v10039_v41 }
0x260e   :  { %v7586_v18 = vpop.f32.mrf.mxu1 }
0x260f   :  { %v4898_v12 = vadd.f32 %v7586_v18, %v6990_v60  ;;  %v4901_v46 = vadd.f32 %v4887_v58, %v10047_v44  ;;  %v4907_v31 = vmul.f32 %v4903_v50, %v8291_v16 }
0x2610   :  { %v4889_v8 = vpop.f32.mrf.mxu1 }
0x2611   :  { %v4904_v56 = vadd.f32 %v4898_v12, %v10055_v4  ;;  %v4890_v51 = vadd.f32 %v6990_v60, %v4889_v8  ;;  %v4905_v17 = vmul.f32 %v4901_v46, %v8296_v22  ;;  %v7001_v4 = vld [vmem:[%s10864_s3 + $0x6] sm:$0x3] }
0x2612   :  { %7688 = vmatprep.subr.msk.bf16.mxu0 %vm261_vm0, %v7001_v4  ;;  %v7774_v46 = vld [vmem:[%s10868_s5 + $0x200] sm:$0xff]  }
0x2613   :  { %v4908_v26 = vmul.f32 %v4904_v56, %v8286_v13  ;;  %v4902_v38 = vadd.f32 %v4890_v51, %v10063_v37  ;;  %v5020_v37 = vsel %vm261_vm0, %v7001_v4, 0  ;;  %7599 = vmatprep.subr.bf16.mxu1 %v7774_v46  ;;  %vm6607_vm0 = vcmask 64512  }
0x2614   :  { %7594 = vmatpush3.bf16.msra.mxu0 %v5020_v37 }
0x2615   :  { %v4910_v55 = vpack.c.bf16 %v4908_v26, %v4907_v31  ;;  %v4906_v14 = vmul.f32 %v4902_v38, %v8318_v33  ;;  %v7775_v26 = vld [vmem:[%s10868_s5 + $0x1f8] sm:$0xff]  }
0x2617   :  { %v4909_v7 = vpack.c.bf16 %v4906_v14, %v4905_v17  ;;  %4926 = vrot.lane.b32.xlu1 %v4910_v55, %s8193_s16 }
0x2619   :  { %4924 = vrot.lane.b32.xlu0 %v4909_v7, %s8193_s16 }
0x2689   :  { %v4927_v44 = vpop.permute.xlu1 %4926 }
0x268b   :  { %v4925_v41 = vpop.permute.xlu0 %4924 }
0x268c   :  { %7589 = vmatprep.mubr.msk.bf16.mxu1 %vm224_vm9, %v4925_v41  ;;  %v7776_v41 = vld [vmem:[%s10868_s5 + $0x1f0] sm:$0xff]  }
0x268d   :  { %7590 = vmatmul.mubr.msk.bf16.vlgmr.msra.gmra.mxu1 %vm224_vm9, %v4927_v44 }
0x268e   :  { %7600 = vmatpush3.bf16.msra.mxu1 %v7774_v46 }
0x268f   :  { %7601 = vmatprep.subr.bf16.mxu1 %v7775_v26 }
0x2692   :  { %7602 = vmatpush3.bf16.msra.mxu1 %v7775_v26 }
0x2693   :  { %7603 = vmatprep.subr.bf16.mxu1 %v7776_v41 }
0x2696   :  { %7604 = vmatpush3.bf16.msra.mxu1 %v7776_v41 }
0x274d   :  { %v7591_v53 = vpop.f32.mrf.mxu1 }
0x274e   :  { %v4983_v9 = vadd.f32 %v7591_v53, %v6997_v23 }
0x274f   :  { %v4974_v15 = vpop.f32.mrf.mxu1 }
0x2750   :  { %v4975_v25 = vadd.f32 %v6997_v23, %v4974_v15  ;;  %v4991_v57 = vmul.f32 %v4983_v9, %v8291_v16 }
0x2751   :  { %v7592_v52 = vpop.f32.mrf.mxu1 }
0x2752   :  { %v4986_v34 = vadd.f32 %v7592_v52, %v6997_v23  ;;  %v4989_v28 = vmul.f32 %v4975_v25, %v8296_v22  ;;  %v10223_v36 = vadd.f32 %v4995_v6, %v4991_v57  ;;  %v7778_v52 = vld [vmem:[%s10868_s5 + $0x1e0] sm:$0xff]  }
0x2753   :  { %v4977_v48 = vpop.f32.mrf.mxu1 }
0x2754   :  { %v4992_v43 = vmul.f32 %v4986_v34, %v8286_v13  ;;  %v4978_v20 = vadd.f32 %v6997_v23, %v4977_v48  ;;  %v10219_v32 = vadd.f32 %v4993_v11, %v4989_v28  ;;  %v7777_v23 = vld [vmem:[%s10868_s5 + $0x1e8] sm:$0xff]  }
0x2755   :  { %7605 = vmatprep.subr.bf16.mxu1 %v7777_v23 }
0x2756   :  { %v4990_v29 = vmul.f32 %v4978_v20, %v8318_v33  ;;  %v10217_v30 = vadd.f32 %v4996_v27, %v4992_v43  ;;  %7606 = vmatpush3.bf16.msra.mxu1 %v7777_v23 }
0x2757   :  { %7607 = vmatprep.subr.bf16.mxu1 %v7778_v52 }
0x2758   :  { %v10221_v35 = vadd.f32 %v4994_v62, %v4990_v29  ;;  %v5002_v19 = vpack.c.bf16 %v10217_v30, %v10223_v36 }
0x275a   :  { %v5001_v61 = vpack.c.bf16 %v10221_v35, %v10219_v32  ;;  %7608 = vmatpush3.bf16.msra.mxu1 %v7778_v52 }
0x275c   :  { %7595 = vmatprep.mubr.msk.bf16.mxu0 %vm254_vm1, %v5001_v61 }
0x275d   :  { %7596 = vmatmul.mubr.msk.bf16.vlgmr.msra.gmra.mxu0 %vm254_vm1, %v5002_v19 }
0x281d   :  { %v7597_v2 = vpop.f32.mrf.mxu0 }
0x281e   :  { %v5065_v10 = vadd.f32 %v7597_v2, %v7003_v0 }
0x281f   :  { %v5056_v39 = vpop.f32.mrf.mxu0 }
0x2820   :  { %v10235_v47 = vmul.f32 %v5065_v10, %v8291_v16  ;;  %v5057_v60 = vadd.f32 %v7003_v0, %v5056_v39 }
0x2821   :  { %v7598_v3 = vpop.f32.mrf.mxu0 }
0x2822   :  { %v10238_v59 = vmul.f32 %v5057_v60, %v8296_v22  ;;  %v5068_v63 = vadd.f32 %v7598_v3, %v7003_v0  ;;  %5131 = vrot.lane.b32.xlu0 %v10235_v47, %s8188_s2  ;;  %v5085_v38 = vrot.slane %v10235_v47, 7  ;;  %v5093_v17 = vrot.slane %v10235_v47, 1 }
0x2823   :  { %v5059_v58 = vpop.f32.mrf.mxu0  ;;  %v5101_v20 = vrot.slane %v10235_v47, 2 }
0x2824   :  { %v10243_v18 = vmul.f32 %v5068_v63, %v8286_v13  ;;  %v5060_v50 = vadd.f32 %v7003_v0, %v5059_v58  ;;  %v5083_v12 = vrot.slane %v10238_v59, 7  ;;  %v5091_v44 = vrot.slane %v10238_v59, 1 }
0x2825   :  { %v5099_v34 = vrot.slane %v10238_v59, 2  ;;  %v5075_v3 = vrot.slane %v10238_v59, 6 }
0x2826   :  { %5133 = vrot.lane.b32.xlu1 %v10243_v18, %s8188_s2  ;;  %5127 = vrot.lane.b32.xlu0 %v10238_v59, %s8188_s2  ;;  %v5086_v8 = vrot.slane %v10243_v18, 7  ;;  %v10255_v56 = vmul.f32 %v5060_v50, %v8318_v33  ;;  %v5094_v31 = vrot.slane %v10243_v18, 1  ;;  %v5102_v43 = vrot.slane %v10243_v18, 2 }
0x2827   :  { %v5078_v60 = vrot.slane %v10243_v18, 6 }
0x2828   :  { %v5090_v51 = vsel %vm331_vm2, %v5086_v8, %v5083_v12  ;;  %v5087_v55 = vsel %vm331_vm2, %v5085_v38, %v5086_v8  ;;  %v5095_v14 = vsel %vm340_vm3, %v5093_v17, %v5094_v31  ;;  %v5084_v7 = vrot.slane %v10255_v56, 7 }
0x2829   :  { %v5098_v4 = vsel %vm340_vm3, %v5094_v31, %v5091_v44  ;;  %v5092_v53 = vrot.slane %v10255_v56, 1  ;;  %v5100_v9 = vrot.slane %v10255_v56, 2  ;;  %v5103_v57 = vsel %vm349_vm4, %v5101_v20, %v5102_v43 }
0x282a   :  { %5129 = vrot.lane.b32.xlu1 %v10255_v56, %s8188_s2  ;;  %5111 = vrot.lane.b32.xlu0 %v5090_v51, %s8189_s22  ;;  %v5088_v37 = vsel %vm331_vm2, %v5084_v7, %v5085_v38  ;;  %v5089_v25 = vsel %vm331_vm2, %v5083_v12, %v5084_v7  ;;  %v5106_v11 = vsel %vm349_vm4, %v5102_v43, %v5099_v34  ;;  %v5076_v63 = vrot.slane %v10255_v56, 6 }
0x282b   :  { %v5097_v15 = vsel %vm340_vm3, %v5091_v44, %v5092_v53  ;;  %v5105_v48 = vsel %vm349_vm4, %v5099_v34, %v5100_v9  ;;  %v5096_v28 = vsel %vm340_vm3, %v5092_v53, %v5093_v17  ;;  %v5104_v27 = vsel %vm349_vm4, %v5100_v9, %v5101_v20 }
0x282c   :  { %v5082_v12 = vsel %vm322_vm10, %v5078_v60, %v5075_v3  ;;  %v5077_v8 = vrot.slane %v10235_v47, 6  ;;  %v5081_v31 = vsel %vm322_vm10, %v5075_v3, %v5076_v63 }
0x282e   :  { %5117 = vrot.lane.b32.xlu1 %v5087_v55, %s8189_s22  ;;  %5147 = vrot.lane.b32.xlu0 %v5095_v14, %s8190_s23  ;;  %v5080_v51 = vsel %vm322_vm10, %v5076_v63, %v5077_v8  ;;  %v5079_v41 = vsel %vm322_vm10, %v5077_v8, %v5078_v60 }
0x2832   :  { %5149 = vrot.lane.b32.xlu1 %v5098_v4, %s8190_s23  ;;  %5115 = vrot.lane.b32.xlu0 %v5088_v37, %s8189_s22 }
0x2836   :  { %5143 = vrot.lane.b32.xlu0 %v5097_v15, %s8190_s23  ;;  %5113 = vrot.lane.b32.xlu1 %v5089_v25, %s8189_s22 }
0x283a   :  { %5159 = vrot.lane.b32.xlu0 %v5105_v48, %s8191_s30  ;;  %5145 = vrot.lane.b32.xlu1 %v5096_v28, %s8190_s23 }
0x283e   :  { %5163 = vrot.lane.b32.xlu0 %v5103_v57, %s8191_s30  ;;  %5161 = vrot.lane.b32.xlu1 %v5104_v27, %s8191_s30 }
0x2842   :  { %5165 = vrot.lane.b32.xlu1 %v5106_v11, %s8191_s30 }
0x2894   :  { %v5132_v29 = vpop.permute.xlu0 %5131 }
0x2898   :  { %v5134_v62 = vpop.permute.xlu1 %5133  ;;  %v5128_v6 = vpop.permute.xlu0 %5127 }
0x289c   :  { %v5130_v61 = vpop.permute.xlu1 %5129  ;;  %v5112_v19 = vpop.permute.xlu0 %5111 }
0x289d   :  { %v5171_v46 = vsel %vm224_vm9, %v5082_v12, %v5112_v19 }
0x289e   :  { %v5175_v14 = vsel %vm229_vm12, %v5171_v46, %v5128_v6 }
0x28a0   :  { %v5118_v0 = vpop.permute.xlu1 %5117  ;;  %v5148_v2 = vpop.permute.xlu0 %5147 }
0x28a1   :  { %v5174_v53 = vsel %vm224_vm9, %v5079_v41, %v5118_v0 }
0x28a2   :  { %v5178_v28 = vsel %vm229_vm12, %v5174_v53, %v5134_v62  ;;  %v7017_v62 = vld [vmem:[%s10869_s6 + $0xc] ss:$0 sm:$0xff] }
0x28a4   :  { %v5150_v10 = vpop.permute.xlu1 %5149  ;;  %v5116_v39 = vpop.permute.xlu0 %5115 }
0x28a5   :  { %v5173_v26 = vsel %vm224_vm9, %v5080_v51, %v5116_v39  ;;  %v5182_v20 = vsel %vm234_vm14, %v5178_v28, %v5150_v10 }
0x28a6   :  { %v5177_v44 = vsel %vm229_vm12, %v5173_v26, %v5132_v29 }
0x28a7   :  { %v5181_v34 = vsel %vm234_vm14, %v5177_v44, %v5148_v2 }
0x28a8   :  { %v5144_v58 = vpop.permute.xlu0 %5143  ;;  %v5114_v50 = vpop.permute.xlu1 %5113 }
0x28a9   :  { %v5172_v38 = vsel %vm224_vm9, %v5081_v31, %v5114_v50  ;;  %v5179_v7 = vsel %vm234_vm14, %v5175_v14, %v5144_v58 }
0x28aa   :  { %v5176_v37 = vsel %vm229_vm12, %v5172_v38, %v5130_v61 }
0x28ac   :  { %v5160_v17 = vpop.permute.xlu0 %5159  ;;  %v5146_v55 = vpop.permute.xlu1 %5145 }
0x28ad   :  { %v5183_v4 = vsel %vm239_vm5, %v5179_v7, %v5160_v17  ;;  %v5180_v23 = vsel %vm234_vm14, %v5176_v37, %v5146_v55  ;;  %v7779_v55 = vld [vmem:[%s10870_s7 + $0x60] sm:$0xff]  }
0x28ae   :  { %v5187_v52 = vmul.f32 %v5183_v4, %v8419_v49  ;;  %7613 = vmatprep.subr.bf16.mxu0 %v7779_v55 }
0x28af   :  { %7614 = vmatpush3.bf16.msra.mxu0 %v7779_v55 }
0x28b0   :  { %v5164_v15 = vpop.permute.xlu0 %5163  ;;  %v5162_v25 = vpop.permute.xlu1 %5161 }
0x28b1   :  { %v5184_v9 = vsel %vm239_vm5, %v5180_v23, %v5162_v25  ;;  %v5185_v43 = vsel %vm239_vm5, %v5181_v34, %v5164_v15 }
0x28b2   :  { %v5188_v48 = vmul.f32 %v5184_v9, %v8426_v54  ;;  %v5189_v29 = vmul.f32 %v5185_v43, %v8434_v1 }
0x28b4   :  { %v5191_v57 = vpack.c.bf16 %v5188_v48, %v5187_v52  ;;  %v5166_v27 = vpop.permute.xlu1 %5165 }
0x28b5   :  { %v5186_v11 = vsel %vm239_vm5, %v5182_v20, %v5166_v27 }
0x28b6   :  { %v5190_v6 = vmul.f32 %v5186_v11, %v8443_v5  ;;  %7609 = vmatprep.mubr.msk.bf16.mxu1 %vm487_vm7, %v5191_v57 }
0x28b8   :  { %v5192_v61 = vpack.c.bf16 %v5190_v6, %v5189_v29  ;;  %v7032_v29 = vld [vmem:[%s10871_s8 + $0xc] ss:$0 sm:$0xff] }
0x28ba   :  { %7610 = vmatmul.mubr.msk.bf16.vlgmr.msra.gmra.mxu1 %vm487_vm7, %v5192_v61 }
0x297a   :  { %v7611_v19 = vpop.f32.mrf.mxu1 }
0x297b   :  { %v5291_v0 = vadd.f32 %v7611_v19, %v7017_v62 }
0x297c   :  { %v5282_v2 = vpop.f32.mrf.mxu1 }
0x297d   :  { %v7027_v10 = vmul.f32 -1.442695, %v5291_v0  ;;  %v5283_v39 = vadd.f32 %v7017_v62, %v5282_v2 }
0x297e   :  { %v7612_v60 = vpop.f32.mrf.mxu1 }
0x297f   :  { %v7025_v3 = vmul.f32 -1.442695, %v5283_v39  ;;  %v5294_v63 = vadd.f32 %v7612_v60, %v7017_v62  ;;  %8087 = vpow2.f32 %v7027_v10 }
0x2980   :  { %v5285_v58 = vpop.f32.mrf.mxu1 }
0x2981   :  { %8089 = vpow2.f32 %v7025_v3  ;;  %v7028_v50 = vmul.f32 -1.442695, %v5294_v63  ;;  %v5286_v12 = vadd.f32 %v7017_v62, %v5285_v58 }
0x2983   :  { %v7026_v8 = vmul.f32 -1.442695, %v5286_v12  ;;  %8091 = vpow2.f32 %v7028_v50 }
0x2985   :  { %8093 = vpow2.f32 %v7026_v8  ;;  %v7780_v8 = vld [vmem:[%s10868_s5 + $0x228] sm:$0xff]  }
0x2986   :  { %7619 = vmatprep.subr.bf16.mxu0 %v7780_v8 }
0x298c   :  { %v8088_v46 = vpop.eup %8087 }
0x298d   :  { %v5315_v26 = vadd.f32 1.0, %v8088_v46 }
0x298e   :  { %v8090_v51 = vpop.eup %8089 }
0x298f   :  { %v5313_v31 = vadd.f32 1.0, %v8090_v51 }
0x2990   :  { %v8092_v38 = vpop.eup %8091 }
0x2991   :  { %8095 = vrcp.f32 %v5313_v31  ;;  %v5316_v7 = vadd.f32 1.0, %v8092_v38  ;;  %v7781_v31 = vld [vmem:[%s10868_s5 + $0x220] sm:$0xff]  }
0x2992   :  { %v8094_v17 = vpop.eup %8093  ;;  %8097 = vrcp.f32 %v5315_v26 }
0x2993   :  { %v5314_v14 = vadd.f32 1.0, %v8094_v17 }
0x2995   :  { %8099 = vrcp.f32 %v5314_v14 }
0x2996   :  { %8101 = vrcp.f32 %v5316_v7  ;;  %v7782_v7 = vld [vmem:[%s10868_s5 + $0x218] sm:$0xff]  }
0x2997   :  { %8103 = vtanh.f32 %v5283_v39 }
0x2998   :  { %8105 = vtanh.f32 %v5286_v12 }
0x2999   :  { %8107 = vtanh.f32 %v5291_v0 }
0x299a   :  { %8109 = vtanh.f32 %v5294_v63 }
0x299e   :  { %v8096_v41 = vpop.eup %8095 }
0x299f   :  { %5329 = vrot.lane.b32.xlu0 %v8096_v41, %s8193_s16  ;;  %v8098_v44 = vpop.eup %8097 }
0x29a2   :  { %v8100_v4 = vpop.eup %8099 }
0x29a3   :  { %5331 = vrot.lane.b32.xlu1 %v8100_v4, %s8193_s16  ;;  %5333 = vrot.lane.b32.xlu0 %v8098_v44, %s8193_s16  ;;  %v8102_v37 = vpop.eup %8101 }
0x29a4   :  { %v8104_v23 = vpop.eup %8103 }
0x29a5   :  { %v8106_v15 = vpop.eup %8105 }
0x29a6   :  { %v8108_v48 = vpop.eup %8107 }
0x29a7   :  { %5335 = vrot.lane.b32.xlu1 %v8102_v37, %s8193_s16  ;;  %v8110_v43 = vpop.eup %8109 }
0x2a11   :  { %v5330_v53 = vpop.permute.xlu0 %5329 }
0x2a12   :  { %v5341_v9 = vmul.f32 %v8104_v23, %v5330_v53  ;;  %v7783_v53 = vld [vmem:[%s10868_s5 + $0x210] sm:$0xff]  }
0x2a15   :  { %v5332_v25 = vpop.permute.xlu1 %5331  ;;  %v5334_v34 = vpop.permute.xlu0 %5333 }
0x2a16   :  { %v5342_v52 = vmul.f32 %v8106_v15, %v5332_v25  ;;  %v5343_v57 = vmul.f32 %v8108_v48, %v5334_v34 }
0x2a18   :  { %v5345_v28 = vpack.c.bf16 %v5342_v52, %v5341_v9  ;;  %v7784_v9 = vld [vmem:[%s10868_s5 + $0x208] sm:$0xff]  }
0x2a19   :  { %v5336_v20 = vpop.permute.xlu1 %5335 }
0x2a1a   :  { %v5344_v27 = vmul.f32 %v8110_v43, %v5336_v20  ;;  %7615 = vmatprep.mubr.msk.bf16.mxu0 %vm224_vm9, %v5345_v28 }
0x2a1c   :  { %v5346_v11 = vpack.c.bf16 %v5344_v27, %v5343_v57 }
0x2a1e   :  { %7616 = vmatmul.mubr.msk.bf16.vlgmr.msra.gmra.mxu0 %vm224_vm9, %v5346_v11 }
0x2a1f   :  { %7620 = vmatpush3.bf16.msra.mxu0 %v7780_v8 }
0x2a20   :  { %7621 = vmatprep.subr.bf16.mxu0 %v7781_v31 }
0x2a23   :  { %7622 = vmatpush3.bf16.msra.mxu0 %v7781_v31 }
0x2a24   :  { %7623 = vmatprep.subr.bf16.mxu0 %v7782_v7 }
0x2a27   :  { %7624 = vmatpush3.bf16.msra.mxu0 %v7782_v7 }
0x2a28   :  { %7625 = vmatprep.subr.bf16.mxu0 %v7783_v53 }
0x2a2b   :  { %7626 = vmatpush3.bf16.msra.mxu0 %v7783_v53 }
0x2a2c   :  { %7627 = vmatprep.subr.bf16.mxu0 %v7784_v9 }
0x2a2f   :  { %7628 = vmatpush3.bf16.msra.mxu0 %v7784_v9 }
0x2ade   :  { %v7617_v6 = vpop.f32.mrf.mxu0 }
0x2adf   :  { %v10366_v61 = vadd.f32 %v7617_v6, %v7032_v29 }
0x2ae0   :  { %v5404_v62 = vpop.f32.mrf.mxu0 }
0x2ae1   :  { %v5421_v19 = vadd.f32 %v10366_v61, %v10235_v47  ;;  %v10370_v0 = vadd.f32 %v7032_v29, %v5404_v62 }
0x2ae2   :  { %v7618_v2 = vpop.f32.mrf.mxu0 }
0x2ae3   :  { %v10373_v10 = vmul.f32 %v5421_v19, %v8291_v16  ;;  %v5419_v39 = vadd.f32 %v10370_v0, %v10238_v59  ;;  %v10377_v60 = vadd.f32 %v7618_v2, %v7032_v29 }
0x2ae4   :  { %v5407_v3 = vpop.f32.mrf.mxu0 }
0x2ae5   :  { %v10380_v63 = vmul.f32 %v5419_v39, %v8296_v22  ;;  %v5422_v58 = vadd.f32 %v10377_v60, %v10243_v18  ;;  %v10384_v50 = vadd.f32 %v7032_v29, %v5407_v3  ;;  %5487 = vrot.lane.b32.xlu0 %v10373_v10, %s8188_s2  ;;  %v5441_v26 = vrot.slane %v10373_v10, 7 }
0x2ae6   :  { %v5449_v38 = vrot.slane %v10373_v10, 1  ;;  %v5457_v43 = vrot.slane %v10373_v10, 2  ;;  %v5433_v31 = vrot.slane %v10373_v10, 6 }
0x2ae7   :  { %v10389_v47 = vmul.f32 %v5422_v58, %v8286_v13  ;;  %v5420_v59 = vadd.f32 %v10384_v50, %v10255_v56  ;;  %v5439_v12 = vrot.slane %v10380_v63, 7  ;;  %v5447_v41 = vrot.slane %v10380_v63, 1 }
0x2ae8   :  { %v5455_v52 = vrot.slane %v10380_v63, 2 }
0x2ae9   :  { %5489 = vrot.lane.b32.xlu1 %v10389_v47, %s8188_s2  ;;  %5483 = vrot.lane.b32.xlu0 %v10380_v63, %s8188_s2  ;;  %v5442_v18 = vrot.slane %v10389_v47, 7  ;;  %v10403_v46 = vmul.f32 %v5420_v59, %v8318_v33  ;;  %v5450_v51 = vrot.slane %v10389_v47, 1  ;;  %v5458_v28 = vrot.slane %v10389_v47, 2 }
0x2aea   :  { %v5434_v59 = vrot.slane %v10389_v47, 6 }
0x2aeb   :  { %v5446_v56 = vsel %vm331_vm2, %v5442_v18, %v5439_v12  ;;  %v5443_v17 = vsel %vm331_vm2, %v5441_v26, %v5442_v18  ;;  %v5451_v55 = vsel %vm340_vm3, %v5449_v38, %v5450_v51  ;;  %v5440_v14 = vrot.slane %v10403_v46, 7 }
0x2aec   :  { %v5454_v44 = vsel %vm340_vm3, %v5450_v51, %v5447_v41  ;;  %v5448_v37 = vrot.slane %v10403_v46, 1  ;;  %v5456_v25 = vrot.slane %v10403_v46, 2  ;;  %v5459_v20 = vsel %vm349_vm4, %v5457_v43, %v5458_v28 }
0x2aed   :  { %5485 = vrot.lane.b32.xlu1 %v10403_v46, %s8188_s2  ;;  %5467 = vrot.lane.b32.xlu0 %v5446_v56, %s8189_s22  ;;  %v5444_v4 = vsel %vm331_vm2, %v5440_v14, %v5441_v26  ;;  %v5445_v15 = vsel %vm331_vm2, %v5439_v12, %v5440_v14  ;;  %v5462_v27 = vsel %vm349_vm4, %v5458_v28, %v5455_v52  ;;  %v5431_v12 = vrot.slane %v10380_v63, 6 }
0x2aee   :  { %v5453_v23 = vsel %vm340_vm3, %v5447_v41, %v5448_v37  ;;  %v5461_v34 = vsel %vm349_vm4, %v5455_v52, %v5456_v25  ;;  %v5452_v48 = vsel %vm340_vm3, %v5448_v37, %v5449_v38  ;;  %v5460_v57 = vsel %vm349_vm4, %v5456_v25, %v5457_v43 }
0x2aef   :  { %v5432_v18 = vrot.slane %v10403_v46, 6  ;;  %v5438_v51 = vsel %vm322_vm10, %v5434_v59, %v5431_v12  ;;  %v5435_v37 = vsel %vm322_vm10, %v5433_v31, %v5434_v59 }
0x2af1   :  { %5473 = vrot.lane.b32.xlu1 %v5443_v17, %s8189_s22  ;;  %5503 = vrot.lane.b32.xlu0 %v5451_v55, %s8190_s23  ;;  %v5436_v38 = vsel %vm322_vm10, %v5432_v18, %v5433_v31  ;;  %v5437_v17 = vsel %vm322_vm10, %v5431_v12, %v5432_v18 }
0x2af5   :  { %5505 = vrot.lane.b32.xlu1 %v5454_v44, %s8190_s23  ;;  %5471 = vrot.lane.b32.xlu0 %v5444_v4, %s8189_s22 }
0x2af9   :  { %5499 = vrot.lane.b32.xlu0 %v5453_v23, %s8190_s23  ;;  %5469 = vrot.lane.b32.xlu1 %v5445_v15, %s8189_s22 }
0x2afd   :  { %5515 = vrot.lane.b32.xlu0 %v5461_v34, %s8191_s30  ;;  %5501 = vrot.lane.b32.xlu1 %v5452_v48, %s8190_s23 }
0x2b01   :  { %5519 = vrot.lane.b32.xlu0 %v5459_v20, %s8191_s30  ;;  %5517 = vrot.lane.b32.xlu1 %v5460_v57, %s8191_s30 }
0x2b05   :  { %5521 = vrot.lane.b32.xlu1 %v5462_v27, %s8191_s30 }
0x2b57   :  { %v5488_v11 = vpop.permute.xlu0 %5487 }
0x2b5b   :  { %v5490_v29 = vpop.permute.xlu1 %5489  ;;  %v5484_v6 = vpop.permute.xlu0 %5483 }
0x2b5f   :  { %v5486_v62 = vpop.permute.xlu1 %5485  ;;  %v5468_v19 = vpop.permute.xlu0 %5467 }
0x2b60   :  { %v5527_v26 = vsel %vm224_vm9, %v5438_v51, %v5468_v19 }
0x2b61   :  { %v5531_v44 = vsel %vm229_vm12, %v5527_v26, %v5484_v6 }
0x2b63   :  { %v5474_v2 = vpop.permute.xlu1 %5473  ;;  %v5504_v39 = vpop.permute.xlu0 %5503 }
0x2b64   :  { %v5530_v25 = vsel %vm224_vm9, %v5435_v37, %v5474_v2 }
0x2b65   :  { %v5534_v57 = vsel %vm229_vm12, %v5530_v25, %v5490_v29  ;;  %v7047_v29 = vld [vmem:[%s10869_s6 + $0xd] ss:$0 sm:$0xff] }
0x2b67   :  { %v5506_v3 = vpop.permute.xlu1 %5505  ;;  %v5472_v58 = vpop.permute.xlu0 %5471 }
0x2b68   :  { %v5529_v55 = vsel %vm224_vm9, %v5436_v38, %v5472_v58 }
0x2b69   :  { %v5533_v53 = vsel %vm229_vm12, %v5529_v55, %v5488_v11  ;;  %v5538_v11 = vsel %vm234_vm14, %v5534_v57, %v5506_v3 }
0x2b6a   :  { %v5537_v43 = vsel %vm234_vm14, %v5533_v53, %v5504_v39  ;;  %v7785_v53 = vld [vmem:[%s10870_s7 + $0x68] sm:$0xff]  }
0x2b6b   :  { %v5500_v8 = vpop.permute.xlu0 %5499  ;;  %v5470_v56 = vpop.permute.xlu1 %5469  ;;  %7633 = vmatprep.subr.bf16.mxu1 %v7785_v53 }
0x2b6c   :  { %v5528_v14 = vsel %vm224_vm9, %v5437_v17, %v5470_v56  ;;  %v5535_v4 = vsel %vm234_vm14, %v5531_v44, %v5500_v8  ;;  %7634 = vmatpush3.bf16.msra.mxu1 %v7785_v53  ;;  %v7787_v53 = vld [vmem:[%s10868_s5 + $0x248] sm:$0xff]  }
0x2b6d   :  { %v5532_v15 = vsel %vm229_vm12, %v5528_v14, %v5486_v62 }
0x2b6f   :  { %v5516_v7 = vpop.permute.xlu0 %5515  ;;  %v5502_v41 = vpop.permute.xlu1 %5501 }
0x2b70   :  { %v5539_v23 = vsel %vm239_vm5, %v5535_v4, %v5516_v7  ;;  %v5536_v9 = vsel %vm234_vm14, %v5532_v15, %v5502_v41 }
0x2b71   :  { %v5543_v28 = vmul.f32 %v5539_v23, %v8419_v49 }
0x2b73   :  { %v5520_v52 = vpop.permute.xlu0 %5519  ;;  %v5518_v34 = vpop.permute.xlu1 %5517 }
0x2b74   :  { %v5540_v48 = vsel %vm239_vm5, %v5536_v9, %v5518_v34  ;;  %v5541_v27 = vsel %vm239_vm5, %v5537_v43, %v5520_v52 }
0x2b75   :  { %v5544_v20 = vmul.f32 %v5540_v48, %v8426_v54  ;;  %v5545_v2 = vmul.f32 %v5541_v27, %v8434_v1 }
0x2b77   :  { %v5547_v6 = vpack.c.bf16 %v5544_v20, %v5543_v28  ;;  %v5522_v62 = vpop.permute.xlu1 %5521 }
0x2b78   :  { %v5542_v19 = vsel %vm239_vm5, %v5538_v11, %v5522_v62 }
0x2b79   :  { %v5546_v58 = vmul.f32 %v5542_v19, %v8443_v5  ;;  %7629 = vmatprep.mubr.msk.bf16.mxu0 %vm487_vm7, %v5547_v6 }
0x2b7b   :  { %v5548_v59 = vpack.c.bf16 %v5546_v58, %v5545_v2 }
0x2b7d   :  { %7630 = vmatmul.mubr.msk.bf16.vlgmr.msra.gmra.mxu0 %vm487_vm7, %v5548_v59 }
0x2c3d   :  { %v7631_v39 = vpop.f32.mrf.mxu0 }
0x2c3e   :  { %v5647_v12 = vadd.f32 %v7631_v39, %v7047_v29  ;;  %v7062_v39 = vld [vmem:[%s10871_s8 + $0xd] ss:$0 sm:$0xff] }
0x2c3f   :  { %v5638_v3 = vpop.f32.mrf.mxu0 }
0x2c40   :  { %v7057_v18 = vmul.f32 -1.442695, %v5647_v12  ;;  %v5639_v8 = vadd.f32 %v7047_v29, %v5638_v3 }
0x2c41   :  { %v7632_v56 = vpop.f32.mrf.mxu0 }
0x2c42   :  { %v7055_v51 = vmul.f32 -1.442695, %v5639_v8  ;;  %v5650_v31 = vadd.f32 %v7632_v56, %v7047_v29  ;;  %8111 = vpow2.f32 %v7057_v18 }
0x2c43   :  { %v5641_v26 = vpop.f32.mrf.mxu0 }
0x2c44   :  { %8113 = vpow2.f32 %v7055_v51  ;;  %v7058_v38 = vmul.f32 -1.442695, %v5650_v31  ;;  %v5642_v17 = vadd.f32 %v7047_v29, %v5641_v26 }
0x2c46   :  { %v7056_v55 = vmul.f32 -1.442695, %v5642_v17  ;;  %8115 = vpow2.f32 %v7058_v38 }
0x2c48   :  { %8117 = vpow2.f32 %v7056_v55 }
0x2c4f   :  { %v8112_v14 = vpop.eup %8111 }
0x2c50   :  { %v5671_v44 = vadd.f32 1.0, %v8112_v14 }
0x2c51   :  { %v8114_v7 = vpop.eup %8113 }
0x2c52   :  { %v5669_v41 = vadd.f32 1.0, %v8114_v7 }
0x2c53   :  { %v8116_v4 = vpop.eup %8115 }
0x2c54   :  { %8119 = vrcp.f32 %v5669_v41  ;;  %v5672_v15 = vadd.f32 1.0, %v8116_v4 }
0x2c55   :  { %v8118_v37 = vpop.eup %8117  ;;  %8121 = vrcp.f32 %v5671_v44  ;;  %v7786_v44 = vld [vmem:[%s10868_s5 + $0x250] sm:$0xff]  }
0x2c56   :  { %v5670_v23 = vadd.f32 1.0, %v8118_v37  ;;  %7639 = vmatprep.subr.bf16.mxu1 %v7786_v44 }
0x2c58   :  { %8123 = vrcp.f32 %v5670_v23 }
0x2c59   :  { %8125 = vrcp.f32 %v5672_v15 }
0x2c5a   :  { %8127 = vtanh.f32 %v5639_v8 }
0x2c5b   :  { %8129 = vtanh.f32 %v5642_v17 }
0x2c5c   :  { %8131 = vtanh.f32 %v5647_v12 }
0x2c5d   :  { %8133 = vtanh.f32 %v5650_v31 }
0x2c61   :  { %v8120_v25 = vpop.eup %8119 }
0x2c62   :  { %5685 = vrot.lane.b32.xlu0 %v8120_v25, %s8193_s16  ;;  %v8122_v9 = vpop.eup %8121 }
0x2c65   :  { %v8124_v52 = vpop.eup %8123 }
0x2c66   :  { %5687 = vrot.lane.b32.xlu1 %v8124_v52, %s8193_s16  ;;  %5689 = vrot.lane.b32.xlu0 %v8122_v9, %s8193_s16  ;;  %v8126_v34 = vpop.eup %8125 }
0x2c67   :  { %v8128_v28 = vpop.eup %8127 }
0x2c68   :  { %v8130_v43 = vpop.eup %8129 }
0x2c69   :  { %v8132_v6 = vpop.eup %8131 }
0x2c6a   :  { %5691 = vrot.lane.b32.xlu1 %v8126_v34, %s8193_s16  ;;  %v8134_v19 = vpop.eup %8133  ;;  %v7788_v34 = vld [vmem:[%s10868_s5 + $0x240] sm:$0xff]  }
0x2cd4   :  { %v5686_v48 = vpop.permute.xlu0 %5685 }
0x2cd5   :  { %v5697_v57 = vmul.f32 %v8128_v28, %v5686_v48 }
0x2cd8   :  { %v5688_v20 = vpop.permute.xlu1 %5687  ;;  %v5690_v11 = vpop.permute.xlu0 %5689 }
0x2cd9   :  { %v5698_v27 = vmul.f32 %v8130_v43, %v5688_v20  ;;  %v5699_v58 = vmul.f32 %v8132_v6, %v5690_v11 }
0x2cdb   :  { %v5701_v62 = vpack.c.bf16 %v5698_v27, %v5697_v57  ;;  %v7789_v57 = vld [vmem:[%s10868_s5 + $0x238] sm:$0xff]  }
0x2cdc   :  { %v5692_v2 = vpop.permute.xlu1 %5691 }
0x2cdd   :  { %v5700_v59 = vmul.f32 %v8134_v19, %v5692_v2  ;;  %7635 = vmatprep.mubr.msk.bf16.mxu1 %vm224_vm9, %v5701_v62  ;;  %v7790_v62 = vld [vmem:[%s10868_s5 + $0x230] sm:$0xff]  }
0x2cdf   :  { %v5702_v29 = vpack.c.bf16 %v5700_v59, %v5699_v58 }
0x2ce1   :  { %7636 = vmatmul.mubr.msk.bf16.vlgmr.msra.gmra.mxu1 %vm224_vm9, %v5702_v29 }
0x2ce2   :  { %7640 = vmatpush3.bf16.msra.mxu1 %v7786_v44 }
0x2ce3   :  { %7641 = vmatprep.subr.bf16.mxu1 %v7787_v53 }
0x2ce6   :  { %7642 = vmatpush3.bf16.msra.mxu1 %v7787_v53 }
0x2ce7   :  { %7643 = vmatprep.subr.bf16.mxu1 %v7788_v34 }
0x2cea   :  { %7644 = vmatpush3.bf16.msra.mxu1 %v7788_v34 }
0x2ceb   :  { %7645 = vmatprep.subr.bf16.mxu1 %v7789_v57 }
0x2cee   :  { %7646 = vmatpush3.bf16.msra.mxu1 %v7789_v57 }
0x2cef   :  { %7647 = vmatprep.subr.bf16.mxu1 %v7790_v62 }
0x2cf2   :  { %7648 = vmatpush3.bf16.msra.mxu1 %v7790_v62 }
0x2da1   :  { %v7637_v12 = vpop.f32.mrf.mxu1 }
0x2da2   :  { %v10514_v3 = vadd.f32 %v7637_v12, %v7062_v39 }
0x2da3   :  { %v5760_v18 = vpop.f32.mrf.mxu1 }
0x2da4   :  { %v5777_v8 = vadd.f32 %v10514_v3, %v10373_v10  ;;  %v10518_v56 = vadd.f32 %v7062_v39, %v5760_v18 }
0x2da5   :  { %v7638_v51 = vpop.f32.mrf.mxu1 }
0x2da6   :  { %v10521_v31 = vmul.f32 %v5777_v8, %v8291_v16  ;;  %v5775_v26 = vadd.f32 %v10518_v56, %v10380_v63  ;;  %v10525_v38 = vadd.f32 %v7638_v51, %v7062_v39 }
0x2da7   :  { %v5763_v17 = vpop.f32.mrf.mxu1 }
0x2da8   :  { %v10528_v55 = vmul.f32 %v5775_v26, %v8296_v22  ;;  %v5778_v14 = vadd.f32 %v10525_v38, %v10389_v47  ;;  %v10532_v7 = vadd.f32 %v7062_v39, %v5763_v17  ;;  %5843 = vrot.lane.b32.xlu0 %v10521_v31, %s8188_s2  ;;  %v5797_v23 = vrot.slane %v10521_v31, 7 }
0x2da9   :  { %v5805_v15 = vrot.slane %v10521_v31, 1  ;;  %v5813_v29 = vrot.slane %v10521_v31, 2 }
0x2daa   :  { %v10537_v10 = vmul.f32 %v5778_v14, %v8286_v13  ;;  %v5776_v63 = vadd.f32 %v10532_v7, %v10403_v46  ;;  %v5795_v41 = vrot.slane %v10528_v55, 7  ;;  %v5803_v48 = vrot.slane %v10528_v55, 1 }
0x2dab   :  { %v5811_v19 = vrot.slane %v10528_v55, 2 }
0x2dac   :  { %5845 = vrot.lane.b32.xlu1 %v10537_v10, %s8188_s2  ;;  %5839 = vrot.lane.b32.xlu0 %v10528_v55, %s8188_s2  ;;  %v5798_v47 = vrot.slane %v10537_v10, 7  ;;  %v10551_v4 = vmul.f32 %v5776_v63, %v8318_v33  ;;  %v5806_v37 = vrot.slane %v10537_v10, 1  ;;  %v5814_v59 = vrot.slane %v10537_v10, 2 }
0x2dae   :  { %v5802_v46 = vsel %vm331_vm2, %v5798_v47, %v5795_v41  ;;  %v5799_v25 = vsel %vm331_vm2, %v5797_v23, %v5798_v47  ;;  %v5807_v9 = vsel %vm340_vm3, %v5805_v15, %v5806_v37  ;;  %v5796_v52 = vrot.slane %v10551_v4, 7 }
0x2daf   :  { %v5810_v28 = vsel %vm340_vm3, %v5806_v37, %v5803_v48  ;;  %v5804_v20 = vrot.slane %v10551_v4, 1  ;;  %v5812_v6 = vrot.slane %v10551_v4, 2  ;;  %v5815_v39 = vsel %vm349_vm4, %v5813_v29, %v5814_v59 }
0x2db0   :  { %5841 = vrot.lane.b32.xlu1 %v10551_v4, %s8188_s2  ;;  %5823 = vrot.lane.b32.xlu0 %v5802_v46, %s8189_s22  ;;  %v5800_v43 = vsel %vm331_vm2, %v5796_v52, %v5797_v23  ;;  %v5801_v11 = vsel %vm331_vm2, %v5795_v41, %v5796_v52  ;;  %v5818_v18 = vsel %vm349_vm4, %v5814_v59, %v5811_v19  ;;  %v5790_v46 = vrot.slane %v10537_v10, 6 }
0x2db1   :  { %v5809_v27 = vsel %vm340_vm3, %v5803_v48, %v5804_v20  ;;  %v5817_v2 = vsel %vm349_vm4, %v5811_v19, %v5812_v6  ;;  %v5808_v58 = vsel %vm340_vm3, %v5804_v20, %v5805_v15  ;;  %v5816_v12 = vsel %vm349_vm4, %v5812_v6, %v5813_v29 }
0x2db2   :  { %v5787_v37 = vrot.slane %v10528_v55, 6  ;;  %v5788_v53 = vrot.slane %v10551_v4, 6 }
0x2db4   :  { %5829 = vrot.lane.b32.xlu1 %v5799_v25, %s8189_s22  ;;  %5859 = vrot.lane.b32.xlu0 %v5807_v9, %s8190_s23  ;;  %v5794_v25 = vsel %vm322_vm10, %v5790_v46, %v5787_v37  ;;  %v5789_v9 = vrot.slane %v10521_v31, 6  ;;  %v5793_v48 = vsel %vm322_vm10, %v5787_v37, %v5788_v53 }
0x2db6   :  { %v5792_v34 = vsel %vm322_vm10, %v5788_v53, %v5789_v9  ;;  %v5791_v6 = vsel %vm322_vm10, %v5789_v9, %v5790_v46 }
0x2db8   :  { %5861 = vrot.lane.b32.xlu1 %v5810_v28, %s8190_s23  ;;  %5827 = vrot.lane.b32.xlu0 %v5800_v43, %s8189_s22 }
0x2dbc   :  { %5855 = vrot.lane.b32.xlu0 %v5809_v27, %s8190_s23  ;;  %5825 = vrot.lane.b32.xlu1 %v5801_v11, %s8189_s22 }
0x2dc0   :  { %5871 = vrot.lane.b32.xlu0 %v5817_v2, %s8191_s30  ;;  %5857 = vrot.lane.b32.xlu1 %v5808_v58, %s8190_s23 }
0x2dc4   :  { %5875 = vrot.lane.b32.xlu0 %v5815_v39, %s8191_s30  ;;  %5873 = vrot.lane.b32.xlu1 %v5816_v12, %s8191_s30 }
0x2dc8   :  { %5877 = vrot.lane.b32.xlu1 %v5818_v18, %s8191_s30 }
0x2e1a   :  { %v5844_v8 = vpop.permute.xlu0 %5843 }
0x2e1e   :  { %v5846_v51 = vpop.permute.xlu1 %5845  ;;  %v5840_v26 = vpop.permute.xlu0 %5839 }
0x2e22   :  { %v5842_v17 = vpop.permute.xlu1 %5841  ;;  %v5824_v14 = vpop.permute.xlu0 %5823 }
0x2e23   :  { %v5883_v52 = vsel %vm224_vm9, %v5794_v25, %v5824_v14 }
0x2e24   :  { %v5887_v27 = vsel %vm229_vm12, %v5883_v52, %v5840_v26 }
0x2e26   :  { %v5830_v63 = vpop.permute.xlu1 %5829  ;;  %v5860_v41 = vpop.permute.xlu0 %5859 }
0x2e27   :  { %v5886_v58 = vsel %vm224_vm9, %v5791_v6, %v5830_v63 }
0x2e2a   :  { %v5862_v47 = vpop.permute.xlu1 %5861  ;;  %v5828_v44 = vpop.permute.xlu0 %5827 }
0x2e2b   :  { %v5885_v28 = vsel %vm224_vm9, %v5792_v34, %v5828_v44 }
0x2e2c   :  { %v5889_v62 = vsel %vm229_vm12, %v5885_v28, %v5844_v8  ;;  %v5890_v8 = vsel %vm229_vm12, %v5886_v58, %v5846_v51  ;;  %v7077_v51 = vld [vmem:[%s10869_s6 + $0xe] ss:$0 sm:$0xff] }
0x2e2d   :  { %v5893_v26 = vsel %vm234_vm14, %v5889_v62, %v5860_v41 }
0x2e2e   :  { %v5856_v23 = vpop.permute.xlu0 %5855  ;;  %v5826_v15 = vpop.permute.xlu1 %5825 }
0x2e2f   :  { %v5884_v43 = vsel %vm224_vm9, %v5793_v48, %v5826_v15  ;;  %v5891_v11 = vsel %vm234_vm14, %v5887_v27, %v5856_v23 }
0x2e30   :  { %v5888_v2 = vsel %vm229_vm12, %v5884_v43, %v5842_v17  ;;  %v5894_v17 = vsel %vm234_vm14, %v5890_v8, %v5862_v47 }
0x2e32   :  { %v5872_v20 = vpop.permute.xlu0 %5871  ;;  %v5858_v57 = vpop.permute.xlu1 %5857 }
0x2e33   :  { %v5895_v19 = vsel %vm239_vm5, %v5891_v11, %v5872_v20  ;;  %v5892_v59 = vsel %vm234_vm14, %v5888_v2, %v5858_v57 }
0x2e34   :  { %v5899_v18 = vmul.f32 %v5895_v19, %v8419_v49 }
0x2e36   :  { %v5876_v29 = vpop.permute.xlu0 %5875  ;;  %v5874_v39 = vpop.permute.xlu1 %5873 }
0x2e37   :  { %v5896_v12 = vsel %vm239_vm5, %v5892_v59, %v5874_v39  ;;  %v5897_v44 = vsel %vm239_vm5, %v5893_v26, %v5876_v29  ;;  %v7791_v59 = vld [vmem:[%s10870_s7 + $0x70] sm:$0xff]  }
0x2e38   :  { %v5900_v14 = vmul.f32 %v5896_v12, %v8426_v54  ;;  %v5901_v53 = vmul.f32 %v5897_v44, %v8434_v1  ;;  %7653 = vmatprep.subr.bf16.mxu0 %v7791_v59 }
0x2e39   :  { %7654 = vmatpush3.bf16.msra.mxu0 %v7791_v59 }
0x2e3a   :  { %v5903_v46 = vpack.c.bf16 %v5900_v14, %v5899_v18  ;;  %v5878_v63 = vpop.permute.xlu1 %5877 }
0x2e3b   :  { %v5898_v37 = vsel %vm239_vm5, %v5894_v17, %v5878_v63 }
0x2e3c   :  { %v5902_v23 = vmul.f32 %v5898_v37, %v8443_v5  ;;  %7649 = vmatprep.mubr.msk.bf16.mxu1 %vm487_vm7, %v5903_v46 }
0x2e3e   :  { %v5904_v15 = vpack.c.bf16 %v5902_v23, %v5901_v53 }
0x2e40   :  { %7650 = vmatmul.mubr.msk.bf16.vlgmr.msra.gmra.mxu1 %vm487_vm7, %v5904_v15 }
0x2f00   :  { %v7651_v41 = vpop.f32.mrf.mxu1 }
0x2f01   :  { %v6003_v25 = vadd.f32 %v7651_v41, %v7077_v51 }
0x2f02   :  { %v5994_v47 = vpop.f32.mrf.mxu1 }
0x2f03   :  { %v7087_v9 = vmul.f32 -1.442695, %v6003_v25  ;;  %v5995_v52 = vadd.f32 %v7077_v51, %v5994_v47 }
0x2f04   :  { %v7652_v34 = vpop.f32.mrf.mxu1 }
0x2f05   :  { %v7085_v48 = vmul.f32 -1.442695, %v5995_v52  ;;  %v6006_v28 = vadd.f32 %v7652_v34, %v7077_v51  ;;  %8135 = vpow2.f32 %v7087_v9 }
0x2f06   :  { %v5997_v43 = vpop.f32.mrf.mxu1 }
0x2f07   :  { %8137 = vpow2.f32 %v7085_v48  ;;  %v7088_v20 = vmul.f32 -1.442695, %v6006_v28  ;;  %v5998_v57 = vadd.f32 %v7077_v51, %v5997_v43  ;;  %v5785_v48 = vadd.f32 %v10514_v3, %v10366_v61 }
0x2f09   :  { %v7086_v27 = vmul.f32 -1.442695, %v5998_v57  ;;  %8139 = vpow2.f32 %v7088_v20  ;;  %v5783_v20 = vadd.f32 %v10518_v56, %v10370_v0  ;;  %v5784_v0 = vadd.f32 %v10532_v7, %v10384_v50 }
0x2f0b   :  { %8141 = vpow2.f32 %v7086_v27 }
0x2f12   :  { %v8136_v11 = vpop.eup %8135 }
0x2f13   :  { %v6027_v19 = vadd.f32 1.0, %v8136_v11 }
0x2f14   :  { %v8138_v6 = vpop.eup %8137 }
0x2f15   :  { %v6025_v62 = vadd.f32 1.0, %v8138_v6  ;;  %v5786_v6 = vadd.f32 %v10525_v38, %v10377_v60 }
0x2f16   :  { %v8140_v2 = vpop.eup %8139 }
0x2f17   :  { %8143 = vrcp.f32 %v6025_v62  ;;  %v6028_v39 = vadd.f32 1.0, %v8140_v2 }
0x2f18   :  { %v8142_v58 = vpop.eup %8141  ;;  %8145 = vrcp.f32 %v6027_v19 }
0x2f19   :  { %v6026_v29 = vadd.f32 1.0, %v8142_v58 }
0x2f1b   :  { %8147 = vrcp.f32 %v6026_v29 }
0x2f1c   :  { %8149 = vrcp.f32 %v6028_v39  ;;  %v7792_v39 = vld [vmem:[%s10868_s5 + $0x278] sm:$0xff]  }
0x2f1d   :  { %8151 = vtanh.f32 %v5995_v52  ;;  %7659 = vmatprep.subr.bf16.mxu0 %v7792_v39 }
0x2f1e   :  { %8153 = vtanh.f32 %v5998_v57 }
0x2f1f   :  { %8155 = vtanh.f32 %v6003_v25  ;;  %v7092_v25 = vld [vmem:[%s10871_s8 + $0xe] ss:$0 sm:$0xff] }
0x2f20   :  { %8157 = vtanh.f32 %v6006_v28 }
0x2f24   :  { %v8144_v12 = vpop.eup %8143 }
0x2f25   :  { %6041 = vrot.lane.b32.xlu0 %v8144_v12, %s8193_s16  ;;  %v8146_v18 = vpop.eup %8145 }
0x2f28   :  { %v8148_v26 = vpop.eup %8147 }
0x2f29   :  { %6043 = vrot.lane.b32.xlu1 %v8148_v26, %s8193_s16  ;;  %6045 = vrot.lane.b32.xlu0 %v8146_v18, %s8193_s16  ;;  %v8150_v14 = vpop.eup %8149 }
0x2f2a   :  { %v8152_v44 = vpop.eup %8151 }
0x2f2b   :  { %v8154_v17 = vpop.eup %8153 }
0x2f2c   :  { %v8156_v23 = vpop.eup %8155 }
0x2f2d   :  { %6047 = vrot.lane.b32.xlu1 %v8150_v14, %s8193_s16  ;;  %v8158_v51 = vpop.eup %8157 }
0x2f97   :  { %v6042_v8 = vpop.permute.xlu0 %6041 }
0x2f98   :  { %v6053_v63 = vmul.f32 %v8152_v44, %v6042_v8  ;;  %v7793_v8 = vld [vmem:[%s10868_s5 + $0x270] sm:$0xff]  }
0x2f9b   :  { %v6044_v46 = vpop.permute.xlu1 %6043  ;;  %v6046_v53 = vpop.permute.xlu0 %6045 }
0x2f9c   :  { %v6054_v37 = vmul.f32 %v8154_v17, %v6044_v46  ;;  %v6055_v47 = vmul.f32 %v8156_v23, %v6046_v53 }
0x2f9e   :  { %v6057_v15 = vpack.c.bf16 %v6054_v37, %v6053_v63 }
0x2f9f   :  { %v6048_v41 = vpop.permute.xlu1 %6047 }
0x2fa0   :  { %v6056_v9 = vmul.f32 %v8158_v51, %v6048_v41  ;;  %7655 = vmatprep.mubr.msk.bf16.mxu0 %vm224_vm9, %v6057_v15 }
0x2fa2   :  { %v6058_v34 = vpack.c.bf16 %v6056_v9, %v6055_v47  ;;  %v7794_v47 = vld [vmem:[%s10868_s5 + $0x268] sm:$0xff]  }
0x2fa4   :  { %7656 = vmatmul.mubr.msk.bf16.vlgmr.msra.gmra.mxu0 %vm224_vm9, %v6058_v34 }
0x2fa5   :  { %7660 = vmatpush3.bf16.msra.mxu0 %v7792_v39 }
0x2fa6   :  { %7661 = vmatprep.subr.bf16.mxu0 %v7793_v8 }
0x2fa9   :  { %7662 = vmatpush3.bf16.msra.mxu0 %v7793_v8 }
0x2faa   :  { %7663 = vmatprep.subr.bf16.mxu0 %v7794_v47 }
0x2fad   :  { %7664 = vmatpush3.bf16.msra.mxu0 %v7794_v47 }
0x3064   :  { %v7657_v52 = vpop.f32.mrf.mxu0 }
0x3065   :  { %v6125_v28 = vadd.f32 %v7657_v52, %v7092_v25 }
0x3066   :  { %v6116_v43 = vpop.f32.mrf.mxu0 }
0x3067   :  { %v6133_v57 = vadd.f32 %v6125_v28, %v10521_v31  ;;  %v10667_v27 = vadd.f32 %v6125_v28, %v5785_v48  ;;  %v6117_v11 = vadd.f32 %v7092_v25, %v6116_v43  ;;  %v7795_v48 = vld [vmem:[%s10868_s5 + $0x260] sm:$0xff]  }
0x3068   :  { %v7658_v62 = vpop.f32.mrf.mxu0  ;;  %7665 = vmatprep.subr.bf16.mxu0 %v7795_v48 }
0x3069   :  { %v10672_v19 = vmul.f32 %v6133_v57, %v8291_v16  ;;  %v6131_v2 = vadd.f32 %v6117_v11, %v10528_v55  ;;  %v10675_v61 = vadd.f32 %v6117_v11, %v5783_v20  ;;  %v6128_v3 = vadd.f32 %v7658_v62, %v7092_v25  ;;  %7666 = vmatpush3.bf16.msra.mxu0 %v7795_v48  ;;  %v7796_v57 = vld [vmem:[%s10868_s5 + $0x258] sm:$0xff]  }
0x306a   :  { %v6119_v56 = vpop.f32.mrf.mxu0  ;;  %7667 = vmatprep.subr.bf16.mxu0 %v7796_v57 }
0x306b   :  { %v10680_v31 = vmul.f32 %v6131_v2, %v8296_v22  ;;  %v6134_v58 = vadd.f32 %v6128_v3, %v10537_v10  ;;  %v10683_v59 = vadd.f32 %v6128_v3, %v5786_v6  ;;  %v6120_v60 = vadd.f32 %v7092_v25, %v6119_v56  ;;  %6199 = vrot.lane.b32.xlu0 %v10672_v19, %s8188_s2 }
0x306c   :  { %v6145_v26 = vrot.slane %v10672_v19, 6  ;;  %v6153_v63 = vrot.slane %v10672_v19, 7  ;;  %v6161_v37 = vrot.slane %v10672_v19, 1  ;;  %v6169_v3 = vrot.slane %v10672_v19, 2 }
0x306d   :  { %v10688_v38 = vmul.f32 %v6134_v58, %v8286_v13  ;;  %v6132_v55 = vadd.f32 %v6120_v60, %v10551_v4  ;;  %v10691_v29 = vadd.f32 %v6120_v60, %v5784_v0  ;;  %v6151_v7 = vrot.slane %v10680_v31, 7  ;;  %7668 = vmatpush3.bf16.msra.mxu0 %v7796_v57 }
0x306e   :  { %v6143_v18 = vrot.slane %v10680_v31, 6  ;;  %v6159_v9 = vrot.slane %v10680_v31, 1  ;;  %v6167_v11 = vrot.slane %v10680_v31, 2 }
0x306f   :  { %v6136_v50 = vmul.f32 %v6132_v55, %v8318_v33  ;;  %6201 = vrot.lane.b32.xlu1 %v10688_v38, %s8188_s2  ;;  %6195 = vrot.lane.b32.xlu0 %v10680_v31, %s8188_s2  ;;  %v6154_v10 = vrot.slane %v10688_v38, 7  ;;  %v6146_v4 = vrot.slane %v10688_v38, 6  ;;  %v6162_v14 = vrot.slane %v10688_v38, 1 }
0x3070   :  { %v6170_v2 = vrot.slane %v10688_v38, 2 }
0x3071   :  { %v6158_v12 = vsel %vm331_vm2, %v6154_v10, %v6151_v7  ;;  %v6150_v44 = vsel %vm322_vm10, %v6146_v4, %v6143_v18  ;;  %v10718_v17 = vsel %vm322_vm10, %v6145_v26, %v6146_v4  ;;  %v6144_v46 = vrot.slane %v6136_v50, 6 }
0x3072   :  { %v6155_v15 = vsel %vm331_vm2, %v6153_v63, %v6154_v10  ;;  %v6163_v51 = vsel %vm340_vm3, %v6161_v37, %v6162_v14  ;;  %v6152_v41 = vrot.slane %v6136_v50, 7  ;;  %v6166_v34 = vsel %vm340_vm3, %v6162_v14, %v6159_v9 }
0x3073   :  { %6197 = vrot.lane.b32.xlu1 %v6136_v50, %s8188_s2  ;;  %6179 = vrot.lane.b32.xlu0 %v6158_v12, %s8189_s22  ;;  %v6148_v53 = vsel %vm322_vm10, %v6144_v46, %v6145_v26  ;;  %v6149_v23 = vsel %vm322_vm10, %v6143_v18, %v6144_v46  ;;  %v6160_v52 = vrot.slane %v6136_v50, 1  ;;  %v6168_v20 = vrot.slane %v6136_v50, 2 }
0x3074   :  { %v6156_v25 = vsel %vm331_vm2, %v6152_v41, %v6153_v63  ;;  %v6157_v43 = vsel %vm331_vm2, %v6151_v7, %v6152_v41  ;;  %v6171_v0 = vsel %vm349_vm4, %v6169_v3, %v6170_v2  ;;  %v6174_v31 = vsel %vm349_vm4, %v6170_v2, %v6167_v11 }
0x3075   :  { %v6165_v28 = vsel %vm340_vm3, %v6159_v9, %v6160_v52  ;;  %v6173_v6 = vsel %vm349_vm4, %v6167_v11, %v6168_v20  ;;  %v6164_v62 = vsel %vm340_vm3, %v6160_v52, %v6161_v37  ;;  %v6172_v56 = vsel %vm349_vm4, %v6168_v20, %v6169_v3 }
0x3077   :  { %6185 = vrot.lane.b32.xlu1 %v6155_v15, %s8189_s22  ;;  %6215 = vrot.lane.b32.xlu0 %v6163_v51, %s8190_s23 }
0x307b   :  { %6217 = vrot.lane.b32.xlu1 %v6166_v34, %s8190_s23  ;;  %6183 = vrot.lane.b32.xlu0 %v6156_v25, %s8189_s22 }
0x307f   :  { %6211 = vrot.lane.b32.xlu0 %v6165_v28, %s8190_s23  ;;  %6181 = vrot.lane.b32.xlu1 %v6157_v43, %s8189_s22 }
0x3083   :  { %6227 = vrot.lane.b32.xlu0 %v6173_v6, %s8191_s30  ;;  %6213 = vrot.lane.b32.xlu1 %v6164_v62, %s8190_s23 }
0x3087   :  { %6231 = vrot.lane.b32.xlu0 %v6171_v0, %s8191_s30  ;;  %6229 = vrot.lane.b32.xlu1 %v6172_v56, %s8191_s30 }
0x308b   :  { %6233 = vrot.lane.b32.xlu1 %v6174_v31, %s8191_s30 }
0x30dd   :  { %v6200_v58 = vpop.permute.xlu0 %6199 }
0x30e1   :  { %v6202_v60 = vpop.permute.xlu1 %6201  ;;  %v6196_v38 = vpop.permute.xlu0 %6195 }
0x30e5   :  { %v6198_v55 = vpop.permute.xlu1 %6197  ;;  %v6180_v19 = vpop.permute.xlu0 %6179 }
0x30e6   :  { %v6239_v18 = vsel %vm224_vm9, %v6150_v44, %v6180_v19 }
0x30e7   :  { %v6243_v46 = vsel %vm229_vm12, %v6239_v18, %v6196_v38 }
0x30e9   :  { %v6186_v50 = vpop.permute.xlu1 %6185  ;;  %v6216_v7 = vpop.permute.xlu0 %6215 }
0x30ea   :  { %v6242_v41 = vsel %vm224_vm9, %v10718_v17, %v6186_v50 }
0x30eb   :  { %v6246_v52 = vsel %vm229_vm12, %v6242_v41, %v6202_v60 }
0x30ed   :  { %v6218_v10 = vpop.permute.xlu1 %6217  ;;  %v6184_v39 = vpop.permute.xlu0 %6183 }
0x30ee   :  { %v6241_v26 = vsel %vm224_vm9, %v6148_v53, %v6184_v39  ;;  %v6250_v28 = vsel %vm234_vm14, %v6246_v52, %v6218_v10 }
0x30ef   :  { %v6245_v37 = vsel %vm229_vm12, %v6241_v26, %v6200_v58 }
0x30f0   :  { %v6249_v34 = vsel %vm234_vm14, %v6245_v37, %v6216_v7 }
0x30f1   :  { %v6212_v4 = vpop.permute.xlu0 %6211  ;;  %v6182_v12 = vpop.permute.xlu1 %6181 }
0x30f2   :  { %v6240_v24 = vsel %vm224_vm9, %v6149_v23, %v6182_v12  ;;  %v6247_v63 = vsel %vm234_vm14, %v6243_v46, %v6212_v4  ;;  %v7797_v4 = vld [vmem:[%s10870_s7 + $0x78] sm:$0xff]  }
0x30f3   :  { %v6244_v51 = vsel %vm229_vm12, %v6240_v24, %v6198_v55  ;;  %7673 = vmatprep.subr.bf16.mxu1 %v7797_v4 }
0x30f4   :  { %7674 = vmatpush3.bf16.msra.mxu1 %v7797_v4 }
0x30f5   :  { %v6228_v14 = vpop.permute.xlu0 %6227  ;;  %v6214_v8 = vpop.permute.xlu1 %6213 }
0x30f6   :  { %v6251_v15 = vsel %vm239_vm5, %v6247_v63, %v6228_v14  ;;  %v6248_v44 = vsel %vm234_vm14, %v6244_v51, %v6214_v8 }
0x30f7   :  { %v6255_v9 = vmul.f32 %v6251_v15, %v8419_v49 }
0x30f9   :  { %v6232_v53 = vpop.permute.xlu0 %6231  ;;  %v6230_v47 = vpop.permute.xlu1 %6229 }
0x30fa   :  { %v6252_v23 = vsel %vm239_vm5, %v6248_v44, %v6230_v47  ;;  %v6253_v48 = vsel %vm239_vm5, %v6249_v34, %v6232_v53 }
0x30fb   :  { %v6256_v25 = vmul.f32 %v6252_v23, %v8426_v54  ;;  %v6257_v57 = vmul.f32 %v6253_v48, %v8434_v1  ;;  %v7107_v54 = vld [vmem:[%s10869_s6 + $0xf] ss:$0 sm:$0xff]  ;;  %v7798_v48 = vld [vmem:[%s10872_s9 + $0x18] sm:$0xff]  }
0x30fc   :  { %7679 = vmatprep.subr.bf16.mxu1 %v7798_v48 }
0x30fd   :  { %v6259_v43 = vpack.c.bf16 %v6256_v25, %v6255_v9  ;;  %v6234_v17 = vpop.permute.xlu1 %6233 }
0x30fe   :  { %v6254_v20 = vsel %vm239_vm5, %v6250_v28, %v6234_v17  ;;  %v7122_v28 = vld [vmem:[%s10871_s8 + $0xf] ss:$0 sm:$0xff]  ;;  %s8194_s8 = smov 4  }
0x30ff   :  { %v6258_v11 = vmul.f32 %v6254_v20, %v8443_v5  ;;  %7669 = vmatprep.mubr.msk.bf16.mxu0 %vm487_vm7, %v6259_v43 }
0x3101   :  { %v6260_v49 = vpack.c.bf16 %v6258_v11, %v6257_v57 }
0x3103   :  { %7670 = vmatmul.mubr.msk.bf16.vlgmr.msra.gmra.mxu0 %vm487_vm7, %v6260_v49 }
0x31c3   :  { %v7671_v6 = vpop.f32.mrf.mxu0 }
0x31c4   :  { %v6359_v62 = vadd.f32 %v7671_v6, %v7107_v54 }
0x31c5   :  { %v6350_v2 = vpop.f32.mrf.mxu0 }
0x31c6   :  { %v7117_v3 = vmul.f32 -1.442695, %v6359_v62  ;;  %v6351_v0 = vadd.f32 %v7107_v54, %v6350_v2 }
0x31c7   :  { %v7672_v56 = vpop.f32.mrf.mxu0 }
0x31c8   :  { %v7115_v31 = vmul.f32 -1.442695, %v6351_v0  ;;  %v6362_v58 = vadd.f32 %v7672_v56, %v7107_v54  ;;  %8159 = vpow2.f32 %v7117_v3 }
0x31c9   :  { %v6353_v1 = vpop.f32.mrf.mxu0 }
0x31ca   :  { %8161 = vpow2.f32 %v7115_v31  ;;  %v7118_v5 = vmul.f32 -1.442695, %v6362_v58  ;;  %v6354_v60 = vadd.f32 %v7107_v54, %v6353_v1 }
0x31cc   :  { %v7116_v38 = vmul.f32 -1.442695, %v6354_v60  ;;  %8163 = vpow2.f32 %v7118_v5 }
0x31ce   :  { %8165 = vpow2.f32 %v7116_v38 }
0x31d5   :  { %v8160_v55 = vpop.eup %8159 }
0x31d6   :  { %v6383_v7 = vadd.f32 1.0, %v8160_v55 }
0x31d7   :  { %v8162_v19 = vpop.eup %8161 }
0x31d8   :  { %v6381_v50 = vadd.f32 1.0, %v8162_v19 }
0x31d9   :  { %v8164_v10 = vpop.eup %8163 }
0x31da   :  { %8167 = vrcp.f32 %v6381_v50  ;;  %v6384_v18 = vadd.f32 1.0, %v8164_v10  ;;  %v6579_v50 = vmul.f32 %v9591_v21, %v8296_v22 }
0x31db   :  { %v8166_v39 = vpop.eup %8165  ;;  %8169 = vrcp.f32 %v6383_v7 }
0x31dc   :  { %v6382_v12 = vadd.f32 1.0, %v8166_v39 }
0x31de   :  { %8171 = vrcp.f32 %v6382_v12 }
0x31df   :  { %8173 = vrcp.f32 %v6384_v18  ;;  %v6582_v18 = vmul.f32 %v9589_v42, %v8286_v13  ;;  %v6580_v42 = vmul.f32 %v9593_v40, %v8318_v33 }
0x31e0   :  { %8175 = vtanh.f32 %v6351_v0 }
0x31e1   :  { %8177 = vtanh.f32 %v6354_v60 }
0x31e2   :  { %8179 = vtanh.f32 %v6359_v62 }
0x31e3   :  { %8181 = vtanh.f32 %v6362_v58 }
0x31e7   :  { %v8168_v26 = vpop.eup %8167 }
0x31e8   :  { %6397 = vrot.lane.b32.xlu0 %v8168_v26, %s8193_s16  ;;  %v8170_v24 = vpop.eup %8169 }
0x31eb   :  { %v8172_v14 = vpop.eup %8171 }
0x31ec   :  { %6399 = vrot.lane.b32.xlu1 %v8172_v14, %s8193_s16  ;;  %6401 = vrot.lane.b32.xlu0 %v8170_v24, %s8193_s16  ;;  %v8174_v8 = vpop.eup %8173 }
0x31ed   :  { %v8176_v63 = vpop.eup %8175 }
0x31ee   :  { %v8178_v37 = vpop.eup %8177 }
0x31ef   :  { %v8180_v53 = vpop.eup %8179 }
0x31f0   :  { %6403 = vrot.lane.b32.xlu1 %v8174_v8, %s8193_s16  ;;  %v8182_v23 = vpop.eup %8181 }
0x325a   :  { %v6398_v46 = vpop.permute.xlu0 %6397 }
0x325b   :  { %v6409_v51 = vmul.f32 %v8176_v63, %v6398_v46 }
0x325e   :  { %v6400_v15 = vpop.permute.xlu1 %6399  ;;  %v6402_v44 = vpop.permute.xlu0 %6401 }
0x325f   :  { %v6410_v41 = vmul.f32 %v8178_v37, %v6400_v15  ;;  %v6411_v34 = vmul.f32 %v8180_v53, %v6402_v44 }
0x3261   :  { %v6413_v47 = vpack.c.bf16 %v6410_v41, %v6409_v51 }
0x3262   :  { %v6404_v9 = vpop.permute.xlu1 %6403 }
0x3263   :  { %v6412_v25 = vmul.f32 %v8182_v23, %v6404_v9  ;;  %7675 = vmatprep.mubr.msk.bf16.mxu1 %vm224_vm9, %v6413_v47 }
0x3265   :  { %v6414_v52 = vpack.c.bf16 %v6412_v25, %v6411_v34 }
0x3267   :  { %7676 = vmatmul.mubr.msk.bf16.vlgmr.msra.gmra.mxu1 %vm224_vm9, %v6414_v52 }
0x3268   :  { %7680 = vmatpush3.bf16.msra.mxu1 %v7798_v48 }
0x3327   :  { %v7677_v43 = vpop.f32.mrf.mxu1 }
0x3328   :  { %v6481_v17 = vadd.f32 %v7677_v43, %v7122_v28 }
0x3329   :  { %v6472_v20 = vpop.f32.mrf.mxu1 }
0x332a   :  { %v6473_v57 = vadd.f32 %v7122_v28, %v6472_v20  ;;  %v6489_v49 = vadd.f32 %v6481_v17, %v10667_v27 }
0x332b   :  { %v7678_v11 = vpop.f32.mrf.mxu1 }
0x332c   :  { %v6484_v54 = vadd.f32 %v7678_v11, %v7122_v28  ;;  %v6487_v62 = vadd.f32 %v6473_v57, %v10675_v61  ;;  %v6493_v0 = vmul.f32 %v6489_v49, %v8291_v16 }
0x332d   :  { %v6475_v6 = vpop.f32.mrf.mxu1 }
0x332e   :  { %v6490_v2 = vadd.f32 %v6484_v54, %v10683_v59  ;;  %v6476_v3 = vadd.f32 %v7122_v28, %v6475_v6  ;;  %v6491_v58 = vmul.f32 %v6487_v62, %v8296_v22  ;;  %v7129_v59 = vld [vmem:[%s10873_s10 + $0x3] ss:$0 sm:$0xff] }
0x3330   :  { %v6494_v56 = vmul.f32 %v6490_v2, %v8286_v13  ;;  %v6488_v31 = vadd.f32 %v6476_v3, %v10691_v29 }
0x3332   :  { %v6496_v1 = vpack.c.bf16 %v6494_v56, %v6493_v0  ;;  %v6492_v5 = vmul.f32 %v6488_v31, %v8318_v33 }
0x3334   :  { %v6495_v60 = vpack.c.bf16 %v6492_v5, %v6491_v58  ;;  %6512 = vrot.lane.b32.xlu1 %v6496_v1, %s8193_s16 }
0x3336   :  { %6510 = vrot.lane.b32.xlu0 %v6495_v60, %s8193_s16 }
0x3338   :  { %6593 = vrot.lane.b32.xlu1 %v10221_v35, %s8194_s8 }
0x333a   :  { %6591 = vrot.lane.b32.xlu0 %v10219_v32, %s8194_s8 }
0x333c   :  { %6597 = vrot.lane.b32.xlu1 %v10217_v30, %s8194_s8  ;;  %v6581_v30 = vmul.f32 %v9595_v45, %v8291_v16 }
0x333e   :  { %6595 = vrot.lane.b32.xlu0 %v10223_v36, %s8194_s8 }
0x33a6   :  { %v6513_v61 = vpop.permute.xlu1 %6512 }
0x33a8   :  { %v6511_v27 = vpop.permute.xlu0 %6510 }
0x33a9   :  { %7681 = vmatprep.mubr.msk.bf16.mxu1 %vm224_vm9, %v6511_v27 }
0x33aa   :  { %7682 = vmatmul.mubr.msk.bf16.vlgmr.msra.gmra.mxu1 %vm224_vm9, %v6513_v61  ;;  %v6594_v19 = vpop.permute.xlu1 %6593 }
0x33ac   :  { %v6592_v29 = vpop.permute.xlu0 %6591 }
0x33ae   :  { %v6598_v46 = vpop.permute.xlu1 %6597 }
0x33b0   :  { %v6596_v12 = vpop.permute.xlu0 %6595 }
0x346a   :  { %v7683_v38 = vpop.f32.mrf.mxu1 }
0x346b   :  { %v6569_v55 = vadd.f32 %v7683_v38, %v7129_v59 }
0x346c   :  { %v6560_v35 = vpop.f32.mrf.mxu1 }
0x346d   :  { %v6577_v32 = vmul.f32 %v6569_v55, %v8291_v16  ;;  %v6561_v36 = vadd.f32 %v7129_v59, %v6560_v35 }
0x346e   :  { %v7684_v7 = vpop.f32.mrf.mxu1 }
0x346f   :  { %v6585_v10 = vadd.f32 %v6581_v30, %v6577_v32  ;;  %v6575_v39 = vmul.f32 %v6561_v36, %v8296_v22  ;;  %v6572_v4 = vadd.f32 %v7684_v7, %v7129_v59 }
0x3470   :  { %v6563_v26 = vpop.f32.mrf.mxu1 }
0x3471   :  { %v6605_v24 = vsel %vm254_vm1, %v6585_v10, %v6596_v12  ;;  %v6583_v14 = vadd.f32 %v6579_v50, %v6575_v39  ;;  %v6578_v16 = vmul.f32 %v6572_v4, %v8286_v13  ;;  %v6564_v45 = vadd.f32 %v7129_v59, %v6563_v26 }
0x3472   :  { %6610 = vst.msk [vmem:[%s10875_s11 + $0x10] sm:$0xff] %vm6607_vm0, %v6605_v24 }
0x3473   :  { %v6603_v21 = vsel %vm254_vm1, %v6583_v14, %v6592_v29  ;;  %v6586_v22 = vadd.f32 %v6582_v18, %v6578_v16  ;;  %v6576_v8 = vmul.f32 %v6564_v45, %v8318_v33 }
0x3474   :  { %6608 = vst.msk [vmem:[%s10875_s11] sm:$0xff] %vm6607_vm0, %v6603_v21 }
0x3475   :  { %v6606_v13 = vsel %vm254_vm1, %v6586_v22, %v6598_v46  ;;  %v6584_v63 = vadd.f32 %v6580_v42, %v6576_v8 }
0x3476   :  { %6611 = vst.msk [vmem:[%s10875_s11 + $0x18] sm:$0xff] %vm6607_vm0, %v6606_v13 }
0x3477   :  { %v6604_v37 = vsel %vm254_vm1, %v6584_v63, %v6594_v19 }
0x3478   :  { %6609 = vst.msk [vmem:[%s10875_s11 + $0x8] sm:$0xff] %vm6607_vm0, %v6604_v37 }

</bundles_post_ra>
